<compile_context>
chip_gen: v6e
topology: v6e:2x2x1
jax: 0.10.0
libtpu: 0.0.40
codegen_flags: <defaults>
</compile_context>

<pallas_src>
import numpy as np

import jax
import jax.numpy as jnp
from jax.experimental import pallas as pl
from jax.experimental.pallas import tpu as pltpu


# ----------------------------------------------------------------------------
# Pallas kernels
# ----------------------------------------------------------------------------
def _make_conv_block_kernel(kd, kh, Ho, Hrows, Dp, k_out, border):
    """Fused Conv3d(3x3x3,pad=1)+BN(folded)+MaxPool3d(2)+ReLU for one batch
    element (grid=(N,)).  Static config is closed over (demo sizes)."""
    d_off = 1 if border else 0

    def kernel(x_ref, wt_ref, sh_ref, sw_ref, shift_ref, out_ref):
        # x_ref    : (Dpad, Hpad, Kp)        zero-padded bf16 input, (W,Cin) on lanes
        # wt_ref   : (kd*kh*Kp, W*Cout)      banded bf16 weights, BN scale folded in
        # sh_ref   : (2*Hrows, Ho)           stacked even/odd H-pool 0/1 selection
        # sw_ref   : (W*Cout, 2*k_out)       stacked even/odd W-pool 0/1 selection
        # shift_ref: (Hrows, k_out)          BN shift, zero on all border rows/lanes
        # out_ref  : (Dout, Hrows, k_out)    bf16, lane-dense, next-block layout
        if border:
            zero_slab = jnp.zeros((Hrows, k_out), out_ref.dtype)
            out_ref[0] = zero_slab          # depth border slabs of next block's pad
            out_ref[Dp + 1] = zero_slab

        for dp in range(Dp):                # pooled-depth loop, fully unrolled
            # Assemble the merged-tap LHS: two pooled-depth candidates stacked
            # along M, the 9 (od, oh) taps concatenated along the K (lane) axis.
            slabs = []
            for d_local in range(2):
                taps = [x_ref[2 * dp + d_local + od, oh:oh + Ho, :]
                        for od in range(kd) for oh in range(kh)]
                slabs.append(jnp.concatenate(taps, axis=-1))      # (Ho, kd*kh*Kp)
            lhs = jnp.concatenate(slabs, axis=0)                  # (2*Ho, kd*kh*Kp)

            # ONE MXU contraction for the whole conv at this pooled depth.
            conv = jnp.dot(lhs, wt_ref[...],
                           preferred_element_type=jnp.float32)    # (2*Ho, W*Cout)
            # depth pair max (first half vs second half of M)
            pooled_d = jnp.maximum(conv[:Ho], conv[Ho:]).astype(jnp.bfloat16)

            # H pool: one stacked selection matmul + max of halves.
            h2 = jnp.dot(sh_ref[...], pooled_d,
                         preferred_element_type=jnp.float32)      # (2*Hrows, W*Cout)
            mh = jnp.maximum(h2[:Hrows], h2[Hrows:]).astype(jnp.bfloat16)

            # W pool: one stacked selection matmul + max of lane halves.
            w2 = jnp.dot(mh, sw_ref[...],
                         preferred_element_type=jnp.float32)      # (Hrows, 2*k_out)
            mw = jnp.maximum(w2[:, :k_out], w2[:, k_out:])        # (Hrows, k_out)

            # BN shift (commutes with max-pool) + ReLU; borders stay exactly 0.
            out_ref[dp + d_off] = jnp.maximum(
                mw + shift_ref[...], 0.0).astype(out_ref.dtype)

    return kernel


def _head_kernel(x_ref, w3_ref, shift3_ref, seg_ref, hm_ref, b_ref, out_ref):
    # Fused: 1x1x1 conv + BN + ReLU + AvgPool3d([D,H,W]) + Dropout(eval) +
    #        Flatten + Linear + sigmoid.  Single invocation (no grid).
    # x_ref  : (N*D2*H2, 128)   bf16 block-2 output, lanes = (w, cin3), 80 real
    # w3_ref : (128, W2*Cout3)  bf16 block-diagonal 1x1 conv weight, BN scale folded
    # seg_ref: (N, N*D2*H2)     f32 per-batch segment-sum 0/1 matrix
    # hm_ref : (W2*Cout3, ncls) f32 fc weight tiled over W2, pre-divided by D*H*W
    # out_ref: (N, ncls)        whole output written once
    y = jnp.dot(x_ref[...], w3_ref[...],
                preferred_element_type=jnp.float32)               # (N*D2*H2, 160)
    y = jnp.maximum(y + shift3_ref[...], 0.0)                     # BN shift + ReLU
    u = jnp.dot(seg_ref[...], y, preferred_element_type=jnp.float32)   # (N, 160)
    logits = jnp.dot(u, hm_ref[...],
                     preferred_element_type=jnp.float32) + b_ref[...]
    # TODO(synk): nn.Dropout(0.5) is identity in eval mode; training-mode
    # stochastic masking is intentionally not implemented.
    out_ref[...] = 1.0 / (1.0 + jnp.exp(-logits))                 # sigmoid


# ----------------------------------------------------------------------------
# Wrappers
# ----------------------------------------------------------------------------
def conv_bn_pool_relu_block(x, bp):
    """x: (N, Dpad, Hpad, Kp) bf16 in fused-lane padded layout ->
    (N, Dout, Hrows, 128) bf16 (block 1 emits block 2's padded layout)."""
    N = x.shape[0]
    kernel = _make_conv_block_kernel(**bp["cfg"])
    in_block = bp["in_block"]
    out_block = bp["out_shape"]
    return pl.pallas_call(
        kernel,
        out_shape=jax.ShapeDtypeStruct((N,) + out_block, jnp.bfloat16),
        grid=(N,),
        in_specs=[
            pl.BlockSpec((None,) + in_block, lambda n: (n, 0, 0, 0)),
            pl.BlockSpec(bp["wt"].shape, lambda n: (0, 0)),
            pl.BlockSpec(bp["sh"].shape, lambda n: (0, 0)),
            pl.BlockSpec(bp["sw"].shape, lambda n: (0, 0)),
            pl.BlockSpec(bp["shift_t"].shape, lambda n: (0, 0)),
        ],
        out_specs=pl.BlockSpec((None,) + out_block, lambda n: (n, 0, 0, 0)),
        compiler_params=pltpu.CompilerParams(
            dimension_semantics=("parallel",),       # batch -> both TCs on v7x
            vmem_limit_bytes=32 * 1024 * 1024),
    )(x, bp["wt"], bp["sh"], bp["sw"], bp["shift_t"])


def fused_conv1x1_head(x, hp):
    """x: (N, D2, H2, 128) bf16 -> (N, num_classes) f32."""
    N = x.shape[0]
    D2, H2, W2 = hp["dims"]
    feat = x.reshape(N * D2 * H2, x.shape[-1])       # leading-dim collapse: free
    seg = jnp.repeat(jnp.eye(N, dtype=jnp.float32), D2 * H2, axis=1)  # (N, N*D2*H2)
    ncls = hp["head_mat"].shape[1]
    return pl.pallas_call(
        _head_kernel,
        out_shape=jax.ShapeDtypeStruct((N, ncls), jnp.float32),
    )(feat, hp["w3big"], hp["shift3_t"], seg, hp["head_mat"], hp["fcb"])


def _prepare_block1_input(x_ncdhw, kp_lanes):
    """NCDHW -> zero-padded NDH(W*C) bf16 with lane dim rounded to kp_lanes."""
    x = jnp.transpose(x_ncdhw, (0, 2, 3, 4, 1))      # -> NDHWC
    N, D, H, W, C = x.shape
    xp = jnp.pad(x, ((0, 0), (1, 1), (1, 1), (1, 1), (0, 0)))
    xp = xp.reshape(N, D + 2, H + 2, (W + 2) * C)
    pad_l = kp_lanes - (W + 2) * C
    if pad_l > 0:
        xp = jnp.pad(xp, ((0, 0), (0, 0), (0, 0), (0, pad_l)))
    return xp.astype(jnp.bfloat16)


# ----------------------------------------------------------------------------
# Parameter construction (deterministic synthetic weights; BN folded)
# ----------------------------------------------------------------------------
def _fold_bn(conv_b, gamma, beta, mean, var, eps=1e-5):
    scale = gamma / jnp.sqrt(var + eps)
    shift = beta + (conv_b - mean) * scale
    return scale, shift


def init_params(key, channels=(1, 8, 16, 32), num_classes=3):
    keys = jax.random.split(key, 32)
    ki = iter(range(32))
    blocks = []
    specs = [
        (channels[0], channels[1], 3, 1),   # conv3x3x3 pad1 + BN + pool + relu
        (channels[1], channels[2], 3, 1),   # conv3x3x3 pad1 + BN + pool + relu
        (channels[2], channels[3], 1, 0),   # conv1x1x1      + BN +        relu
    ]
    for cin, cout, k, pad in specs:
        fan_in = cin * k * k * k
        w = jax.random.normal(keys[next(ki)], (k, k, k, cin, cout),
                              jnp.float32) / jnp.sqrt(jnp.float32(fan_in))
        b = 0.1 * jax.random.normal(keys[next(ki)], (cout,), jnp.float32)
        gamma = jax.random.uniform(keys[next(ki)], (cout,), jnp.float32, 0.8, 1.2)
        beta = 0.1 * jax.random.normal(keys[next(ki)], (cout,), jnp.float32)
        mean = 0.1 * jax.random.normal(keys[next(ki)], (cout,), jnp.float32)
        var = jax.random.uniform(keys[next(ki)], (cout,), jnp.float32, 0.5, 1.5)
        scale, shift = _fold_bn(b, gamma, beta, mean, var)
        blocks.append(dict(w=w, scale=scale, shift=shift, pad=pad))
    c_last = channels[-1]
    fc_w = jax.random.normal(keys[next(ki)], (c_last, num_classes),
                             jnp.float32) / jnp.sqrt(jnp.float32(c_last))
    fc_b = 0.1 * jax.random.normal(keys[next(ki)], (num_classes,), jnp.float32)
    return dict(blocks=blocks, fc_w=fc_w, fc_b=fc_b)


def _round_up(x, m):
    return ((x + m - 1) // m) * m


def _build_conv_block(w, scale, shift, D, H, W, kp_in, k_out, border_out):
    """Banded bf16 conv weight (all 9 taps merged on K), stacked even/odd
    pooling selections and a 2-D BN-shift tile with zeroed borders."""
    kd, kh, kw, Cin, Cout = w.shape
    Dp, Hp, Wp = D // 2, H // 2, W // 2
    Ho, WoC = H, W * Cout

    # Folding BN scale into the conv weights before max-pool requires scale>0.
    assert np.all(scale > 0.0), "BN scale must be > 0 to fold before max-pool"

    wsc = (w * scale[None, None, None, None, :]).astype(np.float32)
    wt = np.zeros((kd * kh * kp_in, WoC), np.float32)
    for od in range(kd):
        for oh in range(kh):
            base = (od * kh + oh) * kp_in
            for ow in range(kw):
                for wc in range(W):
                    wt[base + (wc + ow) * Cin: base + (wc + ow + 1) * Cin,
                       wc * Cout:(wc + 1) * Cout] = wsc[od, oh, ow]

    # H pool: stacked even/odd selection rows (border rows stay all-zero so the
    # stored slab already carries the next block's H zero-padding).
    Hrows = Hp + 2 if border_out else Hp
    hoff = 1 if border_out else 0
    sh = np.zeros((2 * Hrows, Ho), np.float32)
    sh[hoff + np.arange(Hp), 2 * np.arange(Hp)] = 1.0
    sh[Hrows + hoff + np.arange(Hp), 2 * np.arange(Hp) + 1] = 1.0

    # W pool: stacked even/odd selections into lane-dense k_out lanes, with the
    # next block's W zero-padding (Cout lanes) baked in when border_out.
    lane_off = Cout if border_out else 0
    sw = np.zeros((WoC, 2 * k_out), np.float32)
    shift_t = np.zeros((Hrows, k_out), np.float32)
    for wp in range(Wp):
        for co in range(Cout):
            sw[(2 * wp) * Cout + co, lane_off + wp * Cout + co] = 1.0
            sw[(2 * wp + 1) * Cout + co, k_out + lane_off + wp * Cout + co] = 1.0
        shift_t[hoff:hoff + Hp,
                lane_off + wp * Cout: lane_off + (wp + 1) * Cout] = shift

    out_shape = (Dp + 2, Hrows, k_out) if border_out else (Dp, Hrows, k_out)
    return dict(
        wt=jnp.asarray(wt, jnp.bfloat16),
        sh=jnp.asarray(sh, jnp.bfloat16),
        sw=jnp.asarray(sw, jnp.bfloat16),
        shift_t=jnp.asarray(shift_t, jnp.float32),
        in_block=(D + 2, H + 2, kp_in),
        out_shape=out_shape,
        cfg=dict(kd=kd, kh=kh, Ho=Ho, Hrows=Hrows, Dp=Dp,
                 k_out=k_out, border=border_out),
    )


def build_kernel_params(params, spatial):
    """Host-side, once: fold BN, build banded/selection matrices and the fused
    head matrices (all MXU operands stored as bf16, epilogue constants f32)."""
    K_OUT = 128                                  # lane-dense activation width
    D, H, W = spatial
    kp = {"blocks": []}

    # Block 1: input prepared by host -> lane dim round_up((W+2)*Cin, 8).
    b0 = params["blocks"][0]
    kp_in0 = _round_up((W + 2) * 1, 8)
    kp["in_lanes"] = kp_in0
    kp["blocks"].append(_build_conv_block(
        np.asarray(b0["w"], np.float32), np.asarray(b0["scale"], np.float32),
        np.asarray(b0["shift"], np.float32), D, H, W, kp_in0, K_OUT, True))
    D, H, W = D // 2, H // 2, W // 2

    # Block 2: input IS block 1's output (padded layout, K_OUT lanes).
    b1 = params["blocks"][1]
    kp["blocks"].append(_build_conv_block(
        np.asarray(b1["w"], np.float32), np.asarray(b1["scale"], np.float32),
        np.asarray(b1["shift"], np.float32), D, H, W, K_OUT, K_OUT, False))
    D2, H2, W2 = D // 2, H // 2, W // 2

    # Block 3 (1x1x1 conv + BN + ReLU) fused with avgpool + fc + sigmoid.
    blk3 = params["blocks"][2]
    w3 = np.asarray(blk3["w"], np.float32)[0, 0, 0]          # (Cin3, Cout3)
    scale3 = np.asarray(blk3["scale"], np.float32)
    shift3 = np.asarray(blk3["shift"], np.float32)
    Cin3, Cout3 = w3.shape
    w3sc = w3 * scale3[None, :]
    w3big = np.zeros((K_OUT, W2 * Cout3), np.float32)        # block-diagonal
    for wp in range(W2):
        w3big[wp * Cin3:(wp + 1) * Cin3,
              wp * Cout3:(wp + 1) * Cout3] = w3sc
    P = D2 * H2 * W2
    head_mat = np.tile(np.asarray(params["fc_w"], np.float32), (W2, 1)) / float(P)
    kp["head"] = dict(
        w3big=jnp.asarray(w3big, jnp.bfloat16),
        shift3_t=jnp.asarray(np.tile(shift3, W2)[None, :], jnp.float32),
        head_mat=jnp.asarray(head_mat, jnp.float32),
        fcb=jnp.asarray(np.asarray(params["fc_b"], np.float32)[None, :]),
        dims=(D2, H2, W2))
    return kp


# ----------------------------------------------------------------------------
# Full forward (SFCN_TL.forward)
# ----------------------------------------------------------------------------
def sfcn_tl_forward(x_ncdhw, kparams):
    x = _prepare_block1_input(x_ncdhw, kparams["in_lanes"])
    for bp in kparams["blocks"]:                 # 2x fused conv+BN+pool+ReLU
        x = conv_bn_pool_relu_block(x, bp)
    # fused conv1x1+BN+ReLU + avgpool([5,6,5]) + dropout(eval) + fc + sigmoid
    return fused_conv1x1_head(x, kparams["head"])


# ----------------------------------------------------------------------------
# Pure-JAX f32 reference for validation
# ----------------------------------------------------------------------------
def reference_forward(x_ncdhw, params):
    x = jnp.transpose(x_ncdhw, (0, 2, 3, 4, 1))

    def conv(x, blk, relu):
        p = blk["pad"]
        y = jax.lax.conv_general_dilated(
            x, blk["w"], window_strides=(1, 1, 1),
            padding=[(p, p)] * 3,
            dimension_numbers=("NDHWC", "DHWIO", "NDHWC"))
        y = y * blk["scale"] + blk["shift"]
        return jnp.maximum(y, 0.0) if relu else y

    def pool_relu(x):
        y = jax.lax.reduce_window(x, -jnp.inf, jax.lax.max,
                                  (1, 2, 2, 2, 1), (1, 2, 2, 2, 1), "VALID")
        return jnp.maximum(y, 0.0)

    b0, b1, b2 = params["blocks"]
    x = pool_relu(conv(x, b0, relu=False))
    x = pool_relu(conv(x, b1, relu=False))
    x = conv(x, b2, relu=True)
    pooled = jnp.mean(x, axis=(1, 2, 3))
    logits = pooled @ params["fc_w"] + params["fc_b"]
    return jax.nn.sigmoid(logits)


if __name__ == "__main__":
    key = jax.random.PRNGKey(0)
    k_x, k_p = jax.random.split(key)
    # Small SFCN-style 3D input (PyTorch NCDHW): batch=2, 1 channel, 20x24x20
    # volume -> after two 2x maxpools the feature map is 5x6x5, matching
    # nn.AvgPool3d([5, 6, 5]).
    x = jax.random.normal(k_x, (2, 1, 20, 24, 20), jnp.float32)
    params = init_params(k_p, channels=(1, 8, 16, 32), num_classes=3)
    kparams = build_kernel_params(params, spatial=(20, 24, 20))

    out = jax.block_until_ready(sfcn_tl_forward(x, kparams))
    ref = jax.block_until_ready(reference_forward(x, params))

    assert out.shape == (2, 3), out.shape
    # bf16 MXU operands (per perf review) -> tolerance loosened vs f32 reference.
    assert jnp.allclose(out, ref, atol=2e-2, rtol=2e-2), (out, ref)
    print("KERNEL_OK")
</pallas_src>

<mosaic_0001>
module attributes {stable_mosaic.version = 11 : i64} {
  func.func @kernel(%arg0: i32, %arg1: memref<1x22x26x24xbf16, #tpu.memory_space<vmem>>, %arg2: memref<216x160xbf16, #tpu.memory_space<vmem>>, %arg3: memref<28x24xbf16, #tpu.memory_space<vmem>>, %arg4: memref<160x256xbf16, #tpu.memory_space<vmem>>, %arg5: memref<14x128xf32, #tpu.memory_space<vmem>>, %arg6: memref<1x12x14x128xbf16, #tpu.memory_space<vmem>>) attributes {dimension_semantics = [#tpu.dimension_semantics<parallel>], iteration_bounds = array<i64: 2>, scalar_prefetch = 0 : i64, scratch_operands = 0 : i64, tpu.core_type = #tpu.core_type<tc>, window_params = [{transform_indices = @transform_0, window_bounds = array<i64: 1, 22, 26, 24>}, {pipeline_mode = #tpu.pipeline_mode<synchronous>, transform_indices = @transform_1, window_bounds = array<i64: 216, 160>}, {pipeline_mode = #tpu.pipeline_mode<synchronous>, transform_indices = @transform_2, window_bounds = array<i64: 28, 24>}, {pipeline_mode = #tpu.pipeline_mode<synchronous>, transform_indices = @transform_3, window_bounds = array<i64: 160, 256>}, {pipeline_mode = #tpu.pipeline_mode<synchronous>, transform_indices = @transform_4, window_bounds = array<i64: 14, 128>}, {transform_indices = @transform_5, window_bounds = array<i64: 1, 12, 14, 128>}]} {
    %cst = arith.constant 0.000000e+00 : bf16
    %0 = vector.broadcast %cst : bf16 to vector<14x128xbf16>
    %c0 = arith.constant 0 : index
    %c0_0 = arith.constant 0 : index
    %c0_1 = arith.constant 0 : index
    %c0_2 = arith.constant 0 : index
    %1 = vector.load %arg6[%c0, %c0_0, %c0_1, %c0_2] : memref<1x12x14x128xbf16, #tpu.memory_space<vmem>>, vector<1x1x14x128xbf16>
    %2 = vector.shape_cast %1 : vector<1x1x14x128xbf16> to vector<14x128xbf16>
    %3 = vector.shape_cast %0 : vector<14x128xbf16> to vector<1x1x14x128xbf16>
    tpu.vector_store %arg6[%c0, %c0_0, %c0_1, %c0_2], %3 {strides = array<i32>} : memref<1x12x14x128xbf16, #tpu.memory_space<vmem>>, vector<1x1x14x128xbf16>,
    %c0_3 = arith.constant 0 : index
    %c11 = arith.constant 11 : index
    %c0_4 = arith.constant 0 : index
    %c0_5 = arith.constant 0 : index
    %4 = vector.load %arg6[%c0_3, %c11, %c0_4, %c0_5] : memref<1x12x14x128xbf16, #tpu.memory_space<vmem>>, vector<1x1x14x128xbf16>
    %5 = vector.shape_cast %4 : vector<1x1x14x128xbf16> to vector<14x128xbf16>
    %6 = vector.shape_cast %0 : vector<14x128xbf16> to vector<1x1x14x128xbf16>
    tpu.vector_store %arg6[%c0_3, %c11, %c0_4, %c0_5], %6 {strides = array<i32>} : memref<1x12x14x128xbf16, #tpu.memory_space<vmem>>, vector<1x1x14x128xbf16>,
    %c0_6 = arith.constant 0 : index
    %c0_7 = arith.constant 0 : index
    %c0_8 = arith.constant 0 : index
    %c0_9 = arith.constant 0 : index
    %7 = vector.load %arg1[%c0_6, %c0_7, %c0_8, %c0_9] : memref<1x22x26x24xbf16, #tpu.memory_space<vmem>>, vector<1x1x24x24xbf16>
    %8 = vector.shape_cast %7 : vector<1x1x24x24xbf16> to vector<24x24xbf16>
    %c0_10 = arith.constant 0 : index
    %c0_11 = arith.constant 0 : index
    %c1 = arith.constant 1 : index
    %c0_12 = arith.constant 0 : index
    %9 = vector.load %arg1[%c0_10, %c0_11, %c1, %c0_12] : memref<1x22x26x24xbf16, #tpu.memory_space<vmem>>, vector<1x1x24x24xbf16>
    %10 = vector.shape_cast %9 : vector<1x1x24x24xbf16> to vector<24x24xbf16>
    %c0_13 = arith.constant 0 : index
    %c0_14 = arith.constant 0 : index
    %c2 = arith.constant 2 : index
    %c0_15 = arith.constant 0 : index
    %11 = vector.load %arg1[%c0_13, %c0_14, %c2, %c0_15] : memref<1x22x26x24xbf16, #tpu.memory_space<vmem>>, vector<1x1x24x24xbf16>
    %12 = vector.shape_cast %11 : vector<1x1x24x24xbf16> to vector<24x24xbf16>
    %c0_16 = arith.constant 0 : index
    %c1_17 = arith.constant 1 : index
    %c0_18 = arith.constant 0 : index
    %c0_19 = arith.constant 0 : index
    %13 = vector.load %arg1[%c0_16, %c1_17, %c0_18, %c0_19] : memref<1x22x26x24xbf16, #tpu.memory_space<vmem>>, vector<1x1x24x24xbf16>
    %14 = vector.shape_cast %13 : vector<1x1x24x24xbf16> to vector<24x24xbf16>
    %c0_20 = arith.constant 0 : index
    %c1_21 = arith.constant 1 : index
    %c1_22 = arith.constant 1 : index
    %c0_23 = arith.constant 0 : index
    %15 = vector.load %arg1[%c0_20, %c1_21, %c1_22, %c0_23] : memref<1x22x26x24xbf16, #tpu.memory_space<vmem>>, vector<1x1x24x24xbf16>
    %16 = vector.shape_cast %15 : vector<1x1x24x24xbf16> to vector<24x24xbf16>
    %c0_24 = arith.constant 0 : index
    %c1_25 = arith.constant 1 : index
    %c2_26 = arith.constant 2 : index
    %c0_27 = arith.constant 0 : index
    %17 = vector.load %arg1[%c0_24, %c1_25, %c2_26, %c0_27] : memref<1x22x26x24xbf16, #tpu.memory_space<vmem>>, vector<1x1x24x24xbf16>
    %18 = vector.shape_cast %17 : vector<1x1x24x24xbf16> to vector<24x24xbf16>
    %c0_28 = arith.constant 0 : index
    %c2_29 = arith.constant 2 : index
    %c0_30 = arith.constant 0 : index
    %c0_31 = arith.constant 0 : index
    %19 = vector.load %arg1[%c0_28, %c2_29, %c0_30, %c0_31] : memref<1x22x26x24xbf16, #tpu.memory_space<vmem>>, vector<1x1x24x24xbf16>
    %20 = vector.shape_cast %19 : vector<1x1x24x24xbf16> to vector<24x24xbf16>
    %c0_32 = arith.constant 0 : index
    %c2_33 = arith.constant 2 : index
    %c1_34 = arith.constant 1 : index
    %c0_35 = arith.constant 0 : index
    %21 = vector.load %arg1[%c0_32, %c2_33, %c1_34, %c0_35] : memref<1x22x26x24xbf16, #tpu.memory_space<vmem>>, vector<1x1x24x24xbf16>
    %22 = vector.shape_cast %21 : vector<1x1x24x24xbf16> to vector<24x24xbf16>
    %c0_36 = arith.constant 0 : index
    %c2_37 = arith.constant 2 : index
    %c2_38 = arith.constant 2 : index
    %c0_39 = arith.constant 0 : index
    %23 = vector.load %arg1[%c0_36, %c2_37, %c2_38, %c0_39] : memref<1x22x26x24xbf16, #tpu.memory_space<vmem>>, vector<1x1x24x24xbf16>
    %24 = vector.shape_cast %23 : vector<1x1x24x24xbf16> to vector<24x24xbf16>
    %25 = tpu.concatenate %8, %10, %12, %14, %16, %18, %20, %22, %24 in 1 : vector<24x24xbf16>, vector<24x24xbf16>, vector<24x24xbf16>, vector<24x24xbf16>, vector<24x24xbf16>, vector<24x24xbf16>, vector<24x24xbf16>, vector<24x24xbf16>, vector<24x24xbf16> -> vector<24x216xbf16>
    %c0_40 = arith.constant 0 : index
    %c1_41 = arith.constant 1 : index
    %c0_42 = arith.constant 0 : index
    %c0_43 = arith.constant 0 : index
    %26 = vector.load %arg1[%c0_40, %c1_41, %c0_42, %c0_43] : memref<1x22x26x24xbf16, #tpu.memory_space<vmem>>, vector<1x1x24x24xbf16>
    %27 = vector.shape_cast %26 : vector<1x1x24x24xbf16> to vector<24x24xbf16>
    %c0_44 = arith.constant 0 : index
    %c1_45 = arith.constant 1 : index
    %c1_46 = arith.constant 1 : index
    %c0_47 = arith.constant 0 : index
    %28 = vector.load %arg1[%c0_44, %c1_45, %c1_46, %c0_47] : memref<1x22x26x24xbf16, #tpu.memory_space<vmem>>, vector<1x1x24x24xbf16>
    %29 = vector.shape_cast %28 : vector<1x1x24x24xbf16> to vector<24x24xbf16>
    %c0_48 = arith.constant 0 : index
    %c1_49 = arith.constant 1 : index
    %c2_50 = arith.constant 2 : index
    %c0_51 = arith.constant 0 : index
    %30 = vector.load %arg1[%c0_48, %c1_49, %c2_50, %c0_51] : memref<1x22x26x24xbf16, #tpu.memory_space<vmem>>, vector<1x1x24x24xbf16>
    %31 = vector.shape_cast %30 : vector<1x1x24x24xbf16> to vector<24x24xbf16>
    %c0_52 = arith.constant 0 : index
    %c2_53 = arith.constant 2 : index
    %c0_54 = arith.constant 0 : index
    %c0_55 = arith.constant 0 : index
    %32 = vector.load %arg1[%c0_52, %c2_53, %c0_54, %c0_55] : memref<1x22x26x24xbf16, #tpu.memory_space<vmem>>, vector<1x1x24x24xbf16>
    %33 = vector.shape_cast %32 : vector<1x1x24x24xbf16> to vector<24x24xbf16>
    %c0_56 = arith.constant 0 : index
    %c2_57 = arith.constant 2 : index
    %c1_58 = arith.constant 1 : index
    %c0_59 = arith.constant 0 : index
    %34 = vector.load %arg1[%c0_56, %c2_57, %c1_58, %c0_59] : memref<1x22x26x24xbf16, #tpu.memory_space<vmem>>, vector<1x1x24x24xbf16>
    %35 = vector.shape_cast %34 : vector<1x1x24x24xbf16> to vector<24x24xbf16>
    %c0_60 = arith.constant 0 : index
    %c2_61 = arith.constant 2 : index
    %c2_62 = arith.constant 2 : index
    %c0_63 = arith.constant 0 : index
    %36 = vector.load %arg1[%c0_60, %c2_61, %c2_62, %c0_63] : memref<1x22x26x24xbf16, #tpu.memory_space<vmem>>, vector<1x1x24x24xbf16>
    %37 = vector.shape_cast %36 : vector<1x1x24x24xbf16> to vector<24x24xbf16>
    %c0_64 = arith.constant 0 : index
    %c3 = arith.constant 3 : index
    %c0_65 = arith.constant 0 : index
    %c0_66 = arith.constant 0 : index
    %38 = vector.load %arg1[%c0_64, %c3, %c0_65, %c0_66] : memref<1x22x26x24xbf16, #tpu.memory_space<vmem>>, vector<1x1x24x24xbf16>
    %39 = vector.shape_cast %38 : vector<1x1x24x24xbf16> to vector<24x24xbf16>
    %c0_67 = arith.constant 0 : index
    %c3_68 = arith.constant 3 : index
    %c1_69 = arith.constant 1 : index
    %c0_70 = arith.constant 0 : index
    %40 = vector.load %arg1[%c0_67, %c3_68, %c1_69, %c0_70] : memref<1x22x26x24xbf16, #tpu.memory_space<vmem>>, vector<1x1x24x24xbf16>
    %41 = vector.shape_cast %40 : vector<1x1x24x24xbf16> to vector<24x24xbf16>
    %c0_71 = arith.constant 0 : index
    %c3_72 = arith.constant 3 : index
    %c2_73 = arith.constant 2 : index
    %c0_74 = arith.constant 0 : index
    %42 = vector.load %arg1[%c0_71, %c3_72, %c2_73, %c0_74] : memref<1x22x26x24xbf16, #tpu.memory_space<vmem>>, vector<1x1x24x24xbf16>
    %43 = vector.shape_cast %42 : vector<1x1x24x24xbf16> to vector<24x24xbf16>
    %44 = tpu.concatenate %27, %29, %31, %33, %35, %37, %39, %41, %43 in 1 : vector<24x24xbf16>, vector<24x24xbf16>, vector<24x24xbf16>, vector<24x24xbf16>, vector<24x24xbf16>, vector<24x24xbf16>, vector<24x24xbf16>, vector<24x24xbf16>, vector<24x24xbf16> -> vector<24x216xbf16>
    %45 = tpu.concatenate %25, %44 in 0 : vector<24x216xbf16>, vector<24x216xbf16> -> vector<48x216xbf16>
    %c0_75 = arith.constant 0 : index
    %c0_76 = arith.constant 0 : index
    %46 = vector.load %arg2[%c0_75, %c0_76] : memref<216x160xbf16, #tpu.memory_space<vmem>>, vector<216x160xbf16>
    %cst_77 = arith.constant dense<0.000000e+00> : vector<48x160xf32>
    %47 = tpu.matmul %45, %46, %cst_77 {dimension_numbers = #tpu.dot_dimension_numbers<[1], [0], [0], [1], [0, 0, 1, 1], [], []>} : vector<48x216xbf16>, vector<216x160xbf16>, vector<48x160xf32> -> vector<48x160xf32>
    %48 = vector.extract_strided_slice %47 {offsets = [0, 0], sizes = [24, 160], strides = [1, 1]} : vector<48x160xf32> to vector<24x160xf32>
    %49 = vector.extract_strided_slice %47 {offsets = [24, 0], sizes = [24, 160], strides = [1, 1]} : vector<48x160xf32> to vector<24x160xf32>
    %50 = arith.maximumf %48, %49 : vector<24x160xf32>
    %51 = arith.truncf %50 : vector<24x160xf32> to vector<24x160xbf16>
    %c0_78 = arith.constant 0 : index
    %c0_79 = arith.constant 0 : index
    %52 = vector.load %arg3[%c0_78, %c0_79] : memref<28x24xbf16, #tpu.memory_space<vmem>>, vector<28x24xbf16>
    %cst_80 = arith.constant dense<0.000000e+00> : vector<28x160xf32>
    %53 = tpu.matmul %52, %51, %cst_80 {dimension_numbers = #tpu.dot_dimension_numbers<[1], [0], [0], [1], [0, 0, 1, 1], [], []>} : vector<28x24xbf16>, vector<24x160xbf16>, vector<28x160xf32> -> vector<28x160xf32>
    %54 = vector.extract_strided_slice %53 {offsets = [0, 0], sizes = [14, 160], strides = [1, 1]} : vector<28x160xf32> to vector<14x160xf32>
    %55 = vector.extract_strided_slice %53 {offsets = [14, 0], sizes = [14, 160], strides = [1, 1]} : vector<28x160xf32> to vector<14x160xf32>
    %56 = arith.maximumf %54, %55 : vector<14x160xf32>
    %57 = arith.truncf %56 : vector<14x160xf32> to vector<14x160xbf16>
    %c0_81 = arith.constant 0 : index
    %c0_82 = arith.constant 0 : index
    %58 = vector.load %arg4[%c0_81, %c0_82] : memref<160x256xbf16, #tpu.memory_space<vmem>>, vector<160x256xbf16>
    %cst_83 = arith.constant dense<0.000000e+00> : vector<14x256xf32>
    %59 = tpu.matmul %57, %58, %cst_83 {dimension_numbers = #tpu.dot_dimension_numbers<[1], [0], [0], [1], [0, 0, 1, 1], [], []>} : vector<14x160xbf16>, vector<160x256xbf16>, vector<14x256xf32> -> vector<14x256xf32>
    %60 = vector.extract_strided_slice %59 {offsets = [0, 0], sizes = [14, 128], strides = [1, 1]} : vector<14x256xf32> to vector<14x128xf32>
    %61 = vector.extract_strided_slice %59 {offsets = [0, 128], sizes = [14, 128], strides = [1, 1]} : vector<14x256xf32> to vector<14x128xf32>
    %62 = arith.maximumf %60, %61 : vector<14x128xf32>
    %c0_84 = arith.constant 0 : index
    %c0_85 = arith.constant 0 : index
    %63 = vector.load %arg5[%c0_84, %c0_85] : memref<14x128xf32, #tpu.memory_space<vmem>>, vector<14x128xf32>
    %64 = arith.addf %62, %63 : vector<14x128xf32>
    %cst_86 = arith.constant 0.000000e+00 : f32
    %65 = vector.broadcast %cst_86 : f32 to vector<14x128xf32>
    %66 = arith.maximumf %64, %65 : vector<14x128xf32>
    %67 = arith.truncf %66 : vector<14x128xf32> to vector<14x128xbf16>
    %c0_87 = arith.constant 0 : index
    %c1_88 = arith.constant 1 : index
    %c0_89 = arith.constant 0 : index
    %c0_90 = arith.constant 0 : index
    %68 = vector.load %arg6[%c0_87, %c1_88, %c0_89, %c0_90] : memref<1x12x14x128xbf16, #tpu.memory_space<vmem>>, vector<1x1x14x128xbf16>
    %69 = vector.shape_cast %68 : vector<1x1x14x128xbf16> to vector<14x128xbf16>
    %70 = vector.shape_cast %67 : vector<14x128xbf16> to vector<1x1x14x128xbf16>
    tpu.vector_store %arg6[%c0_87, %c1_88, %c0_89, %c0_90], %70 {strides = array<i32>} : memref<1x12x14x128xbf16, #tpu.memory_space<vmem>>, vector<1x1x14x128xbf16>,
    %c0_91 = arith.constant 0 : index
    %c2_92 = arith.constant 2 : index
    %c0_93 = arith.constant 0 : index
    %c0_94 = arith.constant 0 : index
    %71 = vector.load %arg1[%c0_91, %c2_92, %c0_93, %c0_94] : memref<1x22x26x24xbf16, #tpu.memory_space<vmem>>, vector<1x1x24x24xbf16>
    %72 = vector.shape_cast %71 : vector<1x1x24x24xbf16> to vector<24x24xbf16>
    %c0_95 = arith.constant 0 : index
    %c2_96 = arith.constant 2 : index
    %c1_97 = arith.constant 1 : index
    %c0_98 = arith.constant 0 : index
    %73 = vector.load %arg1[%c0_95, %c2_96, %c1_97, %c0_98] : memref<1x22x26x24xbf16, #tpu.memory_space<vmem>>, vector<1x1x24x24xbf16>
    %74 = vector.shape_cast %73 : vector<1x1x24x24xbf16> to vector<24x24xbf16>
    %c0_99 = arith.constant 0 : index
    %c2_100 = arith.constant 2 : index
    %c2_101 = arith.constant 2 : index
    %c0_102 = arith.constant 0 : index
    %75 = vector.load %arg1[%c0_99, %c2_100, %c2_101, %c0_102] : memref<1x22x26x24xbf16, #tpu.memory_space<vmem>>, vector<1x1x24x24xbf16>
    %76 = vector.shape_cast %75 : vector<1x1x24x24xbf16> to vector<24x24xbf16>
    %c0_103 = arith.constant 0 : index
    %c3_104 = arith.constant 3 : index
    %c0_105 = arith.constant 0 : index
    %c0_106 = arith.constant 0 : index
    %77 = vector.load %arg1[%c0_103, %c3_104, %c0_105, %c0_106] : memref<1x22x26x24xbf16, #tpu.memory_space<vmem>>, vector<1x1x24x24xbf16>
    %78 = vector.shape_cast %77 : vector<1x1x24x24xbf16> to vector<24x24xbf16>
    %c0_107 = arith.constant 0 : index
    %c3_108 = arith.constant 3 : index
    %c1_109 = arith.constant 1 : index
    %c0_110 = arith.constant 0 : index
    %79 = vector.load %arg1[%c0_107, %c3_108, %c1_109, %c0_110] : memref<1x22x26x24xbf16, #tpu.memory_space<vmem>>, vector<1x1x24x24xbf16>
    %80 = vector.shape_cast %79 : vector<1x1x24x24xbf16> to vector<24x24xbf16>
    %c0_111 = arith.constant 0 : index
    %c3_112 = arith.constant 3 : index
    %c2_113 = arith.constant 2 : index
    %c0_114 = arith.constant 0 : index
    %81 = vector.load %arg1[%c0_111, %c3_112, %c2_113, %c0_114] : memref<1x22x26x24xbf16, #tpu.memory_space<vmem>>, vector<1x1x24x24xbf16>
    %82 = vector.shape_cast %81 : vector<1x1x24x24xbf16> to vector<24x24xbf16>
    %c0_115 = arith.constant 0 : index
    %c4 = arith.constant 4 : index
    %c0_116 = arith.constant 0 : index
    %c0_117 = arith.constant 0 : index
    %83 = vector.load %arg1[%c0_115, %c4, %c0_116, %c0_117] : memref<1x22x26x24xbf16, #tpu.memory_space<vmem>>, vector<1x1x24x24xbf16>
    %84 = vector.shape_cast %83 : vector<1x1x24x24xbf16> to vector<24x24xbf16>
    %c0_118 = arith.constant 0 : index
    %c4_119 = arith.constant 4 : index
    %c1_120 = arith.constant 1 : index
    %c0_121 = arith.constant 0 : index
    %85 = vector.load %arg1[%c0_118, %c4_119, %c1_120, %c0_121] : memref<1x22x26x24xbf16, #tpu.memory_space<vmem>>, vector<1x1x24x24xbf16>
    %86 = vector.shape_cast %85 : vector<1x1x24x24xbf16> to vector<24x24xbf16>
    %c0_122 = arith.constant 0 : index
    %c4_123 = arith.constant 4 : index
    %c2_124 = arith.constant 2 : index
    %c0_125 = arith.constant 0 : index
    %87 = vector.load %arg1[%c0_122, %c4_123, %c2_124, %c0_125] : memref<1x22x26x24xbf16, #tpu.memory_space<vmem>>, vector<1x1x24x24xbf16>
    %88 = vector.shape_cast %87 : vector<1x1x24x24xbf16> to vector<24x24xbf16>
    %89 = tpu.concatenate %72, %74, %76, %78, %80, %82, %84, %86, %88 in 1 : vector<24x24xbf16>, vector<24x24xbf16>, vector<24x24xbf16>, vector<24x24xbf16>, vector<24x24xbf16>, vector<24x24xbf16>, vector<24x24xbf16>, vector<24x24xbf16>, vector<24x24xbf16> -> vector<24x216xbf16>
    %c0_126 = arith.constant 0 : index
    %c3_127 = arith.constant 3 : index
    %c0_128 = arith.constant 0 : index
    %c0_129 = arith.constant 0 : index
    %90 = vector.load %arg1[%c0_126, %c3_127, %c0_128, %c0_129] : memref<1x22x26x24xbf16, #tpu.memory_space<vmem>>, vector<1x1x24x24xbf16>
    %91 = vector.shape_cast %90 : vector<1x1x24x24xbf16> to vector<24x24xbf16>
    %c0_130 = arith.constant 0 : index
    %c3_131 = arith.constant 3 : index
    %c1_132 = arith.constant 1 : index
    %c0_133 = arith.constant 0 : index
    %92 = vector.load %arg1[%c0_130, %c3_131, %c1_132, %c0_133] : memref<1x22x26x24xbf16, #tpu.memory_space<vmem>>, vector<1x1x24x24xbf16>
    %93 = vector.shape_cast %92 : vector<1x1x24x24xbf16> to vector<24x24xbf16>
    %c0_134 = arith.constant 0 : index
    %c3_135 = arith.constant 3 : index
    %c2_136 = arith.constant 2 : index
    %c0_137 = arith.constant 0 : index
    %94 = vector.load %arg1[%c0_134, %c3_135, %c2_136, %c0_137] : memref<1x22x26x24xbf16, #tpu.memory_space<vmem>>, vector<1x1x24x24xbf16>
    %95 = vector.shape_cast %94 : vector<1x1x24x24xbf16> to vector<24x24xbf16>
    %c0_138 = arith.constant 0 : index
    %c4_139 = arith.constant 4 : index
    %c0_140 = arith.constant 0 : index
    %c0_141 = arith.constant 0 : index
    %96 = vector.load %arg1[%c0_138, %c4_139, %c0_140, %c0_141] : memref<1x22x26x24xbf16, #tpu.memory_space<vmem>>, vector<1x1x24x24xbf16>
    %97 = vector.shape_cast %96 : vector<1x1x24x24xbf16> to vector<24x24xbf16>
    %c0_142 = arith.constant 0 : index
    %c4_143 = arith.constant 4 : index
    %c1_144 = arith.constant 1 : index
    %c0_145 = arith.constant 0 : index
    %98 = vector.load %arg1[%c0_142, %c4_143, %c1_144, %c0_145] : memref<1x22x26x24xbf16, #tpu.memory_space<vmem>>, vector<1x1x24x24xbf16>
    %99 = vector.shape_cast %98 : vector<1x1x24x24xbf16> to vector<24x24xbf16>
    %c0_146 = arith.constant 0 : index
    %c4_147 = arith.constant 4 : index
    %c2_148 = arith.constant 2 : index
    %c0_149 = arith.constant 0 : index
    %100 = vector.load %arg1[%c0_146, %c4_147, %c2_148, %c0_149] : memref<1x22x26x24xbf16, #tpu.memory_space<vmem>>, vector<1x1x24x24xbf16>
    %101 = vector.shape_cast %100 : vector<1x1x24x24xbf16> to vector<24x24xbf16>
    %c0_150 = arith.constant 0 : index
    %c5 = arith.constant 5 : index
    %c0_151 = arith.constant 0 : index
    %c0_152 = arith.constant 0 : index
    %102 = vector.load %arg1[%c0_150, %c5, %c0_151, %c0_152] : memref<1x22x26x24xbf16, #tpu.memory_space<vmem>>, vector<1x1x24x24xbf16>
    %103 = vector.shape_cast %102 : vector<1x1x24x24xbf16> to vector<24x24xbf16>
    %c0_153 = arith.constant 0 : index
    %c5_154 = arith.constant 5 : index
    %c1_155 = arith.constant 1 : index
    %c0_156 = arith.constant 0 : index
    %104 = vector.load %arg1[%c0_153, %c5_154, %c1_155, %c0_156] : memref<1x22x26x24xbf16, #tpu.memory_space<vmem>>, vector<1x1x24x24xbf16>
    %105 = vector.shape_cast %104 : vector<1x1x24x24xbf16> to vector<24x24xbf16>
    %c0_157 = arith.constant 0 : index
    %c5_158 = arith.constant 5 : index
    %c2_159 = arith.constant 2 : index
    %c0_160 = arith.constant 0 : index
    %106 = vector.load %arg1[%c0_157, %c5_158, %c2_159, %c0_160] : memref<1x22x26x24xbf16, #tpu.memory_space<vmem>>, vector<1x1x24x24xbf16>
    %107 = vector.shape_cast %106 : vector<1x1x24x24xbf16> to vector<24x24xbf16>
    %108 = tpu.concatenate %91, %93, %95, %97, %99, %101, %103, %105, %107 in 1 : vector<24x24xbf16>, vector<24x24xbf16>, vector<24x24xbf16>, vector<24x24xbf16>, vector<24x24xbf16>, vector<24x24xbf16>, vector<24x24xbf16>, vector<24x24xbf16>, vector<24x24xbf16> -> vector<24x216xbf16>
    %109 = tpu.concatenate %89, %108 in 0 : vector<24x216xbf16>, vector<24x216xbf16> -> vector<48x216xbf16>
    %c0_161 = arith.constant 0 : index
    %c0_162 = arith.constant 0 : index
    %110 = vector.load %arg2[%c0_161, %c0_162] : memref<216x160xbf16, #tpu.memory_space<vmem>>, vector<216x160xbf16>
    %cst_163 = arith.constant dense<0.000000e+00> : vector<48x160xf32>
    %111 = tpu.matmul %109, %110, %cst_163 {dimension_numbers = #tpu.dot_dimension_numbers<[1], [0], [0], [1], [0, 0, 1, 1], [], []>} : vector<48x216xbf16>, vector<216x160xbf16>, vector<48x160xf32> -> vector<48x160xf32>
    %112 = vector.extract_strided_slice %111 {offsets = [0, 0], sizes = [24, 160], strides = [1, 1]} : vector<48x160xf32> to vector<24x160xf32>
    %113 = vector.extract_strided_slice %111 {offsets = [24, 0], sizes = [24, 160], strides = [1, 1]} : vector<48x160xf32> to vector<24x160xf32>
    %114 = arith.maximumf %112, %113 : vector<24x160xf32>
    %115 = arith.truncf %114 : vector<24x160xf32> to vector<24x160xbf16>
    %c0_164 = arith.constant 0 : index
    %c0_165 = arith.constant 0 : index
    %116 = vector.load %arg3[%c0_164, %c0_165] : memref<28x24xbf16, #tpu.memory_space<vmem>>, vector<28x24xbf16>
    %cst_166 = arith.constant dense<0.000000e+00> : vector<28x160xf32>
    %117 = tpu.matmul %116, %115, %cst_166 {dimension_numbers = #tpu.dot_dimension_numbers<[1], [0], [0], [1], [0, 0, 1, 1], [], []>} : vector<28x24xbf16>, vector<24x160xbf16>, vector<28x160xf32> -> vector<28x160xf32>
    %118 = vector.extract_strided_slice %117 {offsets = [0, 0], sizes = [14, 160], strides = [1, 1]} : vector<28x160xf32> to vector<14x160xf32>
    %119 = vector.extract_strided_slice %117 {offsets = [14, 0], sizes = [14, 160], strides = [1, 1]} : vector<28x160xf32> to vector<14x160xf32>
    %120 = arith.maximumf %118, %119 : vector<14x160xf32>
    %121 = arith.truncf %120 : vector<14x160xf32> to vector<14x160xbf16>
    %c0_167 = arith.constant 0 : index
    %c0_168 = arith.constant 0 : index
    %122 = vector.load %arg4[%c0_167, %c0_168] : memref<160x256xbf16, #tpu.memory_space<vmem>>, vector<160x256xbf16>
    %cst_169 = arith.constant dense<0.000000e+00> : vector<14x256xf32>
    %123 = tpu.matmul %121, %122, %cst_169 {dimension_numbers = #tpu.dot_dimension_numbers<[1], [0], [0], [1], [0, 0, 1, 1], [], []>} : vector<14x160xbf16>, vector<160x256xbf16>, vector<14x256xf32> -> vector<14x256xf32>
    %124 = vector.extract_strided_slice %123 {offsets = [0, 0], sizes = [14, 128], strides = [1, 1]} : vector<14x256xf32> to vector<14x128xf32>
    %125 = vector.extract_strided_slice %123 {offsets = [0, 128], sizes = [14, 128], strides = [1, 1]} : vector<14x256xf32> to vector<14x128xf32>
    %126 = arith.maximumf %124, %125 : vector<14x128xf32>
    %c0_170 = arith.constant 0 : index
    %c0_171 = arith.constant 0 : index
    %127 = vector.load %arg5[%c0_170, %c0_171] : memref<14x128xf32, #tpu.memory_space<vmem>>, vector<14x128xf32>
    %128 = arith.addf %126, %127 : vector<14x128xf32>
    %cst_172 = arith.constant 0.000000e+00 : f32
    %129 = vector.broadcast %cst_172 : f32 to vector<14x128xf32>
    %130 = arith.maximumf %128, %129 : vector<14x128xf32>
    %131 = arith.truncf %130 : vector<14x128xf32> to vector<14x128xbf16>
    %c0_173 = arith.constant 0 : index
    %c2_174 = arith.constant 2 : index
    %c0_175 = arith.constant 0 : index
    %c0_176 = arith.constant 0 : index
    %132 = vector.load %arg6[%c0_173, %c2_174, %c0_175, %c0_176] : memref<1x12x14x128xbf16, #tpu.memory_space<vmem>>, vector<1x1x14x128xbf16>
    %133 = vector.shape_cast %132 : vector<1x1x14x128xbf16> to vector<14x128xbf16>
    %134 = vector.shape_cast %131 : vector<14x128xbf16> to vector<1x1x14x128xbf16>
    tpu.vector_store %arg6[%c0_173, %c2_174, %c0_175, %c0_176], %134 {strides = array<i32>} : memref<1x12x14x128xbf16, #tpu.memory_space<vmem>>, vector<1x1x14x128xbf16>,
    %c0_177 = arith.constant 0 : index
    %c4_178 = arith.constant 4 : index
    %c0_179 = arith.constant 0 : index
    %c0_180 = arith.constant 0 : index
    %135 = vector.load %arg1[%c0_177, %c4_178, %c0_179, %c0_180] : memref<1x22x26x24xbf16, #tpu.memory_space<vmem>>, vector<1x1x24x24xbf16>
    %136 = vector.shape_cast %135 : vector<1x1x24x24xbf16> to vector<24x24xbf16>
    %c0_181 = arith.constant 0 : index
    %c4_182 = arith.constant 4 : index
    %c1_183 = arith.constant 1 : index
    %c0_184 = arith.constant 0 : index
    %137 = vector.load %arg1[%c0_181, %c4_182, %c1_183, %c0_184] : memref<1x22x26x24xbf16, #tpu.memory_space<vmem>>, vector<1x1x24x24xbf16>
    %138 = vector.shape_cast %137 : vector<1x1x24x24xbf16> to vector<24x24xbf16>
    %c0_185 = arith.constant 0 : index
    %c4_186 = arith.constant 4 : index
    %c2_187 = arith.constant 2 : index
    %c0_188 = arith.constant 0 : index
    %139 = vector.load %arg1[%c0_185, %c4_186, %c2_187, %c0_188] : memref<1x22x26x24xbf16, #tpu.memory_space<vmem>>, vector<1x1x24x24xbf16>
    %140 = vector.shape_cast %139 : vector<1x1x24x24xbf16> to vector<24x24xbf16>
    %c0_189 = arith.constant 0 : index
    %c5_190 = arith.constant 5 : index
    %c0_191 = arith.constant 0 : index
    %c0_192 = arith.constant 0 : index
    %141 = vector.load %arg1[%c0_189, %c5_190, %c0_191, %c0_192] : memref<1x22x26x24xbf16, #tpu.memory_space<vmem>>, vector<1x1x24x24xbf16>
    %142 = vector.shape_cast %141 : vector<1x1x24x24xbf16> to vector<24x24xbf16>
    %c0_193 = arith.constant 0 : index
    %c5_194 = arith.constant 5 : index
    %c1_195 = arith.constant 1 : index
    %c0_196 = arith.constant 0 : index
    %143 = vector.load %arg1[%c0_193, %c5_194, %c1_195, %c0_196] : memref<1x22x26x24xbf16, #tpu.memory_space<vmem>>, vector<1x1x24x24xbf16>
    %144 = vector.shape_cast %143 : vector<1x1x24x24xbf16> to vector<24x24xbf16>
    %c0_197 = arith.constant 0 : index
    %c5_198 = arith.constant 5 : index
    %c2_199 = arith.constant 2 : index
    %c0_200 = arith.constant 0 : index
    %145 = vector.load %arg1[%c0_197, %c5_198, %c2_199, %c0_200] : memref<1x22x26x24xbf16, #tpu.memory_space<vmem>>, vector<1x1x24x24xbf16>
    %146 = vector.shape_cast %145 : vector<1x1x24x24xbf16> to vector<24x24xbf16>
    %c0_201 = arith.constant 0 : index
    %c6 = arith.constant 6 : index
    %c0_202 = arith.constant 0 : index
    %c0_203 = arith.constant 0 : index
    %147 = vector.load %arg1[%c0_201, %c6, %c0_202, %c0_203] : memref<1x22x26x24xbf16, #tpu.memory_space<vmem>>, vector<1x1x24x24xbf16>
    %148 = vector.shape_cast %147 : vector<1x1x24x24xbf16> to vector<24x24xbf16>
    %c0_204 = arith.constant 0 : index
    %c6_205 = arith.constant 6 : index
    %c1_206 = arith.constant 1 : index
    %c0_207 = arith.constant 0 : index
    %149 = vector.load %arg1[%c0_204, %c6_205, %c1_206, %c0_207] : memref<1x22x26x24xbf16, #tpu.memory_space<vmem>>, vector<1x1x24x24xbf16>
    %150 = vector.shape_cast %149 : vector<1x1x24x24xbf16> to vector<24x24xbf16>
    %c0_208 = arith.constant 0 : index
    %c6_209 = arith.constant 6 : index
    %c2_210 = arith.constant 2 : index
    %c0_211 = arith.constant 0 : index
    %151 = vector.load %arg1[%c0_208, %c6_209, %c2_210, %c0_211] : memref<1x22x26x24xbf16, #tpu.memory_space<vmem>>, vector<1x1x24x24xbf16>
    %152 = vector.shape_cast %151 : vector<1x1x24x24xbf16> to vector<24x24xbf16>
    %153 = tpu.concatenate %136, %138, %140, %142, %144, %146, %148, %150, %152 in 1 : vector<24x24xbf16>, vector<24x24xbf16>, vector<24x24xbf16>, vector<24x24xbf16>, vector<24x24xbf16>, vector<24x24xbf16>, vector<24x24xbf16>, vector<24x24xbf16>, vector<24x24xbf16> -> vector<24x216xbf16>
    %c0_212 = arith.constant 0 : index
    %c5_213 = arith.constant 5 : index
    %c0_214 = arith.constant 0 : index
    %c0_215 = arith.constant 0 : index
    %154 = vector.load %arg1[%c0_212, %c5_213, %c0_214, %c0_215] : memref<1x22x26x24xbf16, #tpu.memory_space<vmem>>, vector<1x1x24x24xbf16>
    %155 = vector.shape_cast %154 : vector<1x1x24x24xbf16> to vector<24x24xbf16>
    %c0_216 = arith.constant 0 : index
    %c5_217 = arith.constant 5 : index
    %c1_218 = arith.constant 1 : index
    %c0_219 = arith.constant 0 : index
    %156 = vector.load %arg1[%c0_216, %c5_217, %c1_218, %c0_219] : memref<1x22x26x24xbf16, #tpu.memory_space<vmem>>, vector<1x1x24x24xbf16>
    %157 = vector.shape_cast %156 : vector<1x1x24x24xbf16> to vector<24x24xbf16>
    %c0_220 = arith.constant 0 : index
    %c5_221 = arith.constant 5 : index
    %c2_222 = arith.constant 2 : index
    %c0_223 = arith.constant 0 : index
    %158 = vector.load %arg1[%c0_220, %c5_221, %c2_222, %c0_223] : memref<1x22x26x24xbf16, #tpu.memory_space<vmem>>, vector<1x1x24x24xbf16>
    %159 = vector.shape_cast %158 : vector<1x1x24x24xbf16> to vector<24x24xbf16>
    %c0_224 = arith.constant 0 : index
    %c6_225 = arith.constant 6 : index
    %c0_226 = arith.constant 0 : index
    %c0_227 = arith.constant 0 : index
    %160 = vector.load %arg1[%c0_224, %c6_225, %c0_226, %c0_227] : memref<1x22x26x24xbf16, #tpu.memory_space<vmem>>, vector<1x1x24x24xbf16>
    %161 = vector.shape_cast %160 : vector<1x1x24x24xbf16> to vector<24x24xbf16>
    %c0_228 = arith.constant 0 : index
    %c6_229 = arith.constant 6 : index
    %c1_230 = arith.constant 1 : index
    %c0_231 = arith.constant 0 : index
    %162 = vector.load %arg1[%c0_228, %c6_229, %c1_230, %c0_231] : memref<1x22x26x24xbf16, #tpu.memory_space<vmem>>, vector<1x1x24x24xbf16>
    %163 = vector.shape_cast %162 : vector<1x1x24x24xbf16> to vector<24x24xbf16>
    %c0_232 = arith.constant 0 : index
    %c6_233 = arith.constant 6 : index
    %c2_234 = arith.constant 2 : index
    %c0_235 = arith.constant 0 : index
    %164 = vector.load %arg1[%c0_232, %c6_233, %c2_234, %c0_235] : memref<1x22x26x24xbf16, #tpu.memory_space<vmem>>, vector<1x1x24x24xbf16>
    %165 = vector.shape_cast %164 : vector<1x1x24x24xbf16> to vector<24x24xbf16>
    %c0_236 = arith.constant 0 : index
    %c7 = arith.constant 7 : index
    %c0_237 = arith.constant 0 : index
    %c0_238 = arith.constant 0 : index
    %166 = vector.load %arg1[%c0_236, %c7, %c0_237, %c0_238] : memref<1x22x26x24xbf16, #tpu.memory_space<vmem>>, vector<1x1x24x24xbf16>
    %167 = vector.shape_cast %166 : vector<1x1x24x24xbf16> to vector<24x24xbf16>
    %c0_239 = arith.constant 0 : index
    %c7_240 = arith.constant 7 : index
    %c1_241 = arith.constant 1 : index
    %c0_242 = arith.constant 0 : index
    %168 = vector.load %arg1[%c0_239, %c7_240, %c1_241, %c0_242] : memref<1x22x26x24xbf16, #tpu.memory_space<vmem>>, vector<1x1x24x24xbf16>
    %169 = vector.shape_cast %168 : vector<1x1x24x24xbf16> to vector<24x24xbf16>
    %c0_243 = arith.constant 0 : index
    %c7_244 = arith.constant 7 : index
    %c2_245 = arith.constant 2 : index
    %c0_246 = arith.constant 0 : index
    %170 = vector.load %arg1[%c0_243, %c7_244, %c2_245, %c0_246] : memref<1x22x26x24xbf16, #tpu.memory_space<vmem>>, vector<1x1x24x24xbf16>
    %171 = vector.shape_cast %170 : vector<1x1x24x24xbf16> to vector<24x24xbf16>
    %172 = tpu.concatenate %155, %157, %159, %161, %163, %165, %167, %169, %171 in 1 : vector<24x24xbf16>, vector<24x24xbf16>, vector<24x24xbf16>, vector<24x24xbf16>, vector<24x24xbf16>, vector<24x24xbf16>, vector<24x24xbf16>, vector<24x24xbf16>, vector<24x24xbf16> -> vector<24x216xbf16>
    %173 = tpu.concatenate %153, %172 in 0 : vector<24x216xbf16>, vector<24x216xbf16> -> vector<48x216xbf16>
    %c0_247 = arith.constant 0 : index
    %c0_248 = arith.constant 0 : index
    %174 = vector.load %arg2[%c0_247, %c0_248] : memref<216x160xbf16, #tpu.memory_space<vmem>>, vector<216x160xbf16>
    %cst_249 = arith.constant dense<0.000000e+00> : vector<48x160xf32>
    %175 = tpu.matmul %173, %174, %cst_249 {dimension_numbers = #tpu.dot_dimension_numbers<[1], [0], [0], [1], [0, 0, 1, 1], [], []>} : vector<48x216xbf16>, vector<216x160xbf16>, vector<48x160xf32> -> vector<48x160xf32>
    %176 = vector.extract_strided_slice %175 {offsets = [0, 0], sizes = [24, 160], strides = [1, 1]} : vector<48x160xf32> to vector<24x160xf32>
    %177 = vector.extract_strided_slice %175 {offsets = [24, 0], sizes = [24, 160], strides = [1, 1]} : vector<48x160xf32> to vector<24x160xf32>
    %178 = arith.maximumf %176, %177 : vector<24x160xf32>
    %179 = arith.truncf %178 : vector<24x160xf32> to vector<24x160xbf16>
    %c0_250 = arith.constant 0 : index
    %c0_251 = arith.constant 0 : index
    %180 = vector.load %arg3[%c0_250, %c0_251] : memref<28x24xbf16, #tpu.memory_space<vmem>>, vector<28x24xbf16>
    %cst_252 = arith.constant dense<0.000000e+00> : vector<28x160xf32>
    %181 = tpu.matmul %180, %179, %cst_252 {dimension_numbers = #tpu.dot_dimension_numbers<[1], [0], [0], [1], [0, 0, 1, 1], [], []>} : vector<28x24xbf16>, vector<24x160xbf16>, vector<28x160xf32> -> vector<28x160xf32>
    %182 = vector.extract_strided_slice %181 {offsets = [0, 0], sizes = [14, 160], strides = [1, 1]} : vector<28x160xf32> to vector<14x160xf32>
    %183 = vector.extract_strided_slice %181 {offsets = [14, 0], sizes = [14, 160], strides = [1, 1]} : vector<28x160xf32> to vector<14x160xf32>
    %184 = arith.maximumf %182, %183 : vector<14x160xf32>
    %185 = arith.truncf %184 : vector<14x160xf32> to vector<14x160xbf16>
    %c0_253 = arith.constant 0 : index
    %c0_254 = arith.constant 0 : index
    %186 = vector.load %arg4[%c0_253, %c0_254] : memref<160x256xbf16, #tpu.memory_space<vmem>>, vector<160x256xbf16>
    %cst_255 = arith.constant dense<0.000000e+00> : vector<14x256xf32>
    %187 = tpu.matmul %185, %186, %cst_255 {dimension_numbers = #tpu.dot_dimension_numbers<[1], [0], [0], [1], [0, 0, 1, 1], [], []>} : vector<14x160xbf16>, vector<160x256xbf16>, vector<14x256xf32> -> vector<14x256xf32>
    %188 = vector.extract_strided_slice %187 {offsets = [0, 0], sizes = [14, 128], strides = [1, 1]} : vector<14x256xf32> to vector<14x128xf32>
    %189 = vector.extract_strided_slice %187 {offsets = [0, 128], sizes = [14, 128], strides = [1, 1]} : vector<14x256xf32> to vector<14x128xf32>
    %190 = arith.maximumf %188, %189 : vector<14x128xf32>
    %c0_256 = arith.constant 0 : index
    %c0_257 = arith.constant 0 : index
    %191 = vector.load %arg5[%c0_256, %c0_257] : memref<14x128xf32, #tpu.memory_space<vmem>>, vector<14x128xf32>
    %192 = arith.addf %190, %191 : vector<14x128xf32>
    %cst_258 = arith.constant 0.000000e+00 : f32
    %193 = vector.broadcast %cst_258 : f32 to vector<14x128xf32>
    %194 = arith.maximumf %192, %193 : vector<14x128xf32>
    %195 = arith.truncf %194 : vector<14x128xf32> to vector<14x128xbf16>
    %c0_259 = arith.constant 0 : index
    %c3_260 = arith.constant 3 : index
    %c0_261 = arith.constant 0 : index
    %c0_262 = arith.constant 0 : index
    %196 = vector.load %arg6[%c0_259, %c3_260, %c0_261, %c0_262] : memref<1x12x14x128xbf16, #tpu.memory_space<vmem>>, vector<1x1x14x128xbf16>
    %197 = vector.shape_cast %196 : vector<1x1x14x128xbf16> to vector<14x128xbf16>
    %198 = vector.shape_cast %195 : vector<14x128xbf16> to vector<1x1x14x128xbf16>
    tpu.vector_store %arg6[%c0_259, %c3_260, %c0_261, %c0_262], %198 {strides = array<i32>} : memref<1x12x14x128xbf16, #tpu.memory_space<vmem>>, vector<1x1x14x128xbf16>,
    %c0_263 = arith.constant 0 : index
    %c6_264 = arith.constant 6 : index
    %c0_265 = arith.constant 0 : index
    %c0_266 = arith.constant 0 : index
    %199 = vector.load %arg1[%c0_263, %c6_264, %c0_265, %c0_266] : memref<1x22x26x24xbf16, #tpu.memory_space<vmem>>, vector<1x1x24x24xbf16>
    %200 = vector.shape_cast %199 : vector<1x1x24x24xbf16> to vector<24x24xbf16>
    %c0_267 = arith.constant 0 : index
    %c6_268 = arith.constant 6 : index
    %c1_269 = arith.constant 1 : index
    %c0_270 = arith.constant 0 : index
    %201 = vector.load %arg1[%c0_267, %c6_268, %c1_269, %c0_270] : memref<1x22x26x24xbf16, #tpu.memory_space<vmem>>, vector<1x1x24x24xbf16>
    %202 = vector.shape_cast %201 : vector<1x1x24x24xbf16> to vector<24x24xbf16>
    %c0_271 = arith.constant 0 : index
    %c6_272 = arith.constant 6 : index
    %c2_273 = arith.constant 2 : index
    %c0_274 = arith.constant 0 : index
    %203 = vector.load %arg1[%c0_271, %c6_272, %c2_273, %c0_274] : memref<1x22x26x24xbf16, #tpu.memory_space<vmem>>, vector<1x1x24x24xbf16>
    %204 = vector.shape_cast %203 : vector<1x1x24x24xbf16> to vector<24x24xbf16>
    %c0_275 = arith.constant 0 : index
    %c7_276 = arith.constant 7 : index
    %c0_277 = arith.constant 0 : index
    %c0_278 = arith.constant 0 : index
    %205 = vector.load %arg1[%c0_275, %c7_276, %c0_277, %c0_278] : memref<1x22x26x24xbf16, #tpu.memory_space<vmem>>, vector<1x1x24x24xbf16>
    %206 = vector.shape_cast %205 : vector<1x1x24x24xbf16> to vector<24x24xbf16>
    %c0_279 = arith.constant 0 : index
    %c7_280 = arith.constant 7 : index
    %c1_281 = arith.constant 1 : index
    %c0_282 = arith.constant 0 : index
    %207 = vector.load %arg1[%c0_279, %c7_280, %c1_281, %c0_282] : memref<1x22x26x24xbf16, #tpu.memory_space<vmem>>, vector<1x1x24x24xbf16>
    %208 = vector.shape_cast %207 : vector<1x1x24x24xbf16> to vector<24x24xbf16>
    %c0_283 = arith.constant 0 : index
    %c7_284 = arith.constant 7 : index
    %c2_285 = arith.constant 2 : index
    %c0_286 = arith.constant 0 : index
    %209 = vector.load %arg1[%c0_283, %c7_284, %c2_285, %c0_286] : memref<1x22x26x24xbf16, #tpu.memory_space<vmem>>, vector<1x1x24x24xbf16>
    %210 = vector.shape_cast %209 : vector<1x1x24x24xbf16> to vector<24x24xbf16>
    %c0_287 = arith.constant 0 : index
    %c8 = arith.constant 8 : index
    %c0_288 = arith.constant 0 : index
    %c0_289 = arith.constant 0 : index
    %211 = vector.load %arg1[%c0_287, %c8, %c0_288, %c0_289] : memref<1x22x26x24xbf16, #tpu.memory_space<vmem>>, vector<1x1x24x24xbf16>
    %212 = vector.shape_cast %211 : vector<1x1x24x24xbf16> to vector<24x24xbf16>
    %c0_290 = arith.constant 0 : index
    %c8_291 = arith.constant 8 : index
    %c1_292 = arith.constant 1 : index
    %c0_293 = arith.constant 0 : index
    %213 = vector.load %arg1[%c0_290, %c8_291, %c1_292, %c0_293] : memref<1x22x26x24xbf16, #tpu.memory_space<vmem>>, vector<1x1x24x24xbf16>
    %214 = vector.shape_cast %213 : vector<1x1x24x24xbf16> to vector<24x24xbf16>
    %c0_294 = arith.constant 0 : index
    %c8_295 = arith.constant 8 : index
    %c2_296 = arith.constant 2 : index
    %c0_297 = arith.constant 0 : index
    %215 = vector.load %arg1[%c0_294, %c8_295, %c2_296, %c0_297] : memref<1x22x26x24xbf16, #tpu.memory_space<vmem>>, vector<1x1x24x24xbf16>
    %216 = vector.shape_cast %215 : vector<1x1x24x24xbf16> to vector<24x24xbf16>
    %217 = tpu.concatenate %200, %202, %204, %206, %208, %210, %212, %214, %216 in 1 : vector<24x24xbf16>, vector<24x24xbf16>, vector<24x24xbf16>, vector<24x24xbf16>, vector<24x24xbf16>, vector<24x24xbf16>, vector<24x24xbf16>, vector<24x24xbf16>, vector<24x24xbf16> -> vector<24x216xbf16>
    %c0_298 = arith.constant 0 : index
    %c7_299 = arith.constant 7 : index
    %c0_300 = arith.constant 0 : index
    %c0_301 = arith.constant 0 : index
    %218 = vector.load %arg1[%c0_298, %c7_299, %c0_300, %c0_301] : memref<1x22x26x24xbf16, #tpu.memory_space<vmem>>, vector<1x1x24x24xbf16>
    %219 = vector.shape_cast %218 : vector<1x1x24x24xbf16> to vector<24x24xbf16>
    %c0_302 = arith.constant 0 : index
    %c7_303 = arith.constant 7 : index
    %c1_304 = arith.constant 1 : index
    %c0_305 = arith.constant 0 : index
    %220 = vector.load %arg1[%c0_302, %c7_303, %c1_304, %c0_305] : memref<1x22x26x24xbf16, #tpu.memory_space<vmem>>, vector<1x1x24x24xbf16>
    %221 = vector.shape_cast %220 : vector<1x1x24x24xbf16> to vector<24x24xbf16>
    %c0_306 = arith.constant 0 : index
    %c7_307 = arith.constant 7 : index
    %c2_308 = arith.constant 2 : index
    %c0_309 = arith.constant 0 : index
    %222 = vector.load %arg1[%c0_306, %c7_307, %c2_308, %c0_309] : memref<1x22x26x24xbf16, #tpu.memory_space<vmem>>, vector<1x1x24x24xbf16>
    %223 = vector.shape_cast %222 : vector<1x1x24x24xbf16> to vector<24x24xbf16>
    %c0_310 = arith.constant 0 : index
    %c8_311 = arith.constant 8 : index
    %c0_312 = arith.constant 0 : index
    %c0_313 = arith.constant 0 : index
    %224 = vector.load %arg1[%c0_310, %c8_311, %c0_312, %c0_313] : memref<1x22x26x24xbf16, #tpu.memory_space<vmem>>, vector<1x1x24x24xbf16>
    %225 = vector.shape_cast %224 : vector<1x1x24x24xbf16> to vector<24x24xbf16>
    %c0_314 = arith.constant 0 : index
    %c8_315 = arith.constant 8 : index
    %c1_316 = arith.constant 1 : index
    %c0_317 = arith.constant 0 : index
    %226 = vector.load %arg1[%c0_314, %c8_315, %c1_316, %c0_317] : memref<1x22x26x24xbf16, #tpu.memory_space<vmem>>, vector<1x1x24x24xbf16>
    %227 = vector.shape_cast %226 : vector<1x1x24x24xbf16> to vector<24x24xbf16>
    %c0_318 = arith.constant 0 : index
    %c8_319 = arith.constant 8 : index
    %c2_320 = arith.constant 2 : index
    %c0_321 = arith.constant 0 : index
    %228 = vector.load %arg1[%c0_318, %c8_319, %c2_320, %c0_321] : memref<1x22x26x24xbf16, #tpu.memory_space<vmem>>, vector<1x1x24x24xbf16>
    %229 = vector.shape_cast %228 : vector<1x1x24x24xbf16> to vector<24x24xbf16>
    %c0_322 = arith.constant 0 : index
    %c9 = arith.constant 9 : index
    %c0_323 = arith.constant 0 : index
    %c0_324 = arith.constant 0 : index
    %230 = vector.load %arg1[%c0_322, %c9, %c0_323, %c0_324] : memref<1x22x26x24xbf16, #tpu.memory_space<vmem>>, vector<1x1x24x24xbf16>
    %231 = vector.shape_cast %230 : vector<1x1x24x24xbf16> to vector<24x24xbf16>
    %c0_325 = arith.constant 0 : index
    %c9_326 = arith.constant 9 : index
    %c1_327 = arith.constant 1 : index
    %c0_328 = arith.constant 0 : index
    %232 = vector.load %arg1[%c0_325, %c9_326, %c1_327, %c0_328] : memref<1x22x26x24xbf16, #tpu.memory_space<vmem>>, vector<1x1x24x24xbf16>
    %233 = vector.shape_cast %232 : vector<1x1x24x24xbf16> to vector<24x24xbf16>
    %c0_329 = arith.constant 0 : index
    %c9_330 = arith.constant 9 : index
    %c2_331 = arith.constant 2 : index
    %c0_332 = arith.constant 0 : index
    %234 = vector.load %arg1[%c0_329, %c9_330, %c2_331, %c0_332] : memref<1x22x26x24xbf16, #tpu.memory_space<vmem>>, vector<1x1x24x24xbf16>
    %235 = vector.shape_cast %234 : vector<1x1x24x24xbf16> to vector<24x24xbf16>
    %236 = tpu.concatenate %219, %221, %223, %225, %227, %229, %231, %233, %235 in 1 : vector<24x24xbf16>, vector<24x24xbf16>, vector<24x24xbf16>, vector<24x24xbf16>, vector<24x24xbf16>, vector<24x24xbf16>, vector<24x24xbf16>, vector<24x24xbf16>, vector<24x24xbf16> -> vector<24x216xbf16>
    %237 = tpu.concatenate %217, %236 in 0 : vector<24x216xbf16>, vector<24x216xbf16> -> vector<48x216xbf16>
    %c0_333 = arith.constant 0 : index
    %c0_334 = arith.constant 0 : index
    %238 = vector.load %arg2[%c0_333, %c0_334] : memref<216x160xbf16, #tpu.memory_space<vmem>>, vector<216x160xbf16>
    %cst_335 = arith.constant dense<0.000000e+00> : vector<48x160xf32>
    %239 = tpu.matmul %237, %238, %cst_335 {dimension_numbers = #tpu.dot_dimension_numbers<[1], [0], [0], [1], [0, 0, 1, 1], [], []>} : vector<48x216xbf16>, vector<216x160xbf16>, vector<48x160xf32> -> vector<48x160xf32>
    %240 = vector.extract_strided_slice %239 {offsets = [0, 0], sizes = [24, 160], strides = [1, 1]} : vector<48x160xf32> to vector<24x160xf32>
    %241 = vector.extract_strided_slice %239 {offsets = [24, 0], sizes = [24, 160], strides = [1, 1]} : vector<48x160xf32> to vector<24x160xf32>
    %242 = arith.maximumf %240, %241 : vector<24x160xf32>
    %243 = arith.truncf %242 : vector<24x160xf32> to vector<24x160xbf16>
    %c0_336 = arith.constant 0 : index
    %c0_337 = arith.constant 0 : index
    %244 = vector.load %arg3[%c0_336, %c0_337] : memref<28x24xbf16, #tpu.memory_space<vmem>>, vector<28x24xbf16>
    %cst_338 = arith.constant dense<0.000000e+00> : vector<28x160xf32>
    %245 = tpu.matmul %244, %243, %cst_338 {dimension_numbers = #tpu.dot_dimension_numbers<[1], [0], [0], [1], [0, 0, 1, 1], [], []>} : vector<28x24xbf16>, vector<24x160xbf16>, vector<28x160xf32> -> vector<28x160xf32>
    %246 = vector.extract_strided_slice %245 {offsets = [0, 0], sizes = [14, 160], strides = [1, 1]} : vector<28x160xf32> to vector<14x160xf32>
    %247 = vector.extract_strided_slice %245 {offsets = [14, 0], sizes = [14, 160], strides = [1, 1]} : vector<28x160xf32> to vector<14x160xf32>
    %248 = arith.maximumf %246, %247 : vector<14x160xf32>
    %249 = arith.truncf %248 : vector<14x160xf32> to vector<14x160xbf16>
    %c0_339 = arith.constant 0 : index
    %c0_340 = arith.constant 0 : index
    %250 = vector.load %arg4[%c0_339, %c0_340] : memref<160x256xbf16, #tpu.memory_space<vmem>>, vector<160x256xbf16>
    %cst_341 = arith.constant dense<0.000000e+00> : vector<14x256xf32>
    %251 = tpu.matmul %249, %250, %cst_341 {dimension_numbers = #tpu.dot_dimension_numbers<[1], [0], [0], [1], [0, 0, 1, 1], [], []>} : vector<14x160xbf16>, vector<160x256xbf16>, vector<14x256xf32> -> vector<14x256xf32>
    %252 = vector.extract_strided_slice %251 {offsets = [0, 0], sizes = [14, 128], strides = [1, 1]} : vector<14x256xf32> to vector<14x128xf32>
    %253 = vector.extract_strided_slice %251 {offsets = [0, 128], sizes = [14, 128], strides = [1, 1]} : vector<14x256xf32> to vector<14x128xf32>
    %254 = arith.maximumf %252, %253 : vector<14x128xf32>
    %c0_342 = arith.constant 0 : index
    %c0_343 = arith.constant 0 : index
    %255 = vector.load %arg5[%c0_342, %c0_343] : memref<14x128xf32, #tpu.memory_space<vmem>>, vector<14x128xf32>
    %256 = arith.addf %254, %255 : vector<14x128xf32>
    %cst_344 = arith.constant 0.000000e+00 : f32
    %257 = vector.broadcast %cst_344 : f32 to vector<14x128xf32>
    %258 = arith.maximumf %256, %257 : vector<14x128xf32>
    %259 = arith.truncf %258 : vector<14x128xf32> to vector<14x128xbf16>
    %c0_345 = arith.constant 0 : index
    %c4_346 = arith.constant 4 : index
    %c0_347 = arith.constant 0 : index
    %c0_348 = arith.constant 0 : index
    %260 = vector.load %arg6[%c0_345, %c4_346, %c0_347, %c0_348] : memref<1x12x14x128xbf16, #tpu.memory_space<vmem>>, vector<1x1x14x128xbf16>
    %261 = vector.shape_cast %260 : vector<1x1x14x128xbf16> to vector<14x128xbf16>
    %262 = vector.shape_cast %259 : vector<14x128xbf16> to vector<1x1x14x128xbf16>
    tpu.vector_store %arg6[%c0_345, %c4_346, %c0_347, %c0_348], %262 {strides = array<i32>} : memref<1x12x14x128xbf16, #tpu.memory_space<vmem>>, vector<1x1x14x128xbf16>,
    %c0_349 = arith.constant 0 : index
    %c8_350 = arith.constant 8 : index
    %c0_351 = arith.constant 0 : index
    %c0_352 = arith.constant 0 : index
    %263 = vector.load %arg1[%c0_349, %c8_350, %c0_351, %c0_352] : memref<1x22x26x24xbf16, #tpu.memory_space<vmem>>, vector<1x1x24x24xbf16>
    %264 = vector.shape_cast %263 : vector<1x1x24x24xbf16> to vector<24x24xbf16>
    %c0_353 = arith.constant 0 : index
    %c8_354 = arith.constant 8 : index
    %c1_355 = arith.constant 1 : index
    %c0_356 = arith.constant 0 : index
    %265 = vector.load %arg1[%c0_353, %c8_354, %c1_355, %c0_356] : memref<1x22x26x24xbf16, #tpu.memory_space<vmem>>, vector<1x1x24x24xbf16>
    %266 = vector.shape_cast %265 : vector<1x1x24x24xbf16> to vector<24x24xbf16>
    %c0_357 = arith.constant 0 : index
    %c8_358 = arith.constant 8 : index
    %c2_359 = arith.constant 2 : index
    %c0_360 = arith.constant 0 : index
    %267 = vector.load %arg1[%c0_357, %c8_358, %c2_359, %c0_360] : memref<1x22x26x24xbf16, #tpu.memory_space<vmem>>, vector<1x1x24x24xbf16>
    %268 = vector.shape_cast %267 : vector<1x1x24x24xbf16> to vector<24x24xbf16>
    %c0_361 = arith.constant 0 : index
    %c9_362 = arith.constant 9 : index
    %c0_363 = arith.constant 0 : index
    %c0_364 = arith.constant 0 : index
    %269 = vector.load %arg1[%c0_361, %c9_362, %c0_363, %c0_364] : memref<1x22x26x24xbf16, #tpu.memory_space<vmem>>, vector<1x1x24x24xbf16>
    %270 = vector.shape_cast %269 : vector<1x1x24x24xbf16> to vector<24x24xbf16>
    %c0_365 = arith.constant 0 : index
    %c9_366 = arith.constant 9 : index
    %c1_367 = arith.constant 1 : index
    %c0_368 = arith.constant 0 : index
    %271 = vector.load %arg1[%c0_365, %c9_366, %c1_367, %c0_368] : memref<1x22x26x24xbf16, #tpu.memory_space<vmem>>, vector<1x1x24x24xbf16>
    %272 = vector.shape_cast %271 : vector<1x1x24x24xbf16> to vector<24x24xbf16>
    %c0_369 = arith.constant 0 : index
    %c9_370 = arith.constant 9 : index
    %c2_371 = arith.constant 2 : index
    %c0_372 = arith.constant 0 : index
    %273 = vector.load %arg1[%c0_369, %c9_370, %c2_371, %c0_372] : memref<1x22x26x24xbf16, #tpu.memory_space<vmem>>, vector<1x1x24x24xbf16>
    %274 = vector.shape_cast %273 : vector<1x1x24x24xbf16> to vector<24x24xbf16>
    %c0_373 = arith.constant 0 : index
    %c10 = arith.constant 10 : index
    %c0_374 = arith.constant 0 : index
    %c0_375 = arith.constant 0 : index
    %275 = vector.load %arg1[%c0_373, %c10, %c0_374, %c0_375] : memref<1x22x26x24xbf16, #tpu.memory_space<vmem>>, vector<1x1x24x24xbf16>
    %276 = vector.shape_cast %275 : vector<1x1x24x24xbf16> to vector<24x24xbf16>
    %c0_376 = arith.constant 0 : index
    %c10_377 = arith.constant 10 : index
    %c1_378 = arith.constant 1 : index
    %c0_379 = arith.constant 0 : index
    %277 = vector.load %arg1[%c0_376, %c10_377, %c1_378, %c0_379] : memref<1x22x26x24xbf16, #tpu.memory_space<vmem>>, vector<1x1x24x24xbf16>
    %278 = vector.shape_cast %277 : vector<1x1x24x24xbf16> to vector<24x24xbf16>
    %c0_380 = arith.constant 0 : index
    %c10_381 = arith.constant 10 : index
    %c2_382 = arith.constant 2 : index
    %c0_383 = arith.constant 0 : index
    %279 = vector.load %arg1[%c0_380, %c10_381, %c2_382, %c0_383] : memref<1x22x26x24xbf16, #tpu.memory_space<vmem>>, vector<1x1x24x24xbf16>
    %280 = vector.shape_cast %279 : vector<1x1x24x24xbf16> to vector<24x24xbf16>
    %281 = tpu.concatenate %264, %266, %268, %270, %272, %274, %276, %278, %280 in 1 : vector<24x24xbf16>, vector<24x24xbf16>, vector<24x24xbf16>, vector<24x24xbf16>, vector<24x24xbf16>, vector<24x24xbf16>, vector<24x24xbf16>, vector<24x24xbf16>, vector<24x24xbf16> -> vector<24x216xbf16>
    %c0_384 = arith.constant 0 : index
    %c9_385 = arith.constant 9 : index
    %c0_386 = arith.constant 0 : index
    %c0_387 = arith.constant 0 : index
    %282 = vector.load %arg1[%c0_384, %c9_385, %c0_386, %c0_387] : memref<1x22x26x24xbf16, #tpu.memory_space<vmem>>, vector<1x1x24x24xbf16>
    %283 = vector.shape_cast %282 : vector<1x1x24x24xbf16> to vector<24x24xbf16>
    %c0_388 = arith.constant 0 : index
    %c9_389 = arith.constant 9 : index
    %c1_390 = arith.constant 1 : index
    %c0_391 = arith.constant 0 : index
    %284 = vector.load %arg1[%c0_388, %c9_389, %c1_390, %c0_391] : memref<1x22x26x24xbf16, #tpu.memory_space<vmem>>, vector<1x1x24x24xbf16>
    %285 = vector.shape_cast %284 : vector<1x1x24x24xbf16> to vector<24x24xbf16>
    %c0_392 = arith.constant 0 : index
    %c9_393 = arith.constant 9 : index
    %c2_394 = arith.constant 2 : index
    %c0_395 = arith.constant 0 : index
    %286 = vector.load %arg1[%c0_392, %c9_393, %c2_394, %c0_395] : memref<1x22x26x24xbf16, #tpu.memory_space<vmem>>, vector<1x1x24x24xbf16>
    %287 = vector.shape_cast %286 : vector<1x1x24x24xbf16> to vector<24x24xbf16>
    %c0_396 = arith.constant 0 : index
    %c10_397 = arith.constant 10 : index
    %c0_398 = arith.constant 0 : index
    %c0_399 = arith.constant 0 : index
    %288 = vector.load %arg1[%c0_396, %c10_397, %c0_398, %c0_399] : memref<1x22x26x24xbf16, #tpu.memory_space<vmem>>, vector<1x1x24x24xbf16>
    %289 = vector.shape_cast %288 : vector<1x1x24x24xbf16> to vector<24x24xbf16>
    %c0_400 = arith.constant 0 : index
    %c10_401 = arith.constant 10 : index
    %c1_402 = arith.constant 1 : index
    %c0_403 = arith.constant 0 : index
    %290 = vector.load %arg1[%c0_400, %c10_401, %c1_402, %c0_403] : memref<1x22x26x24xbf16, #tpu.memory_space<vmem>>, vector<1x1x24x24xbf16>
    %291 = vector.shape_cast %290 : vector<1x1x24x24xbf16> to vector<24x24xbf16>
    %c0_404 = arith.constant 0 : index
    %c10_405 = arith.constant 10 : index
    %c2_406 = arith.constant 2 : index
    %c0_407 = arith.constant 0 : index
    %292 = vector.load %arg1[%c0_404, %c10_405, %c2_406, %c0_407] : memref<1x22x26x24xbf16, #tpu.memory_space<vmem>>, vector<1x1x24x24xbf16>
    %293 = vector.shape_cast %292 : vector<1x1x24x24xbf16> to vector<24x24xbf16>
    %c0_408 = arith.constant 0 : index
    %c11_409 = arith.constant 11 : index
    %c0_410 = arith.constant 0 : index
    %c0_411 = arith.constant 0 : index
    %294 = vector.load %arg1[%c0_408, %c11_409, %c0_410, %c0_411] : memref<1x22x26x24xbf16, #tpu.memory_space<vmem>>, vector<1x1x24x24xbf16>
    %295 = vector.shape_cast %294 : vector<1x1x24x24xbf16> to vector<24x24xbf16>
    %c0_412 = arith.constant 0 : index
    %c11_413 = arith.constant 11 : index
    %c1_414 = arith.constant 1 : index
    %c0_415 = arith.constant 0 : index
    %296 = vector.load %arg1[%c0_412, %c11_413, %c1_414, %c0_415] : memref<1x22x26x24xbf16, #tpu.memory_space<vmem>>, vector<1x1x24x24xbf16>
    %297 = vector.shape_cast %296 : vector<1x1x24x24xbf16> to vector<24x24xbf16>
    %c0_416 = arith.constant 0 : index
    %c11_417 = arith.constant 11 : index
    %c2_418 = arith.constant 2 : index
    %c0_419 = arith.constant 0 : index
    %298 = vector.load %arg1[%c0_416, %c11_417, %c2_418, %c0_419] : memref<1x22x26x24xbf16, #tpu.memory_space<vmem>>, vector<1x1x24x24xbf16>
    %299 = vector.shape_cast %298 : vector<1x1x24x24xbf16> to vector<24x24xbf16>
    %300 = tpu.concatenate %283, %285, %287, %289, %291, %293, %295, %297, %299 in 1 : vector<24x24xbf16>, vector<24x24xbf16>, vector<24x24xbf16>, vector<24x24xbf16>, vector<24x24xbf16>, vector<24x24xbf16>, vector<24x24xbf16>, vector<24x24xbf16>, vector<24x24xbf16> -> vector<24x216xbf16>
    %301 = tpu.concatenate %281, %300 in 0 : vector<24x216xbf16>, vector<24x216xbf16> -> vector<48x216xbf16>
    %c0_420 = arith.constant 0 : index
    %c0_421 = arith.constant 0 : index
    %302 = vector.load %arg2[%c0_420, %c0_421] : memref<216x160xbf16, #tpu.memory_space<vmem>>, vector<216x160xbf16>
    %cst_422 = arith.constant dense<0.000000e+00> : vector<48x160xf32>
    %303 = tpu.matmul %301, %302, %cst_422 {dimension_numbers = #tpu.dot_dimension_numbers<[1], [0], [0], [1], [0, 0, 1, 1], [], []>} : vector<48x216xbf16>, vector<216x160xbf16>, vector<48x160xf32> -> vector<48x160xf32>
    %304 = vector.extract_strided_slice %303 {offsets = [0, 0], sizes = [24, 160], strides = [1, 1]} : vector<48x160xf32> to vector<24x160xf32>
    %305 = vector.extract_strided_slice %303 {offsets = [24, 0], sizes = [24, 160], strides = [1, 1]} : vector<48x160xf32> to vector<24x160xf32>
    %306 = arith.maximumf %304, %305 : vector<24x160xf32>
    %307 = arith.truncf %306 : vector<24x160xf32> to vector<24x160xbf16>
    %c0_423 = arith.constant 0 : index
    %c0_424 = arith.constant 0 : index
    %308 = vector.load %arg3[%c0_423, %c0_424] : memref<28x24xbf16, #tpu.memory_space<vmem>>, vector<28x24xbf16>
    %cst_425 = arith.constant dense<0.000000e+00> : vector<28x160xf32>
    %309 = tpu.matmul %308, %307, %cst_425 {dimension_numbers = #tpu.dot_dimension_numbers<[1], [0], [0], [1], [0, 0, 1, 1], [], []>} : vector<28x24xbf16>, vector<24x160xbf16>, vector<28x160xf32> -> vector<28x160xf32>
    %310 = vector.extract_strided_slice %309 {offsets = [0, 0], sizes = [14, 160], strides = [1, 1]} : vector<28x160xf32> to vector<14x160xf32>
    %311 = vector.extract_strided_slice %309 {offsets = [14, 0], sizes = [14, 160], strides = [1, 1]} : vector<28x160xf32> to vector<14x160xf32>
    %312 = arith.maximumf %310, %311 : vector<14x160xf32>
    %313 = arith.truncf %312 : vector<14x160xf32> to vector<14x160xbf16>
    %c0_426 = arith.constant 0 : index
    %c0_427 = arith.constant 0 : index
    %314 = vector.load %arg4[%c0_426, %c0_427] : memref<160x256xbf16, #tpu.memory_space<vmem>>, vector<160x256xbf16>
    %cst_428 = arith.constant dense<0.000000e+00> : vector<14x256xf32>
    %315 = tpu.matmul %313, %314, %cst_428 {dimension_numbers = #tpu.dot_dimension_numbers<[1], [0], [0], [1], [0, 0, 1, 1], [], []>} : vector<14x160xbf16>, vector<160x256xbf16>, vector<14x256xf32> -> vector<14x256xf32>
    %316 = vector.extract_strided_slice %315 {offsets = [0, 0], sizes = [14, 128], strides = [1, 1]} : vector<14x256xf32> to vector<14x128xf32>
    %317 = vector.extract_strided_slice %315 {offsets = [0, 128], sizes = [14, 128], strides = [1, 1]} : vector<14x256xf32> to vector<14x128xf32>
    %318 = arith.maximumf %316, %317 : vector<14x128xf32>
    %c0_429 = arith.constant 0 : index
    %c0_430 = arith.constant 0 : index
    %319 = vector.load %arg5[%c0_429, %c0_430] : memref<14x128xf32, #tpu.memory_space<vmem>>, vector<14x128xf32>
    %320 = arith.addf %318, %319 : vector<14x128xf32>
    %cst_431 = arith.constant 0.000000e+00 : f32
    %321 = vector.broadcast %cst_431 : f32 to vector<14x128xf32>
    %322 = arith.maximumf %320, %321 : vector<14x128xf32>
    %323 = arith.truncf %322 : vector<14x128xf32> to vector<14x128xbf16>
    %c0_432 = arith.constant 0 : index
    %c5_433 = arith.constant 5 : index
    %c0_434 = arith.constant 0 : index
    %c0_435 = arith.constant 0 : index
    %324 = vector.load %arg6[%c0_432, %c5_433, %c0_434, %c0_435] : memref<1x12x14x128xbf16, #tpu.memory_space<vmem>>, vector<1x1x14x128xbf16>
    %325 = vector.shape_cast %324 : vector<1x1x14x128xbf16> to vector<14x128xbf16>
    %326 = vector.shape_cast %323 : vector<14x128xbf16> to vector<1x1x14x128xbf16>
    tpu.vector_store %arg6[%c0_432, %c5_433, %c0_434, %c0_435], %326 {strides = array<i32>} : memref<1x12x14x128xbf16, #tpu.memory_space<vmem>>, vector<1x1x14x128xbf16>,
    %c0_436 = arith.constant 0 : index
    %c10_437 = arith.constant 10 : index
    %c0_438 = arith.constant 0 : index
    %c0_439 = arith.constant 0 : index
    %327 = vector.load %arg1[%c0_436, %c10_437, %c0_438, %c0_439] : memref<1x22x26x24xbf16, #tpu.memory_space<vmem>>, vector<1x1x24x24xbf16>
    %328 = vector.shape_cast %327 : vector<1x1x24x24xbf16> to vector<24x24xbf16>
    %c0_440 = arith.constant 0 : index
    %c10_441 = arith.constant 10 : index
    %c1_442 = arith.constant 1 : index
    %c0_443 = arith.constant 0 : index
    %329 = vector.load %arg1[%c0_440, %c10_441, %c1_442, %c0_443] : memref<1x22x26x24xbf16, #tpu.memory_space<vmem>>, vector<1x1x24x24xbf16>
    %330 = vector.shape_cast %329 : vector<1x1x24x24xbf16> to vector<24x24xbf16>
    %c0_444 = arith.constant 0 : index
    %c10_445 = arith.constant 10 : index
    %c2_446 = arith.constant 2 : index
    %c0_447 = arith.constant 0 : index
    %331 = vector.load %arg1[%c0_444, %c10_445, %c2_446, %c0_447] : memref<1x22x26x24xbf16, #tpu.memory_space<vmem>>, vector<1x1x24x24xbf16>
    %332 = vector.shape_cast %331 : vector<1x1x24x24xbf16> to vector<24x24xbf16>
    %c0_448 = arith.constant 0 : index
    %c11_449 = arith.constant 11 : index
    %c0_450 = arith.constant 0 : index
    %c0_451 = arith.constant 0 : index
    %333 = vector.load %arg1[%c0_448, %c11_449, %c0_450, %c0_451] : memref<1x22x26x24xbf16, #tpu.memory_space<vmem>>, vector<1x1x24x24xbf16>
    %334 = vector.shape_cast %333 : vector<1x1x24x24xbf16> to vector<24x24xbf16>
    %c0_452 = arith.constant 0 : index
    %c11_453 = arith.constant 11 : index
    %c1_454 = arith.constant 1 : index
    %c0_455 = arith.constant 0 : index
    %335 = vector.load %arg1[%c0_452, %c11_453, %c1_454, %c0_455] : memref<1x22x26x24xbf16, #tpu.memory_space<vmem>>, vector<1x1x24x24xbf16>
    %336 = vector.shape_cast %335 : vector<1x1x24x24xbf16> to vector<24x24xbf16>
    %c0_456 = arith.constant 0 : index
    %c11_457 = arith.constant 11 : index
    %c2_458 = arith.constant 2 : index
    %c0_459 = arith.constant 0 : index
    %337 = vector.load %arg1[%c0_456, %c11_457, %c2_458, %c0_459] : memref<1x22x26x24xbf16, #tpu.memory_space<vmem>>, vector<1x1x24x24xbf16>
    %338 = vector.shape_cast %337 : vector<1x1x24x24xbf16> to vector<24x24xbf16>
    %c0_460 = arith.constant 0 : index
    %c12 = arith.constant 12 : index
    %c0_461 = arith.constant 0 : index
    %c0_462 = arith.constant 0 : index
    %339 = vector.load %arg1[%c0_460, %c12, %c0_461, %c0_462] : memref<1x22x26x24xbf16, #tpu.memory_space<vmem>>, vector<1x1x24x24xbf16>
    %340 = vector.shape_cast %339 : vector<1x1x24x24xbf16> to vector<24x24xbf16>
    %c0_463 = arith.constant 0 : index
    %c12_464 = arith.constant 12 : index
    %c1_465 = arith.constant 1 : index
    %c0_466 = arith.constant 0 : index
    %341 = vector.load %arg1[%c0_463, %c12_464, %c1_465, %c0_466] : memref<1x22x26x24xbf16, #tpu.memory_space<vmem>>, vector<1x1x24x24xbf16>
    %342 = vector.shape_cast %341 : vector<1x1x24x24xbf16> to vector<24x24xbf16>
    %c0_467 = arith.constant 0 : index
    %c12_468 = arith.constant 12 : index
    %c2_469 = arith.constant 2 : index
    %c0_470 = arith.constant 0 : index
    %343 = vector.load %arg1[%c0_467, %c12_468, %c2_469, %c0_470] : memref<1x22x26x24xbf16, #tpu.memory_space<vmem>>, vector<1x1x24x24xbf16>
    %344 = vector.shape_cast %343 : vector<1x1x24x24xbf16> to vector<24x24xbf16>
    %345 = tpu.concatenate %328, %330, %332, %334, %336, %338, %340, %342, %344 in 1 : vector<24x24xbf16>, vector<24x24xbf16>, vector<24x24xbf16>, vector<24x24xbf16>, vector<24x24xbf16>, vector<24x24xbf16>, vector<24x24xbf16>, vector<24x24xbf16>, vector<24x24xbf16> -> vector<24x216xbf16>
    %c0_471 = arith.constant 0 : index
    %c11_472 = arith.constant 11 : index
    %c0_473 = arith.constant 0 : index
    %c0_474 = arith.constant 0 : index
    %346 = vector.load %arg1[%c0_471, %c11_472, %c0_473, %c0_474] : memref<1x22x26x24xbf16, #tpu.memory_space<vmem>>, vector<1x1x24x24xbf16>
    %347 = vector.shape_cast %346 : vector<1x1x24x24xbf16> to vector<24x24xbf16>
    %c0_475 = arith.constant 0 : index
    %c11_476 = arith.constant 11 : index
    %c1_477 = arith.constant 1 : index
    %c0_478 = arith.constant 0 : index
    %348 = vector.load %arg1[%c0_475, %c11_476, %c1_477, %c0_478] : memref<1x22x26x24xbf16, #tpu.memory_space<vmem>>, vector<1x1x24x24xbf16>
    %349 = vector.shape_cast %348 : vector<1x1x24x24xbf16> to vector<24x24xbf16>
    %c0_479 = arith.constant 0 : index
    %c11_480 = arith.constant 11 : index
    %c2_481 = arith.constant 2 : index
    %c0_482 = arith.constant 0 : index
    %350 = vector.load %arg1[%c0_479, %c11_480, %c2_481, %c0_482] : memref<1x22x26x24xbf16, #tpu.memory_space<vmem>>, vector<1x1x24x24xbf16>
    %351 = vector.shape_cast %350 : vector<1x1x24x24xbf16> to vector<24x24xbf16>
    %c0_483 = arith.constant 0 : index
    %c12_484 = arith.constant 12 : index
    %c0_485 = arith.constant 0 : index
    %c0_486 = arith.constant 0 : index
    %352 = vector.load %arg1[%c0_483, %c12_484, %c0_485, %c0_486] : memref<1x22x26x24xbf16, #tpu.memory_space<vmem>>, vector<1x1x24x24xbf16>
    %353 = vector.shape_cast %352 : vector<1x1x24x24xbf16> to vector<24x24xbf16>
    %c0_487 = arith.constant 0 : index
    %c12_488 = arith.constant 12 : index
    %c1_489 = arith.constant 1 : index
    %c0_490 = arith.constant 0 : index
    %354 = vector.load %arg1[%c0_487, %c12_488, %c1_489, %c0_490] : memref<1x22x26x24xbf16, #tpu.memory_space<vmem>>, vector<1x1x24x24xbf16>
    %355 = vector.shape_cast %354 : vector<1x1x24x24xbf16> to vector<24x24xbf16>
    %c0_491 = arith.constant 0 : index
    %c12_492 = arith.constant 12 : index
    %c2_493 = arith.constant 2 : index
    %c0_494 = arith.constant 0 : index
    %356 = vector.load %arg1[%c0_491, %c12_492, %c2_493, %c0_494] : memref<1x22x26x24xbf16, #tpu.memory_space<vmem>>, vector<1x1x24x24xbf16>
    %357 = vector.shape_cast %356 : vector<1x1x24x24xbf16> to vector<24x24xbf16>
    %c0_495 = arith.constant 0 : index
    %c13 = arith.constant 13 : index
    %c0_496 = arith.constant 0 : index
    %c0_497 = arith.constant 0 : index
    %358 = vector.load %arg1[%c0_495, %c13, %c0_496, %c0_497] : memref<1x22x26x24xbf16, #tpu.memory_space<vmem>>, vector<1x1x24x24xbf16>
    %359 = vector.shape_cast %358 : vector<1x1x24x24xbf16> to vector<24x24xbf16>
    %c0_498 = arith.constant 0 : index
    %c13_499 = arith.constant 13 : index
    %c1_500 = arith.constant 1 : index
    %c0_501 = arith.constant 0 : index
    %360 = vector.load %arg1[%c0_498, %c13_499, %c1_500, %c0_501] : memref<1x22x26x24xbf16, #tpu.memory_space<vmem>>, vector<1x1x24x24xbf16>
    %361 = vector.shape_cast %360 : vector<1x1x24x24xbf16> to vector<24x24xbf16>
    %c0_502 = arith.constant 0 : index
    %c13_503 = arith.constant 13 : index
    %c2_504 = arith.constant 2 : index
    %c0_505 = arith.constant 0 : index
    %362 = vector.load %arg1[%c0_502, %c13_503, %c2_504, %c0_505] : memref<1x22x26x24xbf16, #tpu.memory_space<vmem>>, vector<1x1x24x24xbf16>
    %363 = vector.shape_cast %362 : vector<1x1x24x24xbf16> to vector<24x24xbf16>
    %364 = tpu.concatenate %347, %349, %351, %353, %355, %357, %359, %361, %363 in 1 : vector<24x24xbf16>, vector<24x24xbf16>, vector<24x24xbf16>, vector<24x24xbf16>, vector<24x24xbf16>, vector<24x24xbf16>, vector<24x24xbf16>, vector<24x24xbf16>, vector<24x24xbf16> -> vector<24x216xbf16>
    %365 = tpu.concatenate %345, %364 in 0 : vector<24x216xbf16>, vector<24x216xbf16> -> vector<48x216xbf16>
    %c0_506 = arith.constant 0 : index
    %c0_507 = arith.constant 0 : index
    %366 = vector.load %arg2[%c0_506, %c0_507] : memref<216x160xbf16, #tpu.memory_space<vmem>>, vector<216x160xbf16>
    %cst_508 = arith.constant dense<0.000000e+00> : vector<48x160xf32>
    %367 = tpu.matmul %365, %366, %cst_508 {dimension_numbers = #tpu.dot_dimension_numbers<[1], [0], [0], [1], [0, 0, 1, 1], [], []>} : vector<48x216xbf16>, vector<216x160xbf16>, vector<48x160xf32> -> vector<48x160xf32>
    %368 = vector.extract_strided_slice %367 {offsets = [0, 0], sizes = [24, 160], strides = [1, 1]} : vector<48x160xf32> to vector<24x160xf32>
    %369 = vector.extract_strided_slice %367 {offsets = [24, 0], sizes = [24, 160], strides = [1, 1]} : vector<48x160xf32> to vector<24x160xf32>
    %370 = arith.maximumf %368, %369 : vector<24x160xf32>
    %371 = arith.truncf %370 : vector<24x160xf32> to vector<24x160xbf16>
    %c0_509 = arith.constant 0 : index
    %c0_510 = arith.constant 0 : index
    %372 = vector.load %arg3[%c0_509, %c0_510] : memref<28x24xbf16, #tpu.memory_space<vmem>>, vector<28x24xbf16>
    %cst_511 = arith.constant dense<0.000000e+00> : vector<28x160xf32>
    %373 = tpu.matmul %372, %371, %cst_511 {dimension_numbers = #tpu.dot_dimension_numbers<[1], [0], [0], [1], [0, 0, 1, 1], [], []>} : vector<28x24xbf16>, vector<24x160xbf16>, vector<28x160xf32> -> vector<28x160xf32>
    %374 = vector.extract_strided_slice %373 {offsets = [0, 0], sizes = [14, 160], strides = [1, 1]} : vector<28x160xf32> to vector<14x160xf32>
    %375 = vector.extract_strided_slice %373 {offsets = [14, 0], sizes = [14, 160], strides = [1, 1]} : vector<28x160xf32> to vector<14x160xf32>
    %376 = arith.maximumf %374, %375 : vector<14x160xf32>
    %377 = arith.truncf %376 : vector<14x160xf32> to vector<14x160xbf16>
    %c0_512 = arith.constant 0 : index
    %c0_513 = arith.constant 0 : index
    %378 = vector.load %arg4[%c0_512, %c0_513] : memref<160x256xbf16, #tpu.memory_space<vmem>>, vector<160x256xbf16>
    %cst_514 = arith.constant dense<0.000000e+00> : vector<14x256xf32>
    %379 = tpu.matmul %377, %378, %cst_514 {dimension_numbers = #tpu.dot_dimension_numbers<[1], [0], [0], [1], [0, 0, 1, 1], [], []>} : vector<14x160xbf16>, vector<160x256xbf16>, vector<14x256xf32> -> vector<14x256xf32>
    %380 = vector.extract_strided_slice %379 {offsets = [0, 0], sizes = [14, 128], strides = [1, 1]} : vector<14x256xf32> to vector<14x128xf32>
    %381 = vector.extract_strided_slice %379 {offsets = [0, 128], sizes = [14, 128], strides = [1, 1]} : vector<14x256xf32> to vector<14x128xf32>
    %382 = arith.maximumf %380, %381 : vector<14x128xf32>
    %c0_515 = arith.constant 0 : index
    %c0_516 = arith.constant 0 : index
    %383 = vector.load %arg5[%c0_515, %c0_516] : memref<14x128xf32, #tpu.memory_space<vmem>>, vector<14x128xf32>
    %384 = arith.addf %382, %383 : vector<14x128xf32>
    %cst_517 = arith.constant 0.000000e+00 : f32
    %385 = vector.broadcast %cst_517 : f32 to vector<14x128xf32>
    %386 = arith.maximumf %384, %385 : vector<14x128xf32>
    %387 = arith.truncf %386 : vector<14x128xf32> to vector<14x128xbf16>
    %c0_518 = arith.constant 0 : index
    %c6_519 = arith.constant 6 : index
    %c0_520 = arith.constant 0 : index
    %c0_521 = arith.constant 0 : index
    %388 = vector.load %arg6[%c0_518, %c6_519, %c0_520, %c0_521] : memref<1x12x14x128xbf16, #tpu.memory_space<vmem>>, vector<1x1x14x128xbf16>
    %389 = vector.shape_cast %388 : vector<1x1x14x128xbf16> to vector<14x128xbf16>
    %390 = vector.shape_cast %387 : vector<14x128xbf16> to vector<1x1x14x128xbf16>
    tpu.vector_store %arg6[%c0_518, %c6_519, %c0_520, %c0_521], %390 {strides = array<i32>} : memref<1x12x14x128xbf16, #tpu.memory_space<vmem>>, vector<1x1x14x128xbf16>,
    %c0_522 = arith.constant 0 : index
    %c12_523 = arith.constant 12 : index
    %c0_524 = arith.constant 0 : index
    %c0_525 = arith.constant 0 : index
    %391 = vector.load %arg1[%c0_522, %c12_523, %c0_524, %c0_525] : memref<1x22x26x24xbf16, #tpu.memory_space<vmem>>, vector<1x1x24x24xbf16>
    %392 = vector.shape_cast %391 : vector<1x1x24x24xbf16> to vector<24x24xbf16>
    %c0_526 = arith.constant 0 : index
    %c12_527 = arith.constant 12 : index
    %c1_528 = arith.constant 1 : index
    %c0_529 = arith.constant 0 : index
    %393 = vector.load %arg1[%c0_526, %c12_527, %c1_528, %c0_529] : memref<1x22x26x24xbf16, #tpu.memory_space<vmem>>, vector<1x1x24x24xbf16>
    %394 = vector.shape_cast %393 : vector<1x1x24x24xbf16> to vector<24x24xbf16>
    %c0_530 = arith.constant 0 : index
    %c12_531 = arith.constant 12 : index
    %c2_532 = arith.constant 2 : index
    %c0_533 = arith.constant 0 : index
    %395 = vector.load %arg1[%c0_530, %c12_531, %c2_532, %c0_533] : memref<1x22x26x24xbf16, #tpu.memory_space<vmem>>, vector<1x1x24x24xbf16>
    %396 = vector.shape_cast %395 : vector<1x1x24x24xbf16> to vector<24x24xbf16>
    %c0_534 = arith.constant 0 : index
    %c13_535 = arith.constant 13 : index
    %c0_536 = arith.constant 0 : index
    %c0_537 = arith.constant 0 : index
    %397 = vector.load %arg1[%c0_534, %c13_535, %c0_536, %c0_537] : memref<1x22x26x24xbf16, #tpu.memory_space<vmem>>, vector<1x1x24x24xbf16>
    %398 = vector.shape_cast %397 : vector<1x1x24x24xbf16> to vector<24x24xbf16>
    %c0_538 = arith.constant 0 : index
    %c13_539 = arith.constant 13 : index
    %c1_540 = arith.constant 1 : index
    %c0_541 = arith.constant 0 : index
    %399 = vector.load %arg1[%c0_538, %c13_539, %c1_540, %c0_541] : memref<1x22x26x24xbf16, #tpu.memory_space<vmem>>, vector<1x1x24x24xbf16>
    %400 = vector.shape_cast %399 : vector<1x1x24x24xbf16> to vector<24x24xbf16>
    %c0_542 = arith.constant 0 : index
    %c13_543 = arith.constant 13 : index
    %c2_544 = arith.constant 2 : index
    %c0_545 = arith.constant 0 : index
    %401 = vector.load %arg1[%c0_542, %c13_543, %c2_544, %c0_545] : memref<1x22x26x24xbf16, #tpu.memory_space<vmem>>, vector<1x1x24x24xbf16>
    %402 = vector.shape_cast %401 : vector<1x1x24x24xbf16> to vector<24x24xbf16>
    %c0_546 = arith.constant 0 : index
    %c14 = arith.constant 14 : index
    %c0_547 = arith.constant 0 : index
    %c0_548 = arith.constant 0 : index
    %403 = vector.load %arg1[%c0_546, %c14, %c0_547, %c0_548] : memref<1x22x26x24xbf16, #tpu.memory_space<vmem>>, vector<1x1x24x24xbf16>
    %404 = vector.shape_cast %403 : vector<1x1x24x24xbf16> to vector<24x24xbf16>
    %c0_549 = arith.constant 0 : index
    %c14_550 = arith.constant 14 : index
    %c1_551 = arith.constant 1 : index
    %c0_552 = arith.constant 0 : index
    %405 = vector.load %arg1[%c0_549, %c14_550, %c1_551, %c0_552] : memref<1x22x26x24xbf16, #tpu.memory_space<vmem>>, vector<1x1x24x24xbf16>
    %406 = vector.shape_cast %405 : vector<1x1x24x24xbf16> to vector<24x24xbf16>
    %c0_553 = arith.constant 0 : index
    %c14_554 = arith.constant 14 : index
    %c2_555 = arith.constant 2 : index
    %c0_556 = arith.constant 0 : index
    %407 = vector.load %arg1[%c0_553, %c14_554, %c2_555, %c0_556] : memref<1x22x26x24xbf16, #tpu.memory_space<vmem>>, vector<1x1x24x24xbf16>
    %408 = vector.shape_cast %407 : vector<1x1x24x24xbf16> to vector<24x24xbf16>
    %409 = tpu.concatenate %392, %394, %396, %398, %400, %402, %404, %406, %408 in 1 : vector<24x24xbf16>, vector<24x24xbf16>, vector<24x24xbf16>, vector<24x24xbf16>, vector<24x24xbf16>, vector<24x24xbf16>, vector<24x24xbf16>, vector<24x24xbf16>, vector<24x24xbf16> -> vector<24x216xbf16>
    %c0_557 = arith.constant 0 : index
    %c13_558 = arith.constant 13 : index
    %c0_559 = arith.constant 0 : index
    %c0_560 = arith.constant 0 : index
    %410 = vector.load %arg1[%c0_557, %c13_558, %c0_559, %c0_560] : memref<1x22x26x24xbf16, #tpu.memory_space<vmem>>, vector<1x1x24x24xbf16>
    %411 = vector.shape_cast %410 : vector<1x1x24x24xbf16> to vector<24x24xbf16>
    %c0_561 = arith.constant 0 : index
    %c13_562 = arith.constant 13 : index
    %c1_563 = arith.constant 1 : index
    %c0_564 = arith.constant 0 : index
    %412 = vector.load %arg1[%c0_561, %c13_562, %c1_563, %c0_564] : memref<1x22x26x24xbf16, #tpu.memory_space<vmem>>, vector<1x1x24x24xbf16>
    %413 = vector.shape_cast %412 : vector<1x1x24x24xbf16> to vector<24x24xbf16>
    %c0_565 = arith.constant 0 : index
    %c13_566 = arith.constant 13 : index
    %c2_567 = arith.constant 2 : index
    %c0_568 = arith.constant 0 : index
    %414 = vector.load %arg1[%c0_565, %c13_566, %c2_567, %c0_568] : memref<1x22x26x24xbf16, #tpu.memory_space<vmem>>, vector<1x1x24x24xbf16>
    %415 = vector.shape_cast %414 : vector<1x1x24x24xbf16> to vector<24x24xbf16>
    %c0_569 = arith.constant 0 : index
    %c14_570 = arith.constant 14 : index
    %c0_571 = arith.constant 0 : index
    %c0_572 = arith.constant 0 : index
    %416 = vector.load %arg1[%c0_569, %c14_570, %c0_571, %c0_572] : memref<1x22x26x24xbf16, #tpu.memory_space<vmem>>, vector<1x1x24x24xbf16>
    %417 = vector.shape_cast %416 : vector<1x1x24x24xbf16> to vector<24x24xbf16>
    %c0_573 = arith.constant 0 : index
    %c14_574 = arith.constant 14 : index
    %c1_575 = arith.constant 1 : index
    %c0_576 = arith.constant 0 : index
    %418 = vector.load %arg1[%c0_573, %c14_574, %c1_575, %c0_576] : memref<1x22x26x24xbf16, #tpu.memory_space<vmem>>, vector<1x1x24x24xbf16>
    %419 = vector.shape_cast %418 : vector<1x1x24x24xbf16> to vector<24x24xbf16>
    %c0_577 = arith.constant 0 : index
    %c14_578 = arith.constant 14 : index
    %c2_579 = arith.constant 2 : index
    %c0_580 = arith.constant 0 : index
    %420 = vector.load %arg1[%c0_577, %c14_578, %c2_579, %c0_580] : memref<1x22x26x24xbf16, #tpu.memory_space<vmem>>, vector<1x1x24x24xbf16>
    %421 = vector.shape_cast %420 : vector<1x1x24x24xbf16> to vector<24x24xbf16>
    %c0_581 = arith.constant 0 : index
    %c15 = arith.constant 15 : index
    %c0_582 = arith.constant 0 : index
    %c0_583 = arith.constant 0 : index
    %422 = vector.load %arg1[%c0_581, %c15, %c0_582, %c0_583] : memref<1x22x26x24xbf16, #tpu.memory_space<vmem>>, vector<1x1x24x24xbf16>
    %423 = vector.shape_cast %422 : vector<1x1x24x24xbf16> to vector<24x24xbf16>
    %c0_584 = arith.constant 0 : index
    %c15_585 = arith.constant 15 : index
    %c1_586 = arith.constant 1 : index
    %c0_587 = arith.constant 0 : index
    %424 = vector.load %arg1[%c0_584, %c15_585, %c1_586, %c0_587] : memref<1x22x26x24xbf16, #tpu.memory_space<vmem>>, vector<1x1x24x24xbf16>
    %425 = vector.shape_cast %424 : vector<1x1x24x24xbf16> to vector<24x24xbf16>
    %c0_588 = arith.constant 0 : index
    %c15_589 = arith.constant 15 : index
    %c2_590 = arith.constant 2 : index
    %c0_591 = arith.constant 0 : index
    %426 = vector.load %arg1[%c0_588, %c15_589, %c2_590, %c0_591] : memref<1x22x26x24xbf16, #tpu.memory_space<vmem>>, vector<1x1x24x24xbf16>
    %427 = vector.shape_cast %426 : vector<1x1x24x24xbf16> to vector<24x24xbf16>
    %428 = tpu.concatenate %411, %413, %415, %417, %419, %421, %423, %425, %427 in 1 : vector<24x24xbf16>, vector<24x24xbf16>, vector<24x24xbf16>, vector<24x24xbf16>, vector<24x24xbf16>, vector<24x24xbf16>, vector<24x24xbf16>, vector<24x24xbf16>, vector<24x24xbf16> -> vector<24x216xbf16>
    %429 = tpu.concatenate %409, %428 in 0 : vector<24x216xbf16>, vector<24x216xbf16> -> vector<48x216xbf16>
    %c0_592 = arith.constant 0 : index
    %c0_593 = arith.constant 0 : index
    %430 = vector.load %arg2[%c0_592, %c0_593] : memref<216x160xbf16, #tpu.memory_space<vmem>>, vector<216x160xbf16>
    %cst_594 = arith.constant dense<0.000000e+00> : vector<48x160xf32>
    %431 = tpu.matmul %429, %430, %cst_594 {dimension_numbers = #tpu.dot_dimension_numbers<[1], [0], [0], [1], [0, 0, 1, 1], [], []>} : vector<48x216xbf16>, vector<216x160xbf16>, vector<48x160xf32> -> vector<48x160xf32>
    %432 = vector.extract_strided_slice %431 {offsets = [0, 0], sizes = [24, 160], strides = [1, 1]} : vector<48x160xf32> to vector<24x160xf32>
    %433 = vector.extract_strided_slice %431 {offsets = [24, 0], sizes = [24, 160], strides = [1, 1]} : vector<48x160xf32> to vector<24x160xf32>
    %434 = arith.maximumf %432, %433 : vector<24x160xf32>
    %435 = arith.truncf %434 : vector<24x160xf32> to vector<24x160xbf16>
    %c0_595 = arith.constant 0 : index
    %c0_596 = arith.constant 0 : index
    %436 = vector.load %arg3[%c0_595, %c0_596] : memref<28x24xbf16, #tpu.memory_space<vmem>>, vector<28x24xbf16>
    %cst_597 = arith.constant dense<0.000000e+00> : vector<28x160xf32>
    %437 = tpu.matmul %436, %435, %cst_597 {dimension_numbers = #tpu.dot_dimension_numbers<[1], [0], [0], [1], [0, 0, 1, 1], [], []>} : vector<28x24xbf16>, vector<24x160xbf16>, vector<28x160xf32> -> vector<28x160xf32>
    %438 = vector.extract_strided_slice %437 {offsets = [0, 0], sizes = [14, 160], strides = [1, 1]} : vector<28x160xf32> to vector<14x160xf32>
    %439 = vector.extract_strided_slice %437 {offsets = [14, 0], sizes = [14, 160], strides = [1, 1]} : vector<28x160xf32> to vector<14x160xf32>
    %440 = arith.maximumf %438, %439 : vector<14x160xf32>
    %441 = arith.truncf %440 : vector<14x160xf32> to vector<14x160xbf16>
    %c0_598 = arith.constant 0 : index
    %c0_599 = arith.constant 0 : index
    %442 = vector.load %arg4[%c0_598, %c0_599] : memref<160x256xbf16, #tpu.memory_space<vmem>>, vector<160x256xbf16>
    %cst_600 = arith.constant dense<0.000000e+00> : vector<14x256xf32>
    %443 = tpu.matmul %441, %442, %cst_600 {dimension_numbers = #tpu.dot_dimension_numbers<[1], [0], [0], [1], [0, 0, 1, 1], [], []>} : vector<14x160xbf16>, vector<160x256xbf16>, vector<14x256xf32> -> vector<14x256xf32>
    %444 = vector.extract_strided_slice %443 {offsets = [0, 0], sizes = [14, 128], strides = [1, 1]} : vector<14x256xf32> to vector<14x128xf32>
    %445 = vector.extract_strided_slice %443 {offsets = [0, 128], sizes = [14, 128], strides = [1, 1]} : vector<14x256xf32> to vector<14x128xf32>
    %446 = arith.maximumf %444, %445 : vector<14x128xf32>
    %c0_601 = arith.constant 0 : index
    %c0_602 = arith.constant 0 : index
    %447 = vector.load %arg5[%c0_601, %c0_602] : memref<14x128xf32, #tpu.memory_space<vmem>>, vector<14x128xf32>
    %448 = arith.addf %446, %447 : vector<14x128xf32>
    %cst_603 = arith.constant 0.000000e+00 : f32
    %449 = vector.broadcast %cst_603 : f32 to vector<14x128xf32>
    %450 = arith.maximumf %448, %449 : vector<14x128xf32>
    %451 = arith.truncf %450 : vector<14x128xf32> to vector<14x128xbf16>
    %c0_604 = arith.constant 0 : index
    %c7_605 = arith.constant 7 : index
    %c0_606 = arith.constant 0 : index
    %c0_607 = arith.constant 0 : index
    %452 = vector.load %arg6[%c0_604, %c7_605, %c0_606, %c0_607] : memref<1x12x14x128xbf16, #tpu.memory_space<vmem>>, vector<1x1x14x128xbf16>
    %453 = vector.shape_cast %452 : vector<1x1x14x128xbf16> to vector<14x128xbf16>
    %454 = vector.shape_cast %451 : vector<14x128xbf16> to vector<1x1x14x128xbf16>
    tpu.vector_store %arg6[%c0_604, %c7_605, %c0_606, %c0_607], %454 {strides = array<i32>} : memref<1x12x14x128xbf16, #tpu.memory_space<vmem>>, vector<1x1x14x128xbf16>,
    %c0_608 = arith.constant 0 : index
    %c14_609 = arith.constant 14 : index
    %c0_610 = arith.constant 0 : index
    %c0_611 = arith.constant 0 : index
    %455 = vector.load %arg1[%c0_608, %c14_609, %c0_610, %c0_611] : memref<1x22x26x24xbf16, #tpu.memory_space<vmem>>, vector<1x1x24x24xbf16>
    %456 = vector.shape_cast %455 : vector<1x1x24x24xbf16> to vector<24x24xbf16>
    %c0_612 = arith.constant 0 : index
    %c14_613 = arith.constant 14 : index
    %c1_614 = arith.constant 1 : index
    %c0_615 = arith.constant 0 : index
    %457 = vector.load %arg1[%c0_612, %c14_613, %c1_614, %c0_615] : memref<1x22x26x24xbf16, #tpu.memory_space<vmem>>, vector<1x1x24x24xbf16>
    %458 = vector.shape_cast %457 : vector<1x1x24x24xbf16> to vector<24x24xbf16>
    %c0_616 = arith.constant 0 : index
    %c14_617 = arith.constant 14 : index
    %c2_618 = arith.constant 2 : index
    %c0_619 = arith.constant 0 : index
    %459 = vector.load %arg1[%c0_616, %c14_617, %c2_618, %c0_619] : memref<1x22x26x24xbf16, #tpu.memory_space<vmem>>, vector<1x1x24x24xbf16>
    %460 = vector.shape_cast %459 : vector<1x1x24x24xbf16> to vector<24x24xbf16>
    %c0_620 = arith.constant 0 : index
    %c15_621 = arith.constant 15 : index
    %c0_622 = arith.constant 0 : index
    %c0_623 = arith.constant 0 : index
    %461 = vector.load %arg1[%c0_620, %c15_621, %c0_622, %c0_623] : memref<1x22x26x24xbf16, #tpu.memory_space<vmem>>, vector<1x1x24x24xbf16>
    %462 = vector.shape_cast %461 : vector<1x1x24x24xbf16> to vector<24x24xbf16>
    %c0_624 = arith.constant 0 : index
    %c15_625 = arith.constant 15 : index
    %c1_626 = arith.constant 1 : index
    %c0_627 = arith.constant 0 : index
    %463 = vector.load %arg1[%c0_624, %c15_625, %c1_626, %c0_627] : memref<1x22x26x24xbf16, #tpu.memory_space<vmem>>, vector<1x1x24x24xbf16>
    %464 = vector.shape_cast %463 : vector<1x1x24x24xbf16> to vector<24x24xbf16>
    %c0_628 = arith.constant 0 : index
    %c15_629 = arith.constant 15 : index
    %c2_630 = arith.constant 2 : index
    %c0_631 = arith.constant 0 : index
    %465 = vector.load %arg1[%c0_628, %c15_629, %c2_630, %c0_631] : memref<1x22x26x24xbf16, #tpu.memory_space<vmem>>, vector<1x1x24x24xbf16>
    %466 = vector.shape_cast %465 : vector<1x1x24x24xbf16> to vector<24x24xbf16>
    %c0_632 = arith.constant 0 : index
    %c16 = arith.constant 16 : index
    %c0_633 = arith.constant 0 : index
    %c0_634 = arith.constant 0 : index
    %467 = vector.load %arg1[%c0_632, %c16, %c0_633, %c0_634] : memref<1x22x26x24xbf16, #tpu.memory_space<vmem>>, vector<1x1x24x24xbf16>
    %468 = vector.shape_cast %467 : vector<1x1x24x24xbf16> to vector<24x24xbf16>
    %c0_635 = arith.constant 0 : index
    %c16_636 = arith.constant 16 : index
    %c1_637 = arith.constant 1 : index
    %c0_638 = arith.constant 0 : index
    %469 = vector.load %arg1[%c0_635, %c16_636, %c1_637, %c0_638] : memref<1x22x26x24xbf16, #tpu.memory_space<vmem>>, vector<1x1x24x24xbf16>
    %470 = vector.shape_cast %469 : vector<1x1x24x24xbf16> to vector<24x24xbf16>
    %c0_639 = arith.constant 0 : index
    %c16_640 = arith.constant 16 : index
    %c2_641 = arith.constant 2 : index
    %c0_642 = arith.constant 0 : index
    %471 = vector.load %arg1[%c0_639, %c16_640, %c2_641, %c0_642] : memref<1x22x26x24xbf16, #tpu.memory_space<vmem>>, vector<1x1x24x24xbf16>
    %472 = vector.shape_cast %471 : vector<1x1x24x24xbf16> to vector<24x24xbf16>
    %473 = tpu.concatenate %456, %458, %460, %462, %464, %466, %468, %470, %472 in 1 : vector<24x24xbf16>, vector<24x24xbf16>, vector<24x24xbf16>, vector<24x24xbf16>, vector<24x24xbf16>, vector<24x24xbf16>, vector<24x24xbf16>, vector<24x24xbf16>, vector<24x24xbf16> -> vector<24x216xbf16>
    %c0_643 = arith.constant 0 : index
    %c15_644 = arith.constant 15 : index
    %c0_645 = arith.constant 0 : index
    %c0_646 = arith.constant 0 : index
    %474 = vector.load %arg1[%c0_643, %c15_644, %c0_645, %c0_646] : memref<1x22x26x24xbf16, #tpu.memory_space<vmem>>, vector<1x1x24x24xbf16>
    %475 = vector.shape_cast %474 : vector<1x1x24x24xbf16> to vector<24x24xbf16>
    %c0_647 = arith.constant 0 : index
    %c15_648 = arith.constant 15 : index
    %c1_649 = arith.constant 1 : index
    %c0_650 = arith.constant 0 : index
    %476 = vector.load %arg1[%c0_647, %c15_648, %c1_649, %c0_650] : memref<1x22x26x24xbf16, #tpu.memory_space<vmem>>, vector<1x1x24x24xbf16>
    %477 = vector.shape_cast %476 : vector<1x1x24x24xbf16> to vector<24x24xbf16>
    %c0_651 = arith.constant 0 : index
    %c15_652 = arith.constant 15 : index
    %c2_653 = arith.constant 2 : index
    %c0_654 = arith.constant 0 : index
    %478 = vector.load %arg1[%c0_651, %c15_652, %c2_653, %c0_654] : memref<1x22x26x24xbf16, #tpu.memory_space<vmem>>, vector<1x1x24x24xbf16>
    %479 = vector.shape_cast %478 : vector<1x1x24x24xbf16> to vector<24x24xbf16>
    %c0_655 = arith.constant 0 : index
    %c16_656 = arith.constant 16 : index
    %c0_657 = arith.constant 0 : index
    %c0_658 = arith.constant 0 : index
    %480 = vector.load %arg1[%c0_655, %c16_656, %c0_657, %c0_658] : memref<1x22x26x24xbf16, #tpu.memory_space<vmem>>, vector<1x1x24x24xbf16>
    %481 = vector.shape_cast %480 : vector<1x1x24x24xbf16> to vector<24x24xbf16>
    %c0_659 = arith.constant 0 : index
    %c16_660 = arith.constant 16 : index
    %c1_661 = arith.constant 1 : index
    %c0_662 = arith.constant 0 : index
    %482 = vector.load %arg1[%c0_659, %c16_660, %c1_661, %c0_662] : memref<1x22x26x24xbf16, #tpu.memory_space<vmem>>, vector<1x1x24x24xbf16>
    %483 = vector.shape_cast %482 : vector<1x1x24x24xbf16> to vector<24x24xbf16>
    %c0_663 = arith.constant 0 : index
    %c16_664 = arith.constant 16 : index
    %c2_665 = arith.constant 2 : index
    %c0_666 = arith.constant 0 : index
    %484 = vector.load %arg1[%c0_663, %c16_664, %c2_665, %c0_666] : memref<1x22x26x24xbf16, #tpu.memory_space<vmem>>, vector<1x1x24x24xbf16>
    %485 = vector.shape_cast %484 : vector<1x1x24x24xbf16> to vector<24x24xbf16>
    %c0_667 = arith.constant 0 : index
    %c17 = arith.constant 17 : index
    %c0_668 = arith.constant 0 : index
    %c0_669 = arith.constant 0 : index
    %486 = vector.load %arg1[%c0_667, %c17, %c0_668, %c0_669] : memref<1x22x26x24xbf16, #tpu.memory_space<vmem>>, vector<1x1x24x24xbf16>
    %487 = vector.shape_cast %486 : vector<1x1x24x24xbf16> to vector<24x24xbf16>
    %c0_670 = arith.constant 0 : index
    %c17_671 = arith.constant 17 : index
    %c1_672 = arith.constant 1 : index
    %c0_673 = arith.constant 0 : index
    %488 = vector.load %arg1[%c0_670, %c17_671, %c1_672, %c0_673] : memref<1x22x26x24xbf16, #tpu.memory_space<vmem>>, vector<1x1x24x24xbf16>
    %489 = vector.shape_cast %488 : vector<1x1x24x24xbf16> to vector<24x24xbf16>
    %c0_674 = arith.constant 0 : index
    %c17_675 = arith.constant 17 : index
    %c2_676 = arith.constant 2 : index
    %c0_677 = arith.constant 0 : index
    %490 = vector.load %arg1[%c0_674, %c17_675, %c2_676, %c0_677] : memref<1x22x26x24xbf16, #tpu.memory_space<vmem>>, vector<1x1x24x24xbf16>
    %491 = vector.shape_cast %490 : vector<1x1x24x24xbf16> to vector<24x24xbf16>
    %492 = tpu.concatenate %475, %477, %479, %481, %483, %485, %487, %489, %491 in 1 : vector<24x24xbf16>, vector<24x24xbf16>, vector<24x24xbf16>, vector<24x24xbf16>, vector<24x24xbf16>, vector<24x24xbf16>, vector<24x24xbf16>, vector<24x24xbf16>, vector<24x24xbf16> -> vector<24x216xbf16>
    %493 = tpu.concatenate %473, %492 in 0 : vector<24x216xbf16>, vector<24x216xbf16> -> vector<48x216xbf16>
    %c0_678 = arith.constant 0 : index
    %c0_679 = arith.constant 0 : index
    %494 = vector.load %arg2[%c0_678, %c0_679] : memref<216x160xbf16, #tpu.memory_space<vmem>>, vector<216x160xbf16>
    %cst_680 = arith.constant dense<0.000000e+00> : vector<48x160xf32>
    %495 = tpu.matmul %493, %494, %cst_680 {dimension_numbers = #tpu.dot_dimension_numbers<[1], [0], [0], [1], [0, 0, 1, 1], [], []>} : vector<48x216xbf16>, vector<216x160xbf16>, vector<48x160xf32> -> vector<48x160xf32>
    %496 = vector.extract_strided_slice %495 {offsets = [0, 0], sizes = [24, 160], strides = [1, 1]} : vector<48x160xf32> to vector<24x160xf32>
    %497 = vector.extract_strided_slice %495 {offsets = [24, 0], sizes = [24, 160], strides = [1, 1]} : vector<48x160xf32> to vector<24x160xf32>
    %498 = arith.maximumf %496, %497 : vector<24x160xf32>
    %499 = arith.truncf %498 : vector<24x160xf32> to vector<24x160xbf16>
    %c0_681 = arith.constant 0 : index
    %c0_682 = arith.constant 0 : index
    %500 = vector.load %arg3[%c0_681, %c0_682] : memref<28x24xbf16, #tpu.memory_space<vmem>>, vector<28x24xbf16>
    %cst_683 = arith.constant dense<0.000000e+00> : vector<28x160xf32>
    %501 = tpu.matmul %500, %499, %cst_683 {dimension_numbers = #tpu.dot_dimension_numbers<[1], [0], [0], [1], [0, 0, 1, 1], [], []>} : vector<28x24xbf16>, vector<24x160xbf16>, vector<28x160xf32> -> vector<28x160xf32>
    %502 = vector.extract_strided_slice %501 {offsets = [0, 0], sizes = [14, 160], strides = [1, 1]} : vector<28x160xf32> to vector<14x160xf32>
    %503 = vector.extract_strided_slice %501 {offsets = [14, 0], sizes = [14, 160], strides = [1, 1]} : vector<28x160xf32> to vector<14x160xf32>
    %504 = arith.maximumf %502, %503 : vector<14x160xf32>
    %505 = arith.truncf %504 : vector<14x160xf32> to vector<14x160xbf16>
    %c0_684 = arith.constant 0 : index
    %c0_685 = arith.constant 0 : index
    %506 = vector.load %arg4[%c0_684, %c0_685] : memref<160x256xbf16, #tpu.memory_space<vmem>>, vector<160x256xbf16>
    %cst_686 = arith.constant dense<0.000000e+00> : vector<14x256xf32>
    %507 = tpu.matmul %505, %506, %cst_686 {dimension_numbers = #tpu.dot_dimension_numbers<[1], [0], [0], [1], [0, 0, 1, 1], [], []>} : vector<14x160xbf16>, vector<160x256xbf16>, vector<14x256xf32> -> vector<14x256xf32>
    %508 = vector.extract_strided_slice %507 {offsets = [0, 0], sizes = [14, 128], strides = [1, 1]} : vector<14x256xf32> to vector<14x128xf32>
    %509 = vector.extract_strided_slice %507 {offsets = [0, 128], sizes = [14, 128], strides = [1, 1]} : vector<14x256xf32> to vector<14x128xf32>
    %510 = arith.maximumf %508, %509 : vector<14x128xf32>
    %c0_687 = arith.constant 0 : index
    %c0_688 = arith.constant 0 : index
    %511 = vector.load %arg5[%c0_687, %c0_688] : memref<14x128xf32, #tpu.memory_space<vmem>>, vector<14x128xf32>
    %512 = arith.addf %510, %511 : vector<14x128xf32>
    %cst_689 = arith.constant 0.000000e+00 : f32
    %513 = vector.broadcast %cst_689 : f32 to vector<14x128xf32>
    %514 = arith.maximumf %512, %513 : vector<14x128xf32>
    %515 = arith.truncf %514 : vector<14x128xf32> to vector<14x128xbf16>
    %c0_690 = arith.constant 0 : index
    %c8_691 = arith.constant 8 : index
    %c0_692 = arith.constant 0 : index
    %c0_693 = arith.constant 0 : index
    %516 = vector.load %arg6[%c0_690, %c8_691, %c0_692, %c0_693] : memref<1x12x14x128xbf16, #tpu.memory_space<vmem>>, vector<1x1x14x128xbf16>
    %517 = vector.shape_cast %516 : vector<1x1x14x128xbf16> to vector<14x128xbf16>
    %518 = vector.shape_cast %515 : vector<14x128xbf16> to vector<1x1x14x128xbf16>
    tpu.vector_store %arg6[%c0_690, %c8_691, %c0_692, %c0_693], %518 {strides = array<i32>} : memref<1x12x14x128xbf16, #tpu.memory_space<vmem>>, vector<1x1x14x128xbf16>,
    %c0_694 = arith.constant 0 : index
    %c16_695 = arith.constant 16 : index
    %c0_696 = arith.constant 0 : index
    %c0_697 = arith.constant 0 : index
    %519 = vector.load %arg1[%c0_694, %c16_695, %c0_696, %c0_697] : memref<1x22x26x24xbf16, #tpu.memory_space<vmem>>, vector<1x1x24x24xbf16>
    %520 = vector.shape_cast %519 : vector<1x1x24x24xbf16> to vector<24x24xbf16>
    %c0_698 = arith.constant 0 : index
    %c16_699 = arith.constant 16 : index
    %c1_700 = arith.constant 1 : index
    %c0_701 = arith.constant 0 : index
    %521 = vector.load %arg1[%c0_698, %c16_699, %c1_700, %c0_701] : memref<1x22x26x24xbf16, #tpu.memory_space<vmem>>, vector<1x1x24x24xbf16>
    %522 = vector.shape_cast %521 : vector<1x1x24x24xbf16> to vector<24x24xbf16>
    %c0_702 = arith.constant 0 : index
    %c16_703 = arith.constant 16 : index
    %c2_704 = arith.constant 2 : index
    %c0_705 = arith.constant 0 : index
    %523 = vector.load %arg1[%c0_702, %c16_703, %c2_704, %c0_705] : memref<1x22x26x24xbf16, #tpu.memory_space<vmem>>, vector<1x1x24x24xbf16>
    %524 = vector.shape_cast %523 : vector<1x1x24x24xbf16> to vector<24x24xbf16>
    %c0_706 = arith.constant 0 : index
    %c17_707 = arith.constant 17 : index
    %c0_708 = arith.constant 0 : index
    %c0_709 = arith.constant 0 : index
    %525 = vector.load %arg1[%c0_706, %c17_707, %c0_708, %c0_709] : memref<1x22x26x24xbf16, #tpu.memory_space<vmem>>, vector<1x1x24x24xbf16>
    %526 = vector.shape_cast %525 : vector<1x1x24x24xbf16> to vector<24x24xbf16>
    %c0_710 = arith.constant 0 : index
    %c17_711 = arith.constant 17 : index
    %c1_712 = arith.constant 1 : index
    %c0_713 = arith.constant 0 : index
    %527 = vector.load %arg1[%c0_710, %c17_711, %c1_712, %c0_713] : memref<1x22x26x24xbf16, #tpu.memory_space<vmem>>, vector<1x1x24x24xbf16>
    %528 = vector.shape_cast %527 : vector<1x1x24x24xbf16> to vector<24x24xbf16>
    %c0_714 = arith.constant 0 : index
    %c17_715 = arith.constant 17 : index
    %c2_716 = arith.constant 2 : index
    %c0_717 = arith.constant 0 : index
    %529 = vector.load %arg1[%c0_714, %c17_715, %c2_716, %c0_717] : memref<1x22x26x24xbf16, #tpu.memory_space<vmem>>, vector<1x1x24x24xbf16>
    %530 = vector.shape_cast %529 : vector<1x1x24x24xbf16> to vector<24x24xbf16>
    %c0_718 = arith.constant 0 : index
    %c18 = arith.constant 18 : index
    %c0_719 = arith.constant 0 : index
    %c0_720 = arith.constant 0 : index
    %531 = vector.load %arg1[%c0_718, %c18, %c0_719, %c0_720] : memref<1x22x26x24xbf16, #tpu.memory_space<vmem>>, vector<1x1x24x24xbf16>
    %532 = vector.shape_cast %531 : vector<1x1x24x24xbf16> to vector<24x24xbf16>
    %c0_721 = arith.constant 0 : index
    %c18_722 = arith.constant 18 : index
    %c1_723 = arith.constant 1 : index
    %c0_724 = arith.constant 0 : index
    %533 = vector.load %arg1[%c0_721, %c18_722, %c1_723, %c0_724] : memref<1x22x26x24xbf16, #tpu.memory_space<vmem>>, vector<1x1x24x24xbf16>
    %534 = vector.shape_cast %533 : vector<1x1x24x24xbf16> to vector<24x24xbf16>
    %c0_725 = arith.constant 0 : index
    %c18_726 = arith.constant 18 : index
    %c2_727 = arith.constant 2 : index
    %c0_728 = arith.constant 0 : index
    %535 = vector.load %arg1[%c0_725, %c18_726, %c2_727, %c0_728] : memref<1x22x26x24xbf16, #tpu.memory_space<vmem>>, vector<1x1x24x24xbf16>
    %536 = vector.shape_cast %535 : vector<1x1x24x24xbf16> to vector<24x24xbf16>
    %537 = tpu.concatenate %520, %522, %524, %526, %528, %530, %532, %534, %536 in 1 : vector<24x24xbf16>, vector<24x24xbf16>, vector<24x24xbf16>, vector<24x24xbf16>, vector<24x24xbf16>, vector<24x24xbf16>, vector<24x24xbf16>, vector<24x24xbf16>, vector<24x24xbf16> -> vector<24x216xbf16>
    %c0_729 = arith.constant 0 : index
    %c17_730 = arith.constant 17 : index
    %c0_731 = arith.constant 0 : index
    %c0_732 = arith.constant 0 : index
    %538 = vector.load %arg1[%c0_729, %c17_730, %c0_731, %c0_732] : memref<1x22x26x24xbf16, #tpu.memory_space<vmem>>, vector<1x1x24x24xbf16>
    %539 = vector.shape_cast %538 : vector<1x1x24x24xbf16> to vector<24x24xbf16>
    %c0_733 = arith.constant 0 : index
    %c17_734 = arith.constant 17 : index
    %c1_735 = arith.constant 1 : index
    %c0_736 = arith.constant 0 : index
    %540 = vector.load %arg1[%c0_733, %c17_734, %c1_735, %c0_736] : memref<1x22x26x24xbf16, #tpu.memory_space<vmem>>, vector<1x1x24x24xbf16>
    %541 = vector.shape_cast %540 : vector<1x1x24x24xbf16> to vector<24x24xbf16>
    %c0_737 = arith.constant 0 : index
    %c17_738 = arith.constant 17 : index
    %c2_739 = arith.constant 2 : index
    %c0_740 = arith.constant 0 : index
    %542 = vector.load %arg1[%c0_737, %c17_738, %c2_739, %c0_740] : memref<1x22x26x24xbf16, #tpu.memory_space<vmem>>, vector<1x1x24x24xbf16>
    %543 = vector.shape_cast %542 : vector<1x1x24x24xbf16> to vector<24x24xbf16>
    %c0_741 = arith.constant 0 : index
    %c18_742 = arith.constant 18 : index
    %c0_743 = arith.constant 0 : index
    %c0_744 = arith.constant 0 : index
    %544 = vector.load %arg1[%c0_741, %c18_742, %c0_743, %c0_744] : memref<1x22x26x24xbf16, #tpu.memory_space<vmem>>, vector<1x1x24x24xbf16>
    %545 = vector.shape_cast %544 : vector<1x1x24x24xbf16> to vector<24x24xbf16>
    %c0_745 = arith.constant 0 : index
    %c18_746 = arith.constant 18 : index
    %c1_747 = arith.constant 1 : index
    %c0_748 = arith.constant 0 : index
    %546 = vector.load %arg1[%c0_745, %c18_746, %c1_747, %c0_748] : memref<1x22x26x24xbf16, #tpu.memory_space<vmem>>, vector<1x1x24x24xbf16>
    %547 = vector.shape_cast %546 : vector<1x1x24x24xbf16> to vector<24x24xbf16>
    %c0_749 = arith.constant 0 : index
    %c18_750 = arith.constant 18 : index
    %c2_751 = arith.constant 2 : index
    %c0_752 = arith.constant 0 : index
    %548 = vector.load %arg1[%c0_749, %c18_750, %c2_751, %c0_752] : memref<1x22x26x24xbf16, #tpu.memory_space<vmem>>, vector<1x1x24x24xbf16>
    %549 = vector.shape_cast %548 : vector<1x1x24x24xbf16> to vector<24x24xbf16>
    %c0_753 = arith.constant 0 : index
    %c19 = arith.constant 19 : index
    %c0_754 = arith.constant 0 : index
    %c0_755 = arith.constant 0 : index
    %550 = vector.load %arg1[%c0_753, %c19, %c0_754, %c0_755] : memref<1x22x26x24xbf16, #tpu.memory_space<vmem>>, vector<1x1x24x24xbf16>
    %551 = vector.shape_cast %550 : vector<1x1x24x24xbf16> to vector<24x24xbf16>
    %c0_756 = arith.constant 0 : index
    %c19_757 = arith.constant 19 : index
    %c1_758 = arith.constant 1 : index
    %c0_759 = arith.constant 0 : index
    %552 = vector.load %arg1[%c0_756, %c19_757, %c1_758, %c0_759] : memref<1x22x26x24xbf16, #tpu.memory_space<vmem>>, vector<1x1x24x24xbf16>
    %553 = vector.shape_cast %552 : vector<1x1x24x24xbf16> to vector<24x24xbf16>
    %c0_760 = arith.constant 0 : index
    %c19_761 = arith.constant 19 : index
    %c2_762 = arith.constant 2 : index
    %c0_763 = arith.constant 0 : index
    %554 = vector.load %arg1[%c0_760, %c19_761, %c2_762, %c0_763] : memref<1x22x26x24xbf16, #tpu.memory_space<vmem>>, vector<1x1x24x24xbf16>
    %555 = vector.shape_cast %554 : vector<1x1x24x24xbf16> to vector<24x24xbf16>
    %556 = tpu.concatenate %539, %541, %543, %545, %547, %549, %551, %553, %555 in 1 : vector<24x24xbf16>, vector<24x24xbf16>, vector<24x24xbf16>, vector<24x24xbf16>, vector<24x24xbf16>, vector<24x24xbf16>, vector<24x24xbf16>, vector<24x24xbf16>, vector<24x24xbf16> -> vector<24x216xbf16>
    %557 = tpu.concatenate %537, %556 in 0 : vector<24x216xbf16>, vector<24x216xbf16> -> vector<48x216xbf16>
    %c0_764 = arith.constant 0 : index
    %c0_765 = arith.constant 0 : index
    %558 = vector.load %arg2[%c0_764, %c0_765] : memref<216x160xbf16, #tpu.memory_space<vmem>>, vector<216x160xbf16>
    %cst_766 = arith.constant dense<0.000000e+00> : vector<48x160xf32>
    %559 = tpu.matmul %557, %558, %cst_766 {dimension_numbers = #tpu.dot_dimension_numbers<[1], [0], [0], [1], [0, 0, 1, 1], [], []>} : vector<48x216xbf16>, vector<216x160xbf16>, vector<48x160xf32> -> vector<48x160xf32>
    %560 = vector.extract_strided_slice %559 {offsets = [0, 0], sizes = [24, 160], strides = [1, 1]} : vector<48x160xf32> to vector<24x160xf32>
    %561 = vector.extract_strided_slice %559 {offsets = [24, 0], sizes = [24, 160], strides = [1, 1]} : vector<48x160xf32> to vector<24x160xf32>
    %562 = arith.maximumf %560, %561 : vector<24x160xf32>
    %563 = arith.truncf %562 : vector<24x160xf32> to vector<24x160xbf16>
    %c0_767 = arith.constant 0 : index
    %c0_768 = arith.constant 0 : index
    %564 = vector.load %arg3[%c0_767, %c0_768] : memref<28x24xbf16, #tpu.memory_space<vmem>>, vector<28x24xbf16>
    %cst_769 = arith.constant dense<0.000000e+00> : vector<28x160xf32>
    %565 = tpu.matmul %564, %563, %cst_769 {dimension_numbers = #tpu.dot_dimension_numbers<[1], [0], [0], [1], [0, 0, 1, 1], [], []>} : vector<28x24xbf16>, vector<24x160xbf16>, vector<28x160xf32> -> vector<28x160xf32>
    %566 = vector.extract_strided_slice %565 {offsets = [0, 0], sizes = [14, 160], strides = [1, 1]} : vector<28x160xf32> to vector<14x160xf32>
    %567 = vector.extract_strided_slice %565 {offsets = [14, 0], sizes = [14, 160], strides = [1, 1]} : vector<28x160xf32> to vector<14x160xf32>
    %568 = arith.maximumf %566, %567 : vector<14x160xf32>
    %569 = arith.truncf %568 : vector<14x160xf32> to vector<14x160xbf16>
    %c0_770 = arith.constant 0 : index
    %c0_771 = arith.constant 0 : index
    %570 = vector.load %arg4[%c0_770, %c0_771] : memref<160x256xbf16, #tpu.memory_space<vmem>>, vector<160x256xbf16>
    %cst_772 = arith.constant dense<0.000000e+00> : vector<14x256xf32>
    %571 = tpu.matmul %569, %570, %cst_772 {dimension_numbers = #tpu.dot_dimension_numbers<[1], [0], [0], [1], [0, 0, 1, 1], [], []>} : vector<14x160xbf16>, vector<160x256xbf16>, vector<14x256xf32> -> vector<14x256xf32>
    %572 = vector.extract_strided_slice %571 {offsets = [0, 0], sizes = [14, 128], strides = [1, 1]} : vector<14x256xf32> to vector<14x128xf32>
    %573 = vector.extract_strided_slice %571 {offsets = [0, 128], sizes = [14, 128], strides = [1, 1]} : vector<14x256xf32> to vector<14x128xf32>
    %574 = arith.maximumf %572, %573 : vector<14x128xf32>
    %c0_773 = arith.constant 0 : index
    %c0_774 = arith.constant 0 : index
    %575 = vector.load %arg5[%c0_773, %c0_774] : memref<14x128xf32, #tpu.memory_space<vmem>>, vector<14x128xf32>
    %576 = arith.addf %574, %575 : vector<14x128xf32>
    %cst_775 = arith.constant 0.000000e+00 : f32
    %577 = vector.broadcast %cst_775 : f32 to vector<14x128xf32>
    %578 = arith.maximumf %576, %577 : vector<14x128xf32>
    %579 = arith.truncf %578 : vector<14x128xf32> to vector<14x128xbf16>
    %c0_776 = arith.constant 0 : index
    %c9_777 = arith.constant 9 : index
    %c0_778 = arith.constant 0 : index
    %c0_779 = arith.constant 0 : index
    %580 = vector.load %arg6[%c0_776, %c9_777, %c0_778, %c0_779] : memref<1x12x14x128xbf16, #tpu.memory_space<vmem>>, vector<1x1x14x128xbf16>
    %581 = vector.shape_cast %580 : vector<1x1x14x128xbf16> to vector<14x128xbf16>
    %582 = vector.shape_cast %579 : vector<14x128xbf16> to vector<1x1x14x128xbf16>
    tpu.vector_store %arg6[%c0_776, %c9_777, %c0_778, %c0_779], %582 {strides = array<i32>} : memref<1x12x14x128xbf16, #tpu.memory_space<vmem>>, vector<1x1x14x128xbf16>,
    %c0_780 = arith.constant 0 : index
    %c18_781 = arith.constant 18 : index
    %c0_782 = arith.constant 0 : index
    %c0_783 = arith.constant 0 : index
    %583 = vector.load %arg1[%c0_780, %c18_781, %c0_782, %c0_783] : memref<1x22x26x24xbf16, #tpu.memory_space<vmem>>, vector<1x1x24x24xbf16>
    %584 = vector.shape_cast %583 : vector<1x1x24x24xbf16> to vector<24x24xbf16>
    %c0_784 = arith.constant 0 : index
    %c18_785 = arith.constant 18 : index
    %c1_786 = arith.constant 1 : index
    %c0_787 = arith.constant 0 : index
    %585 = vector.load %arg1[%c0_784, %c18_785, %c1_786, %c0_787] : memref<1x22x26x24xbf16, #tpu.memory_space<vmem>>, vector<1x1x24x24xbf16>
    %586 = vector.shape_cast %585 : vector<1x1x24x24xbf16> to vector<24x24xbf16>
    %c0_788 = arith.constant 0 : index
    %c18_789 = arith.constant 18 : index
    %c2_790 = arith.constant 2 : index
    %c0_791 = arith.constant 0 : index
    %587 = vector.load %arg1[%c0_788, %c18_789, %c2_790, %c0_791] : memref<1x22x26x24xbf16, #tpu.memory_space<vmem>>, vector<1x1x24x24xbf16>
    %588 = vector.shape_cast %587 : vector<1x1x24x24xbf16> to vector<24x24xbf16>
    %c0_792 = arith.constant 0 : index
    %c19_793 = arith.constant 19 : index
    %c0_794 = arith.constant 0 : index
    %c0_795 = arith.constant 0 : index
    %589 = vector.load %arg1[%c0_792, %c19_793, %c0_794, %c0_795] : memref<1x22x26x24xbf16, #tpu.memory_space<vmem>>, vector<1x1x24x24xbf16>
    %590 = vector.shape_cast %589 : vector<1x1x24x24xbf16> to vector<24x24xbf16>
    %c0_796 = arith.constant 0 : index
    %c19_797 = arith.constant 19 : index
    %c1_798 = arith.constant 1 : index
    %c0_799 = arith.constant 0 : index
    %591 = vector.load %arg1[%c0_796, %c19_797, %c1_798, %c0_799] : memref<1x22x26x24xbf16, #tpu.memory_space<vmem>>, vector<1x1x24x24xbf16>
    %592 = vector.shape_cast %591 : vector<1x1x24x24xbf16> to vector<24x24xbf16>
    %c0_800 = arith.constant 0 : index
    %c19_801 = arith.constant 19 : index
    %c2_802 = arith.constant 2 : index
    %c0_803 = arith.constant 0 : index
    %593 = vector.load %arg1[%c0_800, %c19_801, %c2_802, %c0_803] : memref<1x22x26x24xbf16, #tpu.memory_space<vmem>>, vector<1x1x24x24xbf16>
    %594 = vector.shape_cast %593 : vector<1x1x24x24xbf16> to vector<24x24xbf16>
    %c0_804 = arith.constant 0 : index
    %c20 = arith.constant 20 : index
    %c0_805 = arith.constant 0 : index
    %c0_806 = arith.constant 0 : index
    %595 = vector.load %arg1[%c0_804, %c20, %c0_805, %c0_806] : memref<1x22x26x24xbf16, #tpu.memory_space<vmem>>, vector<1x1x24x24xbf16>
    %596 = vector.shape_cast %595 : vector<1x1x24x24xbf16> to vector<24x24xbf16>
    %c0_807 = arith.constant 0 : index
    %c20_808 = arith.constant 20 : index
    %c1_809 = arith.constant 1 : index
    %c0_810 = arith.constant 0 : index
    %597 = vector.load %arg1[%c0_807, %c20_808, %c1_809, %c0_810] : memref<1x22x26x24xbf16, #tpu.memory_space<vmem>>, vector<1x1x24x24xbf16>
    %598 = vector.shape_cast %597 : vector<1x1x24x24xbf16> to vector<24x24xbf16>
    %c0_811 = arith.constant 0 : index
    %c20_812 = arith.constant 20 : index
    %c2_813 = arith.constant 2 : index
    %c0_814 = arith.constant 0 : index
    %599 = vector.load %arg1[%c0_811, %c20_812, %c2_813, %c0_814] : memref<1x22x26x24xbf16, #tpu.memory_space<vmem>>, vector<1x1x24x24xbf16>
    %600 = vector.shape_cast %599 : vector<1x1x24x24xbf16> to vector<24x24xbf16>
    %601 = tpu.concatenate %584, %586, %588, %590, %592, %594, %596, %598, %600 in 1 : vector<24x24xbf16>, vector<24x24xbf16>, vector<24x24xbf16>, vector<24x24xbf16>, vector<24x24xbf16>, vector<24x24xbf16>, vector<24x24xbf16>, vector<24x24xbf16>, vector<24x24xbf16> -> vector<24x216xbf16>
    %c0_815 = arith.constant 0 : index
    %c19_816 = arith.constant 19 : index
    %c0_817 = arith.constant 0 : index
    %c0_818 = arith.constant 0 : index
    %602 = vector.load %arg1[%c0_815, %c19_816, %c0_817, %c0_818] : memref<1x22x26x24xbf16, #tpu.memory_space<vmem>>, vector<1x1x24x24xbf16>
    %603 = vector.shape_cast %602 : vector<1x1x24x24xbf16> to vector<24x24xbf16>
    %c0_819 = arith.constant 0 : index
    %c19_820 = arith.constant 19 : index
    %c1_821 = arith.constant 1 : index
    %c0_822 = arith.constant 0 : index
    %604 = vector.load %arg1[%c0_819, %c19_820, %c1_821, %c0_822] : memref<1x22x26x24xbf16, #tpu.memory_space<vmem>>, vector<1x1x24x24xbf16>
    %605 = vector.shape_cast %604 : vector<1x1x24x24xbf16> to vector<24x24xbf16>
    %c0_823 = arith.constant 0 : index
    %c19_824 = arith.constant 19 : index
    %c2_825 = arith.constant 2 : index
    %c0_826 = arith.constant 0 : index
    %606 = vector.load %arg1[%c0_823, %c19_824, %c2_825, %c0_826] : memref<1x22x26x24xbf16, #tpu.memory_space<vmem>>, vector<1x1x24x24xbf16>
    %607 = vector.shape_cast %606 : vector<1x1x24x24xbf16> to vector<24x24xbf16>
    %c0_827 = arith.constant 0 : index
    %c20_828 = arith.constant 20 : index
    %c0_829 = arith.constant 0 : index
    %c0_830 = arith.constant 0 : index
    %608 = vector.load %arg1[%c0_827, %c20_828, %c0_829, %c0_830] : memref<1x22x26x24xbf16, #tpu.memory_space<vmem>>, vector<1x1x24x24xbf16>
    %609 = vector.shape_cast %608 : vector<1x1x24x24xbf16> to vector<24x24xbf16>
    %c0_831 = arith.constant 0 : index
    %c20_832 = arith.constant 20 : index
    %c1_833 = arith.constant 1 : index
    %c0_834 = arith.constant 0 : index
    %610 = vector.load %arg1[%c0_831, %c20_832, %c1_833, %c0_834] : memref<1x22x26x24xbf16, #tpu.memory_space<vmem>>, vector<1x1x24x24xbf16>
    %611 = vector.shape_cast %610 : vector<1x1x24x24xbf16> to vector<24x24xbf16>
    %c0_835 = arith.constant 0 : index
    %c20_836 = arith.constant 20 : index
    %c2_837 = arith.constant 2 : index
    %c0_838 = arith.constant 0 : index
    %612 = vector.load %arg1[%c0_835, %c20_836, %c2_837, %c0_838] : memref<1x22x26x24xbf16, #tpu.memory_space<vmem>>, vector<1x1x24x24xbf16>
    %613 = vector.shape_cast %612 : vector<1x1x24x24xbf16> to vector<24x24xbf16>
    %c0_839 = arith.constant 0 : index
    %c21 = arith.constant 21 : index
    %c0_840 = arith.constant 0 : index
    %c0_841 = arith.constant 0 : index
    %614 = vector.load %arg1[%c0_839, %c21, %c0_840, %c0_841] : memref<1x22x26x24xbf16, #tpu.memory_space<vmem>>, vector<1x1x24x24xbf16>
    %615 = vector.shape_cast %614 : vector<1x1x24x24xbf16> to vector<24x24xbf16>
    %c0_842 = arith.constant 0 : index
    %c21_843 = arith.constant 21 : index
    %c1_844 = arith.constant 1 : index
    %c0_845 = arith.constant 0 : index
    %616 = vector.load %arg1[%c0_842, %c21_843, %c1_844, %c0_845] : memref<1x22x26x24xbf16, #tpu.memory_space<vmem>>, vector<1x1x24x24xbf16>
    %617 = vector.shape_cast %616 : vector<1x1x24x24xbf16> to vector<24x24xbf16>
    %c0_846 = arith.constant 0 : index
    %c21_847 = arith.constant 21 : index
    %c2_848 = arith.constant 2 : index
    %c0_849 = arith.constant 0 : index
    %618 = vector.load %arg1[%c0_846, %c21_847, %c2_848, %c0_849] : memref<1x22x26x24xbf16, #tpu.memory_space<vmem>>, vector<1x1x24x24xbf16>
    %619 = vector.shape_cast %618 : vector<1x1x24x24xbf16> to vector<24x24xbf16>
    %620 = tpu.concatenate %603, %605, %607, %609, %611, %613, %615, %617, %619 in 1 : vector<24x24xbf16>, vector<24x24xbf16>, vector<24x24xbf16>, vector<24x24xbf16>, vector<24x24xbf16>, vector<24x24xbf16>, vector<24x24xbf16>, vector<24x24xbf16>, vector<24x24xbf16> -> vector<24x216xbf16>
    %621 = tpu.concatenate %601, %620 in 0 : vector<24x216xbf16>, vector<24x216xbf16> -> vector<48x216xbf16>
    %c0_850 = arith.constant 0 : index
    %c0_851 = arith.constant 0 : index
    %622 = vector.load %arg2[%c0_850, %c0_851] : memref<216x160xbf16, #tpu.memory_space<vmem>>, vector<216x160xbf16>
    %cst_852 = arith.constant dense<0.000000e+00> : vector<48x160xf32>
    %623 = tpu.matmul %621, %622, %cst_852 {dimension_numbers = #tpu.dot_dimension_numbers<[1], [0], [0], [1], [0, 0, 1, 1], [], []>} : vector<48x216xbf16>, vector<216x160xbf16>, vector<48x160xf32> -> vector<48x160xf32>
    %624 = vector.extract_strided_slice %623 {offsets = [0, 0], sizes = [24, 160], strides = [1, 1]} : vector<48x160xf32> to vector<24x160xf32>
    %625 = vector.extract_strided_slice %623 {offsets = [24, 0], sizes = [24, 160], strides = [1, 1]} : vector<48x160xf32> to vector<24x160xf32>
    %626 = arith.maximumf %624, %625 : vector<24x160xf32>
    %627 = arith.truncf %626 : vector<24x160xf32> to vector<24x160xbf16>
    %c0_853 = arith.constant 0 : index
    %c0_854 = arith.constant 0 : index
    %628 = vector.load %arg3[%c0_853, %c0_854] : memref<28x24xbf16, #tpu.memory_space<vmem>>, vector<28x24xbf16>
    %cst_855 = arith.constant dense<0.000000e+00> : vector<28x160xf32>
    %629 = tpu.matmul %628, %627, %cst_855 {dimension_numbers = #tpu.dot_dimension_numbers<[1], [0], [0], [1], [0, 0, 1, 1], [], []>} : vector<28x24xbf16>, vector<24x160xbf16>, vector<28x160xf32> -> vector<28x160xf32>
    %630 = vector.extract_strided_slice %629 {offsets = [0, 0], sizes = [14, 160], strides = [1, 1]} : vector<28x160xf32> to vector<14x160xf32>
    %631 = vector.extract_strided_slice %629 {offsets = [14, 0], sizes = [14, 160], strides = [1, 1]} : vector<28x160xf32> to vector<14x160xf32>
    %632 = arith.maximumf %630, %631 : vector<14x160xf32>
    %633 = arith.truncf %632 : vector<14x160xf32> to vector<14x160xbf16>
    %c0_856 = arith.constant 0 : index
    %c0_857 = arith.constant 0 : index
    %634 = vector.load %arg4[%c0_856, %c0_857] : memref<160x256xbf16, #tpu.memory_space<vmem>>, vector<160x256xbf16>
    %cst_858 = arith.constant dense<0.000000e+00> : vector<14x256xf32>
    %635 = tpu.matmul %633, %634, %cst_858 {dimension_numbers = #tpu.dot_dimension_numbers<[1], [0], [0], [1], [0, 0, 1, 1], [], []>} : vector<14x160xbf16>, vector<160x256xbf16>, vector<14x256xf32> -> vector<14x256xf32>
    %636 = vector.extract_strided_slice %635 {offsets = [0, 0], sizes = [14, 128], strides = [1, 1]} : vector<14x256xf32> to vector<14x128xf32>
    %637 = vector.extract_strided_slice %635 {offsets = [0, 128], sizes = [14, 128], strides = [1, 1]} : vector<14x256xf32> to vector<14x128xf32>
    %638 = arith.maximumf %636, %637 : vector<14x128xf32>
    %c0_859 = arith.constant 0 : index
    %c0_860 = arith.constant 0 : index
    %639 = vector.load %arg5[%c0_859, %c0_860] : memref<14x128xf32, #tpu.memory_space<vmem>>, vector<14x128xf32>
    %640 = arith.addf %638, %639 : vector<14x128xf32>
    %cst_861 = arith.constant 0.000000e+00 : f32
    %641 = vector.broadcast %cst_861 : f32 to vector<14x128xf32>
    %642 = arith.maximumf %640, %641 : vector<14x128xf32>
    %643 = arith.truncf %642 : vector<14x128xf32> to vector<14x128xbf16>
    %c0_862 = arith.constant 0 : index
    %c10_863 = arith.constant 10 : index
    %c0_864 = arith.constant 0 : index
    %c0_865 = arith.constant 0 : index
    %644 = vector.load %arg6[%c0_862, %c10_863, %c0_864, %c0_865] : memref<1x12x14x128xbf16, #tpu.memory_space<vmem>>, vector<1x1x14x128xbf16>
    %645 = vector.shape_cast %644 : vector<1x1x14x128xbf16> to vector<14x128xbf16>
    %646 = vector.shape_cast %643 : vector<14x128xbf16> to vector<1x1x14x128xbf16>
    tpu.vector_store %arg6[%c0_862, %c10_863, %c0_864, %c0_865], %646 {strides = array<i32>} : memref<1x12x14x128xbf16, #tpu.memory_space<vmem>>, vector<1x1x14x128xbf16>,
    return
  }
  func.func @transform_0(%arg0: i32) -> (i32, i32, i32, i32) {
    %c0_i32 = arith.constant 0 : i32
    %c0_i32_0 = arith.constant 0 : i32
    %c0_i32_1 = arith.constant 0 : i32
    %c0_i32_2 = arith.constant 0 : i32
    return %arg0, %c0_i32, %c0_i32_0, %c0_i32_1 : i32, i32, i32, i32
  }
  func.func @transform_1(%arg0: i32) -> (i32, i32) {
    %c0_i32 = arith.constant 0 : i32
    %c0_i32_0 = arith.constant 0 : i32
    %c0_i32_1 = arith.constant 0 : i32
    return %c0_i32, %c0_i32_0 : i32, i32
  }
  func.func @transform_2(%arg0: i32) -> (i32, i32) {
    %c0_i32 = arith.constant 0 : i32
    %c0_i32_0 = arith.constant 0 : i32
    %c0_i32_1 = arith.constant 0 : i32
    return %c0_i32, %c0_i32_0 : i32, i32
  }
  func.func @transform_3(%arg0: i32) -> (i32, i32) {
    %c0_i32 = arith.constant 0 : i32
    %c0_i32_0 = arith.constant 0 : i32
    %c0_i32_1 = arith.constant 0 : i32
    return %c0_i32, %c0_i32_0 : i32, i32
  }
  func.func @transform_4(%arg0: i32) -> (i32, i32) {
    %c0_i32 = arith.constant 0 : i32
    %c0_i32_0 = arith.constant 0 : i32
    %c0_i32_1 = arith.constant 0 : i32
    return %c0_i32, %c0_i32_0 : i32, i32
  }
  func.func @transform_5(%arg0: i32) -> (i32, i32, i32, i32) {
    %c0_i32 = arith.constant 0 : i32
    %c0_i32_0 = arith.constant 0 : i32
    %c0_i32_1 = arith.constant 0 : i32
    %c0_i32_2 = arith.constant 0 : i32
    return %arg0, %c0_i32, %c0_i32_0, %c0_i32_1 : i32, i32, i32, i32
  }
}

</mosaic_0001>

<bundles_post_ra>
// kernel: tpu_custom_call.1
= control target key start
LH: loop header
LB: loop body
LE: loop exit
PB: predicated region body
PF: predicated region fallthrough
CT: control target
= control target key end

     0   :  { %s10296_s18 = smov 0   ;;  %s14155_s0 = inlined_call_operand.vmem [shape: bf16[2,22,26,24], index: 0, kind: input, shape index: {}]   ;;  %s14156_s1 = inlined_call_operand.vmem [shape: bf16[216,160], index: 1, kind: input, shape index: {}]   ;;  %s14157_s2 = inlined_call_operand.vmem [shape: bf16[28,24], index: 2, kind: input, shape index: {}]   ;;  %s14158_s3 = inlined_call_operand.vmem [shape: bf16[160,256], index: 3, kind: input, shape index: {}]   ;;  %s14159_s4 = inlined_call_operand.vmem [shape: f32[14,128], index: 4, kind: input, shape index: {}]   ;;  %s14160_s5 = inlined_call_operand.vmem [shape: bf16[2,12,14,128], index: 5, kind: output, shape index: {}]  }
   0x1 LB: > { %s8652_s19 = sadd.s32 4294967295, %s10255_s18   ;;  %p8656_p0 = scmp.ge.s32.totalorder %s10255_s18, 1  ;;  %s10255_s18 = sphi %s10296_s18, %s15_s18  }
   0x2   : > { %p187_p1 = scmp.lt.s32.totalorder %s10255_s18, 3 }
   0x4   : > { %p188_p2 = pnand %p8656_p0, %p187_p1 }
   0x6   : > { %191 = sbr.rel (%p188_p2) target bundleno = 3669 (0xe55), region = 40 }
   0xb   : > { %p215_p3 = scmp.lt.s32.totalorder %s8652_s19, 1  ;;  %v9692_v0 = vld [vmem:[%s14156_s1 + $0x74] ss:$8 sps:$4 sm:$0xff]   ;;  %v9694_v1 = vld [vmem:[%s14156_s1 + $0x70] ss:$8 sps:$4 sm:$0xff]   ;;  %vm282_vm0 = vcmask 1046528  }
   0xc   : > { %v9695_v2 = vld [vmem:[%s14156_s1 + $0x64] ss:$8 sps:$4 sm:$0xff]   ;;  %717 = vmatprep.subr.bf16.mxu0 %v9692_v0  ;;  %v9697_v3 = vld [vmem:[%s14156_s1 + $0x60] ss:$8 sps:$4 sm:$0xff]   ;;  %v9698_v4 = vld [vmem:[%s14156_s1 + $0x54] ss:$8 sps:$4 sm:$0xff]  }
   0xd   : > { %s14207_s19 = smov (!%p215_p3, %s8652_s19), 1  ;;  %718 = vmatpush1.bf16.msra.mxu0 %v9694_v1  ;;  %v9700_v5 = vld [vmem:[%s14156_s1 + $0x50] ss:$8 sps:$4 sm:$0xff]   ;;  %v9701_v9 = vld [vmem:[%s14156_s1 + $0x44] ss:$8 sps:$4 sm:$0xff]   ;;  %s10257_s13 = smov 16  }
   0xe   : > { %s9658_s26 = smul.u32 352, %s14207_s19  ;;  %719 = vmatprep.subr.bf16.mxu0 %v9695_v2  ;;  %vm259_vm1 = vsmask.f32 7424  ;;  %v9703_v23 = vld [vmem:[%s14156_s1 + $0x40] ss:$8 sps:$4 sm:$0xff]   ;;  %s10258_s16 = smov 72  }
   0xf   : > { %s10259_s17 = smov 120   ;;  %s10260_s20 = smov 48   ;;  %v9704_v56 = vld [vmem:[%s14156_s1 + $0x34] ss:$8 sps:$4 sm:$0xff]   ;;  %v9706_v60 = vld [vmem:[%s14156_s1 + $0x30] ss:$8 sps:$4 sm:$0xff]  }
  0x10   : > { %s10325_s8 = scalar_lea.vmem %s14155_s0, %s9658_s26  ;;  %v9707_v61 = vld [vmem:[%s14156_s1 + $0x24] ss:$8 sps:$4 sm:$0xff]   ;;  %s10261_s27 = smov 64   ;;  %v9709_v1 = vld [vmem:[%s14156_s1 + $0x20] ss:$8 sps:$4 sm:$0xff]   ;;  %vm527_vm2 = vcmask 1043456  }
  0x11   : > { %v8666_v6 = vld [vmem:[%s10325_s8 + $0x20] sm:$0xf]  ;;  %v8667_v7 = vld [vmem:[%s10325_s8 + $0x24] sm:$0xf]  ;;  %v8661_v8 = vld [vmem:[%s10325_s8 + $0x10] sm:$0xf]  ;;  %720 = vmatpush1.bf16.msra.mxu0 %v9697_v3 }
  0x12   : > { %v10336_v10 = vcombine.low %v8666_v6, %v8667_v7  ;;  %v8662_v11 = vld [vmem:[%s10325_s8 + $0x14] sm:$0xf]  ;;  %v10340_v12 = vld [vmem:[%s10325_s8 + $0x18] sm:$0xf]  ;;  %v8664_v13 = vld [vmem:[%s10325_s8 + $0x1c] sm:$0x1]  ;;  %721 = vmatprep.subr.bf16.mxu0 %v9698_v4 }
  0x13   : > { %v10343_v14 = vcombine.low %v8661_v8, %v8662_v11  ;;  %v8665_v15 = vld [vmem:[%s10325_s8 + $0x10] sm:$0xe]  ;;  %v10347_v16 = vcombine.low %v10340_v12, %v8664_v13  ;;  %v232_v17 = vld [vmem:[%s10325_s8 + $0x4] sm:$0xf]  ;;  %v10351_v18 = vld [vmem:[%s10325_s8 + $0x8] sm:$0xf] }
  0x14   : > { %342 = vrot.lane.b32.xlu1 %v10336_v10, %s10257_s13  ;;  %v8678_v19 = vcombine.low %v8665_v15, %v8662_v11  ;;  %v234_v20 = vld [vmem:[%s10325_s8 + $0xc] sm:$0x1]  ;;  %v235_v21 = vld [vmem:[%s10325_s8] sm:$0xe]  ;;  %v10372_v28 = vld [vmem:[%s10325_s8 + $0x28] sm:$0xf] }
  0x15   : > { %v231_v22 = vld [vmem:[%s10325_s8] sm:$0xf]  ;;  %298 = vrot.lane.b32.xlu0 %v10343_v14, %s10258_s16  ;;  %v10364_v24 = vrot.slane %v10347_v16, 1  ;;  %v10367_v25 = vcombine.low %v10351_v18, %v234_v20  ;;  %v8674_v26 = vcombine.low %v235_v21, %v232_v17  ;;  %v8669_v29 = vld [vmem:[%s10325_s8 + $0x2c] sm:$0x1]  ;;  %v306_v33 = vshrl.u32 %v10343_v14, 16  ;;  %722 = vmatpush1.bf16.msra.mxu0 %v9700_v5 }
  0x16   : > { %v10369_v27 = vcombine.low %v231_v22, %v232_v17  ;;  %v327_v30 = vrot.slane %v8678_v19, 1  ;;  %v8670_v31 = vld [vmem:[%s10325_s8 + $0x20] sm:$0xe]  ;;  %v10377_v32 = vcombine.low %v10372_v28, %v8669_v29  ;;  %v308_v34 = vshll.u32 %v10343_v14, 16  ;;  %723 = vmatprep.subr.bf16.mxu0 %v9701_v9  ;;  %v8683_v51 = vld [vmem:[%s10325_s8 + $0x30] sm:$0xf] }
  0x17   : > { %v283_v35 = vrot.slane %v8674_v26, 1  ;;  %v284_v36 = vrot.slane %v10367_v25, 1  ;;  %v8682_v37 = vcombine.low %v8670_v31, %v8667_v7  ;;  %v268_v42 = vshll.u32 %v10367_v25, 16  ;;  %v10405_v55 = vld [vmem:[%s10325_s8 + $0x34] sm:$0xf]  ;;  %s10262_s30 = smov 24  }
  0x18   : > { %v261_v38 = vshrl.u32 %v10369_v27, 16  ;;  %v329_v39 = vsel %vm282_vm0, %v327_v30, %v10364_v24  ;;  %v10386_v40 = vrot.slane %v10377_v32, 1  ;;  %v263_v41 = vshll.u32 %v10369_v27, 16  ;;  %v9710_v3 = vld [vmem:[%s14156_s1 + $0x14] ss:$8 sps:$4 sm:$0xff]   ;;  %s10263_s11 = smov 96  }
  0x19   : > { %330 = vrot.lane.b32.xlu1 %v329_v39, %s10259_s17  ;;  %v285_v43 = vsel %vm282_vm0, %v283_v35, %v284_v36  ;;  %v371_v44 = vrot.slane %v8682_v37, 1  ;;  %v310_v45 = vrot.slane %v308_v34, 1  ;;  %v313_v46 = vshll.u32 %v10347_v16, 16  ;;  %724 = vmatpush1.bf16.msra.mxu0 %v9703_v23  ;;  %v10431_v5 = vld [vmem:[%s10325_s8 + $0x38] sm:$0xf]  ;;  %v567_v15 = vld [vmem:[%s14156_s1 + $0xd0] sm:$0xff] }
  0x1a   : > { %286 = vrot.lane.b32.xlu0 %v285_v43, %s10260_s20  ;;  %v265_v47 = vrot.slane %v263_v41, 1  ;;  %v270_v48 = vrot.slane %v268_v42, 1  ;;  %v350_v49 = vshrl.u32 %v10336_v10, 16  ;;  %v352_v50 = vshll.u32 %v10336_v10, 16  ;;  %725 = vmatprep.subr.bf16.mxu0 %v9704_v56  ;;  %v8686_v6 = vld [vmem:[%s10325_s8 + $0x3c] sm:$0x1] }
  0x1b   : > { %v373_v52 = vsel %vm282_vm0, %v371_v44, %v10386_v40  ;;  %v10401_v53 = vrot.slane %v313_v46, 1  ;;  %v357_v54 = vshll.u32 %v10377_v32, 16  ;;  %v311_v58 = vor.u32 %v310_v45, %v306_v33  ;;  %v9712_v8 = vld [vmem:[%s14156_s1 + $0x10] ss:$8 sps:$4 sm:$0xff]   ;;  %v9713_v13 = vld [vmem:[%s14156_s1 + $0x4] ss:$8 sps:$4 sm:$0xff]  }
  0x1c   : > { %v266_v57 = vor.u32 %v265_v47, %v261_v38  ;;  %v354_v59 = vrot.slane %v352_v50, 1  ;;  %v8688_v2 = vcombine.low %v8683_v51, %v10405_v55  ;;  %v10442_v11 = vcombine.low %v10431_v5, %v8686_v6  ;;  %s10264_s22 = smov 40   ;;  %v9715_v20 = vld [vmem:[%s14156_s1] ss:$8 sps:$4 sm:$0xff]   ;;  %v8687_v29 = vld [vmem:[%s10325_s8 + $0x30] sm:$0xe] }
  0x1d   : > { %374 = vrot.lane.b32.xlu1 %v373_v52, %s10261_s27  ;;  %v10418_v0 = vrot.slane %v357_v54, 1  ;;  %726 = vmatpush1.bf16.msra.mxu0 %v9706_v60  ;;  %v316_v4 = vsel %vm259_vm1, %v311_v58, %v10401_v53  ;;  %v272_v17 = vshrl.u32 %v10367_v25, 16  ;;  %v10457_v23 = vcombine.high %v567_v15, %v567_v15  ;;  %v9718_v30 = vld [vmem:[%s14156_s1 + $0xc4] ss:$8 sps:$4 sm:$0xff]   ;;  %v9720_v37 = vld [vmem:[%s14156_s1 + $0xc0] ss:$8 sps:$4 sm:$0xff]  }
  0x1e   : > { %v271_v62 = vsel %vm259_vm1, %v266_v57, %v270_v48  ;;  %v355_v63 = vor.u32 %v354_v59, %v350_v49  ;;  %727 = vmatprep.subr.bf16.mxu0 %v9707_v61  ;;  %v464_v9 = vshll.u32 %v8688_v2, 16  ;;  %v462_v19 = vshrl.u32 %v8688_v2, 16  ;;  %v9721_v38 = vld [vmem:[%s14156_s1 + $0xb4] ss:$8 sps:$4 sm:$0xff]   ;;  %v9723_v42 = vld [vmem:[%s14156_s1 + $0xb0] ss:$8 sps:$4 sm:$0xff]  }
  0x1f   : > { %275 = vrot.lane.b32.xlu0 %v271_v62, %s10262_s30  ;;  %v469_v22 = vshll.u32 %v10442_v11, 16  ;;  %v8718_v26 = vcombine.low %v567_v15, %v567_v15  ;;  %v274_v31 = vor.u32 %v272_v17, %v270_v48  ;;  %v9724_v43 = vld [vmem:[%s14156_s1 + $0xa4] ss:$8 sps:$4 sm:$0xff]   ;;  %v484_v45 = vrot.slane %v10442_v11, 1  ;;  %v9726_v46 = vld [vmem:[%s14156_s1 + $0xa0] ss:$8 sps:$4 sm:$0xff]  }
  0x20   : > { %v360_v7 = vsel %vm259_vm1, %v355_v63, %v10418_v0  ;;  %v466_v21 = vrot.slane %v464_v9, 1  ;;  %v361_v25 = vshrl.u32 %v10377_v32, 16  ;;  %v9729_v47 = vld [vmem:[%s14156_s1 + $0x90] ss:$8 sps:$4 sm:$0xff]   ;;  %v9730_v32 = vld [vmem:[%s14156_s1 + $0x84] ss:$8 sps:$4 sm:$0xff]   ;;  %v10517_v49 = vcombine.low %v10340_v12, %v10340_v12 }
  0x21   : > { %430 = vrot.lane.b32.xlu1 %v329_v39, %s10260_s20  ;;  %728 = vmatpush1.bf16.msra.mxu0 %v9709_v1  ;;  %v10468_v33 = vsel %vm527_vm2, %v8718_v26, 0  ;;  %v471_v35 = vrot.slane %v469_v22, 1  ;;  %v8691_v39 = vcombine.low %v8687_v29, %v10405_v55  ;;  %v317_v50 = vshrl.u32 %v10347_v16, 16  ;;  %v9732_v51 = vld [vmem:[%s14156_s1 + $0x80] ss:$8 sps:$4 sm:$0xff]   ;;  %s9659_s6 = smul.u32 96, %s14207_s19 }
  0x22   : > { %729 = vmatprep.subr.bf16.mxu0 %v9710_v3  ;;  %v467_v34 = vor.u32 %v466_v21, %v462_v19  ;;  %v363_v48 = vor.u32 %v361_v25, %v10418_v0  ;;  %v8689_v12 = vcombine.low %v10431_v5, %v10431_v5  ;;  %v473_v16 = vshrl.u32 %v10442_v11, 16 }
  0x23   : > { %320 = vrot.lane.b32.xlu0 %v316_v4, %s10263_s11  ;;  %v483_v44 = vrot.slane %v8691_v39, 1  ;;  %vm378_vm3 = vcmask 195584   ;;  %vm384_vm4 = vcmask 392192   ;;  %vm389_vm5 = vcmask 588800   ;;  %s11175_s15 = scalar_lea.vmem %s14160_s5, %s9659_s6 }
  0x24   : > { %v472_v41 = vsel %vm259_vm1, %v467_v34, %v471_v35  ;;  %vm405_vm6 = vcmask 130048   ;;  %vm394_vm7 = vcmask 785408   ;;  %vm410_vm8 = vcmask 326656  }
  0x25   : > { %364 = vrot.lane.b32.xlu1 %v360_v7, %s10264_s22  ;;  %730 = vmatpush1.bf16.msra.mxu0 %v9712_v8  ;;  %vm415_vm9 = vcmask 523264   ;;  %vm703_vm10 = vcmask 719872   ;;  %vm399_vm11 = vcmask 982016   ;;  %v8672_v29 = vcombine.low %v10351_v18, %v10351_v18 }
  0x26   : > { %731 = vmatprep.subr.bf16.mxu0 %v9713_v13  ;;  %vm875_vm12 = vcmask 1041408   ;;  %vm1016_vm13 = vcmask 261120  }
  0x27   : > { %426 = vrot.lane.b32.xlu0 %v316_v4, %s10262_s30 }
  0x29   : > { %454 = vrot.lane.b32.xlu1 %v8688_v2, %s10257_s13  ;;  %732 = vmatpush1.bf16.msra.mxu0 %v9715_v20 }
  0x2a   : > { %8720 = vmatprep.subr.msk.bf16.mxu0 %vm527_vm2, %v10457_v23 }
  0x2b   : > { %442 = vrot.lane.b32.xlu0 %v373_v52, %s10259_s17  ;;  %v319_v52 = vor.u32 %v317_v50, %v10401_v53  ;;  %v475_v53 = vor.u32 %v473_v16, %v471_v35 }
  0x2d   : > { %434 = vrot.lane.b32.xlu1 %v10336_v10, %s10258_s16  ;;  %738 = vmatpush2.bf16.msra.mxu0 %v10468_v33  ;;  %v8680_v10 = vcombine.low %v10372_v28, %v10372_v28  ;;  %v9727_v28 = vld [vmem:[%s14156_s1 + $0x94] ss:$8 sps:$4 sm:$0xff]  }
  0x2e   : > { %739 = vmatprep.subr.bf16.mxu0 %v9718_v30 }
  0x2f   : > { %277 = vrot.lane.b32.xlu0 %v274_v31, %s10262_s30 }
  0x31   : > { %288 = vrot.lane.b32.xlu1 %v284_v36, %s10260_s20  ;;  %740 = vmatpush2.bf16.msra.mxu0 %v9720_v37  ;;  %v485_v36 = vsel %vm282_vm0, %v483_v44, %v484_v45 }
  0x32   : > { %741 = vmatprep.subr.bf16.mxu0 %v9721_v38 }
  0x33   : > { %476 = vrot.lane.b32.xlu0 %v472_v41, %s10264_s22 }
  0x35   : > { %344 = vrot.lane.b32.xlu1 %v8680_v10, %s10257_s13  ;;  %742 = vmatpush2.bf16.msra.mxu0 %v9723_v42 }
  0x36   : > { %743 = vmatprep.subr.bf16.mxu0 %v9724_v43 }
  0x37   : > { %332 = vrot.lane.b32.xlu0 %v10364_v24, %s10259_s17 }
  0x39   : > { %486 = vrot.lane.b32.xlu1 %v485_v36, %s10261_s27  ;;  %744 = vmatpush2.bf16.msra.mxu0 %v9726_v46 }
  0x3a   : > { %745 = vmatprep.subr.bf16.mxu0 %v9727_v28 }
  0x3b   : > { %438 = vrot.lane.b32.xlu0 %v360_v7, %s10263_s11 }
  0x3d   : > { %366 = vrot.lane.b32.xlu1 %v363_v48, %s10264_s22  ;;  %746 = vmatpush2.bf16.msra.mxu0 %v9729_v47 }
  0x3e   : > { %747 = vmatprep.subr.bf16.mxu0 %v9730_v32 }
  0x3f   : > { %300 = vrot.lane.b32.xlu0 %v10517_v49, %s10258_s16 }
  0x41   : > { %376 = vrot.lane.b32.xlu1 %v10386_v40, %s10261_s27  ;;  %748 = vmatpush2.bf16.msra.mxu0 %v9732_v51 }
  0x43   : > { %322 = vrot.lane.b32.xlu0 %v319_v52, %s10263_s11 }
  0x45   : > { %432 = vrot.lane.b32.xlu1 %v10364_v24, %s10260_s20 }
  0x47   : > { %428 = vrot.lane.b32.xlu0 %v319_v52, %s10262_s30 }
  0x49   : > { %456 = vrot.lane.b32.xlu1 %v8689_v12, %s10257_s13 }
  0x4b   : > { %444 = vrot.lane.b32.xlu0 %v10386_v40, %s10259_s17 }
  0x4d   : > { %478 = vrot.lane.b32.xlu1 %v475_v53, %s10264_s22 }
  0x4f   : > { %436 = vrot.lane.b32.xlu0 %v8680_v10, %s10258_s16 }
  0x51   : > { %488 = vrot.lane.b32.xlu1 %v484_v45, %s10261_s27 }
  0x53   : > { %440 = vrot.lane.b32.xlu0 %v363_v48, %s10263_s11 }
  0x86   : > { %v343_v24 = vpop.permute.xlu1 %342 }
  0x87   : > { %v299_v54 = vpop.permute.xlu0 %298 }
  0x8b   : > { %v331_v55 = vpop.permute.xlu1 %330 }
  0x8c   : > { %v287_v56 = vpop.permute.xlu0 %286  ;;  %v407_v63 = vsel %vm405_vm6, %v331_v55, %v343_v24 }
  0x8f   : > { %v375_v57 = vpop.permute.xlu1 %374 }
  0x91   : > { %v276_v58 = vpop.permute.xlu0 %275 }
  0x92   : > { %v380_v40 = vsel %vm378_vm3, %v10369_v27, %v276_v58 }
  0x93   : > { %v386_v59 = vsel %vm384_vm4, %v380_v40, %v287_v56  ;;  %v431_v60 = vpop.permute.xlu1 %430 }
  0x94   : > { %v391_v61 = vsel %vm389_vm5, %v386_v59, %v299_v54 }
  0x95   : > { %v321_v62 = vpop.permute.xlu0 %320 }
  0x96   : > { %v396_v0 = vsel %vm394_vm7, %v391_v61, %v321_v62 }
  0x97   : > { %v365_v1 = vpop.permute.xlu1 %364  ;;  %v401_v4 = vsel %vm399_vm11, %v396_v0, %v331_v55  ;;  %v8754_v0 = vld [vmem:[%s10325_s8 + $0x20] sm:$0xf] }
  0x98   : > { %v412_v2 = vsel %vm410_vm8, %v407_v63, %v365_v1  ;;  %v14161_v63 = vmov 0   ;;  %v8755_v1 = vld [vmem:[%s10325_s8 + $0x24] sm:$0xf] }
  0x99   : > { %v427_v27 = vpop.permute.xlu0 %426  ;;  %v417_v3 = vsel %vm415_vm9, %v412_v2, %v375_v57  ;;  %848 = vmatprep.mubr.bf16.mxu1 %v14161_v63  ;;  %v10592_v2 = vld [vmem:[%s10325_s8 + $0x28] sm:$0xf]  ;;  %226 = vst [vmem:[%s11175_s15] sm:$0xf] %v14161_v63  ;;  %227 = vst [vmem:[%s11175_s15 + $0x4] sm:$0x7] %v14161_v63 }
  0x9a   : > { %8721 = vmatprep.mubr.msk.bf16.mxu0 %vm703_vm10, %v417_v3  ;;  %v491_v17 = vsel %vm378_vm3, %v10343_v14, %v427_v27  ;;  %v8757_v27 = vld [vmem:[%s10325_s8 + $0x2c] sm:$0x1]  ;;  %v10595_v3 = vcombine.low %v8754_v0, %v8755_v1  ;;  %8659 = vst [vmem:[%s11175_s15 + $0x58] sm:$0xf] %v14161_v63  ;;  %8660 = vst [vmem:[%s11175_s15 + $0x5c] sm:$0x7] %v14161_v63 }
  0x9b   : > { %v455_v5 = vpop.permute.xlu1 %454  ;;  %750 = vmatmul.mubr.bf16.vlgmr.msra.gmra.mxu0 %v401_v4  ;;  %v496_v22 = vsel %vm384_vm4, %v491_v17, %v431_v60  ;;  %v8758_v4 = vld [vmem:[%s10325_s8 + $0x20] sm:$0xe] }
  0x9d   : > { %v443_v6 = vpop.permute.xlu0 %442 }
  0x9e   : > { %v512_v21 = vsel %vm405_vm6, %v443_v6, %v455_v5  ;;  %v8760_v5 = vld [vmem:[%s10325_s8 + $0x34] sm:$0xf] }
  0x9f   : > { %v435_v7 = vpop.permute.xlu1 %434 }
  0xa0   : > { %v500_v26 = vsel %vm389_vm5, %v496_v22, %v435_v7  ;;  %v8772_v7 = vcombine.low %v8758_v4, %v8755_v1 }
  0xa1   : > { %v278_v8 = vpop.permute.xlu0 %277 }
  0xa2   : > { %v383_v38 = vsel %vm378_vm3, %v8672_v29, %v278_v8  ;;  %v10603_v8 = vld [vmem:[%s10325_s8 + $0x38] sm:$0xf] }
  0xa3   : > { %v289_v9 = vpop.permute.xlu1 %288 }
  0xa4   : > { %v388_v18 = vsel %vm384_vm4, %v383_v38, %v289_v9  ;;  %v8762_v9 = vld [vmem:[%s10325_s8 + $0x3c] sm:$0x1]  ;;  %v8766_v38 = vld [vmem:[%s10325_s8 + $0x48] sm:$0xf] }
  0xa5   : > { %v477_v11 = vpop.permute.xlu0 %476  ;;  %v10610_v17 = vcombine.low %v10603_v8, %v8762_v9 }
  0xa6   : > { %v516_v30 = vsel %vm410_vm8, %v512_v21, %v477_v11  ;;  %v8763_v11 = vld [vmem:[%s10325_s8 + $0x30] sm:$0xe]  ;;  %v8765_v21 = vld [vmem:[%s10325_s8 + $0x44] sm:$0xf] }
  0xa7   : > { %v345_v13 = vpop.permute.xlu1 %344 }
  0xa9   : > { %v333_v15 = vpop.permute.xlu0 %332 }
  0xaa   : > { %v409_v14 = vsel %vm405_vm6, %v333_v15, %v345_v13  ;;  %v1110_v13 = vshrl.u32 %v10595_v3, 16 }
  0xab   : > { %v487_v19 = vpop.permute.xlu1 %486 }
  0xac   : > { %v520_v34 = vsel %vm415_vm9, %v516_v30, %v487_v19  ;;  %v8776_v19 = vcombine.low %v8763_v11, %v8760_v5 }
  0xad   : > { %v439_v20 = vpop.permute.xlu0 %438  ;;  %v529_v39 = vrot.slane %v520_v34, 4 }
  0xae   : > { %v504_v35 = vsel %vm394_vm7, %v500_v26, %v439_v20  ;;  %v8764_v20 = vld [vmem:[%s10325_s8 + $0x40] sm:$0xf]  ;;  %v1131_v26 = vrot.slane %v8772_v7, 1 }
  0xaf   : > { %v367_v31 = vpop.permute.xlu1 %366  ;;  %v508_v41 = vsel %vm399_vm11, %v504_v35, %v443_v6  ;;  %v10600_v6 = vcombine.low %v10592_v2, %v8757_v27  ;;  %v8777_v30 = vcombine.low %v8764_v20, %v8765_v21  ;;  %v1175_v35 = vrot.slane %v8776_v19, 1 }
  0xb0   : > { %v414_v42 = vsel %vm410_vm8, %v409_v14, %v367_v31  ;;  %v528_v25 = vrot.slane %v508_v41, 4  ;;  %v8759_v31 = vld [vmem:[%s10325_s8 + $0x30] sm:$0xf]  ;;  %v8778_v19 = vcombine.low %v8766_v38, %v8766_v38 }
  0xb1   : > { %v301_v37 = vpop.permute.xlu0 %300  ;;  %v1117_v22 = vshll.u32 %v10600_v6, 16  ;;  %v1132_v29 = vrot.slane %v10600_v6, 1  ;;  %v10620_v14 = vcombine.low %v8759_v31, %v8760_v5  ;;  %v1121_v0 = vshrl.u32 %v10600_v6, 16  ;;  %v8785_v5 = vld [vmem:[%s10325_s8 + $0x50] sm:$0xe] }
  0xb2   : > { %v393_v44 = vsel %vm389_vm5, %v388_v18, %v301_v37  ;;  %v10618_v37 = vrot.slane %v10610_v17, 1  ;;  %v1200_v18 = vshll.u32 %v8777_v30, 16  ;;  %v10671_v6 = vcombine.low %v10603_v8, %v10603_v8 }
  0xb3   : > { %v377_v10 = vpop.permute.xlu1 %376  ;;  %v1133_v41 = vsel %vm282_vm0, %v1131_v26, %v1132_v29 }
  0xb4   : > { %v419_v43 = vsel %vm415_vm9, %v414_v42, %v377_v10  ;;  %v8767_v42 = vld [vmem:[%s10325_s8 + $0x4c] sm:$0x1]  ;;  %v1198_v10 = vshrl.u32 %v8777_v30, 16  ;;  %1134 = vrot.lane.b32.xlu1 %v1133_v41, %s10260_s20 }
  0xb5   : > { %v323_v45 = vpop.permute.xlu0 %322  ;;  %v540_v46 = vsel %vm527_vm2, %v419_v43, %v529_v39 }
  0xb6   : > { %v398_v28 = vsel %vm394_vm7, %v393_v44, %v323_v45  ;;  %8722 = vmatprep.mubr.msk.bf16.mxu0 %vm703_vm10, %v540_v46  ;;  %v8779_v44 = vcombine.low %v8766_v38, %v8767_v42  ;;  %v8768_v45 = vld [vmem:[%s10325_s8 + $0x40] sm:$0xe]  ;;  %v1202_v46 = vrot.slane %v1200_v18, 1 }
  0xb7   : > { %v433_v36 = vpop.permute.xlu1 %432  ;;  %v404_v47 = vsel %vm399_vm11, %v398_v28, %v333_v15  ;;  %v1112_v15 = vshll.u32 %v10595_v3, 16  ;;  %v8780_v28 = vcombine.low %v8768_v45, %v8765_v21 }
  0xb8   : > { %v537_v48 = vsel %vm527_vm2, %v404_v47, %v528_v25  ;;  %v1205_v47 = vshll.u32 %v8779_v44, 16  ;;  %1190 = vrot.lane.b32.xlu1 %v8777_v30, %s10257_s13 }
  0xb9   : > { %760 = vmatmul.mubr.bf16.gmra.mxu0 %v537_v48  ;;  %v429_v32 = vpop.permute.xlu0 %428  ;;  %v1114_v34 = vrot.slane %v1112_v15, 1  ;;  %v1177_v48 = vsel %vm282_vm0, %v1175_v35, %v10618_v37 }
  0xba   : > { %v494_v12 = vsel %vm378_vm3, %v10517_v49, %v429_v32  ;;  %v1203_v32 = vor.u32 %v1202_v46, %v1198_v10 }
  0xbb   : > { %v457_v50 = vpop.permute.xlu1 %456  ;;  %v498_v55 = vsel %vm384_vm4, %v494_v12, %v433_v36  ;;  %v1115_v43 = vor.u32 %v1114_v34, %v1110_v13  ;;  %v1161_v12 = vshll.u32 %v10610_v17, 16 }
  0xbd   : > { %v445_v51 = vpop.permute.xlu0 %444 }
  0xbe   : > { %v514_v53 = vsel %vm405_vm6, %v445_v51, %v457_v50  ;;  %v1207_v50 = vrot.slane %v1205_v47, 1 }
  0xbf   : > { %v479_v52 = vpop.permute.xlu1 %478 }
  0xc0   : > { %v518_v24 = vsel %vm410_vm8, %v514_v53, %v479_v52  ;;  %v1220_v53 = vrot.slane %v8779_v44, 1 }
  0xc1   : > { %v437_v16 = vpop.permute.xlu0 %436 }
  0xc2   : > { %v502_v57 = vsel %vm389_vm5, %v498_v55, %v437_v16  ;;  %v1219_v16 = vrot.slane %v8780_v28, 1  ;;  %v1163_v55 = vrot.slane %v1161_v12, 1 }
  0xc3   : > { %v489_v54 = vpop.permute.xlu1 %488 }
  0xc4   : > { %v522_v56 = vsel %vm415_vm9, %v518_v24, %v489_v54  ;;  %v1208_v24 = vsel %vm259_vm1, %v1203_v32, %v1207_v50 }
  0xc5   : > { %v532_v58 = vrot.slane %v522_v56, 4  ;;  %v441_v40 = vpop.permute.xlu0 %440  ;;  %1212 = vrot.lane.b32.xlu1 %v1208_v24, %s10264_s22  ;;  %v1221_v56 = vsel %vm282_vm0, %v1219_v16, %v1220_v53  ;;  %v9753_v16 = vld [vmem:[%s14158_s3 + $0x74] ss:$8 sps:$4 sm:$0xff]  }
  0xc6   : > { %v506_v49 = vsel %vm394_vm7, %v502_v57, %v441_v40  ;;  %v8781_v57 = vld [vmem:[%s10325_s8 + $0x50] sm:$0xf] }
  0xc7   : > { %v510_v59 = vsel %vm399_vm11, %v506_v49, %v445_v51  ;;  %v533_v60 = vsel %vm527_vm2, %v529_v39, %v532_v58  ;;  %v1119_v39 = vrot.slane %v1117_v22, 1  ;;  %v1154_v51 = vshrl.u32 %v10620_v14, 16  ;;  %v8782_v58 = vld [vmem:[%s10325_s8 + $0x54] sm:$0xf] }
  0xc8   : > { %v530_v61 = vrot.slane %v510_v59, 4  ;;  %8723 = vmatprep.mubr.msk.bf16.mxu0 %vm703_vm10, %v533_v60  ;;  %v8786_v49 = vcombine.low %v8781_v57, %v8782_v58  ;;  %v8783_v59 = vld [vmem:[%s10325_s8 + $0x58] sm:$0xf]  ;;  %v8784_v60 = vld [vmem:[%s10325_s8 + $0x5c] sm:$0x1]  ;;  %v8789_v13 = vcombine.low %v8785_v5, %v8782_v58  ;;  %v1209_v22 = vshrl.u32 %v8779_v44, 16 }
  0xc9   : > { %v1120_v36 = vsel %vm259_vm1, %v1115_v43, %v1119_v39  ;;  %1222 = vrot.lane.b32.xlu1 %v1221_v56, %s10261_s27  ;;  %v1123_v7 = vor.u32 %v1121_v0, %v1119_v39  ;;  %v8787_v34 = vcombine.low %v8783_v59, %v8783_v59  ;;  %v9759_v57 = vld [vmem:[%s14158_s3 + $0x54] ss:$8 sps:$4 sm:$0xff]   ;;  %v9735_v58 = vld [vmem:[%s14157_s2 + $0x8] sm:$0x3f]  }
  0xca   : > { %v531_v62 = vsel %vm527_vm2, %v528_v25, %v530_v61  ;;  %v1156_v25 = vshll.u32 %v10620_v14, 16  ;;  %1124 = vrot.lane.b32.xlu0 %v1120_v36, %s10262_s30  ;;  %v1304_v61 = vshll.u32 %v8786_v49, 16  ;;  %v1302_v1 = vshrl.u32 %v8786_v49, 16  ;;  %v9766_v0 = vld [vmem:[%s14158_s3 + $0x20] ss:$8 sps:$4 sm:$0xff]  }
  0xcb   : > { %770 = vmatmul.mubr.bf16.gmra.mxu0 %v531_v62  ;;  %v8788_v62 = vcombine.low %v8783_v59, %v8784_v60  ;;  %v1323_v20 = vrot.slane %v8789_v13, 1  ;;  %v9760_v59 = vld [vmem:[%s14158_s3 + $0x40] ss:$8 sps:$4 sm:$0xff]   ;;  %v9765_v60 = vld [vmem:[%s14158_s3 + $0x34] ss:$8 sps:$4 sm:$0xff]  }
  0xcc   : > { %1685 = vmatprep.mubr.bf16.mxu0 %v14161_v63  ;;  %v1158_v52 = vrot.slane %v1156_v25, 1  ;;  %v1306_v27 = vrot.slane %v1304_v61, 1  ;;  %v9763_v61 = vld [vmem:[%s14158_s3 + $0x30] ss:$8 sps:$4 sm:$0xff]   ;;  %v9772_v5 = vld [vmem:[%s14158_s3] ss:$8 sps:$4 sm:$0xff]  }
  0xcd   : > { %1270 = vrot.lane.b32.xlu1 %v1177_v48, %s10260_s20  ;;  %v1309_v4 = vshll.u32 %v8788_v62, 16  ;;  %v1324_v21 = vrot.slane %v8788_v62, 1  ;;  %v1313_v35 = vshrl.u32 %v8788_v62, 16  ;;  %v9768_v62 = vld [vmem:[%s14158_s3 + $0x24] ss:$8 sps:$4 sm:$0xff]  }
  0xce   : > { %1178 = vrot.lane.b32.xlu0 %v1177_v48, %s10259_s17  ;;  %v1159_v54 = vor.u32 %v1158_v52, %v1154_v51  ;;  %v1307_v9 = vor.u32 %v1306_v27, %v1302_v1  ;;  %v9771_v1 = vld [vmem:[%s14158_s3 + $0x14] ss:$8 sps:$4 sm:$0xff]   ;;  %v9769_v27 = vld [vmem:[%s14158_s3 + $0x10] ss:$8 sps:$4 sm:$0xff]   ;;  %v9779_v13 = vld [vmem:[%s14158_s3 + $0x80] ss:$8 sps:$4 sm:$0xff]  }
  0xcf   : > { %v1311_v11 = vrot.slane %v1309_v4, 1  ;;  %v1325_v26 = vsel %vm282_vm0, %v1323_v20, %v1324_v21  ;;  %v9774_v4 = vld [vmem:[%s14158_s3 + $0x4] ss:$8 sps:$4 sm:$0xff]  }
  0xd0   : > { %v1164_v40 = vsel %vm259_vm1, %v1159_v54, %v1163_v55  ;;  %v9751_v54 = vld [vmem:[%s14158_s3 + $0x70] ss:$8 sps:$4 sm:$0xff]   ;;  %v8853_v20 = vld [vmem:[%s10325_s8 + $0x44] sm:$0xf] }
  0xd1   : > { %1294 = vrot.lane.b32.xlu1 %v8786_v49, %s10257_s13  ;;  %v1312_v15 = vsel %vm259_vm1, %v1307_v9, %v1311_v11  ;;  %v1315_v8 = vor.u32 %v1313_v35, %v1311_v11  ;;  %v9762_v49 = vld [vmem:[%s14158_s3 + $0x44] ss:$8 sps:$4 sm:$0xff]   ;;  %v9776_v9 = vld [vmem:[%s14158_s3 + $0x90] ss:$8 sps:$4 sm:$0xff]  }
  0xd2   : > { %1146 = vrot.lane.b32.xlu0 %v10620_v14, %s10258_s16  ;;  %v9781_v11 = vld [vmem:[%s14158_s3 + $0x84] ss:$8 sps:$4 sm:$0xff]  }
  0xd5   : > { %1274 = vrot.lane.b32.xlu1 %v8777_v30, %s10258_s16  ;;  %v1211_v30 = vor.u32 %v1209_v22, %v1207_v50  ;;  %v10767_v22 = vld [vmem:[%s10325_s8 + $0x48] sm:$0xf] }
  0xd6   : > { %1168 = vrot.lane.b32.xlu0 %v1164_v40, %s10263_s11 }
  0xd9   : > { %1136 = vrot.lane.b32.xlu1 %v1132_v29, %s10260_s20  ;;  %v1165_v29 = vshrl.u32 %v10610_v17, 16 }
  0xda   : > { %1266 = vrot.lane.b32.xlu0 %v1164_v40, %s10262_s30  ;;  %v9757_v40 = vld [vmem:[%s14158_s3 + $0x50] ss:$8 sps:$4 sm:$0xff]  }
  0xdb   : > { %v1167_v31 = vor.u32 %v1165_v29, %v1163_v55  ;;  %v9756_v55 = vld [vmem:[%s14158_s3 + $0x64] ss:$8 sps:$4 sm:$0xff]  }
  0xdd   : > { %1192 = vrot.lane.b32.xlu1 %v8778_v19, %s10257_s13 }
  0xde   : > { %1282 = vrot.lane.b32.xlu0 %v1221_v56, %s10259_s17  ;;  %v9754_v56 = vld [vmem:[%s14158_s3 + $0x60] ss:$8 sps:$4 sm:$0xff]  }
  0xe1   : > { %1326 = vrot.lane.b32.xlu1 %v1325_v26, %s10261_s27  ;;  %v8855_v26 = vld [vmem:[%s10325_s8 + $0x4c] sm:$0x1] }
  0xe2   : > { %1126 = vrot.lane.b32.xlu0 %v1123_v7, %s10262_s30  ;;  %v9778_v7 = vld [vmem:[%s14158_s3 + $0x94] ss:$8 sps:$4 sm:$0xff]  }
  0xe5   : > { %1214 = vrot.lane.b32.xlu1 %v1211_v30, %s10264_s22 }
  0xe6   : > { %1316 = vrot.lane.b32.xlu0 %v1312_v15, %s10264_s22  ;;  %v10223_v15 = vld [vmem:[%s14156_s1 + $0x74] ss:$8 sps:$4 sm:$0xff]  }
  0xe9   : > { %1224 = vrot.lane.b32.xlu1 %v1220_v53, %s10261_s27 }
  0xea   : > { %1180 = vrot.lane.b32.xlu0 %v10618_v37, %s10259_s17 }
  0xed   : > { %1272 = vrot.lane.b32.xlu1 %v10618_v37, %s10260_s20 }
  0xee   : > { %1278 = vrot.lane.b32.xlu0 %v1208_v24, %s10263_s11  ;;  %v9734_v24 = vld [vmem:[%s14157_s2] sm:$0xff]  }
  0xf1   : > { %1296 = vrot.lane.b32.xlu1 %v8787_v34, %s10257_s13 }
  0xf2   : > { %1148 = vrot.lane.b32.xlu0 %v10671_v6, %s10258_s16 }
  0xf5   : > { %1318 = vrot.lane.b32.xlu1 %v1315_v8, %s10264_s22 }
  0xf6   : > { %1170 = vrot.lane.b32.xlu0 %v1167_v31, %s10263_s11 }
  0xf9   : > { %1328 = vrot.lane.b32.xlu1 %v1324_v21, %s10261_s27 }
  0xfa   : > { %1268 = vrot.lane.b32.xlu0 %v1167_v31, %s10262_s30  ;;  %v8856_v31 = vld [vmem:[%s10325_s8 + $0x40] sm:$0xe] }
  0xfb   : > { %v8870_v34 = vcombine.low %v8856_v31, %v8853_v20  ;;  %v8881_v31 = vld [vmem:[%s10325_s8 + $0x78] sm:$0xf] }
  0xfe   : > { %1284 = vrot.lane.b32.xlu0 %v1220_v53, %s10259_s17 }
 0x102   : > { %1276 = vrot.lane.b32.xlu0 %v8778_v19, %s10258_s16  ;;  %v8852_v19 = vld [vmem:[%s10325_s8 + $0x40] sm:$0xf] }
 0x103   : > { %v10764_v21 = vcombine.low %v8852_v19, %v8853_v20 }
 0x105   : > { %v1947_v29 = vshll.u32 %v10764_v21, 16  ;;  %v1945_v35 = vshrl.u32 %v10764_v21, 16 }
 0x106   : > { %1280 = vrot.lane.b32.xlu0 %v1211_v30, %s10263_s11  ;;  %v10771_v30 = vcombine.low %v10767_v22, %v8855_v26 }
 0x107   : > { %v1949_v8 = vrot.slane %v1947_v29, 1 }
 0x108   : > { %v1956_v29 = vshrl.u32 %v10771_v30, 16 }
 0x126   : > { %v10835_v26 = vpop.permute.xlu1 %1134 }
 0x13c   : > { %v10833_v20 = vpop.permute.xlu0 %1124 }
 0x15b   : > { %v751_v17 = vpop.f32.mrf.mxu0 }
 0x15d   : > { %v753_v38 = vpop.f32.mrf.mxu0 }
 0x15f   : > { %v755_v37 = vpop.f32.mrf.mxu0 }
 0x161   : > { %v757_v39 = vpop.f32.mrf.mxu0 }
 0x179   : > { %v761_v41 = vpop.f32.mrf.mxu0 }
 0x17b   : > { %v763_v42 = vpop.f32.mrf.mxu0 }
 0x17d   : > { %v765_v10 = vpop.f32.mrf.mxu0 }
 0x17e   : > { %v780_v12 = vmax.f32 %v751_v17, %v765_v10  ;;  %v1952_v17 = vshll.u32 %v10771_v30, 16  ;;  %v8863_v10 = vld [vmem:[%s10325_s8 + $0x64] sm:$0xf] }
 0x17f   : > { %v767_v18 = vpop.f32.mrf.mxu0 }
 0x180   : > { %v781_v48 = vmax.f32 %v753_v38, %v767_v18  ;;  %v1966_v38 = vrot.slane %v8870_v34, 1  ;;  %v8858_v18 = vld [vmem:[%s10325_s8 + $0x54] sm:$0xf]  ;;  %v8882_v34 = vld [vmem:[%s10325_s8 + $0x7c] sm:$0x1] }
 0x18b   : > { %v771_v43 = vpop.f32.mrf.mxu0 }
 0x18c   : > { %v782_v50 = vmax.f32 %v755_v37, %v771_v43  ;;  %v1967_v37 = vrot.slane %v10771_v30, 1 }
 0x18d   : > { %v773_v44 = vpop.f32.mrf.mxu0 }
 0x18e   : > { %v783_v28 = vmax.f32 %v757_v39, %v773_v44  ;;  %v786_v53 = vpack.c.bf16 %v782_v50, %v780_v12  ;;  %v1950_v39 = vor.u32 %v1949_v8, %v1945_v35  ;;  %v1968_v43 = vsel %vm282_vm0, %v1966_v38, %v1967_v37  ;;  %v8883_v38 = vld [vmem:[%s10325_s8 + $0x70] sm:$0xe] }
 0x18f   : > { %v775_v45 = vpop.f32.mrf.mxu0  ;;  %1969 = vrot.lane.b32.xlu1 %v1968_v43, %s10260_s20  ;;  %v8886_v8 = vcombine.low %v8881_v31, %v8882_v34 }
 0x190   : > { %v784_v46 = vmax.f32 %v761_v41, %v775_v45  ;;  %v787_v51 = vpack.c.bf16 %v783_v28, %v781_v48  ;;  %v10778_v41 = vrot.slane %v1952_v17, 1  ;;  %v8861_v28 = vld [vmem:[%s10325_s8 + $0x50] sm:$0xe]  ;;  %v8864_v48 = vld [vmem:[%s10325_s8 + $0x68] sm:$0xf] }
 0x191   : > { %v777_v25 = vpop.f32.mrf.mxu0 }
 0x192   : > { %v788_v36 = vpack.c.bf16 %v784_v46, %v784_v46  ;;  %v785_v47 = vmax.f32 %v763_v42, %v777_v25  ;;  %v8862_v42 = vld [vmem:[%s10325_s8 + $0x60] sm:$0xf]  ;;  %v1955_v44 = vsel %vm259_vm1, %v1950_v39, %v10778_v41  ;;  %v10789_v46 = vld [vmem:[%s10325_s8 + $0x58] sm:$0xf]  ;;  %v8860_v25 = vld [vmem:[%s10325_s8 + $0x5c] sm:$0x1]  ;;  %v1958_v39 = vor.u32 %v1956_v29, %v10778_v41 }
 0x193   : > { %v8875_v45 = vcombine.low %v8862_v42, %v8863_v10  ;;  %1959 = vrot.lane.b32.xlu0 %v1955_v44, %s10262_s30  ;;  %v10846_v44 = vpop.permute.xlu0 %1178 }
 0x194   : > { %v789_v32 = vpack.c.bf16 %v785_v47, %v785_v47  ;;  %v811_v52 = vsel %vm527_vm2, %v788_v36, 0  ;;  %v10796_v36 = vcombine.low %v10789_v46, %v8860_v25  ;;  %v8874_v47 = vcombine.low %v8861_v28, %v8858_v18  ;;  %v1191_v25 = vpop.permute.xlu1 %1190 }
 0x195   : > { %2025 = vrot.lane.b32.xlu1 %v8875_v45, %s10257_s13  ;;  %v1249_v29 = vsel %vm405_vm6, %v10846_v44, %v1191_v25 }
 0x196   : > { %8726 = vmatprep.subr.msk.bf16.mxu1 %vm527_vm2, %v789_v32  ;;  %v8865_v32 = vld [vmem:[%s10325_s8 + $0x6c] sm:$0x1]  ;;  %v10803_v12 = vrot.slane %v10796_v36, 1 }
 0x197   : > { %829 = vmatpush1.bf16.msra.mxu1 %v811_v52  ;;  %v10800_v50 = vcombine.low %v8864_v48, %v8865_v32  ;;  %v2010_v52 = vrot.slane %v8874_v47, 1  ;;  %v8876_v47 = vcombine.low %v8864_v48, %v8864_v48  ;;  %v2159_v32 = vrot.slane %v8886_v8, 1 }
 0x198   : > { %830 = vmatprep.subr.bf16.mxu1 %v787_v51  ;;  %v2035_v51 = vshll.u32 %v8875_v45, 16  ;;  %v2000_v48 = vshrl.u32 %v10796_v36, 16 }
 0x19b   : > { %831 = vmatpush1.bf16.msra.mxu1 %v786_v53  ;;  %v2033_v53 = vshrl.u32 %v8875_v45, 16 }
 0x19c   : > { %1020 = vmatprep.subr.bf16.mxu1 %v9753_v16  ;;  %v8857_v16 = vld [vmem:[%s10325_s8 + $0x50] sm:$0xf] }
 0x19e   : > { %8727 = vmatmul.mubr.msk.bf16.vlgmr.msra.gmra.mxu1 %vm378_vm3, %v9734_v24  ;;  %v2037_v24 = vrot.slane %v2035_v51, 1  ;;  %v10853_v51 = vpop.permute.xlu0 %1146 }
 0x19f   : > { %858 = vmatprep.mubr.bf16.mxu1 %v14161_v63  ;;  %1021 = vmatpush1.bf16.msra.mxu1 %v9751_v54  ;;  %v2040_v54 = vshll.u32 %v10800_v50, 16 }
 0x1a0   : > { %1022 = vmatprep.subr.bf16.mxu1 %v9756_v55  ;;  %v10807_v55 = vcombine.low %v8857_v16, %v8858_v18 }
 0x1a3   : > { %1023 = vmatpush1.bf16.msra.mxu1 %v9754_v56  ;;  %v2012_v56 = vsel %vm282_vm0, %v2010_v52, %v10803_v12  ;;  %v2044_v52 = vshrl.u32 %v10800_v50, 16 }
 0x1a4   : > { %1024 = vmatprep.subr.bf16.mxu1 %v9759_v57  ;;  %2013 = vrot.lane.b32.xlu0 %v2012_v56, %s10259_s17  ;;  %v2038_v57 = vor.u32 %v2037_v24, %v2033_v53  ;;  %v10867_v53 = vpop.permute.xlu0 %1168 }
 0x1a6   : > { %8728 = vmatmul.mubr.msk.bf16.gmra.mxu1 %vm378_vm3, %v9735_v58  ;;  %v2042_v58 = vrot.slane %v2040_v54, 1 }
 0x1a7   : > { %1025 = vmatpush1.bf16.msra.mxu1 %v9757_v40  ;;  %v8866_v40 = vld [vmem:[%s10325_s8 + $0x60] sm:$0xe] }
 0x1a8   : > { %1026 = vmatprep.subr.bf16.mxu1 %v9762_v49  ;;  %v10815_v49 = vrot.slane %v10800_v50, 1  ;;  %1981 = vrot.lane.b32.xlu0 %v10807_v55, %s10258_s16  ;;  %v2046_v30 = vor.u32 %v2044_v52, %v2042_v58  ;;  %v10872_v54 = vpop.permute.xlu0 %1266 }
 0x1ab   : > { %1027 = vmatpush1.bf16.msra.mxu1 %v9760_v59  ;;  %v8878_v59 = vcombine.low %v8866_v40, %v8863_v10  ;;  %v2144_v10 = vshll.u32 %v8886_v8, 16 }
 0x1ac   : > { %1028 = vmatprep.subr.bf16.mxu1 %v9765_v60  ;;  %v1989_v60 = vshrl.u32 %v10807_v55, 16 }
 0x1ad   : > { %v2146_v43 = vrot.slane %v2144_v10, 1 }
 0x1af   : > { %1029 = vmatpush1.bf16.msra.mxu1 %v9763_v61  ;;  %v1991_v61 = vshll.u32 %v10807_v55, 16 }
 0x1b0   : > { %1030 = vmatprep.subr.bf16.mxu1 %v9768_v62  ;;  %v1996_v62 = vshll.u32 %v10796_v36, 16  ;;  %v2148_v36 = vshrl.u32 %v8886_v8, 16 }
 0x1b2   : > { %v2150_v40 = vor.u32 %v2148_v36, %v2146_v43 }
 0x1b3   : > { %1031 = vmatpush1.bf16.msra.mxu1 %v9766_v0  ;;  %v2043_v0 = vsel %vm259_vm1, %v2038_v57, %v2042_v58  ;;  %v10882_v57 = vpop.permute.xlu0 %1282 }
 0x1b4   : > { %1032 = vmatprep.subr.bf16.mxu1 %v9771_v1  ;;  %2047 = vrot.lane.b32.xlu1 %v2043_v0, %s10264_s22  ;;  %v2054_v1 = vrot.slane %v8878_v59, 1 }
 0x1b7   : > { %1033 = vmatpush1.bf16.msra.mxu1 %v9769_v27  ;;  %v1993_v27 = vrot.slane %v1991_v61, 1  ;;  %v10889_v61 = vpop.permute.xlu0 %1126 }
 0x1b8   : > { %1034 = vmatprep.subr.bf16.mxu1 %v9774_v4  ;;  %v1998_v4 = vrot.slane %v1996_v62, 1 }
 0x1ba   : > { %v2002_v50 = vor.u32 %v2000_v48, %v1998_v4 }
 0x1bb   : > { %1035 = vmatpush1.bf16.msra.mxu1 %v9772_v5  ;;  %v2056_v5 = vsel %vm282_vm0, %v2054_v1, %v10815_v49 }
 0x1bc   : > { %1048 = vmatprep.subr.bf16.mxu1 %v9778_v7  ;;  %v1994_v7 = vor.u32 %v1993_v27, %v1989_v60  ;;  %2057 = vrot.lane.b32.xlu1 %v2056_v5, %s10261_s27  ;;  %v10897_v27 = vpop.permute.xlu0 %1316 }
 0x1bf   : > { %1049 = vmatpush2.bf16.msra.mxu1 %v9776_v9  ;;  %v1999_v9 = vsel %vm259_vm1, %v1994_v7, %v1998_v4 }
 0x1c0   : > { %1050 = vmatprep.subr.bf16.mxu1 %v9781_v11  ;;  %2003 = vrot.lane.b32.xlu0 %v1999_v9, %s10263_s11  ;;  %v8879_v11 = vld [vmem:[%s10325_s8 + $0x70] sm:$0xf]  ;;  %v10905_v8 = vpop.permute.xlu0 %1180 }
 0x1c1   : > { %2105 = vrot.lane.b32.xlu1 %v2012_v56, %s10260_s20 }
 0x1c3   : > { %1051 = vmatpush2.bf16.msra.mxu1 %v9779_v13  ;;  %v8880_v13 = vld [vmem:[%s10325_s8 + $0x74] sm:$0xf] }
 0x1c4   : > { %1554 = vmatprep.subr.bf16.mxu1 %v10223_v15  ;;  %v8884_v15 = vcombine.low %v8879_v11, %v8880_v13  ;;  %2101 = vrot.lane.b32.xlu0 %v1999_v9, %s10262_s30  ;;  %v8887_v18 = vcombine.low %v8883_v38, %v8880_v13 }
 0x1c6   : > { %v2139_v19 = vshll.u32 %v8884_v15, 16  ;;  %2129 = vrot.lane.b32.xlu1 %v8884_v15, %s10257_s13  ;;  %v2137_v35 = vshrl.u32 %v8884_v15, 16  ;;  %v2158_v41 = vrot.slane %v8887_v18, 1 }
 0x1c8   : > { %2117 = vrot.lane.b32.xlu0 %v2056_v5, %s10259_s17  ;;  %v2141_v17 = vrot.slane %v2139_v19, 1  ;;  %v2160_v16 = vsel %vm282_vm0, %v2158_v41, %v2159_v32 }
 0x1ca   : > { %v2142_v42 = vor.u32 %v2141_v17, %v2137_v35  ;;  %2109 = vrot.lane.b32.xlu1 %v8875_v45, %s10258_s16  ;;  %v1213_v45 = vpop.permute.xlu1 %1212 }
 0x1cb   : > { %v1253_v10 = vsel %vm410_vm8, %v1249_v29, %v1213_v45  ;;  %v10225_v45 = vld [vmem:[%s14156_s1 + $0x64] ss:$8 sps:$4 sm:$0xff]  }
 0x1cc   : > { %1961 = vrot.lane.b32.xlu0 %v1958_v39, %s10262_s30  ;;  %v2147_v28 = vsel %vm259_vm1, %v2142_v42, %v2146_v43 }
 0x1ce   : > { %1971 = vrot.lane.b32.xlu1 %v1967_v37, %s10260_s20  ;;  %v10864_v37 = vcombine.low %v10789_v46, %v10789_v46  ;;  %v1223_v24 = vpop.permute.xlu1 %1222  ;;  %v8885_v46 = vcombine.low %v8881_v31, %v8881_v31 }
 0x1d0   : > { %2151 = vrot.lane.b32.xlu0 %v2147_v28, %s10264_s22 }
 0x1d2   : > { %2027 = vrot.lane.b32.xlu1 %v8876_v47, %s10257_s13  ;;  %v10874_v56 = vpop.permute.xlu1 %1270 }
 0x1d4   : > { %2015 = vrot.lane.b32.xlu0 %v10803_v12, %s10259_s17 }
 0x1d6   : > { %2161 = vrot.lane.b32.xlu1 %v2160_v16, %s10261_s27  ;;  %v10884_v58 = vpop.permute.xlu1 %1294  ;;  %v10224_v16 = vld [vmem:[%s14156_s1 + $0x70] ss:$8 sps:$4 sm:$0xff]  }
 0x1d8   : > { %2113 = vrot.lane.b32.xlu0 %v2043_v0, %s10263_s11 }
 0x1da   : > { %2049 = vrot.lane.b32.xlu1 %v2046_v30, %s10264_s22  ;;  %v10891_v62 = vpop.permute.xlu1 %1274 }
 0x1dc   : > { %1983 = vrot.lane.b32.xlu0 %v10864_v37, %s10258_s16 }
 0x1de   : > { %2059 = vrot.lane.b32.xlu1 %v10815_v49, %s10261_s27  ;;  %v10899_v4 = vpop.permute.xlu1 %1136 }
 0x1e0   : > { %2005 = vrot.lane.b32.xlu0 %v2002_v50, %s10263_s11 }
 0x1e2   : > { %2107 = vrot.lane.b32.xlu1 %v10803_v12, %s10260_s20  ;;  %v10907_v17 = vpop.permute.xlu1 %1192 }
 0x1e4   : > { %2103 = vrot.lane.b32.xlu0 %v2002_v50, %s10262_s30  ;;  %v10227_v50 = vld [vmem:[%s14156_s1 + $0x54] ss:$8 sps:$4 sm:$0xff]  }
 0x1e6   : > { %2131 = vrot.lane.b32.xlu1 %v8885_v46, %s10257_s13  ;;  %v10915_v52 = vpop.permute.xlu1 %1326  ;;  %v10228_v46 = vld [vmem:[%s14156_s1 + $0x50] ss:$8 sps:$4 sm:$0xff]  }
 0x1e8   : > { %2119 = vrot.lane.b32.xlu0 %v10815_v49, %s10259_s17 }
 0x1ea   : > { %2153 = vrot.lane.b32.xlu1 %v2150_v40, %s10264_s22  ;;  %v10927_v48 = vpop.permute.xlu1 %1214 }
 0x1ec   : > { %2111 = vrot.lane.b32.xlu0 %v8876_v47, %s10258_s16  ;;  %v1257_v47 = vsel %vm415_vm9, %v1253_v10, %v1223_v24  ;;  %v10226_v24 = vld [vmem:[%s14156_s1 + $0x60] ss:$8 sps:$4 sm:$0xff]  }
 0x1ee   : > { %2163 = vrot.lane.b32.xlu1 %v2159_v32, %s10261_s27  ;;  %v10913_v32 = vpop.permute.xlu0 %1278  ;;  %v10940_v40 = vpop.permute.xlu1 %1224 }
 0x1f0   : > { %2115 = vrot.lane.b32.xlu0 %v2046_v30, %s10263_s11 }
 0x1f2   : > { %v10925_v30 = vpop.permute.xlu0 %1148 }
 0x1f6   : > { %v10938_v36 = vpop.permute.xlu0 %1170 }
 0x25e   : > { %v850_v59 = vpop.f32.mrf.mxu1 }
 0x260   : > { %v852_v60 = vpop.f32.mrf.mxu1 }
 0x262   : > { %v854_v12 = vpop.f32.mrf.mxu1 }
 0x263   : > { %v876_v15 = vrot.slane %v854_v12, 6 }
 0x264   : > { %v856_v0 = vpop.f32.mrf.mxu1 }
 0x265   : > { %v879_v11 = vrot.slane %v856_v0, 6 }
 0x266   : > { %v860_v1 = vpop.f32.mrf.mxu1 }
 0x267   : > { %v877_v7 = vrot.slane %v860_v1, 6  ;;  %v10953_v1 = vpop.permute.xlu1 %1272 }
 0x268   : > { %v862_v49 = vpop.f32.mrf.mxu1 }
 0x269   : > { %v880_v5 = vrot.slane %v862_v49, 6  ;;  %v878_v38 = vsel %vm875_vm12, %v876_v15, %v877_v7  ;;  %v10232_v49 = vld [vmem:[%s14156_s1 + $0x30] ss:$8 sps:$4 sm:$0xff]  }
 0x26a   : > { %v864_v9 = vpop.f32.mrf.mxu1  ;;  %v890_v28 = vmax.f32 %v850_v59, %v878_v38  ;;  %v10229_v59 = vld [vmem:[%s14156_s1 + $0x44] ss:$8 sps:$4 sm:$0xff]   ;;  %v10236_v15 = vld [vmem:[%s14156_s1 + $0x10] ss:$8 sps:$4 sm:$0xff]  }
 0x26b   : > { %v882_v13 = vrot.slane %v864_v9, 6  ;;  %v881_v31 = vsel %vm875_vm12, %v879_v11, %v880_v5  ;;  %v1297_v11 = vpop.permute.xlu1 %1296 }
 0x26c   : > { %v866_v19 = vpop.f32.mrf.mxu1  ;;  %v891_v18 = vmax.f32 %v852_v60, %v881_v31  ;;  %v10230_v60 = vld [vmem:[%s14156_s1 + $0x40] ss:$8 sps:$4 sm:$0xff]  }
 0x26d   : > { %v883_v34 = vsel %vm875_vm12, %v877_v7, %v882_v13  ;;  %v884_v35 = vrot.slane %v866_v19, 6  ;;  %v10234_v7 = vld [vmem:[%s14156_s1 + $0x20] ss:$8 sps:$4 sm:$0xff]   ;;  %v10235_v13 = vld [vmem:[%s14156_s1 + $0x14] ss:$8 sps:$4 sm:$0xff]  }
 0x26e   : > { %v892_v39 = vmax.f32 %v854_v12, %v883_v34  ;;  %v10231_v12 = vld [vmem:[%s14156_s1 + $0x34] ss:$8 sps:$4 sm:$0xff]   ;;  %v10237_v19 = vld [vmem:[%s14156_s1 + $0x4] ss:$8 sps:$4 sm:$0xff]   ;;  %v10238_v34 = vld [vmem:[%s14156_s1] ss:$8 sps:$4 sm:$0xff]  }
 0x26f   : > { %v885_v42 = vsel %vm875_vm12, %v880_v5, %v884_v35  ;;  %v10233_v5 = vld [vmem:[%s14156_s1 + $0x24] ss:$8 sps:$4 sm:$0xff]   ;;  %v1319_v31 = vpop.permute.xlu1 %1318 }
 0x270   : > { %v893_v43 = vmax.f32 %v856_v0, %v885_v42  ;;  %v894_v41 = vpack.c.bf16 %v892_v39, %v890_v28  ;;  %v10951_v0 = vpop.permute.xlu0 %1268  ;;  %v10239_v39 = vld [vmem:[%s14156_s1 + $0xc4] ss:$8 sps:$4 sm:$0xff]   ;;  %v10240_v42 = vld [vmem:[%s14156_s1 + $0xc0] ss:$8 sps:$4 sm:$0xff]  }
 0x272   : > { %v895_v25 = vpack.c.bf16 %v893_v43, %v891_v18  ;;  %v10242_v18 = vld [vmem:[%s14156_s1 + $0xb0] ss:$8 sps:$4 sm:$0xff]   ;;  %v10243_v43 = vld [vmem:[%s14156_s1 + $0xa4] ss:$8 sps:$4 sm:$0xff]  }
 0x273   : > { %v10985_v38 = vpop.permute.xlu1 %1328 }
 0x274   : > { %8749 = vmatprep.mubr.msk.bf16.mxu1 %vm1016_vm13, %v895_v25  ;;  %v10964_v9 = vpop.permute.xlu0 %1284  ;;  %v1227_v25 = vsel %vm378_vm3, %v10595_v3, %v10833_v20 }
 0x275   : > { %1053 = vmatmul.mubr.bf16.vlgmr.msra.gmra.mxu1 %v894_v41  ;;  %v1232_v3 = vsel %vm384_vm4, %v1227_v25, %v10835_v26  ;;  %v11143_v25 = vld [vmem:[%s14156_s1 + $0x44] ss:$8 sps:$4 sm:$0xff]  }
 0x276   : > { %1555 = vmatpush1.bf16.msra.mxu1 %v10224_v16  ;;  %8819 = vmatprep.mubr.msk.bf16.mxu1 %vm703_vm10, %v1257_v47  ;;  %v1352_v47 = vsel %vm405_vm6, %v10882_v57, %v10884_v58  ;;  %v1331_v16 = vsel %vm378_vm3, %v10620_v14, %v10872_v54  ;;  %v10245_v58 = vld [vmem:[%s14156_s1 + $0x94] ss:$8 sps:$4 sm:$0xff]   ;;  %v1251_v54 = vsel %vm405_vm6, %v10905_v8, %v10907_v17 }
 0x277   : > { %1556 = vmatprep.subr.bf16.mxu1 %v10225_v45  ;;  %v8770_v45 = vcombine.low %v10592_v2, %v10592_v2  ;;  %v1356_v20 = vsel %vm410_vm8, %v1352_v47, %v10897_v27  ;;  %v1336_v2 = vsel %vm384_vm4, %v1331_v16, %v10874_v56  ;;  %v1236_v27 = vsel %vm389_vm5, %v1232_v3, %v10853_v51  ;;  %v11059_v51 = vld [vmem:[%s14156_s1 + $0x74] ss:$8 sps:$4 sm:$0xff]   ;;  %v11162_v3 = vld [vmem:[%s14156_s1 + $0x40] ss:$8 sps:$4 sm:$0xff]  }
 0x278   : > { %v10975_v29 = vpop.permute.xlu0 %1276  ;;  %v1340_v56 = vsel %vm389_vm5, %v1336_v2, %v10891_v62  ;;  %v1255_v17 = vsel %vm410_vm8, %v1251_v54, %v10927_v48  ;;  %v1354_v62 = vsel %vm405_vm6, %v10964_v9, %v1297_v11  ;;  %v1240_v48 = vsel %vm394_vm7, %v1236_v27, %v10867_v53  ;;  %v11084_v53 = vld [vmem:[%s14156_s1 + $0x70] ss:$8 sps:$4 sm:$0xff]  }
 0x279   : > { %v1230_v26 = vsel %vm378_vm3, %v8770_v45, %v10889_v61  ;;  %v10247_v61 = vld [vmem:[%s14156_s1 + $0x84] ss:$8 sps:$4 sm:$0xff]   ;;  %v11191_v54 = vld [vmem:[%s14156_s1 + $0x30] ss:$8 sps:$4 sm:$0xff]  }
 0x27a   : > { %1557 = vmatpush1.bf16.msra.mxu1 %v10226_v24  ;;  %v10244_v24 = vld [vmem:[%s14156_s1 + $0xa0] ss:$8 sps:$4 sm:$0xff]  }
 0x27b   : > { %1558 = vmatprep.subr.bf16.mxu1 %v10227_v50 }
 0x27c   : > { %v10983_v35 = vpop.permute.xlu0 %1280 }
 0x27e   : > { %1559 = vmatpush1.bf16.msra.mxu1 %v10228_v46  ;;  %v1360_v46 = vsel %vm415_vm9, %v1356_v20, %v10915_v52 }
 0x27f   : > { %1560 = vmatprep.subr.bf16.mxu1 %v10229_v59  ;;  %v10246_v59 = vld [vmem:[%s14156_s1 + $0x90] ss:$8 sps:$4 sm:$0xff]  }
 0x280   : > { %v10998_v10 = vpop.permute.xlu0 %1959 }
 0x282   : > { %1561 = vmatpush1.bf16.msra.mxu1 %v10230_v60  ;;  %v1234_v60 = vsel %vm384_vm4, %v1230_v26, %v10899_v4  ;;  %v10248_v4 = vld [vmem:[%s14156_s1 + $0x80] ss:$8 sps:$4 sm:$0xff]   ;;  %v11199_v26 = vld [vmem:[%s14156_s1 + $0x24] ss:$8 sps:$4 sm:$0xff]  }
 0x283   : > { %1562 = vmatprep.subr.bf16.mxu1 %v10231_v12  ;;  %v1238_v11 = vsel %vm389_vm5, %v1234_v60, %v10925_v30  ;;  %v11223_v60 = vld [vmem:[%s14156_s1 + $0x10] ss:$8 sps:$4 sm:$0xff]  }
 0x284   : > { %v11014_v41 = vpop.permute.xlu0 %2013 }
 0x286   : > { %1563 = vmatpush1.bf16.msra.mxu1 %v10232_v49  ;;  %v1368_v49 = vrot.slane %v1360_v46, 4 }
 0x287   : > { %1564 = vmatprep.subr.bf16.mxu1 %v10233_v5  ;;  %v1334_v5 = vsel %vm378_vm3, %v10671_v6, %v10951_v0  ;;  %v1358_v6 = vsel %vm410_vm8, %v1354_v62, %v1319_v31  ;;  %v11229_v62 = vld [vmem:[%s14156_s1 + $0x4] ss:$8 sps:$4 sm:$0xff]  }
 0x288   : > { %v11038_v50 = vpop.permute.xlu0 %1981  ;;  %v1338_v0 = vsel %vm384_vm4, %v1334_v5, %v10953_v1  ;;  %v11238_v5 = vld [vmem:[%s14156_s1] ss:$8 sps:$4 sm:$0xff]  }
 0x28a   : > { %1565 = vmatpush1.bf16.msra.mxu1 %v10234_v7  ;;  %v1344_v7 = vsel %vm394_vm7, %v1340_v56, %v10913_v32  ;;  %v11093_v32 = vld [vmem:[%s14156_s1 + $0x64] ss:$8 sps:$4 sm:$0xff]   ;;  %v11208_v56 = vld [vmem:[%s14156_s1 + $0x20] ss:$8 sps:$4 sm:$0xff]  }
 0x28b   : > { %1566 = vmatprep.subr.bf16.mxu1 %v10235_v13  ;;  %v1259_v13 = vsel %vm415_vm9, %v1255_v17, %v10940_v40  ;;  %v1348_v30 = vsel %vm399_vm11, %v1344_v7, %v10882_v57  ;;  %v1342_v57 = vsel %vm389_vm5, %v1338_v0, %v10975_v29  ;;  %v11215_v17 = vld [vmem:[%s14156_s1 + $0x14] ss:$8 sps:$4 sm:$0xff]   ;;  %v11252_v0 = vld [vmem:[%s14156_s1 + $0xc4] ss:$8 sps:$4 sm:$0xff]  }
 0x28c   : > { %v11067_v12 = vpop.permute.xlu0 %2003  ;;  %v1378_v31 = vsel %vm527_vm2, %v1259_v13, %v1368_v49  ;;  %v1346_v29 = vsel %vm394_vm7, %v1342_v57, %v10983_v35  ;;  %v11276_v57 = vld [vmem:[%s14156_s1 + $0xa4] ss:$8 sps:$4 sm:$0xff]  }
 0x28d   : > { %v1350_v35 = vsel %vm399_vm11, %v1346_v29, %v10964_v9  ;;  %v11168_v9 = vld [vmem:[%s14156_s1 + $0x34] ss:$8 sps:$4 sm:$0xff]  }
 0x28e   : > { %1567 = vmatpush1.bf16.msra.mxu1 %v10236_v15  ;;  %v1244_v15 = vsel %vm399_vm11, %v1240_v48, %v10846_v44  ;;  %v11115_v44 = vld [vmem:[%s14156_s1 + $0x60] ss:$8 sps:$4 sm:$0xff]  }
 0x28f   : > { %1568 = vmatprep.subr.bf16.mxu1 %v10237_v19 }
 0x290   : > { %v11101_v19 = vpop.permute.xlu0 %2101 }
 0x292   : > { %1569 = vmatpush1.bf16.msra.mxu1 %v10238_v34  ;;  %v1242_v34 = vsel %vm394_vm7, %v1238_v11, %v10938_v36  ;;  %v11123_v36 = vld [vmem:[%s14156_s1 + $0x54] ss:$8 sps:$4 sm:$0xff]  }
 0x293   : > { %8818 = vmatprep.subr.msk.bf16.mxu1 %vm527_vm2, %v10457_v23  ;;  %v10241_v23 = vld [vmem:[%s14156_s1 + $0xb4] ss:$8 sps:$4 sm:$0xff]  }
 0x296   : > { %1575 = vmatpush2.bf16.msra.mxu1 %v10468_v33  ;;  %v10996_v33 = vpop.permute.xlu1 %1969 }
 0x297   : > { %1576 = vmatprep.subr.bf16.mxu1 %v10239_v39  ;;  %v1362_v39 = vsel %vm415_vm9, %v1358_v6, %v10985_v38  ;;  %v1367_v38 = vrot.slane %v1348_v30, 4  ;;  %v11258_v30 = vld [vmem:[%s14156_s1 + $0xc0] ss:$8 sps:$4 sm:$0xff]  }
 0x29a   : > { %1577 = vmatpush2.bf16.msra.mxu1 %v10240_v42  ;;  %v11006_v28 = vpop.permute.xlu1 %2025  ;;  %v11127_v42 = vpop.permute.xlu0 %2117 }
 0x29b   : > { %1578 = vmatprep.subr.bf16.mxu1 %v10241_v23  ;;  %v1371_v23 = vrot.slane %v1362_v39, 4  ;;  %v11270_v39 = vld [vmem:[%s14156_s1 + $0xb0] ss:$8 sps:$4 sm:$0xff]  }
 0x29d   : > { %v1372_v45 = vsel %vm527_vm2, %v1368_v49, %v1371_v23  ;;  %v2240_v49 = vld [vmem:[%s14156_s1 + $0xd0] sm:$0xff] }
 0x29e   : > { %1579 = vmatpush2.bf16.msra.mxu1 %v10242_v18  ;;  %v11031_v14 = vpop.permute.xlu1 %2047  ;;  %v1247_v18 = vsel %vm399_vm11, %v1242_v34, %v10905_v8  ;;  %v11148_v16 = vpop.permute.xlu0 %1961  ;;  %v11241_v7 = vcombine.high %v2240_v49, %v2240_v49  ;;  %v8914_v13 = vcombine.low %v2240_v49, %v2240_v49 }
 0x29f   : > { %1580 = vmatprep.subr.bf16.mxu1 %v10243_v43  ;;  %v11137_v43 = vld [vmem:[%s14156_s1 + $0x50] ss:$8 sps:$4 sm:$0xff]   ;;  %v1375_v8 = vsel %vm527_vm2, %v1247_v18, %v1367_v38  ;;  %v2062_v18 = vsel %vm378_vm3, %v10764_v21, %v10998_v10  ;;  %v11299_v21 = vld [vmem:[%s14156_s1 + $0x94] ss:$8 sps:$4 sm:$0xff]  }
 0x2a0   : > { %v11247_v6 = vsel %vm527_vm2, %v8914_v13, 0  ;;  %v2067_v10 = vsel %vm384_vm4, %v2062_v18, %v10996_v33  ;;  %v11320_v33 = vld [vmem:[%s14156_s1 + $0x84] ss:$8 sps:$4 sm:$0xff]  }
 0x2a2   : > { %1581 = vmatpush2.bf16.msra.mxu1 %v10244_v24  ;;  %v11061_v52 = vpop.permute.xlu1 %2057  ;;  %v2084_v24 = vsel %vm405_vm6, %v11014_v41, %v11006_v28  ;;  %v1369_v28 = vrot.slane %v1350_v35, 4  ;;  %v2152_v2 = vpop.permute.xlu0 %2151  ;;  %v2166_v35 = vsel %vm378_vm3, %v10807_v55, %v11101_v19 }
 0x2a3   : > { %1582 = vmatprep.subr.bf16.mxu1 %v10245_v58  ;;  %v2088_v58 = vsel %vm410_vm8, %v2084_v24, %v11031_v14 }
 0x2a4   : > { %v2092_v14 = vsel %vm415_vm9, %v2088_v58, %v11061_v52  ;;  %v1370_v46 = vsel %vm527_vm2, %v1367_v38, %v1369_v28  ;;  %v2071_v58 = vsel %vm389_vm5, %v2067_v10, %v11038_v50 }
 0x2a5   : > { %v2075_v50 = vsel %vm394_vm7, %v2071_v58, %v11067_v12 }
 0x2a6   : > { %1583 = vmatpush2.bf16.msra.mxu1 %v10246_v59  ;;  %v11095_v40 = vpop.permute.xlu1 %2105  ;;  %v11202_v59 = vpop.permute.xlu0 %2015  ;;  %v2079_v12 = vsel %vm399_vm11, %v2075_v50, %v11014_v41  ;;  %v11425_v50 = vld [vmem:[%s10325_s8 + $0x88] sm:$0xf] }
 0x2a7   : > { %1584 = vmatprep.subr.bf16.mxu1 %v10247_v61  ;;  %v2171_v28 = vsel %vm384_vm4, %v2166_v35, %v11095_v40 }
 0x2aa   : > { %1585 = vmatpush2.bf16.msra.mxu1 %v10248_v4  ;;  %v11125_v1 = vpop.permute.xlu1 %2129  ;;  %v11217_v52 = vpop.permute.xlu0 %2113 }
 0x2ab   : > { %2389 = vmatprep.subr.bf16.mxu1 %v11059_v51  ;;  %v2187_v29 = vsel %vm405_vm6, %v11127_v42, %v11125_v1 }
 0x2ac   : > { %v2191_v1 = vsel %vm410_vm8, %v2187_v29, %v2152_v2 }
 0x2ad   : > { %1587 = vmatmul.mubr.bf16.vlgmr.msra.gmra.mxu1 %v1244_v15 }
 0x2ae   : > { %8820 = vmatprep.mubr.msk.bf16.mxu1 %vm703_vm10, %v1378_v31  ;;  %2390 = vmatpush1.bf16.msra.mxu1 %v11084_v53  ;;  %v11145_v47 = vpop.permute.xlu1 %2109  ;;  %v1984_v4 = vpop.permute.xlu0 %1983  ;;  %v11264_v31 = vld [vmem:[%s14156_s1 + $0xb4] ss:$8 sps:$4 sm:$0xff]  }
 0x2af   : > { %2391 = vmatprep.subr.bf16.mxu1 %v11093_v32 }
 0x2b2   : > { %2392 = vmatpush1.bf16.msra.mxu1 %v11115_v44  ;;  %v11170_v20 = vpop.permute.xlu1 %1971  ;;  %v2006_v15 = vpop.permute.xlu0 %2005 }
 0x2b3   : > { %2393 = vmatprep.subr.bf16.mxu1 %v11123_v36 }
 0x2b5   : > { %1597 = vmatmul.mubr.bf16.gmra.mxu1 %v1375_v8  ;;  %v11288_v8 = vld [vmem:[%s14156_s1 + $0xa0] ss:$8 sps:$4 sm:$0xff]  }
 0x2b6   : > { %8821 = vmatprep.mubr.msk.bf16.mxu1 %vm703_vm10, %v1372_v45  ;;  %2394 = vmatpush1.bf16.msra.mxu1 %v11137_v43  ;;  %v2028_v27 = vpop.permute.xlu1 %2027  ;;  %v2104_v38 = vpop.permute.xlu0 %2103  ;;  %v8868_v45 = vcombine.low %v10767_v22, %v10767_v22  ;;  %v11312_v22 = vld [vmem:[%s14156_s1 + $0x90] ss:$8 sps:$4 sm:$0xff]  }
 0x2b7   : > { %2395 = vmatprep.subr.bf16.mxu1 %v11143_v25  ;;  %v2086_v55 = vsel %vm405_vm6, %v11202_v59, %v2028_v27 }
 0x2b8   : > { %v2065_v19 = vsel %vm378_vm3, %v8868_v45, %v11148_v16 }
 0x2b9   : > { %v2069_v16 = vsel %vm384_vm4, %v2065_v19, %v11170_v20  ;;  %v8961_v19 = vld [vmem:[%s10325_s8 + $0x84] sm:$0xf] }
 0x2ba   : > { %2396 = vmatpush1.bf16.msra.mxu1 %v11162_v3  ;;  %v2162_v61 = vpop.permute.xlu1 %2161  ;;  %v2120_v24 = vpop.permute.xlu0 %2119  ;;  %v2073_v18 = vsel %vm389_vm5, %v2069_v16, %v1984_v4  ;;  %v8959_v16 = vld [vmem:[%s10325_s8 + $0x70] sm:$0xe] }
 0x2bb   : > { %2397 = vmatprep.subr.bf16.mxu1 %v11168_v9  ;;  %v2195_v2 = vsel %vm415_vm9, %v2191_v1, %v2162_v61 }
 0x2bc   : > { %v2203_v61 = vrot.slane %v2195_v2, 4 }
 0x2bd   : > { %1607 = vmatmul.mubr.bf16.gmra.mxu1 %v1370_v46  ;;  %v11334_v46 = vld [vmem:[%s14156_s1 + $0x80] ss:$8 sps:$4 sm:$0xff]  }
 0x2be   : > { %2398 = vmatpush1.bf16.msra.mxu1 %v11191_v54  ;;  %8917 = vmatprep.mubr.msk.bf16.mxu1 %vm703_vm10, %v2092_v14  ;;  %v2050_v48 = vpop.permute.xlu1 %2049  ;;  %v2175_v14 = vsel %vm389_vm5, %v2171_v28, %v11145_v47  ;;  %v2169_v47 = vsel %vm378_vm3, %v10864_v37, %v2104_v38 }
 0x2bf   : > { %2399 = vmatprep.subr.bf16.mxu1 %v11199_v26  ;;  %v2090_v27 = vsel %vm410_vm8, %v2086_v55, %v2050_v48  ;;  %v2112_v48 = vpop.permute.xlu0 %2111  ;;  %v2179_v20 = vsel %vm394_vm7, %v2175_v14, %v11217_v52  ;;  %v2077_v52 = vsel %vm394_vm7, %v2073_v18, %v2006_v15  ;;  %v11414_v14 = vld [vmem:[%s10325_s8 + $0x78] sm:$0xf] }
 0x2c0   : > { %v2183_v37 = vsel %vm399_vm11, %v2179_v20, %v11127_v42  ;;  %v2082_v42 = vsel %vm399_vm11, %v2077_v52, %v11202_v59  ;;  %v8964_v52 = vld [vmem:[%s10325_s8 + $0x80] sm:$0xe] }
 0x2c1   : > { %v2202_v41 = vrot.slane %v2183_v37, 4 }
 0x2c2   : > { %2400 = vmatpush1.bf16.msra.mxu1 %v11208_v56  ;;  %v2060_v11 = vpop.permute.xlu1 %2059 }
 0x2c3   : > { %2401 = vmatprep.subr.bf16.mxu1 %v11215_v17  ;;  %v2094_v13 = vsel %vm415_vm9, %v2090_v27, %v2060_v11  ;;  %v2116_v45 = vpop.permute.xlu0 %2115  ;;  %v2210_v15 = vsel %vm527_vm2, %v2082_v42, %v2202_v41  ;;  %v8958_v27 = vld [vmem:[%s10325_s8 + $0x7c] sm:$0x1] }
 0x2c4   : > { %v2213_v38 = vsel %vm527_vm2, %v2094_v13, %v2203_v61  ;;  %v8955_v13 = vld [vmem:[%s10325_s8 + $0x70] sm:$0xf] }
 0x2c6   : > { %2402 = vmatpush1.bf16.msra.mxu1 %v11223_v60  ;;  %v2108_v34 = vpop.permute.xlu1 %2107 }
 0x2c7   : > { %2403 = vmatprep.subr.bf16.mxu1 %v11229_v62  ;;  %v2173_v35 = vsel %vm384_vm4, %v2169_v47, %v2108_v34 }
 0x2c8   : > { %v2177_v11 = vsel %vm389_vm5, %v2173_v35, %v2112_v48 }
 0x2ca   : > { %2404 = vmatpush1.bf16.msra.mxu1 %v11238_v5  ;;  %v2132_v23 = vpop.permute.xlu1 %2131 }
 0x2cb   : > { %8916 = vmatprep.subr.msk.bf16.mxu1 %vm527_vm2, %v11241_v7  ;;  %v2189_v49 = vsel %vm405_vm6, %v2120_v24, %v2132_v23 }
 0x2ce   : > { %2410 = vmatpush2.bf16.msra.mxu1 %v11247_v6  ;;  %v2154_v40 = vpop.permute.xlu1 %2153 }
 0x2cf   : > { %2411 = vmatprep.subr.bf16.mxu1 %v11252_v0  ;;  %v2193_v29 = vsel %vm410_vm8, %v2189_v49, %v2154_v40  ;;  %v8956_v40 = vld [vmem:[%s10325_s8 + $0x74] sm:$0xf] }
 0x2d0   : > { %v8972_v49 = vcombine.low %v8959_v16, %v8956_v40 }
 0x2d2   : > { %2412 = vmatpush2.bf16.msra.mxu1 %v11258_v30  ;;  %v2164_v23 = vpop.permute.xlu1 %2163  ;;  %v2845_v20 = vrot.slane %v8972_v49, 1 }
 0x2d3   : > { %2413 = vmatprep.subr.bf16.mxu1 %v11264_v31  ;;  %v2197_v4 = vsel %vm415_vm9, %v2193_v29, %v2164_v23 }
 0x2d4   : > { %v2206_v34 = vrot.slane %v2197_v4, 4 }
 0x2d6   : > { %2414 = vmatpush2.bf16.msra.mxu1 %v11270_v39  ;;  %v2207_v1 = vsel %vm527_vm2, %v2203_v61, %v2206_v34  ;;  %v8963_v61 = vld [vmem:[%s10325_s8 + $0x8c] sm:$0x1] }
 0x2d7   : > { %2415 = vmatprep.subr.bf16.mxu1 %v11276_v57  ;;  %v11429_v47 = vcombine.low %v11425_v50, %v8963_v61  ;;  %v1066_v61 = vld [vmem:[%s14159_s4 + $0x8] sm:$0x3f] }
 0x2d9   : > { %v2875_v23 = vshll.u32 %v11429_v47, 16 }
 0x2da   : > { %2416 = vmatpush2.bf16.msra.mxu1 %v11288_v8 }
 0x2db   : > { %2417 = vmatprep.subr.bf16.mxu1 %v11299_v21 }
 0x2de   : > { %2418 = vmatpush2.bf16.msra.mxu1 %v11312_v22 }
 0x2df   : > { %2419 = vmatprep.subr.bf16.mxu1 %v11320_v33 }
 0x2e2   : > { %2420 = vmatpush2.bf16.msra.mxu1 %v11334_v46 }
 0x2e3   : > { %3224 = vmatprep.subr.bf16.mxu1 %v11059_v51  ;;  %v2181_v51 = vsel %vm394_vm7, %v2177_v11, %v2116_v45  ;;  %v8976_v11 = vcombine.low %v8964_v52, %v8961_v19 }
 0x2e4   : > { %v2185_v10 = vsel %vm399_vm11, %v2181_v51, %v2120_v24 }
 0x2e5   : > { %2422 = vmatmul.mubr.bf16.vlgmr.msra.gmra.mxu1 %v2079_v12  ;;  %v11439_v12 = vcombine.low %v8955_v13, %v8956_v40 }
 0x2e6   : > { %8918 = vmatprep.mubr.msk.bf16.mxu1 %vm703_vm10, %v2213_v38  ;;  %3225 = vmatpush1.bf16.msra.mxu1 %v11084_v53  ;;  %v2204_v53 = vrot.slane %v2185_v10, 4  ;;  %v2877_v38 = vrot.slane %v2875_v23, 1  ;;  %v8977_v10 = vld [vmem:[%s10325_s8 + $0x90] sm:$0xf] }
 0x2e7   : > { %3226 = vmatprep.subr.bf16.mxu1 %v11093_v32 }
 0x2e8   : > { %v2205_v32 = vsel %vm527_vm2, %v2202_v41, %v2204_v53  ;;  %v11455_v41 = vrot.slane %v11429_v47, 1  ;;  %v8979_v53 = vld [vmem:[%s10325_s8 + $0x98] sm:$0xf] }
 0x2ea   : > { %3227 = vmatpush1.bf16.msra.mxu1 %v11115_v44  ;;  %v8950_v44 = vld [vmem:[%s10325_s8 + $0x60] sm:$0xf] }
 0x2eb   : > { %3228 = vmatprep.subr.bf16.mxu1 %v11123_v36  ;;  %v8951_v36 = vld [vmem:[%s10325_s8 + $0x64] sm:$0xf] }
 0x2ed   : > { %2432 = vmatmul.mubr.bf16.gmra.mxu1 %v2210_v15 }
 0x2ee   : > { %8919 = vmatprep.mubr.msk.bf16.mxu1 %vm703_vm10, %v2207_v1  ;;  %3229 = vmatpush1.bf16.msra.mxu1 %v11137_v43  ;;  %v11382_v43 = vcombine.low %v8950_v44, %v8951_v36  ;;  %v8978_v1 = vld [vmem:[%s10325_s8 + $0x94] sm:$0xf] }
 0x2ef   : > { %3230 = vmatprep.subr.bf16.mxu1 %v11143_v25  ;;  %v11386_v25 = vld [vmem:[%s10325_s8 + $0x68] sm:$0xf] }
 0x2f2   : > { %3231 = vmatpush1.bf16.msra.mxu1 %v11162_v3  ;;  %v8953_v3 = vld [vmem:[%s10325_s8 + $0x6c] sm:$0x1] }
 0x2f3   : > { %3232 = vmatprep.subr.bf16.mxu1 %v11168_v9  ;;  %v11390_v9 = vcombine.low %v11386_v25, %v8953_v3 }
 0x2f5   : > { %2442 = vmatmul.mubr.bf16.gmra.mxu1 %v2205_v32  ;;  %v2802_v24 = vrot.slane %v11390_v9, 1  ;;  %v8980_v32 = vld [vmem:[%s10325_s8 + $0x9c] sm:$0x1] }
 0x2f6   : > { %3233 = vmatpush1.bf16.msra.mxu1 %v11191_v54  ;;  %v2782_v54 = vshll.u32 %v11382_v43, 16  ;;  %v8984_v44 = vcombine.low %v8979_v53, %v8980_v32 }
 0x2f7   : > { %3234 = vmatprep.subr.bf16.mxu1 %v11199_v26  ;;  %v8954_v26 = vld [vmem:[%s10325_s8 + $0x60] sm:$0xe] }
 0x2f8   : > { %v8968_v59 = vcombine.low %v8954_v26, %v8951_v36  ;;  %v2983_v16 = vshrl.u32 %v8984_v44, 16 }
 0x2fa   : > { %3235 = vmatpush1.bf16.msra.mxu1 %v11208_v56  ;;  %v2780_v56 = vshrl.u32 %v11382_v43, 16 }
 0x2fb   : > { %3236 = vmatprep.subr.bf16.mxu1 %v11215_v17  ;;  %v2784_v17 = vrot.slane %v2782_v54, 1 }
 0x2fd   : > { %v2785_v28 = vor.u32 %v2784_v17, %v2780_v56 }
 0x2fe   : > { %3237 = vmatpush1.bf16.msra.mxu1 %v11223_v60  ;;  %v2787_v60 = vshll.u32 %v11390_v9, 16 }
 0x2ff   : > { %3238 = vmatprep.subr.bf16.mxu1 %v11229_v62  ;;  %v2801_v62 = vrot.slane %v8968_v59, 1  ;;  %v8981_v59 = vld [vmem:[%s10325_s8 + $0x90] sm:$0xe] }
 0x300   : > { %v11400_v55 = vrot.slane %v2787_v60, 1  ;;  %v8985_v17 = vcombine.low %v8981_v59, %v8978_v1  ;;  %v8974_v60 = vcombine.low %v11425_v50, %v11425_v50 }
 0x301   : > { %v2803_v58 = vsel %vm282_vm0, %v2801_v62, %v2802_v24 }
 0x302   : > { %3239 = vmatpush1.bf16.msra.mxu1 %v11238_v5  ;;  %v8960_v5 = vld [vmem:[%s10325_s8 + $0x80] sm:$0xf]  ;;  %2804 = vrot.lane.b32.xlu1 %v2803_v58, %s10260_s20  ;;  %v2993_v62 = vrot.slane %v8985_v17, 1 }
 0x303   : > { %9014 = vmatprep.subr.msk.bf16.mxu1 %vm527_vm2, %v11241_v7  ;;  %v2790_v7 = vsel %vm259_vm1, %v2785_v28, %v11400_v55  ;;  %v11411_v2 = vcombine.low %v8960_v5, %v8961_v19  ;;  %v2994_v28 = vrot.slane %v8984_v44, 1 }
 0x304   : > { %2794 = vrot.lane.b32.xlu0 %v2790_v7, %s10262_s30 }
 0x305   : > { %v2870_v48 = vshll.u32 %v11411_v2, 16  ;;  %v2868_v18 = vshrl.u32 %v11411_v2, 16  ;;  %v2995_v5 = vsel %vm282_vm0, %v2993_v62, %v2994_v28 }
 0x306   : > { %3245 = vmatpush2.bf16.msra.mxu1 %v11247_v6  ;;  %v11422_v6 = vcombine.low %v11414_v14, %v8958_v27  ;;  %2860 = vrot.lane.b32.xlu1 %v11411_v2, %s10257_s13  ;;  %v8983_v27 = vcombine.low %v8979_v53, %v8979_v53 }
 0x307   : > { %3246 = vmatprep.subr.bf16.mxu1 %v11252_v0  ;;  %v2872_v29 = vrot.slane %v2870_v48, 1 }
 0x308   : > { %v11433_v0 = vrot.slane %v11422_v6, 1  ;;  %v2831_v42 = vshll.u32 %v11422_v6, 16  ;;  %v2835_v19 = vshrl.u32 %v11422_v6, 16 }
 0x309   : > { %v2873_v37 = vor.u32 %v2872_v29, %v2868_v18 }
 0x30a   : > { %3247 = vmatpush2.bf16.msra.mxu1 %v11258_v30  ;;  %v2847_v35 = vsel %vm282_vm0, %v2845_v20, %v11433_v0  ;;  %v2826_v30 = vshll.u32 %v11439_v12, 16  ;;  %v2833_v51 = vrot.slane %v2831_v42, 1 }
 0x30b   : > { %3248 = vmatprep.subr.bf16.mxu1 %v11264_v31  ;;  %2848 = vrot.lane.b32.xlu0 %v2847_v35, %s10259_s17  ;;  %v2878_v4 = vsel %vm259_vm1, %v2873_v37, %v2877_v38  ;;  %v2824_v31 = vshrl.u32 %v11439_v12, 16 }
 0x30c   : > { %v2828_v45 = vrot.slane %v2826_v30, 1  ;;  %2882 = vrot.lane.b32.xlu1 %v2878_v4, %s10264_s22  ;;  %v2837_v40 = vor.u32 %v2835_v19, %v2833_v51 }
 0x30e   : > { %3249 = vmatpush2.bf16.msra.mxu1 %v11270_v39  ;;  %v2889_v39 = vrot.slane %v8976_v11, 1  ;;  %v2829_v34 = vor.u32 %v2828_v45, %v2824_v31 }
 0x30f   : > { %3250 = vmatprep.subr.bf16.mxu1 %v11276_v57  ;;  %2816 = vrot.lane.b32.xlu0 %v11439_v12, %s10258_s16 }
 0x310   : > { %v2891_v57 = vsel %vm282_vm0, %v2889_v39, %v11455_v41  ;;  %v2834_v15 = vsel %vm259_vm1, %v2829_v34, %v2833_v51 }
 0x311   : > { %2892 = vrot.lane.b32.xlu1 %v2891_v57, %s10261_s27 }
 0x312   : > { %3251 = vmatpush2.bf16.msra.mxu1 %v11288_v8  ;;  %v8982_v8 = vcombine.low %v8977_v10, %v8978_v1 }
 0x313   : > { %3252 = vmatprep.subr.bf16.mxu1 %v11299_v21  ;;  %2838 = vrot.lane.b32.xlu0 %v2834_v15, %s10263_s11  ;;  %v2791_v21 = vshrl.u32 %v11390_v9, 16 }
 0x314   : > { %v2972_v36 = vshrl.u32 %v8982_v8, 16  ;;  %v2974_v3 = vshll.u32 %v8982_v8, 16 }
 0x315   : > { %2940 = vrot.lane.b32.xlu1 %v2847_v35, %s10260_s20 }
 0x316   : > { %3253 = vmatpush2.bf16.msra.mxu1 %v11312_v22  ;;  %v2979_v22 = vshll.u32 %v8984_v44, 16  ;;  %v2976_v54 = vrot.slane %v2974_v3, 1 }
 0x317   : > { %3254 = vmatprep.subr.bf16.mxu1 %v11320_v33  ;;  %2936 = vrot.lane.b32.xlu0 %v2834_v15, %s10262_s30  ;;  %v2793_v33 = vor.u32 %v2791_v21, %v11400_v55  ;;  %v2879_v55 = vshrl.u32 %v11429_v47, 16 }
 0x318   : > { %v2981_v26 = vrot.slane %v2979_v22, 1  ;;  %v2977_v56 = vor.u32 %v2976_v54, %v2972_v36 }
 0x319   : > { %2964 = vrot.lane.b32.xlu1 %v8982_v8, %s10257_s13  ;;  %v2881_v9 = vor.u32 %v2879_v55, %v2877_v38 }
 0x31a   : > { %3255 = vmatpush2.bf16.msra.mxu1 %v11334_v46  ;;  %v2982_v46 = vsel %vm259_vm1, %v2977_v56, %v2981_v26  ;;  %v2985_v20 = vor.u32 %v2983_v16, %v2981_v26 }
 0x31b   : > { %2952 = vrot.lane.b32.xlu0 %v2891_v57, %s10259_s17 }
 0x31d   : > { %2944 = vrot.lane.b32.xlu1 %v11411_v2, %s10258_s16  ;;  %v1065_v2 = vld [vmem:[%s14159_s4] sm:$0xff] }
 0x31f   : > { %2796 = vrot.lane.b32.xlu0 %v2793_v33, %s10262_s30 }
 0x321   : > { %2806 = vrot.lane.b32.xlu1 %v2802_v24, %s10260_s20  ;;  %v11500_v24 = vcombine.low %v11414_v14, %v11414_v14 }
 0x323   : > { %2986 = vrot.lane.b32.xlu0 %v2982_v46, %s10264_s22 }
 0x325   : > { %2862 = vrot.lane.b32.xlu1 %v8974_v60, %s10257_s13 }
 0x327   : > { %2850 = vrot.lane.b32.xlu0 %v11433_v0, %s10259_s17 }
 0x329   : > { %2996 = vrot.lane.b32.xlu1 %v2995_v5, %s10261_s27  ;;  %v11542_v5 = vld [vmem:[%s14158_s3 + $0x74] ss:$8 sps:$4 sm:$0xff]  }
 0x32b   : > { %2948 = vrot.lane.b32.xlu0 %v2878_v4, %s10263_s11 }
 0x32d   : > { %2884 = vrot.lane.b32.xlu1 %v2881_v9, %s10264_s22 }
 0x32f   : > { %2818 = vrot.lane.b32.xlu0 %v11500_v24, %s10258_s16 }
 0x331   : > { %2894 = vrot.lane.b32.xlu1 %v11455_v41, %s10261_s27 }
 0x333   : > { %2840 = vrot.lane.b32.xlu0 %v2837_v40, %s10263_s11 }
 0x335   : > { %v1054_v58 = vpop.f32.mrf.mxu1  ;;  %2942 = vrot.lane.b32.xlu1 %v11433_v0, %s10260_s20 }
 0x337   : > { %v1056_v7 = vpop.f32.mrf.mxu1  ;;  %2938 = vrot.lane.b32.xlu0 %v2837_v40, %s10262_s30  ;;  %v9847_v40 = vld [vmem:[%s14157_s2] sm:$0xff]  }
 0x338   : > { %v1063_v14 = vmax.f32 %v1054_v58, %v1056_v7  ;;  %v11550_v58 = vld [vmem:[%s14158_s3 + $0x70] ss:$8 sps:$4 sm:$0xff]  }
 0x339   : > { %v1058_v6 = vpop.f32.mrf.mxu1  ;;  %2966 = vrot.lane.b32.xlu1 %v8983_v27, %s10257_s13  ;;  %v11564_v27 = vld [vmem:[%s14158_s3 + $0x60] ss:$8 sps:$4 sm:$0xff]  }
 0x33a   : > { %v1067_v49 = vadd.f32 %v1065_v2, %v1063_v14  ;;  %v11556_v2 = vld [vmem:[%s14158_s3 + $0x64] ss:$8 sps:$4 sm:$0xff]  }
 0x33b   : > { %v1060_v50 = vpop.f32.mrf.mxu1  ;;  %2954 = vrot.lane.b32.xlu0 %v11455_v41, %s10259_s17 }
 0x33c   : > { %v1069_v47 = vmax.f32 %v1067_v49, 0.0  ;;  %v1064_v48 = vmax.f32 %v1058_v6, %v1060_v50  ;;  %v11570_v6 = vld [vmem:[%s14158_s3 + $0x54] ss:$8 sps:$4 sm:$0xff]   ;;  %v9849_v50 = vld [vmem:[%s14157_s2 + $0x8] sm:$0x3f]  }
 0x33d   : > { %2988 = vrot.lane.b32.xlu1 %v2985_v20, %s10264_s22 }
 0x33e   : > { %v9638_v0 = vpack.c.bf16 %v1069_v47, %v1069_v47  ;;  %v1068_v13 = vadd.f32 %v1066_v61, %v1064_v48  ;;  %v11579_v61 = vld [vmem:[%s14158_s3 + $0x50] ss:$8 sps:$4 sm:$0xff]   ;;  %v11585_v48 = vld [vmem:[%s14158_s3 + $0x44] ss:$8 sps:$4 sm:$0xff]  }
 0x33f   : > { %2946 = vrot.lane.b32.xlu0 %v8974_v60, %s10258_s16 }
 0x340   : > { %8752 = vst [vmem:[%s11175_s15 + $0x8] sm:$0xf] %v9638_v0  ;;  %v1070_v18 = vmax.f32 %v1068_v13, 0.0  ;;  %v11594_v13 = vld [vmem:[%s14158_s3 + $0x40] ss:$8 sps:$4 sm:$0xff]  }
 0x341   : > { %2998 = vrot.lane.b32.xlu1 %v2994_v28, %s10261_s27 }
 0x342   : > { %v9639_v29 = vpack.c.bf16 %v1070_v18, %v1070_v18 }
 0x343   : > { %2950 = vrot.lane.b32.xlu0 %v2881_v9, %s10263_s11 }
 0x344   : > { %8753 = vst [vmem:[%s11175_s15 + $0xc] sm:$0x7] %v9639_v29 }
 0x36d   : > { %v1588_v23 = vpop.f32.mrf.mxu1 }
 0x36f   : > { %v1590_v35 = vpop.f32.mrf.mxu1 }
 0x371   : > { %v1592_v37 = vpop.f32.mrf.mxu1 }
 0x373   : > { %v1594_v38 = vpop.f32.mrf.mxu1 }
 0x374   : > { %v2805_v11 = vpop.permute.xlu1 %2804 }
 0x375   : > { %v1598_v30 = vpop.f32.mrf.mxu1 }
 0x376   : > { %v2795_v31 = vpop.permute.xlu0 %2794 }
 0x377   : > { %v1600_v52 = vpop.f32.mrf.mxu1  ;;  %v2897_v34 = vsel %vm378_vm3, %v11382_v43, %v2795_v31 }
 0x378   : > { %v2861_v42 = vpop.permute.xlu1 %2860  ;;  %v2902_v8 = vsel %vm384_vm4, %v2897_v34, %v2805_v11  ;;  %v11618_v11 = vld [vmem:[%s14158_s3 + $0x24] ss:$8 sps:$4 sm:$0xff]  }
 0x379   : > { %v1602_v4 = vpop.f32.mrf.mxu1 }
 0x37a   : > { %v1617_v62 = vmax.f32 %v1588_v23, %v1602_v4  ;;  %v11601_v23 = vld [vmem:[%s14158_s3 + $0x34] ss:$8 sps:$4 sm:$0xff]  }
 0x37b   : > { %v1604_v45 = vpop.f32.mrf.mxu1 }
 0x37c   : > { %v1618_v33 = vmax.f32 %v1590_v35, %v1604_v45  ;;  %v8966_v35 = vcombine.low %v11386_v25, %v11386_v25 }
 0x37d   : > { %v1608_v41 = vpop.f32.mrf.mxu1  ;;  %v2849_v51 = vpop.permute.xlu0 %2848 }
 0x37e   : > { %v2919_v15 = vsel %vm405_vm6, %v2849_v51, %v2861_v42  ;;  %v2883_v1 = vpop.permute.xlu1 %2882  ;;  %v1619_v26 = vmax.f32 %v1592_v37, %v1608_v41 }
 0x37f   : > { %v1610_v39 = vpop.f32.mrf.mxu1  ;;  %v2923_v3 = vsel %vm410_vm8, %v2919_v15, %v2883_v1 }
 0x380   : > { %v1620_v32 = vmax.f32 %v1594_v38, %v1610_v39  ;;  %v1623_v9 = vpack.c.bf16 %v1619_v26, %v1617_v62  ;;  %v11630_v39 = vld [vmem:[%s14158_s3 + $0x20] ss:$8 sps:$4 sm:$0xff]  }
 0x381   : > { %v1612_v57 = vpop.f32.mrf.mxu1  ;;  %v2817_v53 = vpop.permute.xlu0 %2816 }
 0x382   : > { %v1621_v10 = vmax.f32 %v1598_v30, %v1612_v57  ;;  %v2906_v22 = vsel %vm389_vm5, %v2902_v8, %v2817_v53  ;;  %v1624_v17 = vpack.c.bf16 %v1620_v32, %v1618_v33  ;;  %v11611_v30 = vld [vmem:[%s14158_s3 + $0x30] ss:$8 sps:$4 sm:$0xff]   ;;  %v11637_v57 = vld [vmem:[%s14158_s3 + $0x14] ss:$8 sps:$4 sm:$0xff]  }
 0x383   : > { %v1614_v21 = vpop.f32.mrf.mxu1  ;;  %v2893_v43 = vpop.permute.xlu1 %2892  ;;  %v11649_v32 = vld [vmem:[%s14158_s3 + $0x10] ss:$8 sps:$4 sm:$0xff]  }
 0x384   : > { %v1625_v44 = vpack.c.bf16 %v1621_v10, %v1621_v10  ;;  %v1622_v36 = vmax.f32 %v1600_v52, %v1614_v21  ;;  %v2927_v59 = vsel %vm415_vm9, %v2923_v3, %v2893_v43  ;;  %v11656_v3 = vld [vmem:[%s14158_s3 + $0x4] ss:$8 sps:$4 sm:$0xff]  }
 0x385   : > { %v2839_v56 = vpop.permute.xlu0 %2838  ;;  %9015 = vmatprep.mubr.msk.bf16.mxu1 %vm703_vm10, %v2927_v59 }
 0x386   : > { %v1626_v54 = vpack.c.bf16 %v1622_v36, %v1622_v36  ;;  %v1648_v46 = vsel %vm527_vm2, %v1625_v44, 0  ;;  %v2910_v60 = vsel %vm394_vm7, %v2906_v22, %v2839_v56  ;;  %v11667_v56 = vld [vmem:[%s14158_s3] ss:$8 sps:$4 sm:$0xff]  }
 0x387   : > { %v2914_v28 = vsel %vm399_vm11, %v2910_v60, %v2849_v51  ;;  %v2941_v55 = vpop.permute.xlu1 %2940  ;;  %v11675_v60 = vld [vmem:[%s14158_s3 + $0x94] ss:$8 sps:$4 sm:$0xff]  }
 0x388   : > { %8824 = vmatprep.subr.msk.bf16.mxu0 %vm527_vm2, %v1626_v54  ;;  %3257 = vmatmul.mubr.bf16.vlgmr.msra.gmra.mxu1 %v2914_v28 }
 0x389   : > { %1666 = vmatpush1.bf16.msra.mxu0 %v1648_v46  ;;  %v2937_v19 = vpop.permute.xlu0 %2936 }
 0x38a   : > { %1667 = vmatprep.subr.bf16.mxu0 %v1624_v17  ;;  %v3001_v20 = vsel %vm378_vm3, %v11439_v12, %v2937_v19  ;;  %v11684_v19 = vld [vmem:[%s14158_s3 + $0x90] ss:$8 sps:$4 sm:$0xff]  }
 0x38b   : > { %v2965_v7 = vpop.permute.xlu1 %2964  ;;  %v3006_v18 = vsel %vm384_vm4, %v3001_v20, %v2941_v55  ;;  %v11699_v20 = vld [vmem:[%s14158_s3 + $0x80] ss:$8 sps:$4 sm:$0xff]  }
 0x38d   : > { %1668 = vmatpush1.bf16.msra.mxu0 %v1623_v9  ;;  %v2953_v14 = vpop.permute.xlu0 %2952 }
 0x38e   : > { %1855 = vmatprep.subr.bf16.mxu0 %v11542_v5  ;;  %v3022_v12 = vsel %vm405_vm6, %v2953_v14, %v2965_v7  ;;  %v11690_v7 = vld [vmem:[%s14158_s3 + $0x84] ss:$8 sps:$4 sm:$0xff]  }
 0x38f   : > { %v2945_v16 = vpop.permute.xlu1 %2944 }
 0x390   : > { %8825 = vmatmul.mubr.msk.bf16.vlgmr.msra.gmra.mxu0 %vm378_vm3, %v9847_v40  ;;  %v3010_v38 = vsel %vm389_vm5, %v3006_v18, %v2945_v16 }
 0x391   : > { %1695 = vmatprep.mubr.bf16.mxu0 %v14161_v63  ;;  %1856 = vmatpush1.bf16.msra.mxu0 %v11550_v58  ;;  %v2797_v49 = vpop.permute.xlu0 %2796 }
 0x392   : > { %1857 = vmatprep.subr.bf16.mxu0 %v11556_v2  ;;  %v2900_v25 = vsel %vm378_vm3, %v8966_v35, %v2797_v49 }
 0x393   : > { %v2807_v47 = vpop.permute.xlu1 %2806 }
 0x394   : > { %v2904_v34 = vsel %vm384_vm4, %v2900_v25, %v2807_v47 }
 0x395   : > { %1858 = vmatpush1.bf16.msra.mxu0 %v11564_v27  ;;  %v2987_v0 = vpop.permute.xlu0 %2986 }
 0x396   : > { %1859 = vmatprep.subr.bf16.mxu0 %v11570_v6  ;;  %v3026_v52 = vsel %vm410_vm8, %v3022_v12, %v2987_v0 }
 0x397   : > { %v2863_v29 = vpop.permute.xlu1 %2862 }
 0x398   : > { %8826 = vmatmul.mubr.msk.bf16.gmra.mxu0 %vm378_vm3, %v9849_v50 }
 0x399   : > { %1860 = vmatpush1.bf16.msra.mxu0 %v11579_v61  ;;  %v2851_v37 = vpop.permute.xlu0 %2850 }
 0x39a   : > { %1861 = vmatprep.subr.bf16.mxu0 %v11585_v48  ;;  %v2921_v41 = vsel %vm405_vm6, %v2851_v37, %v2863_v29 }
 0x39b   : > { %v2997_v4 = vpop.permute.xlu1 %2996 }
 0x39c   : > { %v11624_v42 = vsel %vm415_vm9, %v3026_v52, %v2997_v4 }
 0x39d   : > { %1862 = vmatpush1.bf16.msra.mxu0 %v11594_v13  ;;  %v2949_v31 = vpop.permute.xlu0 %2948  ;;  %v3038_v1 = vrot.slane %v11624_v42, 4 }
 0x39e   : > { %1863 = vmatprep.subr.bf16.mxu0 %v11601_v23  ;;  %v3014_v45 = vsel %vm394_vm7, %v3010_v38, %v2949_v31 }
 0x39f   : > { %v2885_v51 = vpop.permute.xlu1 %2884  ;;  %v11640_v15 = vsel %vm399_vm11, %v3014_v45, %v2953_v14 }
 0x3a0   : > { %v2925_v8 = vsel %vm410_vm8, %v2921_v41, %v2885_v51  ;;  %v3037_v44 = vrot.slane %v11640_v15, 4 }
 0x3a1   : > { %1864 = vmatpush1.bf16.msra.mxu0 %v11611_v30  ;;  %v2819_v10 = vpop.permute.xlu0 %2818 }
 0x3a2   : > { %1865 = vmatprep.subr.bf16.mxu0 %v11618_v11  ;;  %v2908_v53 = vsel %vm389_vm5, %v2904_v34, %v2819_v10 }
 0x3a3   : > { %v2895_v36 = vpop.permute.xlu1 %2894 }
 0x3a4   : > { %v2929_v33 = vsel %vm415_vm9, %v2925_v8, %v2895_v36 }
 0x3a5   : > { %v2423_v21 = vpop.f32.mrf.mxu1  ;;  %1866 = vmatpush1.bf16.msra.mxu0 %v11630_v39  ;;  %v2841_v54 = vpop.permute.xlu0 %2840  ;;  %v3048_v26 = vsel %vm527_vm2, %v2929_v33, %v3038_v1 }
 0x3a6   : > { %1867 = vmatprep.subr.bf16.mxu0 %v11637_v57  ;;  %v2912_v43 = vsel %vm394_vm7, %v2908_v53, %v2841_v54  ;;  %9016 = vmatprep.mubr.msk.bf16.mxu1 %vm703_vm10, %v3048_v26 }
 0x3a7   : > { %v2425_v22 = vpop.f32.mrf.mxu1  ;;  %v2917_v17 = vsel %vm399_vm11, %v2912_v43, %v2851_v37  ;;  %v2943_v46 = vpop.permute.xlu1 %2942 }
 0x3a8   : > { %v3045_v62 = vsel %vm527_vm2, %v2917_v17, %v3037_v44 }
 0x3a9   : > { %v2427_v59 = vpop.f32.mrf.mxu1  ;;  %1868 = vmatpush1.bf16.msra.mxu0 %v11649_v32  ;;  %v2939_v55 = vpop.permute.xlu0 %2938  ;;  %3267 = vmatmul.mubr.bf16.gmra.mxu1 %v3045_v62 }
 0x3aa   : > { %1869 = vmatprep.subr.bf16.mxu0 %v11656_v3  ;;  %v3004_v16 = vsel %vm378_vm3, %v11500_v24, %v2939_v55 }
 0x3ab   : > { %v2429_v28 = vpop.f32.mrf.mxu1  ;;  %v2967_v40 = vpop.permute.xlu1 %2966  ;;  %v3008_v29 = vsel %vm384_vm4, %v3004_v16, %v2943_v46 }
 0x3ad   : > { %v2433_v9 = vpop.f32.mrf.mxu1  ;;  %1870 = vmatpush1.bf16.msra.mxu0 %v11667_v56  ;;  %v2955_v49 = vpop.permute.xlu0 %2954 }
 0x3ae   : > { %1883 = vmatprep.subr.bf16.mxu0 %v11675_v60  ;;  %v3024_v47 = vsel %vm405_vm6, %v2955_v49, %v2967_v40 }
 0x3af   : > { %v2435_v14 = vpop.f32.mrf.mxu1  ;;  %v2989_v18 = vpop.permute.xlu1 %2988 }
 0x3b0   : > { %v3028_v37 = vsel %vm410_vm8, %v3024_v47, %v2989_v18 }
 0x3b1   : > { %v2437_v50 = vpop.f32.mrf.mxu1  ;;  %1884 = vmatpush2.bf16.msra.mxu0 %v11684_v19  ;;  %v2947_v35 = vpop.permute.xlu0 %2946 }
 0x3b2   : > { %v2452_v0 = vmax.f32 %v2423_v21, %v2437_v50  ;;  %1885 = vmatprep.subr.bf16.mxu0 %v11690_v7  ;;  %v3012_v52 = vsel %vm389_vm5, %v3008_v29, %v2947_v35 }
 0x3b3   : > { %v2439_v12 = vpop.f32.mrf.mxu1  ;;  %v2999_v25 = vpop.permute.xlu1 %2998 }
 0x3b4   : > { %v2453_v24 = vmax.f32 %v2425_v22, %v2439_v12  ;;  %v3032_v45 = vsel %vm415_vm9, %v3028_v37, %v2999_v25 }
 0x3b5   : > { %v2443_v38 = vpop.f32.mrf.mxu1  ;;  %1886 = vmatpush2.bf16.msra.mxu0 %v11699_v20  ;;  %v2951_v41 = vpop.permute.xlu0 %2950  ;;  %v3041_v10 = vrot.slane %v3032_v45, 4 }
 0x3b6   : > { %v2454_v4 = vmax.f32 %v2427_v59, %v2443_v38  ;;  %v3016_v8 = vsel %vm394_vm7, %v3012_v52, %v2951_v41 }
 0x3b7   : > { %v2445_v31 = vpop.f32.mrf.mxu1  ;;  %v3020_v53 = vsel %vm399_vm11, %v3016_v8, %v2955_v49  ;;  %v3042_v54 = vsel %vm527_vm2, %v3038_v1, %v3041_v10  ;;  %v9887_v10 = vld [vmem:[%s14157_s2] sm:$0xff]  }
 0x3b8   : > { %v2458_v34 = vpack.c.bf16 %v2454_v4, %v2452_v0  ;;  %v2455_v51 = vmax.f32 %v2429_v28, %v2445_v31  ;;  %v3039_v33 = vrot.slane %v3020_v53, 4  ;;  %9017 = vmatprep.mubr.msk.bf16.mxu1 %vm703_vm10, %v3042_v54  ;;  %v9888_v54 = vld [vmem:[%s14157_s2 + $0x8] sm:$0x3f]  }
 0x3b9   : > { %v2447_v21 = vpop.f32.mrf.mxu1 }
 0x3ba   : > { %v2459_v36 = vpack.c.bf16 %v2455_v51, %v2453_v24  ;;  %v2456_v22 = vmax.f32 %v2433_v9, %v2447_v21  ;;  %v3040_v59 = vsel %vm527_vm2, %v3037_v44, %v3039_v33 }
 0x3bb   : > { %v2449_v43 = vpop.f32.mrf.mxu1  ;;  %3277 = vmatmul.mubr.bf16.gmra.mxu1 %v3040_v59 }
 0x3bc   : > { %v2457_v26 = vmax.f32 %v2435_v14, %v2449_v43  ;;  %4190 = vmatprep.mubr.bf16.mxu1 %v14161_v63  ;;  %v2460_v52 = vpack.c.bf16 %v2456_v22, %v2456_v22 }
 0x3be   : > { %v2461_v17 = vpack.c.bf16 %v2457_v26, %v2457_v26  ;;  %v2483_v41 = vsel %vm527_vm2, %v2460_v52, 0  ;;  %v9059_v52 = vld [vmem:[%s10325_s8 + $0xa4] sm:$0xf] }
 0x3c0   : > { %8922 = vmatprep.subr.msk.bf16.mxu0 %vm527_vm2, %v2461_v17 }
 0x448   : > { %v3258_v40 = vpop.f32.mrf.mxu1 }
 0x44a   : > { %v3260_v29 = vpop.f32.mrf.mxu1 }
 0x44c   : > { %v3262_v25 = vpop.f32.mrf.mxu1 }
 0x44e   : > { %v3264_v51 = vpop.f32.mrf.mxu1 }
 0x450   : > { %v1687_v46 = vpop.f32.mrf.mxu0 }
 0x452   : > { %v1689_v62 = vpop.f32.mrf.mxu0 }
 0x454   : > { %v1691_v28 = vpop.f32.mrf.mxu0 }
 0x455   : > { %v1712_v50 = vrot.slane %v1691_v28, 6 }
 0x456   : > { %v1693_v42 = vpop.f32.mrf.mxu0 }
 0x457   : > { %v1715_v49 = vrot.slane %v1693_v42, 6 }
 0x458   : > { %v1697_v55 = vpop.f32.mrf.mxu0 }
 0x459   : > { %v1713_v16 = vrot.slane %v1697_v55, 6 }
 0x45a   : > { %v1699_v1 = vpop.f32.mrf.mxu0 }
 0x45b   : > { %v1716_v9 = vrot.slane %v1699_v1, 6  ;;  %v1714_v12 = vsel %vm875_vm12, %v1712_v50, %v1713_v16  ;;  %v9054_v50 = vld [vmem:[%s10325_s8 + $0x94] sm:$0xf] }
 0x45c   : > { %v1701_v14 = vpop.f32.mrf.mxu0  ;;  %v1726_v4 = vmax.f32 %v1687_v46, %v1714_v12 }
 0x45d   : > { %v1718_v15 = vrot.slane %v1701_v14, 6  ;;  %v1717_v47 = vsel %vm875_vm12, %v1715_v49, %v1716_v9  ;;  %v9051_v14 = vld [vmem:[%s10325_s8 + $0x8c] sm:$0x1] }
 0x45e   : > { %v1703_v44 = vpop.f32.mrf.mxu0  ;;  %v1727_v37 = vmax.f32 %v1689_v62, %v1717_v47 }
 0x45f   : > { %v1719_v0 = vsel %vm875_vm12, %v1713_v16, %v1718_v15  ;;  %v1720_v18 = vrot.slane %v1703_v44, 6  ;;  %v11764_v16 = vld [vmem:[%s10325_s8 + $0x88] sm:$0xf]  ;;  %v9052_v15 = vld [vmem:[%s10325_s8 + $0x80] sm:$0xe] }
 0x460   : > { %v1728_v35 = vmax.f32 %v1691_v28, %v1719_v0  ;;  %v11772_v44 = vcombine.low %v11764_v16, %v9051_v14  ;;  %v11775_v0 = vld [vmem:[%s10325_s8 + $0x98] sm:$0xf] }
 0x461   : > { %v1721_v24 = vsel %vm875_vm12, %v1716_v9, %v1720_v18  ;;  %v9048_v9 = vld [vmem:[%s10325_s8 + $0x80] sm:$0xf]  ;;  %v9056_v18 = vld [vmem:[%s10325_s8 + $0x9c] sm:$0x1] }
 0x462   : > { %v1729_v38 = vmax.f32 %v1693_v42, %v1721_v24  ;;  %v1730_v45 = vpack.c.bf16 %v1728_v35, %v1726_v4  ;;  %v11782_v24 = vcombine.low %v11775_v0, %v9056_v18  ;;  %v3622_v4 = vshll.u32 %v11772_v44, 16 }
 0x464   : > { %v1731_v31 = vpack.c.bf16 %v1729_v38, %v1727_v37  ;;  %v9058_v38 = vld [vmem:[%s10325_s8 + $0xa0] sm:$0xf]  ;;  %v3666_v18 = vshll.u32 %v11782_v24, 16 }
 0x466   : > { %8847 = vmatprep.mubr.msk.bf16.mxu0 %vm1016_vm13, %v1731_v31  ;;  %v3637_v31 = vrot.slane %v11772_v44, 1 }
 0x467   : > { %1888 = vmatmul.mubr.bf16.vlgmr.msra.gmra.mxu0 %v1730_v45  ;;  %v9071_v45 = vcombine.low %v9058_v38, %v9059_v52  ;;  %v3668_v38 = vrot.slane %v3666_v18, 1 }
 0x468   : > { %2501 = vmatpush1.bf16.msra.mxu0 %v2483_v41  ;;  %2520 = vmatprep.mubr.bf16.mxu0 %v14161_v63  ;;  %v9053_v41 = vld [vmem:[%s10325_s8 + $0x90] sm:$0xf] }
 0x469   : > { %2502 = vmatprep.subr.bf16.mxu0 %v2459_v36  ;;  %v3268_v8 = vpop.f32.mrf.mxu1 }
 0x46b   : > { %v3270_v21 = vpop.f32.mrf.mxu1 }
 0x46c   : > { %2503 = vmatpush1.bf16.msra.mxu0 %v2458_v34 }
 0x46d   : > { %2690 = vmatprep.subr.bf16.mxu0 %v11542_v5  ;;  %v3272_v53 = vpop.f32.mrf.mxu1 }
 0x46e   : > { %v3287_v22 = vmax.f32 %v3258_v40, %v3272_v53  ;;  %v9049_v40 = vld [vmem:[%s10325_s8 + $0x84] sm:$0xf]  ;;  %v9060_v53 = vld [vmem:[%s10325_s8 + $0xa8] sm:$0xf] }
 0x46f   : > { %8923 = vmatmul.mubr.msk.bf16.vlgmr.msra.gmra.mxu0 %vm378_vm3, %v9887_v10  ;;  %v3274_v36 = vpop.f32.mrf.mxu1  ;;  %v11767_v49 = vcombine.low %v9048_v9, %v9049_v40  ;;  %v9066_v47 = vcombine.low %v9052_v15, %v9049_v40 }
 0x470   : > { %2530 = vmatprep.mubr.bf16.mxu0 %v14161_v63  ;;  %2691 = vmatpush1.bf16.msra.mxu0 %v11550_v58  ;;  %v3288_v33 = vmax.f32 %v3260_v29, %v3274_v36  ;;  %v9057_v29 = vld [vmem:[%s10325_s8 + $0x90] sm:$0xe] }
 0x471   : > { %2692 = vmatprep.subr.bf16.mxu0 %v11556_v2  ;;  %v3615_v12 = vshrl.u32 %v11767_v49, 16  ;;  %v3617_v35 = vshll.u32 %v11767_v49, 16  ;;  %v9070_v37 = vcombine.low %v9057_v29, %v9054_v50 }
 0x473   : > { %v3680_v10 = vrot.slane %v9070_v37, 1 }
 0x474   : > { %2693 = vmatpush1.bf16.msra.mxu0 %v11564_v27 }
 0x475   : > { %2694 = vmatprep.subr.bf16.mxu0 %v11570_v6 }
 0x477   : > { %8924 = vmatmul.mubr.msk.bf16.gmra.mxu0 %vm378_vm3, %v9888_v54  ;;  %v3703_v54 = vshrl.u32 %v9071_v45, 16 }
 0x478   : > { %2695 = vmatpush1.bf16.msra.mxu0 %v11579_v61 }
 0x479   : > { %2696 = vmatprep.subr.bf16.mxu0 %v11585_v48 }
 0x47b   : > { %v3278_v34 = vpop.f32.mrf.mxu1 }
 0x47c   : > { %2697 = vmatpush1.bf16.msra.mxu0 %v11594_v13  ;;  %v3289_v43 = vmax.f32 %v3262_v25, %v3278_v34  ;;  %v3636_v25 = vrot.slane %v9066_v47, 1  ;;  %v3705_v34 = vshll.u32 %v9071_v45, 16 }
 0x47d   : > { %2698 = vmatprep.subr.bf16.mxu0 %v11601_v23  ;;  %v3280_v26 = vpop.f32.mrf.mxu1 }
 0x47e   : > { %v11743_v59 = vpack.c.bf16 %v3289_v43, %v3287_v22  ;;  %v3290_v17 = vmax.f32 %v3264_v51, %v3280_v26  ;;  %v3619_v51 = vrot.slane %v3617_v35, 1  ;;  %v3624_v22 = vrot.slane %v3622_v4, 1  ;;  %v9075_v4 = vld [vmem:[%s10325_s8 + $0xb0] sm:$0xf] }
 0x47f   : > { %v3282_v46 = vpop.f32.mrf.mxu1  ;;  %v3638_v36 = vsel %vm282_vm0, %v3636_v25, %v3637_v31  ;;  %v9076_v25 = vld [vmem:[%s10325_s8 + $0xb4] sm:$0xf] }
 0x480   : > { %2699 = vmatpush1.bf16.msra.mxu0 %v11611_v30  ;;  %v11747_v62 = vpack.c.bf16 %v3290_v17, %v3288_v33  ;;  %v11749_v28 = vmax.f32 %v3268_v8, %v3282_v46  ;;  %v11790_v8 = vrot.slane %v11782_v24, 1  ;;  %v9061_v33 = vld [vmem:[%s10325_s8 + $0xac] sm:$0x1]  ;;  %v3620_v43 = vor.u32 %v3619_v51, %v3615_v12  ;;  %3639 = vrot.lane.b32.xlu1 %v3638_v36, %s10260_s20  ;;  %v9062_v17 = vld [vmem:[%s10325_s8 + $0xa0] sm:$0xe] }
 0x481   : > { %2700 = vmatprep.subr.bf16.mxu0 %v11618_v11  ;;  %v3284_v42 = vpop.f32.mrf.mxu1  ;;  %v9073_v26 = vcombine.low %v9060_v53, %v9061_v33  ;;  %v3707_v46 = vrot.slane %v3705_v34, 1  ;;  %v9080_v51 = vcombine.low %v9075_v4, %v9076_v25  ;;  %v9078_v36 = vld [vmem:[%s10325_s8 + $0xbc] sm:$0x1]  ;;  %v3626_v34 = vshrl.u32 %v11772_v44, 16  ;;  %v1901_v4 = vld [vmem:[%s14159_s4 + $0x8] sm:$0x3f] }
 0x482   : > { %v3292_v55 = vmax.f32 %v3270_v21, %v3284_v42  ;;  %v11792_v21 = vcombine.low %v9053_v41, %v9054_v50  ;;  %v3682_v40 = vsel %vm282_vm0, %v3680_v10, %v11790_v8  ;;  %v9077_v10 = vld [vmem:[%s10325_s8 + $0xb8] sm:$0xf]  ;;  %v11843_v44 = vcombine.low %v11775_v0, %v11775_v0 }
 0x483   : > { %v3710_v9 = vshll.u32 %v9073_v26, 16  ;;  %v3708_v14 = vor.u32 %v3707_v46, %v3703_v54  ;;  %v3725_v12 = vrot.slane %v9073_v26, 1  ;;  %v9082_v33 = vcombine.low %v9077_v10, %v9078_v36 }
 0x484   : > { %2701 = vmatpush1.bf16.msra.mxu0 %v11630_v39  ;;  %v3296_v1 = vpack.c.bf16 %v3292_v55, %v3292_v55  ;;  %v3661_v42 = vshll.u32 %v11792_v21, 16  ;;  %v9074_v55 = vcombine.low %v9062_v17, %v9059_v52  ;;  %3695 = vrot.lane.b32.xlu1 %v9071_v45, %s10257_s13  ;;  %v3659_v50 = vshrl.u32 %v11792_v21, 16 }
 0x485   : > { %2702 = vmatprep.subr.bf16.mxu0 %v11637_v57  ;;  %v3712_v15 = vrot.slane %v3710_v9, 1  ;;  %v3809_v54 = vshll.u32 %v9080_v51, 16  ;;  %v3814_v46 = vshll.u32 %v9082_v33, 16  ;;  %v3829_v18 = vrot.slane %v9082_v33, 1 }
 0x486   : > { %v3663_v47 = vrot.slane %v3661_v42, 1  ;;  %v3724_v29 = vrot.slane %v9074_v55, 1  ;;  %v9079_v42 = vld [vmem:[%s10325_s8 + $0xb0] sm:$0xe]  ;;  %v3628_v55 = vor.u32 %v3626_v34, %v3624_v22 }
 0x487   : > { %v3713_v35 = vsel %vm259_vm1, %v3708_v14, %v3712_v15  ;;  %v3811_v17 = vrot.slane %v3809_v54, 1  ;;  %v3816_v9 = vrot.slane %v3814_v46, 1 }
 0x488   : > { %2703 = vmatpush1.bf16.msra.mxu0 %v11649_v32  ;;  %3717 = vrot.lane.b32.xlu1 %v3713_v35, %s10264_s22  ;;  %v3664_v37 = vor.u32 %v3663_v47, %v3659_v50  ;;  %v3726_v52 = vsel %vm282_vm0, %v3724_v29, %v3725_v12  ;;  %v9072_v50 = vcombine.low %v9060_v53, %v9060_v53 }
 0x489   : > { %2704 = vmatprep.subr.bf16.mxu0 %v11656_v3 }
 0x48a   : > { %v3669_v41 = vsel %vm259_vm1, %v3664_v37, %v3668_v38 }
 0x48c   : > { %2705 = vmatpush1.bf16.msra.mxu0 %v11667_v56  ;;  %3727 = vrot.lane.b32.xlu1 %v3726_v52, %s10261_s27 }
 0x48d   : > { %2718 = vmatprep.subr.bf16.mxu0 %v11675_v60 }
 0x490   : > { %2719 = vmatpush2.bf16.msra.mxu0 %v11684_v19  ;;  %3775 = vrot.lane.b32.xlu1 %v3682_v40, %s10260_s20 }
 0x491   : > { %2720 = vmatprep.subr.bf16.mxu0 %v11690_v7 }
 0x494   : > { %2721 = vmatpush2.bf16.msra.mxu0 %v11699_v20  ;;  %3799 = vrot.lane.b32.xlu1 %v9080_v51, %s10257_s13 }
 0x495   : > { %9020 = vmatprep.subr.msk.bf16.mxu0 %vm527_vm2, %v3296_v1  ;;  %v3625_v1 = vsel %vm259_vm1, %v3620_v43, %v3624_v22  ;;  %v3807_v43 = vshrl.u32 %v9080_v51, 16  ;;  %v3714_v22 = vshrl.u32 %v9073_v26, 16  ;;  %v9081_v26 = vcombine.low %v9077_v10, %v9077_v10 }
 0x496   : > { %3629 = vrot.lane.b32.xlu0 %v3625_v1, %s10262_s30 }
 0x497   : > { %v3812_v1 = vor.u32 %v3811_v17, %v3807_v43  ;;  %v3716_v29 = vor.u32 %v3714_v22, %v3712_v15  ;;  %v3818_v15 = vshrl.u32 %v9082_v33, 16 }
 0x498   : > { %3779 = vrot.lane.b32.xlu1 %v9071_v45, %s10258_s16 }
 0x499   : > { %v3817_v14 = vsel %vm259_vm1, %v3812_v1, %v3816_v9  ;;  %v3820_v0 = vor.u32 %v3818_v15, %v3816_v9 }
 0x49a   : > { %3683 = vrot.lane.b32.xlu0 %v3682_v40, %s10259_s17  ;;  %v9083_v40 = vcombine.low %v9079_v42, %v9076_v25 }
 0x49c   : > { %3641 = vrot.lane.b32.xlu1 %v3637_v31, %s10260_s20  ;;  %v3828_v47 = vrot.slane %v9083_v40, 1  ;;  %v3670_v31 = vshrl.u32 %v11782_v24, 16 }
 0x49e   : > { %3651 = vrot.lane.b32.xlu0 %v11792_v21, %s10258_s16  ;;  %v3830_v45 = vsel %vm282_vm0, %v3828_v47, %v3829_v18  ;;  %v3672_v53 = vor.u32 %v3670_v31, %v3668_v38 }
 0x4a0   : > { %3697 = vrot.lane.b32.xlu1 %v9072_v50, %s10257_s13 }
 0x4a2   : > { %3673 = vrot.lane.b32.xlu0 %v3669_v41, %s10263_s11 }
 0x4a4   : > { %3831 = vrot.lane.b32.xlu1 %v3830_v45, %s10261_s27 }
 0x4a6   : > { %3771 = vrot.lane.b32.xlu0 %v3669_v41, %s10262_s30 }
 0x4a8   : > { %3719 = vrot.lane.b32.xlu1 %v3716_v29, %s10264_s22 }
 0x4aa   : > { %3787 = vrot.lane.b32.xlu0 %v3726_v52, %s10259_s17 }
 0x4ac   : > { %3729 = vrot.lane.b32.xlu1 %v3725_v12, %s10261_s27 }
 0x4ae   : > { %3631 = vrot.lane.b32.xlu0 %v3628_v55, %s10262_s30 }
 0x4b0   : > { %3777 = vrot.lane.b32.xlu1 %v11790_v8, %s10260_s20 }
 0x4b2   : > { %3821 = vrot.lane.b32.xlu0 %v3817_v14, %s10264_s22 }
 0x4b4   : > { %3801 = vrot.lane.b32.xlu1 %v9081_v26, %s10257_s13 }
 0x4b6   : > { %3685 = vrot.lane.b32.xlu0 %v11790_v8, %s10259_s17 }
 0x4b8   : > { %3823 = vrot.lane.b32.xlu1 %v3820_v0, %s10264_s22  ;;  %v3295_v0 = vpack.c.bf16 %v11749_v28, %v11749_v28 }
 0x4ba   : > { %3783 = vrot.lane.b32.xlu0 %v3713_v35, %s10263_s11  ;;  %v11863_v35 = vld [vmem:[%s14159_s4] sm:$0xff] }
 0x4bc   : > { %3833 = vrot.lane.b32.xlu1 %v3829_v18, %s10261_s27 }
 0x4be   : > { %3653 = vrot.lane.b32.xlu0 %v11843_v44, %s10258_s16 }
 0x4c2   : > { %3675 = vrot.lane.b32.xlu0 %v3672_v53, %s10263_s11 }
 0x4c6   : > { %3773 = vrot.lane.b32.xlu0 %v3672_v53, %s10262_s30 }
 0x4ca   : > { %3789 = vrot.lane.b32.xlu0 %v3725_v12, %s10259_s17 }
 0x4ce   : > { %3781 = vrot.lane.b32.xlu0 %v9072_v50, %s10258_s16 }
 0x4d2   : > { %3785 = vrot.lane.b32.xlu0 %v3716_v29, %s10263_s11 }
 0x527   : > { %v1889_v24 = vpop.f32.mrf.mxu0 }
 0x529   : > { %v1891_v8 = vpop.f32.mrf.mxu0 }
 0x52a   : > { %v1898_v37 = vmax.f32 %v1889_v24, %v1891_v8 }
 0x52b   : > { %v1893_v38 = vpop.f32.mrf.mxu0 }
 0x52c   : > { %v1902_v12 = vadd.f32 %v11863_v35, %v1898_v37 }
 0x52d   : > { %v1895_v52 = vpop.f32.mrf.mxu0 }
 0x52e   : > { %v1904_v25 = vmax.f32 %v1902_v12, 0.0  ;;  %v1899_v41 = vmax.f32 %v1893_v38, %v1895_v52  ;;  %v3318_v38 = vsel %vm527_vm2, %v3295_v0, 0  ;;  %v9889_v12 = vld [vmem:[%s14157_s2] sm:$0xff]   ;;  %v9152_v52 = vld [vmem:[%s10325_s8 + $0xb4] sm:$0xf] }
 0x52f   : > { %v2522_v51 = vpop.f32.mrf.mxu0 }
 0x530   : > { %v9640_v10 = vpack.c.bf16 %v1904_v25, %v1904_v25  ;;  %v1903_v36 = vadd.f32 %v1901_v4, %v1899_v41  ;;  %v11941_v4 = vld [vmem:[%s10325_s8 + $0xb8] sm:$0xf]  ;;  %v9154_v25 = vld [vmem:[%s10325_s8 + $0xbc] sm:$0x1]  ;;  %v9155_v41 = vld [vmem:[%s10325_s8 + $0xb0] sm:$0xe] }
 0x531   : > { %v2524_v33 = vpop.f32.mrf.mxu0 }
 0x532   : > { %8850 = vst [vmem:[%s11175_s15 + $0x10] sm:$0xf] %v9640_v10  ;;  %v1905_v54 = vmax.f32 %v1903_v36, 0.0  ;;  %v9158_v10 = vld [vmem:[%s10325_s8 + $0xc8] sm:$0xf]  ;;  %v9168_v36 = vcombine.low %v9155_v41, %v9152_v52 }
 0x533   : > { %v2526_v34 = vpop.f32.mrf.mxu0 }
 0x534   : > { %v9641_v43 = vpack.c.bf16 %v1905_v54, %v1905_v54  ;;  %v2547_v50 = vrot.slane %v2526_v34, 6 }
 0x535   : > { %v2528_v17 = vpop.f32.mrf.mxu0 }
 0x536   : > { %8851 = vst [vmem:[%s11175_s15 + $0x14] sm:$0x7] %v9641_v43  ;;  %v2550_v40 = vrot.slane %v2528_v17, 6 }
 0x537   : > { %v2532_v46 = vpop.f32.mrf.mxu0 }
 0x538   : > { %v2548_v1 = vrot.slane %v2532_v46, 6  ;;  %v4515_v46 = vrot.slane %v9168_v36, 1 }
 0x539   : > { %v2534_v42 = vpop.f32.mrf.mxu0 }
 0x53a   : > { %v2551_v55 = vrot.slane %v2534_v42, 6  ;;  %v2549_v29 = vsel %vm875_vm12, %v2547_v50, %v2548_v1  ;;  %v9160_v50 = vld [vmem:[%s10325_s8 + $0xc0] sm:$0xe] }
 0x53b   : > { %v2536_v9 = vpop.f32.mrf.mxu0  ;;  %v2561_v24 = vmax.f32 %v2522_v51, %v2549_v29  ;;  %v11948_v51 = vcombine.low %v11941_v4, %v9154_v25 }
 0x53c   : > { %v2553_v14 = vrot.slane %v2536_v9, 6  ;;  %v2552_v18 = vsel %vm875_vm12, %v2550_v40, %v2551_v55 }
 0x53d   : > { %v2538_v47 = vpop.f32.mrf.mxu0  ;;  %v2562_v26 = vmax.f32 %v2524_v33, %v2552_v18  ;;  %v9159_v33 = vld [vmem:[%s10325_s8 + $0xcc] sm:$0x1] }
 0x53e   : > { %v2554_v22 = vsel %vm875_vm12, %v2548_v1, %v2553_v14  ;;  %v2555_v45 = vrot.slane %v2538_v47, 6  ;;  %v11955_v43 = vcombine.low %v9158_v10, %v9159_v33 }
 0x53f   : > { %v2563_v31 = vmax.f32 %v2526_v34, %v2554_v22  ;;  %v11953_v34 = vrot.slane %v11948_v51, 1 }
 0x540   : > { %v2556_v53 = vsel %vm875_vm12, %v2551_v55, %v2555_v45  ;;  %v4545_v9 = vshll.u32 %v11955_v43, 16  ;;  %v11966_v47 = vrot.slane %v11955_v43, 1 }
 0x541   : > { %v2564_v15 = vmax.f32 %v2528_v17, %v2556_v53  ;;  %v2565_v37 = vpack.c.bf16 %v2563_v31, %v2561_v24  ;;  %v9151_v17 = vld [vmem:[%s10325_s8 + $0xb0] sm:$0xf]  ;;  %v4517_v40 = vsel %vm282_vm0, %v4515_v46, %v11953_v34  ;;  %v4501_v31 = vshll.u32 %v11948_v51, 16 }
 0x542   : > { %v11958_v1 = vcombine.low %v9151_v17, %v9152_v52  ;;  %v4547_v22 = vrot.slane %v4545_v9, 1  ;;  %v4549_v17 = vshrl.u32 %v11955_v43, 16  ;;  %v4505_v43 = vshrl.u32 %v11948_v51, 16 }
 0x543   : > { %v2566_v8 = vpack.c.bf16 %v2564_v15, %v2562_v26  ;;  %v4503_v0 = vrot.slane %v4501_v31, 1 }
 0x544   : > { %14178 = vst [vmem:[#allocation4_spill] sm:$0xff] %v11958_v1  ;;  %v4494_v18 = vshrl.u32 %v11958_v1, 16  ;;  %v4496_v29 = vshll.u32 %v11958_v1, 16 }
 0x545   : > { %8945 = vmatprep.mubr.msk.bf16.mxu0 %vm1016_vm13, %v2566_v8 }
 0x546   : > { %2723 = vmatmul.mubr.bf16.vlgmr.msra.gmra.mxu0 %v2565_v37  ;;  %v4498_v15 = vrot.slane %v4496_v29, 1 }
 0x547   : > { %3336 = vmatpush1.bf16.msra.mxu0 %v3318_v38  ;;  %3355 = vmatprep.mubr.bf16.mxu0 %v14161_v63  ;;  %v9173_v38 = vld [vmem:[%s10325_s8 + $0xd0] sm:$0xf] }
 0x548   : > { %3337 = vmatprep.subr.bf16.mxu0 %v11747_v62  ;;  %v9890_v62 = vld [vmem:[%s14157_s2 + $0x8] sm:$0x3f]   ;;  %v4499_v8 = vor.u32 %v4498_v15, %v4494_v18 }
 0x54a   : > { %v4504_v37 = vsel %vm259_vm1, %v4499_v8, %v4503_v0 }
 0x54b   : > { %3338 = vmatpush1.bf16.msra.mxu0 %v11743_v59 }
 0x54c   : > { %3525 = vmatprep.subr.bf16.mxu0 %v11542_v5  ;;  %v11914_v5 = vld [vmem:[%s14156_s1 + $0x74] ss:$8 sps:$4 sm:$0xff]  }
 0x54e   : > { %9021 = vmatmul.mubr.msk.bf16.vlgmr.msra.gmra.mxu0 %vm378_vm3, %v9889_v12  ;;  %v9174_v12 = vld [vmem:[%s10325_s8 + $0xd4] sm:$0xf] }
 0x54f   : > { %3365 = vmatprep.mubr.bf16.mxu0 %v14161_v63  ;;  %3526 = vmatpush1.bf16.msra.mxu0 %v11550_v58  ;;  %v9146_v58 = vld [vmem:[%s10325_s8 + $0xa0] sm:$0xf]  ;;  %v12251_v63 = vld [vmem:[%s14156_s1 + $0x94] ss:$8 sps:$4 sm:$0xff]  }
 0x550   : > { %3527 = vmatprep.subr.bf16.mxu0 %v11556_v2  ;;  %v9147_v2 = vld [vmem:[%s10325_s8 + $0xa4] sm:$0xf] }
 0x553   : > { %3528 = vmatpush1.bf16.msra.mxu0 %v11564_v27  ;;  %v11919_v27 = vcombine.low %v9146_v58, %v9147_v2  ;;  %v11985_v58 = vpop.permute.xlu0 %3629 }
 0x554   : > { %3529 = vmatprep.subr.bf16.mxu0 %v11570_v6  ;;  %v11922_v6 = vld [vmem:[%s10325_s8 + $0xa8] sm:$0xf] }
 0x555   : > { %14176 = vst [vmem:[#allocation2_spill] sm:$0xff] %v11919_v27  ;;  %14177 = vst [vmem:[#allocation3_spill] sm:$0xff] %v11922_v6 }
 0x556   : > { %9022 = vmatmul.mubr.msk.bf16.gmra.mxu0 %vm378_vm3, %v9890_v62  ;;  %v9178_v62 = vcombine.low %v9173_v38, %v9174_v12 }
 0x557   : > { %3530 = vmatpush1.bf16.msra.mxu0 %v11579_v61  ;;  %v9149_v61 = vld [vmem:[%s10325_s8 + $0xac] sm:$0x1] }
 0x558   : > { %3531 = vmatprep.subr.bf16.mxu0 %v11585_v48  ;;  %v11926_v48 = vcombine.low %v11922_v6, %v9149_v61 }
 0x55a   : > { %v4461_v61 = vshrl.u32 %v11926_v48, 16 }
 0x55b   : > { %3532 = vmatpush1.bf16.msra.mxu0 %v11594_v13  ;;  %v4452_v13 = vshll.u32 %v11919_v27, 16 }
 0x55c   : > { %3533 = vmatprep.subr.bf16.mxu0 %v11601_v23  ;;  %v9150_v23 = vld [vmem:[%s10325_s8 + $0xa0] sm:$0xe] }
 0x55f   : > { %3534 = vmatpush1.bf16.msra.mxu0 %v11611_v30  ;;  %v9164_v30 = vcombine.low %v9150_v23, %v9147_v2  ;;  %v11987_v2 = vpop.permute.xlu1 %3639  ;;  %v9176_v23 = vld [vmem:[%s10325_s8 + $0xdc] sm:$0x1] }
 0x560   : > { %3535 = vmatprep.subr.bf16.mxu0 %v11618_v11  ;;  %v4450_v11 = vshrl.u32 %v11919_v27, 16  ;;  %v12272_v27 = vld [vmem:[%s14156_s1 + $0x90] ss:$8 sps:$4 sm:$0xff]  }
 0x563   : > { %3536 = vmatpush1.bf16.msra.mxu0 %v11630_v39  ;;  %v4454_v39 = vrot.slane %v4452_v13, 1  ;;  %v9175_v13 = vld [vmem:[%s10325_s8 + $0xd8] sm:$0xf]  ;;  %v12001_v52 = vpop.permute.xlu1 %3695 }
 0x564   : > { %3537 = vmatprep.subr.bf16.mxu0 %v11637_v57  ;;  %v4457_v57 = vshll.u32 %v11926_v48, 16  ;;  %v9179_v51 = vcombine.low %v9175_v13, %v9175_v13 }
 0x567   : > { %3538 = vmatpush1.bf16.msra.mxu0 %v11649_v32  ;;  %v4471_v32 = vrot.slane %v9164_v30, 1  ;;  %v11993_v30 = vcombine.low %v9175_v13, %v9176_v23 }
 0x568   : > { %3539 = vmatprep.subr.bf16.mxu0 %v11656_v3  ;;  %v4472_v3 = vrot.slane %v11926_v48, 1 }
 0x56b   : > { %3540 = vmatpush1.bf16.msra.mxu0 %v11667_v56  ;;  %v4455_v56 = vor.u32 %v4454_v39, %v4450_v11  ;;  %v4642_v11 = vshrl.u32 %v9178_v62, 16  ;;  %v4644_v39 = vshll.u32 %v9178_v62, 16 }
 0x56c   : > { %3553 = vmatprep.subr.bf16.mxu0 %v11675_v60  ;;  %v4459_v60 = vrot.slane %v4457_v57, 1 }
 0x56e   : > { %v4460_v59 = vsel %vm259_vm1, %v4455_v56, %v4459_v60  ;;  %v4463_v57 = vor.u32 %v4461_v61, %v4459_v60  ;;  %v4649_v56 = vshll.u32 %v11993_v30, 16  ;;  %v9170_v60 = vcombine.low %v9158_v10, %v9158_v10 }
 0x56f   : > { %3554 = vmatpush2.bf16.msra.mxu0 %v11684_v19  ;;  %v9156_v19 = vld [vmem:[%s10325_s8 + $0xc0] sm:$0xf]  ;;  %4464 = vrot.lane.b32.xlu0 %v4460_v59, %s10262_s30  ;;  %v11999_v59 = vpop.permute.xlu0 %3683 }
 0x570   : > { %3555 = vmatprep.subr.bf16.mxu0 %v11690_v7  ;;  %v9157_v7 = vld [vmem:[%s10325_s8 + $0xc4] sm:$0xf] }
 0x571   : > { %v9169_v28 = vcombine.low %v9156_v19, %v9157_v7  ;;  %v9172_v45 = vcombine.low %v9160_v50, %v9157_v7  ;;  %v9177_v19 = vld [vmem:[%s10325_s8 + $0xd0] sm:$0xe] }
 0x572   : > { %v9181_v25 = vcombine.low %v9177_v19, %v9174_v12 }
 0x573   : > { %3556 = vmatpush2.bf16.msra.mxu0 %v11699_v20  ;;  %v4473_v20 = vsel %vm282_vm0, %v4471_v32, %v4472_v3  ;;  %v4540_v54 = vshll.u32 %v9169_v28, 16  ;;  %v4538_v42 = vshrl.u32 %v9169_v28, 16  ;;  %4518 = vrot.lane.b32.xlu0 %v4517_v40, %s10259_s17  ;;  %v4559_v26 = vrot.slane %v9172_v45, 1  ;;  %v12010_v33 = vpop.permute.xlu0 %3651 }
 0x574   : > { %4059 = vmatprep.subr.bf16.mxu0 %v11914_v5  ;;  %4474 = vrot.lane.b32.xlu1 %v4473_v20, %s10260_s20  ;;  %v4646_v32 = vrot.slane %v4644_v39, 1  ;;  %v4651_v20 = vrot.slane %v4649_v56, 1  ;;  %v4663_v36 = vrot.slane %v9181_v25, 1 }
 0x575   : > { %v4542_v55 = vrot.slane %v4540_v54, 1  ;;  %v4561_v24 = vsel %vm282_vm0, %v4559_v26, %v11966_v47  ;;  %v12012_v54 = vpop.permute.xlu1 %3717  ;;  %v2736_v26 = vld [vmem:[%s14159_s4 + $0x8] sm:$0x3f] }
 0x576   : > { %v4647_v7 = vor.u32 %v4646_v32, %v4642_v11 }
 0x577   : > { %v4543_v14 = vor.u32 %v4542_v55, %v4538_v42  ;;  %4486 = vrot.lane.b32.xlu0 %v11958_v1, %s10258_s16  ;;  %v12020_v10 = vpop.permute.xlu0 %3673  ;;  %v12027_v42 = vcombine.low %v11941_v4, %v11941_v4  ;;  %v4507_v55 = vor.u32 %v4505_v43, %v4503_v0 }
 0x578   : > { %4530 = vrot.lane.b32.xlu1 %v9169_v28, %s10257_s13  ;;  %v4652_v41 = vsel %vm259_vm1, %v4647_v7, %v4651_v20 }
 0x579   : > { %v4548_v53 = vsel %vm259_vm1, %v4543_v14, %v4547_v22  ;;  %v12022_v46 = vpop.permute.xlu1 %3727  ;;  %14179 = vst [vmem:[#allocation5_spill] sm:$0xff] %v12027_v42 }
 0x57b   : > { %4508 = vrot.lane.b32.xlu0 %v4504_v37, %s10263_s11  ;;  %v12033_v9 = vpop.permute.xlu0 %3771 }
 0x57c   : > { %4552 = vrot.lane.b32.xlu1 %v4548_v53, %s10264_s22  ;;  %v3836_v1 = vsel %vm378_vm3, %v11792_v21, %v12033_v9 }
 0x57f   : > { %4606 = vrot.lane.b32.xlu0 %v4504_v37, %s10262_s30  ;;  %v12044_v29 = vpop.permute.xlu0 %3787 }
 0x580   : > { %4562 = vrot.lane.b32.xlu1 %v4561_v24, %s10261_s27 }
 0x583   : > { %4622 = vrot.lane.b32.xlu0 %v4561_v24, %s10259_s17  ;;  %v12056_v12 = vpop.permute.xlu0 %3631 }
 0x584   : > { %4610 = vrot.lane.b32.xlu1 %v4517_v40, %s10260_s20  ;;  %v12035_v40 = vpop.permute.xlu1 %3775 }
 0x585   : > { %v3841_v21 = vsel %vm384_vm4, %v3836_v1, %v12035_v40  ;;  %v12301_v1 = vld [vmem:[%s14156_s1 + $0x80] ss:$8 sps:$4 sm:$0xff]  }
 0x587   : > { %4466 = vrot.lane.b32.xlu0 %v4463_v57, %s10262_s30  ;;  %v12064_v11 = vpop.permute.xlu0 %3821 }
 0x588   : > { %4634 = vrot.lane.b32.xlu1 %v9178_v62, %s10257_s13  ;;  %v12046_v31 = vpop.permute.xlu1 %3799 }
 0x589   : > { %v3857_v6 = vsel %vm405_vm6, %v12044_v29, %v12046_v31 }
 0x58b   : > { %4656 = vrot.lane.b32.xlu0 %v4652_v41, %s10264_s22  ;;  %v3754_v41 = vsel %vm405_vm6, %v11999_v59, %v12001_v52 }
 0x58c   : > { %4614 = vrot.lane.b32.xlu1 %v9169_v28, %s10258_s16  ;;  %v4664_v28 = vrot.slane %v11993_v30, 1  ;;  %v12058_v62 = vpop.permute.xlu1 %3779 }
 0x58d   : > { %v3845_v40 = vsel %vm389_vm5, %v3841_v21, %v12058_v62 }
 0x58e   : > { %v4665_v48 = vsel %vm282_vm0, %v4663_v36, %v4664_v28 }
 0x58f   : > { %4520 = vrot.lane.b32.xlu0 %v11953_v34, %s10259_s17 }
 0x590   : > { %4476 = vrot.lane.b32.xlu1 %v4472_v3, %s10260_s20  ;;  %v4551_v3 = vor.u32 %v4549_v17, %v4547_v22  ;;  %v4653_v22 = vshrl.u32 %v11993_v30, 16  ;;  %v12074_v17 = vpop.permute.xlu0 %3685 }
 0x592   : > { %v4655_v24 = vor.u32 %v4653_v22, %v4651_v20 }
 0x593   : > { %4618 = vrot.lane.b32.xlu0 %v4548_v53, %s10263_s11 }
 0x594   : > { %4532 = vrot.lane.b32.xlu1 %v9170_v60, %s10257_s13 }
 0x597   : > { %4488 = vrot.lane.b32.xlu0 %v12027_v42, %s10258_s16 }
 0x598   : > { %4666 = vrot.lane.b32.xlu1 %v4665_v48, %s10261_s27 }
 0x59b   : > { %4510 = vrot.lane.b32.xlu0 %v4507_v55, %s10263_s11 }
 0x59c   : > { %4554 = vrot.lane.b32.xlu1 %v4551_v3, %s10264_s22 }
 0x59f   : > { %4608 = vrot.lane.b32.xlu0 %v4507_v55, %s10262_s30 }
 0x5a0   : > { %4564 = vrot.lane.b32.xlu1 %v11966_v47, %s10261_s27 }
 0x5a3   : > { %4624 = vrot.lane.b32.xlu0 %v11966_v47, %s10259_s17  ;;  %v12066_v47 = vpop.permute.xlu1 %3641 }
 0x5a4   : > { %4612 = vrot.lane.b32.xlu1 %v11953_v34, %s10260_s20 }
 0x5a7   : > { %4616 = vrot.lane.b32.xlu0 %v9170_v60, %s10258_s16  ;;  %v12076_v48 = vpop.permute.xlu1 %3697 }
 0x5a8   : > { %4636 = vrot.lane.b32.xlu1 %v9179_v51, %s10257_s13  ;;  %v12085_v51 = vld [vmem:[%s14156_s1 + $0x70] ss:$8 sps:$4 sm:$0xff]   ;;  %v3756_v9 = vsel %vm405_vm6, %v12074_v17, %v12076_v48 }
 0x5ab   : > { %4620 = vrot.lane.b32.xlu0 %v4551_v3, %s10263_s11 }
 0x5ac   : > { %4658 = vrot.lane.b32.xlu1 %v4655_v24, %s10264_s22  ;;  %v12120_v24 = vld [vmem:[%s14156_s1 + $0x50] ss:$8 sps:$4 sm:$0xff]  }
 0x5b0   : > { %4668 = vrot.lane.b32.xlu1 %v4664_v28, %s10261_s27 }
 0x606   : > { %v2724_v14 = vpop.f32.mrf.mxu0 }
 0x608   : > { %v2726_v4 = vpop.f32.mrf.mxu0 }
 0x609   : > { %v2733_v50 = vmax.f32 %v2724_v14, %v2726_v4  ;;  %v3758_v14 = vsel %vm410_vm8, %v3754_v41, %v12012_v54  ;;  %v12096_v54 = vld [vmem:[%s14156_s1 + $0x64] ss:$8 sps:$4 sm:$0xff]   ;;  %v12193_v41 = vld [vmem:[%s14156_s1] ss:$8 sps:$4 sm:$0xff]  }
 0x60a   : > { %v2728_v18 = vpop.f32.mrf.mxu0  ;;  %v3762_v22 = vsel %vm415_vm9, %v3758_v14, %v12022_v46  ;;  %v12110_v46 = vld [vmem:[%s14156_s1 + $0x54] ss:$8 sps:$4 sm:$0xff]   ;;  %v12215_v14 = vld [vmem:[%s14156_s1 + $0xc0] ss:$8 sps:$4 sm:$0xff]  }
 0x60b   : > { %v2737_v45 = vadd.f32 %v2733_v50, %v11863_v35 }
 0x60c   : > { %v2730_v53 = vpop.f32.mrf.mxu0 }
 0x60d   : > { %v2739_v15 = vmax.f32 %v2737_v45, 0.0  ;;  %v2734_v0 = vmax.f32 %v2728_v18, %v2730_v53  ;;  %v12089_v53 = vpop.permute.xlu0 %3783 }
 0x60e   : > { %v3357_v34 = vpop.f32.mrf.mxu0 }
 0x60f   : > { %v9642_v8 = vpack.c.bf16 %v2739_v15, %v2739_v15  ;;  %v2738_v35 = vadd.f32 %v2736_v26, %v2734_v0  ;;  %v12091_v26 = vpop.permute.xlu1 %3831  ;;  %v12103_v15 = vld [vmem:[%s14156_s1 + $0x60] ss:$8 sps:$4 sm:$0xff]  }
 0x610   : > { %v3359_v37 = vpop.f32.mrf.mxu0 }
 0x611   : > { %8948 = vst [vmem:[%s11175_s15 + $0x18] sm:$0xf] %v9642_v8  ;;  %v2740_v38 = vmax.f32 %v2738_v35, 0.0  ;;  %v12112_v0 = vpop.permute.xlu0 %3653  ;;  %v12126_v8 = vld [vmem:[%s14156_s1 + $0x44] ss:$8 sps:$4 sm:$0xff]  }
 0x612   : > { %v3361_v61 = vpop.f32.mrf.mxu0  ;;  %v12132_v35 = vld [vmem:[%s14156_s1 + $0x40] ss:$8 sps:$4 sm:$0xff]  }
 0x613   : > { %v9643_v13 = vpack.c.bf16 %v2740_v38, %v2740_v38  ;;  %v3382_v20 = vrot.slane %v3361_v61, 6 }
 0x614   : > { %v3363_v23 = vpop.f32.mrf.mxu0 }
 0x615   : > { %8949 = vst [vmem:[%s11175_s15 + $0x1c] sm:$0x7] %v9643_v13  ;;  %v3385_v19 = vrot.slane %v3363_v23, 6  ;;  %v12148_v13 = vld [vmem:[%s14156_s1 + $0x30] ss:$8 sps:$4 sm:$0xff]  }
 0x616   : > { %v3367_v30 = vpop.f32.mrf.mxu0 }
 0x617   : > { %v3383_v32 = vrot.slane %v3367_v30, 6 }
 0x618   : > { %v3369_v39 = vpop.f32.mrf.mxu0 }
 0x619   : > { %v3386_v57 = vrot.slane %v3369_v39, 6  ;;  %v3384_v3 = vsel %vm875_vm12, %v3382_v20, %v3383_v32  ;;  %v12184_v20 = vld [vmem:[%s14156_s1 + $0x4] ss:$8 sps:$4 sm:$0xff]  }
 0x61a   : > { %v3371_v56 = vpop.f32.mrf.mxu0  ;;  %v3396_v52 = vmax.f32 %v3357_v34, %v3384_v3  ;;  %v12114_v34 = vpop.permute.xlu1 %3719 }
 0x61b   : > { %v3388_v7 = vrot.slane %v3371_v56, 6  ;;  %v3387_v60 = vsel %vm875_vm12, %v3385_v19, %v3386_v57  ;;  %v12176_v56 = vld [vmem:[%s14156_s1 + $0x10] ss:$8 sps:$4 sm:$0xff]  }
 0x61c   : > { %v3373_v25 = vpop.f32.mrf.mxu0  ;;  %v3397_v4 = vmax.f32 %v3359_v37, %v3387_v60  ;;  %v12134_v37 = vpop.permute.xlu0 %3675 }
 0x61d   : > { %v3389_v36 = vsel %vm875_vm12, %v3383_v32, %v3388_v7  ;;  %v3390_v28 = vrot.slane %v3373_v25, 6  ;;  %v12170_v32 = vld [vmem:[%s14156_s1 + $0x14] ss:$8 sps:$4 sm:$0xff]  }
 0x61e   : > { %v3398_v43 = vmax.f32 %v3361_v61, %v3389_v36  ;;  %v12136_v38 = vpop.permute.xlu1 %3729  ;;  %v12142_v61 = vld [vmem:[%s14156_s1 + $0x34] ss:$8 sps:$4 sm:$0xff]  }
 0x61f   : > { %v3391_v55 = vsel %vm875_vm12, %v3386_v57, %v3390_v28  ;;  %v12164_v57 = vld [vmem:[%s14156_s1 + $0x20] ss:$8 sps:$4 sm:$0xff]   ;;  %v3910_v25 = vld [vmem:[%s14156_s1 + $0xd0] sm:$0xff] }
 0x620   : > { %v3399_v50 = vmax.f32 %v3363_v23, %v3391_v55  ;;  %v3400_v45 = vpack.c.bf16 %v3398_v43, %v3396_v52  ;;  %v12154_v23 = vld [vmem:[%s14156_s1 + $0x24] ss:$8 sps:$4 sm:$0xff]   ;;  %v12156_v30 = vpop.permute.xlu0 %3773  ;;  %v12196_v60 = vcombine.high %v3910_v25, %v3910_v25  ;;  %v9110_v36 = vcombine.low %v3910_v25, %v3910_v25  ;;  %v12223_v52 = vld [vmem:[%s14156_s1 + $0xb4] ss:$8 sps:$4 sm:$0xff]  }
 0x621   : > { %v12209_v55 = vld [vmem:[%s14156_s1 + $0xc4] ss:$8 sps:$4 sm:$0xff]   ;;  %v3839_v62 = vsel %vm378_vm3, %v11843_v44, %v12156_v30 }
 0x622   : > { %v3401_v18 = vpack.c.bf16 %v3399_v50, %v3397_v4  ;;  %v12158_v39 = vpop.permute.xlu1 %3777  ;;  %v12204_v43 = vsel %vm527_vm2, %v9110_v36, 0  ;;  %v12245_v36 = vld [vmem:[%s14156_s1 + $0xa0] ss:$8 sps:$4 sm:$0xff]  }
 0x623   : > { %v3843_v44 = vsel %vm384_vm4, %v3839_v62, %v12158_v39 }
 0x624   : > { %9043 = vmatprep.mubr.msk.bf16.mxu0 %vm1016_vm13, %v3401_v18  ;;  %v12178_v19 = vpop.permute.xlu0 %3789  ;;  %v12229_v18 = vld [vmem:[%s14156_s1 + $0xb0] ss:$8 sps:$4 sm:$0xff]  }
 0x625   : > { %3558 = vmatmul.mubr.bf16.vlgmr.msra.gmra.mxu0 %v3400_v45  ;;  %14180 = vst [vmem:[#allocation6_spill] sm:$0xff] %v12229_v18 }
 0x626   : > { %4060 = vmatpush1.bf16.msra.mxu0 %v12085_v51  ;;  %9113 = vmatprep.mubr.msk.bf16.mxu0 %vm703_vm10, %v3762_v22  ;;  %v3802_v7 = vpop.permute.xlu1 %3801  ;;  %v12235_v22 = vld [vmem:[%s14156_s1 + $0xa4] ss:$8 sps:$4 sm:$0xff]  }
 0x627   : > { %4061 = vmatprep.subr.bf16.mxu0 %v12096_v54  ;;  %14181 = vst [vmem:[#allocation7_spill] sm:$0xff] %v12235_v22  ;;  %v3859_v48 = vsel %vm405_vm6, %v12178_v19, %v3802_v7 }
 0x628   : > { %v12198_v28 = vpop.permute.xlu0 %3781 }
 0x62a   : > { %4062 = vmatpush1.bf16.msra.mxu0 %v12103_v15  ;;  %v3824_v3 = vpop.permute.xlu1 %3823 }
 0x62b   : > { %4063 = vmatprep.subr.bf16.mxu0 %v12110_v46 }
 0x62c   : > { %v12217_v4 = vpop.permute.xlu0 %3785 }
 0x62e   : > { %4064 = vmatpush1.bf16.msra.mxu0 %v12120_v24  ;;  %v3834_v50 = vpop.permute.xlu1 %3833 }
 0x62f   : > { %4065 = vmatprep.subr.bf16.mxu0 %v12126_v8 }
 0x630   : > { %v12239_v25 = vpop.permute.xlu0 %4464 }
 0x632   : > { %4066 = vmatpush1.bf16.msra.mxu0 %v12132_v35  ;;  %v12237_v45 = vpop.permute.xlu1 %4474 }
 0x633   : > { %4067 = vmatprep.subr.bf16.mxu0 %v12142_v61  ;;  %14182 = vst [vmem:[#allocation8_spill] sm:$0xff] %v12237_v45  ;;  %v3732_v45 = vsel %vm378_vm3, %v11767_v49, %v11985_v58  ;;  %v3861_v58 = vsel %vm410_vm8, %v3857_v6, %v12064_v11 }
 0x634   : > { %v3737_v49 = vsel %vm384_vm4, %v3732_v45, %v11987_v2  ;;  %v3865_v11 = vsel %vm415_vm9, %v3861_v58, %v12091_v26 }
 0x635   : > { %v3741_v6 = vsel %vm389_vm5, %v3737_v49, %v12010_v33  ;;  %v3873_v49 = vrot.slane %v3865_v11, 4 }
 0x636   : > { %4068 = vmatpush1.bf16.msra.mxu0 %v12148_v13  ;;  %v12253_v42 = vpop.permute.xlu1 %4530 }
 0x637   : > { %4069 = vmatprep.subr.bf16.mxu0 %v12154_v23 }
 0x63a   : > { %4070 = vmatpush1.bf16.msra.mxu0 %v12164_v57  ;;  %v4553_v31 = vpop.permute.xlu1 %4552 }
 0x63b   : > { %4071 = vmatprep.subr.bf16.mxu0 %v12170_v32 }
 0x63e   : > { %4072 = vmatpush1.bf16.msra.mxu0 %v12176_v56  ;;  %v4563_v26 = vpop.permute.xlu1 %4562 }
 0x63f   : > { %4073 = vmatprep.subr.bf16.mxu0 %v12184_v20 }
 0x642   : > { %4074 = vmatpush1.bf16.msra.mxu0 %v12193_v41  ;;  %v12332_v21 = vpop.permute.xlu1 %4610 }
 0x643   : > { %9112 = vmatprep.subr.msk.bf16.mxu0 %vm527_vm2, %v12196_v60 }
 0x646   : > { %4080 = vmatpush2.bf16.msra.mxu0 %v12204_v43 }
 0x647   : > { %4081 = vmatprep.subr.bf16.mxu0 %v12209_v55 }
 0x64a   : > { %4082 = vmatpush2.bf16.msra.mxu0 %v12215_v14 }
 0x64b   : > { %4083 = vmatprep.subr.bf16.mxu0 %v12223_v52 }
 0x64e   : > { %4084 = vmatpush2.bf16.msra.mxu0 %v12229_v18  ;;  %v12266_v18 = vpop.permute.xlu0 %4518 }
 0x64f   : > { %4085 = vmatprep.subr.bf16.mxu0 %v12235_v22  ;;  %v9064_v22 = vcombine.low %v11764_v16, %v11764_v16  ;;  %v12282_v16 = vld [vmem:[%s14156_s1 + $0x84] ss:$8 sps:$4 sm:$0xff]  }
 0x651   : > { %v3735_v2 = vsel %vm378_vm3, %v9064_v22, %v12056_v12  ;;  %v3760_v12 = vsel %vm410_vm8, %v3756_v9, %v12114_v34  ;;  %v3745_v22 = vsel %vm394_vm7, %v3741_v6, %v12020_v10  ;;  %v3849_v34 = vsel %vm394_vm7, %v3845_v40, %v12089_v53 }
 0x652   : > { %4086 = vmatpush2.bf16.msra.mxu0 %v12245_v36  ;;  %v12291_v45 = vpop.permute.xlu0 %4486  ;;  %v3739_v33 = vsel %vm384_vm4, %v3735_v2, %v12066_v47  ;;  %v3764_v47 = vsel %vm415_vm9, %v3760_v12, %v12136_v38  ;;  %v3863_v10 = vsel %vm410_vm8, %v3859_v48, %v3824_v3  ;;  %v3749_v30 = vsel %vm399_vm11, %v3745_v22, %v11999_v59  ;;  %v14185_v48 = vld [vmem:[#allocation4_spill] sm:$0xff] }
 0x653   : > { %4087 = vmatprep.subr.bf16.mxu0 %v12251_v63  ;;  %v3743_v7 = vsel %vm389_vm5, %v3739_v33, %v12112_v0  ;;  %v3853_v53 = vsel %vm399_vm11, %v3849_v34, %v12044_v29  ;;  %v3883_v38 = vsel %vm527_vm2, %v3764_v47, %v3873_v49  ;;  %v3847_v59 = vsel %vm389_vm5, %v3843_v44, %v12198_v28  ;;  %v4635_v29 = vpop.permute.xlu1 %4634 }
 0x654   : > { %v3747_v0 = vsel %vm394_vm7, %v3743_v7, %v12134_v37  ;;  %v3872_v39 = vrot.slane %v3853_v53, 4  ;;  %v3851_v37 = vsel %vm394_vm7, %v3847_v59, %v12217_v4 }
 0x655   : > { %v3752_v2 = vsel %vm399_vm11, %v3747_v0, %v12074_v17  ;;  %v4589_v17 = vsel %vm405_vm6, %v12266_v18, %v12253_v42 }
 0x656   : > { %4088 = vmatpush2.bf16.msra.mxu0 %v12272_v27  ;;  %v12317_v58 = vpop.permute.xlu0 %4508 }
 0x657   : > { %4089 = vmatprep.subr.bf16.mxu0 %v12282_v16  ;;  %v4615_v28 = vpop.permute.xlu1 %4614 }
 0x65a   : > { %4090 = vmatpush2.bf16.msra.mxu0 %v12301_v1  ;;  %v4607_v9 = vpop.permute.xlu0 %4606 }
 0x65b   : > { %4894 = vmatprep.subr.bf16.mxu0 %v11914_v5  ;;  %v3867_v5 = vsel %vm415_vm9, %v3863_v10, %v3834_v50  ;;  %v4477_v4 = vpop.permute.xlu1 %4476 }
 0x65c   : > { %v3876_v3 = vrot.slane %v3867_v5, 4 }
 0x65d   : > { %4092 = vmatmul.mubr.bf16.vlgmr.msra.gmra.mxu0 %v3749_v30 }
 0x65e   : > { %9114 = vmatprep.mubr.msk.bf16.mxu0 %vm703_vm10, %v3883_v38  ;;  %4895 = vmatpush1.bf16.msra.mxu0 %v12085_v51  ;;  %v12347_v6 = vpop.permute.xlu0 %4622  ;;  %v3880_v51 = vsel %vm527_vm2, %v3752_v2, %v3872_v39  ;;  %v3877_v50 = vsel %vm527_vm2, %v3873_v49, %v3876_v3 }
 0x65f   : > { %4896 = vmatprep.subr.bf16.mxu0 %v12096_v54  ;;  %v3855_v54 = vsel %vm399_vm11, %v3851_v37, %v12178_v19  ;;  %v4533_v12 = vpop.permute.xlu1 %4532 }
 0x662   : > { %4897 = vmatpush1.bf16.msra.mxu0 %v12103_v15  ;;  %v4467_v11 = vpop.permute.xlu0 %4466  ;;  %v3874_v15 = vrot.slane %v3855_v54, 4 }
 0x663   : > { %4898 = vmatprep.subr.bf16.mxu0 %v12110_v46  ;;  %v4593_v46 = vsel %vm410_vm8, %v4589_v17, %v4553_v31 }
 0x664   : > { %v4597_v19 = vsel %vm415_vm9, %v4593_v46, %v4563_v26  ;;  %v3875_v42 = vsel %vm527_vm2, %v3872_v39, %v3874_v15 }
 0x665   : > { %4102 = vmatmul.mubr.bf16.gmra.mxu0 %v3880_v51 }
 0x666   : > { %9115 = vmatprep.mubr.msk.bf16.mxu0 %vm703_vm10, %v3877_v50  ;;  %4899 = vmatpush1.bf16.msra.mxu0 %v12120_v24  ;;  %v4657_v40 = vpop.permute.xlu0 %4656  ;;  %v4667_v24 = vpop.permute.xlu1 %4666 }
 0x667   : > { %4900 = vmatprep.subr.bf16.mxu0 %v12126_v8 }
 0x66a   : > { %4901 = vmatpush1.bf16.msra.mxu0 %v12132_v35  ;;  %v12368_v33 = vpop.permute.xlu0 %4520  ;;  %v4555_v35 = vpop.permute.xlu1 %4554 }
 0x66b   : > { %4902 = vmatprep.subr.bf16.mxu0 %v12142_v61  ;;  %v4591_v34 = vsel %vm405_vm6, %v12368_v33, %v4533_v12  ;;  %v12446_v12 = vld [vmem:[%s10325_s8 + $0xc8] sm:$0xf] }
 0x66c   : > { %v4595_v53 = vsel %vm410_vm8, %v4591_v34, %v4555_v35  ;;  %v9248_v35 = vld [vmem:[%s10325_s8 + $0xc0] sm:$0xe]  ;;  %v9257_v34 = vld [vmem:[%s10325_s8 + $0xec] sm:$0x1] }
 0x66d   : > { %4112 = vmatmul.mubr.bf16.gmra.mxu0 %v3875_v42 }
 0x66e   : > { %4903 = vmatpush1.bf16.msra.mxu0 %v12148_v13  ;;  %9211 = vmatprep.mubr.msk.bf16.mxu0 %vm703_vm10, %v4597_v19  ;;  %v4619_v8 = vpop.permute.xlu0 %4618  ;;  %v4565_v31 = vpop.permute.xlu1 %4564  ;;  %v9245_v19 = vld [vmem:[%s10325_s8 + $0xc4] sm:$0xf] }
 0x66f   : > { %4904 = vmatprep.subr.bf16.mxu0 %v12154_v23  ;;  %v4599_v59 = vsel %vm415_vm9, %v4595_v53, %v4565_v31 }
 0x672   : > { %4905 = vmatpush1.bf16.msra.mxu0 %v12164_v57  ;;  %v4489_v61 = vpop.permute.xlu0 %4488  ;;  %v4613_v23 = vpop.permute.xlu1 %4612 }
 0x673   : > { %4906 = vmatprep.subr.bf16.mxu0 %v12170_v32 }
 0x676   : > { %4907 = vmatpush1.bf16.msra.mxu0 %v12176_v56  ;;  %v4511_v13 = vpop.permute.xlu0 %4510  ;;  %v4637_v32 = vpop.permute.xlu1 %4636  ;;  %v14183_v56 = vld [vmem:[#allocation2_spill] sm:$0xff] }
 0x677   : > { %4908 = vmatprep.subr.bf16.mxu0 %v12184_v20  ;;  %v4567_v20 = vsel %vm378_vm3, %v14183_v56, %v12239_v25 }
 0x67a   : > { %4909 = vmatpush1.bf16.msra.mxu0 %v12193_v41  ;;  %v4609_v57 = vpop.permute.xlu0 %4608  ;;  %v4692_v41 = vsel %vm405_vm6, %v12347_v6, %v4635_v29  ;;  %v4659_v7 = vpop.permute.xlu1 %4658 }
 0x67b   : > { %9210 = vmatprep.subr.msk.bf16.mxu0 %vm527_vm2, %v12196_v60  ;;  %v14184_v60 = vld [vmem:[#allocation6_spill] sm:$0xff]  ;;  %v4696_v49 = vsel %vm410_vm8, %v4692_v41, %v4657_v40 }
 0x67c   : > { %v4700_v44 = vsel %vm415_vm9, %v4696_v49, %v4667_v24  ;;  %v9244_v40 = vld [vmem:[%s10325_s8 + $0xc0] sm:$0xf] }
 0x67d   : > { %v12443_v42 = vcombine.low %v9244_v40, %v9245_v19  ;;  %v9254_v41 = vld [vmem:[%s10325_s8 + $0xe0] sm:$0xf] }
 0x67e   : > { %4915 = vmatpush2.bf16.msra.mxu0 %v12204_v43  ;;  %v4671_v43 = vsel %vm378_vm3, %v14185_v48, %v4607_v9  ;;  %v4625_v62 = vpop.permute.xlu0 %4624  ;;  %v14189_v9 = vld [vmem:[#allocation5_spill] sm:$0xff]  ;;  %v4669_v29 = vpop.permute.xlu1 %4668  ;;  %v9250_v48 = vld [vmem:[%s10325_s8 + $0xd4] sm:$0xf] }
 0x67f   : > { %4916 = vmatprep.subr.bf16.mxu0 %v12209_v55  ;;  %v14186_v55 = vld [vmem:[#allocation3_spill] sm:$0xff]  ;;  %v4676_v25 = vsel %vm384_vm4, %v4671_v43, %v12332_v21  ;;  %v5285_v31 = vshrl.u32 %v12443_v42, 16 }
 0x680   : > { %v9162_v26 = vcombine.low %v14186_v55, %v14186_v55  ;;  %v4680_v30 = vsel %vm389_vm5, %v4676_v25, %v4615_v28  ;;  %v12480_v25 = vld [vmem:[%s10325_s8 + $0xe8] sm:$0xf] }
 0x681   : > { %v4684_v5 = vsel %vm394_vm7, %v4680_v30, %v4619_v8  ;;  %v5287_v8 = vshll.u32 %v12443_v42, 16  ;;  %v9249_v30 = vld [vmem:[%s10325_s8 + $0xd0] sm:$0xf] }
 0x682   : > { %4917 = vmatpush2.bf16.msra.mxu0 %v12215_v14  ;;  %v14187_v14 = vld [vmem:[#allocation7_spill] sm:$0xff]  ;;  %v4570_v47 = vsel %vm378_vm3, %v9162_v26, %v4467_v11  ;;  %v4617_v0 = vpop.permute.xlu0 %4616 }
 0x683   : > { %4918 = vmatprep.subr.bf16.mxu0 %v12223_v52  ;;  %v14188_v52 = vld [vmem:[#allocation8_spill] sm:$0xff]  ;;  %v4574_v21 = vsel %vm384_vm4, %v4570_v47, %v4477_v4  ;;  %v12484_v47 = vcombine.low %v12480_v25, %v9257_v34 }
 0x684   : > { %v4572_v22 = vsel %vm384_vm4, %v4567_v20, %v14188_v52  ;;  %v4578_v39 = vsel %vm389_vm5, %v4574_v21, %v4489_v61  ;;  %v9262_v61 = vcombine.low %v9248_v35, %v9245_v19  ;;  %v9252_v52 = vld [vmem:[%s10325_s8 + $0xdc] sm:$0x1]  ;;  %v9986_v19 = vld [vmem:[%s14156_s1 + $0x64] ss:$8 sps:$4 sm:$0xff]  }
 0x685   : > { %v4576_v10 = vsel %vm389_vm5, %v4572_v22, %v12291_v45  ;;  %v4674_v45 = vsel %vm378_vm3, %v14189_v9, %v4609_v57  ;;  %v4582_v37 = vsel %vm394_vm7, %v4578_v39, %v4511_v13  ;;  %v5289_v13 = vrot.slane %v5287_v8, 1  ;;  %v9253_v22 = vld [vmem:[%s10325_s8 + $0xd0] sm:$0xe] }
 0x686   : > { %4919 = vmatpush2.bf16.msra.mxu0 %v14184_v60  ;;  %v4580_v38 = vsel %vm394_vm7, %v4576_v10, %v12317_v58  ;;  %v4688_v58 = vsel %vm399_vm11, %v4684_v5, %v12347_v6  ;;  %v4621_v54 = vpop.permute.xlu0 %4620  ;;  %v5306_v57 = vrot.slane %v9262_v61, 1  ;;  %v9255_v60 = vld [vmem:[%s10325_s8 + $0xe4] sm:$0xf]  ;;  %v9258_v5 = vld [vmem:[%s10325_s8 + $0xe0] sm:$0xe] }
 0x687   : > { %4920 = vmatprep.subr.bf16.mxu0 %v14187_v14  ;;  %v4584_v3 = vsel %vm399_vm11, %v4580_v38, %v12266_v18  ;;  %v4707_v18 = vrot.slane %v4688_v58, 4  ;;  %v5290_v56 = vor.u32 %v5289_v13, %v5285_v31  ;;  %v12467_v26 = vcombine.low %v9254_v41, %v9255_v60  ;;  %v12470_v14 = vld [vmem:[%s10325_s8 + $0xd8] sm:$0xf]  ;;  %v9984_v61 = vld [vmem:[%s14156_s1 + $0x60] ss:$8 sps:$4 sm:$0xff]  }
 0x688   : > { %v12477_v49 = vcombine.low %v12470_v14, %v9252_v52  ;;  %v12493_v38 = vcombine.low %v9249_v30, %v9250_v48  ;;  %v9270_v39 = vcombine.low %v9258_v5, %v9255_v60  ;;  %v9275_v13 = vld [vmem:[%s10325_s8 + $0xf0] sm:$0xe]  ;;  %v9992_v60 = vld [vmem:[%s14156_s1 + $0x44] ss:$8 sps:$4 sm:$0xff]   ;;  %v12605_v34 = vcombine.low %v12470_v14, %v12470_v14 }
 0x689   : > { %v5373_v53 = vshrl.u32 %v12467_v26, 16  ;;  %v10004_v30 = vld [vmem:[%s14156_s1 + $0x4] ss:$8 sps:$4 sm:$0xff]  }
 0x68a   : > { %4921 = vmatpush2.bf16.msra.mxu0 %v12245_v36  ;;  %v4694_v36 = vsel %vm405_vm6, %v4625_v62, %v4637_v32  ;;  %v5394_v58 = vrot.slane %v9270_v39, 1 }
 0x68b   : > { %4922 = vmatprep.subr.bf16.mxu0 %v12251_v63  ;;  %v4708_v63 = vrot.slane %v4700_v44, 4  ;;  %v12488_v44 = vrot.slane %v12477_v49, 1 }
 0x68d   : > { %v4718_v2 = vsel %vm527_vm2, %v4599_v59, %v4708_v63 }
 0x68e   : > { %4923 = vmatpush2.bf16.msra.mxu0 %v12272_v27  ;;  %v4698_v27 = vsel %vm410_vm8, %v4694_v36, %v4659_v7  ;;  %v5375_v7 = vshll.u32 %v12467_v26, 16  ;;  %v5380_v36 = vshll.u32 %v12484_v47, 16 }
 0x68f   : > { %4924 = vmatprep.subr.bf16.mxu0 %v12282_v16  ;;  %v4678_v16 = vsel %vm384_vm4, %v4674_v45, %v4613_v23  ;;  %v4702_v51 = vsel %vm415_vm9, %v4698_v27, %v4669_v29  ;;  %v5329_v27 = vshrl.u32 %v12493_v38, 16 }
 0x690   : > { %v4682_v28 = vsel %vm389_vm5, %v4678_v16, %v4617_v0  ;;  %v4711_v6 = vrot.slane %v4702_v51, 4  ;;  %v5377_v21 = vrot.slane %v5375_v7, 1  ;;  %v12500_v45 = vrot.slane %v5380_v36, 1  ;;  %v9996_v7 = vld [vmem:[%s14156_s1 + $0x20] ss:$8 sps:$4 sm:$0xff]  }
 0x691   : > { %v4686_v50 = vsel %vm394_vm7, %v4682_v28, %v4621_v54  ;;  %v5331_v0 = vshll.u32 %v12493_v38, 16  ;;  %v5336_v16 = vshll.u32 %v12477_v49, 16  ;;  %v9271_v54 = vld [vmem:[%s10325_s8 + $0xf0] sm:$0xf]  ;;  %v10002_v36 = vld [vmem:[%s14156_s1] ss:$8 sps:$4 sm:$0xff]  }
 0x692   : > { %4925 = vmatpush2.bf16.msra.mxu0 %v12301_v1  ;;  %v4587_v1 = vsel %vm399_vm11, %v4582_v37, %v12368_v33  ;;  %v4690_v11 = vsel %vm399_vm11, %v4686_v50, %v4625_v62  ;;  %v4712_v15 = vsel %vm527_vm2, %v4708_v63, %v4711_v6  ;;  %v9247_v33 = vld [vmem:[%s10325_s8 + $0xcc] sm:$0x1]  ;;  %v9266_v62 = vcombine.low %v9253_v22, %v9250_v48  ;;  %v12531_v50 = vld [vmem:[%s10325_s8 + $0xf8] sm:$0xf] }
 0x693   : > { %v4715_v17 = vsel %vm527_vm2, %v4587_v1, %v4707_v18  ;;  %v4709_v46 = vrot.slane %v4690_v11, 4  ;;  %v12450_v24 = vcombine.low %v12446_v12, %v9247_v33  ;;  %v5378_v9 = vor.u32 %v5377_v21, %v5373_v53  ;;  %v9993_v22 = vld [vmem:[%s14156_s1 + $0x30] ss:$8 sps:$4 sm:$0xff]  }
 0x694   : > { %v5350_v10 = vrot.slane %v9266_v62, 1  ;;  %v5333_v29 = vrot.slane %v5331_v0, 1  ;;  %v12517_v37 = vrot.slane %v5336_v16, 1  ;;  %v12575_v48 = vcombine.low %v12480_v25, %v12480_v25  ;;  %v9998_v62 = vld [vmem:[%s14156_s1 + $0x24] ss:$8 sps:$4 sm:$0xff]   ;;  %v5580_v53 = vld [vmem:[%s14156_s1 + $0xd0] sm:$0xff] }
 0x695   : > { %4927 = vmatmul.mubr.bf16.vlgmr.msra.gmra.mxu0 %v4584_v3  ;;  %v4710_v4 = vsel %vm527_vm2, %v4707_v18, %v4709_v46  ;;  %v5292_v23 = vshll.u32 %v12450_v24, 16  ;;  %v5307_v32 = vrot.slane %v12450_v24, 1  ;;  %v12506_v59 = vsel %vm259_vm1, %v5378_v9, %v12500_v45  ;;  %v9272_v18 = vld [vmem:[%s10325_s8 + $0xf4] sm:$0xf]  ;;  %v3570_v0 = vld [vmem:[%s14159_s4] sm:$0xff] }
 0x696   : > { %9212 = vmatprep.mubr.msk.bf16.mxu0 %vm703_vm10, %v4718_v2  ;;  %v5352_v63 = vsel %vm282_vm0, %v5350_v10, %v12488_v44  ;;  %v12512_v3 = vrot.slane %v12484_v47, 1  ;;  %v5334_v2 = vor.u32 %v5333_v29, %v5329_v27  ;;  %v9276_v1 = vcombine.low %v9271_v54, %v9272_v18  ;;  %v9983_v46 = vld [vmem:[%s14156_s1 + $0x74] ss:$8 sps:$4 sm:$0xff]   ;;  %v10014_v54 = vld [vmem:[%s14156_s1 + $0xc0] ss:$8 sps:$4 sm:$0xff]  }
 0x697   : > { %v12457_v20 = vrot.slane %v5292_v23, 1  ;;  %v5308_v43 = vsel %vm282_vm0, %v5306_v57, %v5307_v32  ;;  %v5296_v6 = vshrl.u32 %v12450_v24, 16  ;;  %5729 = vmatprep.subr.bf16.mxu0 %v9983_v46  ;;  %v9989_v23 = vld [vmem:[%s14156_s1 + $0x54] ss:$8 sps:$4 sm:$0xff]   ;;  %v9306_v9 = vcombine.low %v5580_v53, %v5580_v53  ;;  %v10026_v46 = vld [vmem:[%s14156_s1 + $0xa0] ss:$8 sps:$4 sm:$0xff]  }
 0x698   : > { %5309 = vrot.lane.b32.xlu1 %v5308_v43, %s10260_s20  ;;  %v5396_v51 = vsel %vm282_vm0, %v5394_v58, %v12512_v3  ;;  %v5339_v28 = vsel %vm259_vm1, %v5334_v2, %v12517_v37  ;;  %v5479_v40 = vshll.u32 %v9276_v1, 16  ;;  %v9995_v24 = vld [vmem:[%s14156_s1 + $0x34] ss:$8 sps:$4 sm:$0xff]   ;;  %v10016_v58 = vld [vmem:[%s14156_s1 + $0xc4] ss:$8 sps:$4 sm:$0xff]  }
 0x699   : > { %v5295_v55 = vsel %vm259_vm1, %v5290_v56, %v12457_v20  ;;  %v5298_v8 = vor.u32 %v5296_v6, %v12457_v20  ;;  %v9279_v56 = vcombine.low %v9275_v13, %v9272_v18  ;;  %v9987_v20 = vld [vmem:[%s14156_s1 + $0x50] ss:$8 sps:$4 sm:$0xff]   ;;  %v10001_v10 = vld [vmem:[%s14156_s1 + $0x14] ss:$8 sps:$4 sm:$0xff]   ;;  %v5724_v16 = vsel %vm527_vm2, %v9306_v9, 0 }
 0x69a   : > { %5299 = vrot.lane.b32.xlu0 %v5295_v55, %s10262_s30  ;;  %v5481_v35 = vrot.slane %v5479_v40, 1  ;;  %v3571_v2 = vld [vmem:[%s14159_s4 + $0x8] sm:$0x3f]  ;;  %v10022_v6 = vld [vmem:[%s14156_s1 + $0xb4] ss:$8 sps:$4 sm:$0xff]  }
 0x69b   : > { %v5498_v43 = vrot.slane %v9279_v56, 1  ;;  %v10032_v40 = vld [vmem:[%s14156_s1 + $0x90] ss:$8 sps:$4 sm:$0xff]  }
 0x69c   : > { %5365 = vrot.lane.b32.xlu1 %v12467_v26, %s10257_s13 }
 0x69d   : > { %4937 = vmatmul.mubr.bf16.gmra.mxu0 %v4715_v17  ;;  %v9274_v17 = vld [vmem:[%s10325_s8 + $0xfc] sm:$0x1] }
 0x69e   : > { %9213 = vmatprep.mubr.msk.bf16.mxu0 %vm703_vm10, %v4712_v15  ;;  %5353 = vrot.lane.b32.xlu0 %v5352_v63, %s10259_s17  ;;  %v12535_v11 = vcombine.low %v12531_v50, %v9274_v17  ;;  %v9981_v15 = vld [vmem:[%s14156_s1 + $0x70] ss:$8 sps:$4 sm:$0xff]  }
 0x69f   : > { %5730 = vmatpush1.bf16.msra.mxu0 %v9981_v15  ;;  %v10028_v15 = vld [vmem:[%s14156_s1 + $0xa4] ss:$8 sps:$4 sm:$0xff]  }
 0x6a0   : > { %5387 = vrot.lane.b32.xlu1 %v12506_v59, %s10264_s22  ;;  %v5484_v33 = vshll.u32 %v12535_v11, 16  ;;  %5731 = vmatprep.subr.bf16.mxu0 %v9986_v19  ;;  %v5499_v55 = vrot.slane %v12535_v11, 1  ;;  %v5488_v39 = vshrl.u32 %v12535_v11, 16  ;;  %v10040_v11 = vld [vmem:[%s14156_s1 + $0x84] ss:$8 sps:$4 sm:$0xff]  }
 0x6a1   : > { %v10038_v19 = vld [vmem:[%s14156_s1 + $0x80] ss:$8 sps:$4 sm:$0xff]  }
 0x6a2   : > { %5321 = vrot.lane.b32.xlu0 %v12493_v38, %s10258_s16  ;;  %v12553_v31 = vrot.slane %v5484_v33, 1  ;;  %v5500_v52 = vsel %vm282_vm0, %v5498_v43, %v5499_v55 }
 0x6a3   : > { %5732 = vmatpush1.bf16.msra.mxu0 %v9984_v61 }
 0x6a4   : > { %5397 = vrot.lane.b32.xlu1 %v5396_v51, %s10261_s27  ;;  %5733 = vmatprep.subr.bf16.mxu0 %v9989_v23 }
 0x6a5   : > { %4947 = vmatmul.mubr.bf16.gmra.mxu0 %v4710_v4  ;;  %v5477_v4 = vshrl.u32 %v9276_v1, 16 }
 0x6a6   : > { %5343 = vrot.lane.b32.xlu0 %v5339_v28, %s10263_s11 }
 0x6a7   : > { %v5482_v57 = vor.u32 %v5481_v35, %v5477_v4  ;;  %5734 = vmatpush1.bf16.msra.mxu0 %v9987_v20  ;;  %v10034_v4 = vld [vmem:[%s14156_s1 + $0x94] ss:$8 sps:$4 sm:$0xff]  }
 0x6a8   : > { %5445 = vrot.lane.b32.xlu1 %v5352_v63, %s10260_s20  ;;  %5735 = vmatprep.subr.bf16.mxu0 %v9992_v60  ;;  %v9307_v63 = vcombine.high %v5580_v53, %v5580_v53 }
 0x6a9   : > { %v5487_v41 = vsel %vm259_vm1, %v5482_v57, %v12553_v31 }
 0x6aa   : > { %5441 = vrot.lane.b32.xlu0 %v5339_v28, %s10262_s30  ;;  %v5490_v28 = vor.u32 %v5488_v39, %v12553_v31 }
 0x6ac   : > { %5469 = vrot.lane.b32.xlu1 %v9276_v1, %s10257_s13 }
 0x6ae   : > { %5457 = vrot.lane.b32.xlu0 %v5396_v51, %s10259_s17 }
 0x6b0   : > { %5449 = vrot.lane.b32.xlu1 %v12467_v26, %s10258_s16  ;;  %v9990_v26 = vld [vmem:[%s14156_s1 + $0x40] ss:$8 sps:$4 sm:$0xff]  }
 0x6b1   : > { %5736 = vmatpush1.bf16.msra.mxu0 %v9990_v26 }
 0x6b2   : > { %5301 = vrot.lane.b32.xlu0 %v5298_v8, %s10262_s30  ;;  %5737 = vmatprep.subr.bf16.mxu0 %v9995_v24 }
 0x6b4   : > { %5311 = vrot.lane.b32.xlu1 %v5307_v32, %s10260_s20  ;;  %v5384_v32 = vshrl.u32 %v12484_v47, 16  ;;  %v5340_v47 = vshrl.u32 %v12477_v49, 16  ;;  %v9999_v49 = vld [vmem:[%s14156_s1 + $0x10] ss:$8 sps:$4 sm:$0xff]  }
 0x6b5   : > { %5738 = vmatpush1.bf16.msra.mxu0 %v9993_v22 }
 0x6b6   : > { %5491 = vrot.lane.b32.xlu0 %v5487_v41, %s10264_s22  ;;  %v5386_v25 = vor.u32 %v5384_v32, %v12500_v45  ;;  %5739 = vmatprep.subr.bf16.mxu0 %v9998_v62  ;;  %v5342_v14 = vor.u32 %v5340_v47, %v12517_v37 }
 0x6b8   : > { %5367 = vrot.lane.b32.xlu1 %v12575_v48, %s10257_s13 }
 0x6b9   : > { %5740 = vmatpush1.bf16.msra.mxu0 %v9996_v7 }
 0x6ba   : > { %5355 = vrot.lane.b32.xlu0 %v12488_v44, %s10259_s17  ;;  %5741 = vmatprep.subr.bf16.mxu0 %v10001_v10 }
 0x6bc   : > { %5501 = vrot.lane.b32.xlu1 %v5500_v52, %s10261_s27 }
 0x6bd   : > { %5742 = vmatpush1.bf16.msra.mxu0 %v9999_v49 }
 0x6be   : > { %5453 = vrot.lane.b32.xlu0 %v12506_v59, %s10263_s11  ;;  %5743 = vmatprep.subr.bf16.mxu0 %v10004_v30  ;;  %v9277_v59 = vcombine.low %v12531_v50, %v12531_v50 }
 0x6c0   : > { %5389 = vrot.lane.b32.xlu1 %v5386_v25, %s10264_s22 }
 0x6c1   : > { %5744 = vmatpush1.bf16.msra.mxu0 %v10002_v36 }
 0x6c2   : > { %5323 = vrot.lane.b32.xlu0 %v12605_v34, %s10258_s16  ;;  %9308 = vmatprep.subr.msk.bf16.mxu0 %vm527_vm2, %v9307_v63 }
 0x6c4   : > { %5399 = vrot.lane.b32.xlu1 %v12512_v3, %s10261_s27 }
 0x6c5   : > { %5750 = vmatpush2.bf16.msra.mxu0 %v5724_v16 }
 0x6c6   : > { %5345 = vrot.lane.b32.xlu0 %v5342_v14, %s10263_s11  ;;  %5751 = vmatprep.subr.bf16.mxu0 %v10016_v58  ;;  %v9972_v58 = vld [vmem:[%s14157_s2] sm:$0xff]  }
 0x6c8   : > { %5447 = vrot.lane.b32.xlu1 %v12488_v44, %s10260_s20 }
 0x6c9   : > { %5752 = vmatpush2.bf16.msra.mxu0 %v10014_v54  ;;  %v12727_v54 = vld [vmem:[%s14158_s3 + $0x60] ss:$8 sps:$4 sm:$0xff]  }
 0x6ca   : > { %5443 = vrot.lane.b32.xlu0 %v5342_v14, %s10262_s30  ;;  %5753 = vmatprep.subr.bf16.mxu0 %v10022_v6 }
 0x6cc   : > { %5471 = vrot.lane.b32.xlu1 %v9277_v59, %s10257_s13 }
 0x6ce   : > { %5459 = vrot.lane.b32.xlu0 %v12512_v3, %s10259_s17  ;;  %v10020_v3 = vld [vmem:[%s14156_s1 + $0xb0] ss:$8 sps:$4 sm:$0xff]  }
 0x6cf   : > { %5754 = vmatpush2.bf16.msra.mxu0 %v10020_v3  ;;  %v12742_v3 = vld [vmem:[%s14158_s3 + $0x50] ss:$8 sps:$4 sm:$0xff]  }
 0x6d0   : > { %5493 = vrot.lane.b32.xlu1 %v5490_v28, %s10264_s22  ;;  %5755 = vmatprep.subr.bf16.mxu0 %v10028_v15  ;;  %v14190_v28 = vmov 0   ;;  %v12748_v15 = vld [vmem:[%s14158_s3 + $0x44] ss:$8 sps:$4 sm:$0xff]  }
 0x6d2   : > { %5451 = vrot.lane.b32.xlu0 %v12575_v48, %s10258_s16 }
 0x6d3   : > { %5756 = vmatpush2.bf16.msra.mxu0 %v10026_v46 }
 0x6d4   : > { %5503 = vrot.lane.b32.xlu1 %v5499_v55, %s10261_s27  ;;  %5757 = vmatprep.subr.bf16.mxu0 %v10034_v4 }
 0x6d6   : > { %5455 = vrot.lane.b32.xlu0 %v5386_v25, %s10263_s11 }
 0x6d7   : > { %5758 = vmatpush2.bf16.msra.mxu0 %v10032_v40  ;;  %v12757_v40 = vld [vmem:[%s14158_s3 + $0x40] ss:$8 sps:$4 sm:$0xff]  }
 0x6d8   : > { %5759 = vmatprep.subr.bf16.mxu0 %v10040_v11 }
 0x6db   : > { %5760 = vmatpush2.bf16.msra.mxu0 %v10038_v19 }
 0x6e5   : > { %v3559_v21 = vpop.f32.mrf.mxu0 }
 0x6e7   : > { %v3561_v45 = vpop.f32.mrf.mxu0 }
 0x6e8   : > { %v3568_v5 = vmax.f32 %v3559_v21, %v3561_v45 }
 0x6e9   : > { %v3563_v27 = vpop.f32.mrf.mxu0 }
 0x6ea   : > { %v3572_v29 = vadd.f32 %v3570_v0, %v3568_v5 }
 0x6eb   : > { %v3565_v44 = vpop.f32.mrf.mxu0 }
 0x6ec   : > { %v3574_v37 = vmax.f32 %v3572_v29, 0.0  ;;  %v3569_v51 = vmax.f32 %v3563_v27, %v3565_v44  ;;  %v12705_v27 = vld [vmem:[%s14158_s3 + $0x74] ss:$8 sps:$4 sm:$0xff]   ;;  %v12713_v44 = vld [vmem:[%s14158_s3 + $0x70] ss:$8 sps:$4 sm:$0xff]  }
 0x6ee   : > { %v9644_v18 = vpack.c.bf16 %v3574_v37, %v3574_v37  ;;  %v3573_v1 = vadd.f32 %v3571_v2, %v3569_v51  ;;  %v12719_v37 = vld [vmem:[%s14158_s3 + $0x64] ss:$8 sps:$4 sm:$0xff]  }
 0x6f0   : > { %9046 = vst [vmem:[%s11175_s15 + $0x20] sm:$0xf] %v9644_v18  ;;  %v3575_v50 = vmax.f32 %v3573_v1, 0.0  ;;  %v12733_v1 = vld [vmem:[%s14158_s3 + $0x54] ss:$8 sps:$4 sm:$0xff]  }
 0x6f2   : > { %v9645_v17 = vpack.c.bf16 %v3575_v50, %v3575_v50  ;;  %v9974_v50 = vld [vmem:[%s14157_s2 + $0x8] sm:$0x3f]  }
 0x6f4   : > { %9047 = vst [vmem:[%s11175_s15 + $0x24] sm:$0x7] %v9645_v17 }
 0x70a   : > { %v5310_v57 = vpop.permute.xlu1 %5309 }
 0x70c   : > { %v5300_v56 = vpop.permute.xlu0 %5299 }
 0x70d   : > { %v5402_v43 = vsel %vm378_vm3, %v12443_v42, %v5300_v56 }
 0x70e   : > { %v5366_v60 = vpop.permute.xlu1 %5365  ;;  %v5407_v22 = vsel %vm384_vm4, %v5402_v43, %v5310_v57  ;;  %v12781_v57 = vld [vmem:[%s14158_s3 + $0x24] ss:$8 sps:$4 sm:$0xff]  }
 0x710   : > { %v5354_v55 = vpop.permute.xlu0 %5353 }
 0x711   : > { %v5424_v24 = vsel %vm405_vm6, %v5354_v55, %v5366_v60 }
 0x712   : > { %v5388_v52 = vpop.permute.xlu1 %5387 }
 0x713   : > { %v5428_v14 = vsel %vm410_vm8, %v5424_v24, %v5388_v52 }
 0x714   : > { %v5322_v25 = vpop.permute.xlu0 %5321 }
 0x715   : > { %v5411_v49 = vsel %vm389_vm5, %v5407_v22, %v5322_v25 }
 0x716   : > { %v5398_v42 = vpop.permute.xlu1 %5397 }
 0x717   : > { %v5432_v36 = vsel %vm415_vm9, %v5428_v14, %v5398_v42  ;;  %v12819_v14 = vld [vmem:[%s14158_s3 + $0x4] ss:$8 sps:$4 sm:$0xff]  }
 0x718   : > { %v5344_v63 = vpop.permute.xlu0 %5343  ;;  %9309 = vmatprep.mubr.msk.bf16.mxu0 %vm703_vm10, %v5432_v36 }
 0x719   : > { %v5415_v0 = vsel %vm394_vm7, %v5411_v49, %v5344_v63  ;;  %v12830_v63 = vld [vmem:[%s14158_s3] ss:$8 sps:$4 sm:$0xff]  }
 0x71a   : > { %v5419_v59 = vsel %vm399_vm11, %v5415_v0, %v5354_v55  ;;  %v5446_v39 = vpop.permute.xlu1 %5445  ;;  %v12838_v0 = vld [vmem:[%s14158_s3 + $0x94] ss:$8 sps:$4 sm:$0xff]  }
 0x71b   : > { %5762 = vmatmul.mubr.bf16.vlgmr.msra.gmra.mxu0 %v5419_v59 }
 0x71c   : > { %v5442_v16 = vpop.permute.xlu0 %5441 }
 0x71d   : > { %v4093_v33 = vpop.f32.mrf.mxu0  ;;  %v5506_v46 = vsel %vm378_vm3, %v12493_v38, %v5442_v16  ;;  %v12847_v16 = vld [vmem:[%s14158_s3 + $0x90] ss:$8 sps:$4 sm:$0xff]  }
 0x71e   : > { %v5470_v2 = vpop.permute.xlu1 %5469  ;;  %v5511_v11 = vsel %vm384_vm4, %v5506_v46, %v5446_v39  ;;  %v12862_v46 = vld [vmem:[%s14158_s3 + $0x80] ss:$8 sps:$4 sm:$0xff]  }
 0x71f   : > { %v4095_v8 = vpop.f32.mrf.mxu0 }
 0x720   : > { %v5458_v51 = vpop.permute.xlu0 %5457 }
 0x721   : > { %v4097_v35 = vpop.f32.mrf.mxu0  ;;  %v5527_v38 = vsel %vm405_vm6, %v5458_v51, %v5470_v2  ;;  %v12853_v2 = vld [vmem:[%s14158_s3 + $0x84] ss:$8 sps:$4 sm:$0xff]  }
 0x722   : > { %v5450_v18 = vpop.permute.xlu1 %5449 }
 0x723   : > { %v4099_v61 = vpop.f32.mrf.mxu0 }
 0x724   : > { %v5302_v6 = vpop.permute.xlu0 %5301 }
 0x725   : > { %v4103_v31 = vpop.f32.mrf.mxu0 }
 0x726   : > { %v5312_v17 = vpop.permute.xlu1 %5311 }
 0x727   : > { %v4105_v13 = vpop.f32.mrf.mxu0 }
 0x728   : > { %v5492_v4 = vpop.permute.xlu0 %5491 }
 0x729   : > { %v4107_v23 = vpop.f32.mrf.mxu0 }
 0x72a   : > { %v4122_v5 = vmax.f32 %v4093_v33, %v4107_v23  ;;  %v5368_v19 = vpop.permute.xlu1 %5367  ;;  %v12764_v33 = vld [vmem:[%s14158_s3 + $0x34] ss:$8 sps:$4 sm:$0xff]  }
 0x72b   : > { %v4109_v20 = vpop.f32.mrf.mxu0 }
 0x72c   : > { %v4123_v30 = vmax.f32 %v4095_v8, %v4109_v20  ;;  %v9260_v8 = vcombine.low %v12446_v12, %v12446_v12 }
 0x72d   : > { %v4113_v41 = vpop.f32.mrf.mxu0 }
 0x72e   : > { %v4124_v21 = vmax.f32 %v4097_v35, %v4113_v41  ;;  %v5356_v35 = vpop.permute.xlu0 %5355  ;;  %v5502_v23 = vpop.permute.xlu1 %5501  ;;  %v5405_v12 = vsel %vm378_vm3, %v9260_v8, %v5302_v6 }
 0x72f   : > { %v4115_v48 = vpop.f32.mrf.mxu0  ;;  %v5426_v41 = vsel %vm405_vm6, %v5356_v35, %v5368_v19  ;;  %v5409_v43 = vsel %vm384_vm4, %v5405_v12, %v5312_v17 }
 0x730   : > { %v4125_v47 = vmax.f32 %v4099_v61, %v4115_v48  ;;  %v4128_v29 = vpack.c.bf16 %v4124_v21, %v4122_v5  ;;  %v5515_v61 = vsel %vm389_vm5, %v5511_v11, %v5450_v18  ;;  %v12793_v48 = vld [vmem:[%s14158_s3 + $0x20] ss:$8 sps:$4 sm:$0xff]  }
 0x731   : > { %v4117_v26 = vpop.f32.mrf.mxu0 }
 0x732   : > { %v4126_v32 = vmax.f32 %v4103_v31, %v4117_v26  ;;  %v4129_v9 = vpack.c.bf16 %v4125_v47, %v4123_v30  ;;  %v12774_v31 = vld [vmem:[%s14158_s3 + $0x30] ss:$8 sps:$4 sm:$0xff]   ;;  %v5454_v56 = vpop.permute.xlu0 %5453  ;;  %v5390_v55 = vpop.permute.xlu1 %5389  ;;  %v12800_v26 = vld [vmem:[%s14158_s3 + $0x14] ss:$8 sps:$4 sm:$0xff]  }
 0x733   : > { %v4119_v62 = vpop.f32.mrf.mxu0  ;;  %v5519_v20 = vsel %vm394_vm7, %v5515_v61, %v5454_v56  ;;  %v5430_v22 = vsel %vm410_vm8, %v5426_v41, %v5390_v55  ;;  %v12812_v47 = vld [vmem:[%s14158_s3 + $0x10] ss:$8 sps:$4 sm:$0xff]  }
 0x734   : > { %v4130_v7 = vpack.c.bf16 %v4126_v32, %v4126_v32  ;;  %v4127_v10 = vmax.f32 %v4105_v13, %v4119_v62  ;;  %v5531_v13 = vsel %vm410_vm8, %v5527_v38, %v5492_v4  ;;  %v12803_v24 = vsel %vm399_vm11, %v5519_v20, %v5458_v51 }
 0x735   : > { %v12787_v60 = vsel %vm415_vm9, %v5531_v13, %v5502_v23 }
 0x736   : > { %v4131_v53 = vpack.c.bf16 %v4127_v10, %v4127_v10  ;;  %v4153_v45 = vsel %vm527_vm2, %v4130_v7, 0  ;;  %v5324_v32 = vpop.permute.xlu0 %5323  ;;  %v5543_v52 = vrot.slane %v12787_v60, 4  ;;  %v5542_v7 = vrot.slane %v12803_v24, 4  ;;  %v5400_v10 = vpop.permute.xlu1 %5399 }
 0x737   : > { %v5413_v25 = vsel %vm389_vm5, %v5409_v43, %v5324_v32  ;;  %v5434_v30 = vsel %vm415_vm9, %v5430_v22, %v5400_v10 }
 0x738   : > { %9118 = vmatprep.subr.msk.bf16.mxu1 %vm527_vm2, %v4131_v53  ;;  %v5553_v21 = vsel %vm527_vm2, %v5434_v30, %v5543_v52 }
 0x739   : > { %4171 = vmatpush1.bf16.msra.mxu1 %v4153_v45  ;;  %9310 = vmatprep.mubr.msk.bf16.mxu0 %vm703_vm10, %v5553_v21 }
 0x73a   : > { %4172 = vmatprep.subr.bf16.mxu1 %v4129_v9  ;;  %v5346_v53 = vpop.permute.xlu0 %5345  ;;  %v5448_v45 = vpop.permute.xlu1 %5447 }
 0x73b   : > { %v5417_v42 = vsel %vm394_vm7, %v5413_v25, %v5346_v53 }
 0x73c   : > { %v5422_v9 = vsel %vm399_vm11, %v5417_v42, %v5356_v35 }
 0x73d   : > { %4173 = vmatpush1.bf16.msra.mxu1 %v4128_v29  ;;  %v5550_v5 = vsel %vm527_vm2, %v5422_v9, %v5542_v7 }
 0x73e   : > { %4360 = vmatprep.subr.bf16.mxu1 %v12705_v27  ;;  %v5444_v39 = vpop.permute.xlu0 %5443  ;;  %5772 = vmatmul.mubr.bf16.gmra.mxu0 %v5550_v5 }
 0x73f   : > { %v5509_v18 = vsel %vm378_vm3, %v12605_v34, %v5444_v39 }
 0x740   : > { %9119 = vmatmul.mubr.msk.bf16.vlgmr.msra.gmra.mxu1 %vm378_vm3, %v9972_v58  ;;  %v5472_v58 = vpop.permute.xlu1 %5471  ;;  %v5513_v19 = vsel %vm384_vm4, %v5509_v18, %v5448_v45 }
 0x741   : > { %4200 = vmatprep.mubr.bf16.mxu1 %v14190_v28  ;;  %4361 = vmatpush1.bf16.msra.mxu1 %v12713_v44 }
 0x742   : > { %4362 = vmatprep.subr.bf16.mxu1 %v12719_v37  ;;  %v5460_v6 = vpop.permute.xlu0 %5459 }
 0x743   : > { %v5529_v17 = vsel %vm405_vm6, %v5460_v6, %v5472_v58 }
 0x744   : > { %v5494_v11 = vpop.permute.xlu1 %5493 }
 0x745   : > { %4363 = vmatpush1.bf16.msra.mxu1 %v12727_v54  ;;  %v5533_v35 = vsel %vm410_vm8, %v5529_v17, %v5494_v11 }
 0x746   : > { %4364 = vmatprep.subr.bf16.mxu1 %v12733_v1  ;;  %v5452_v8 = vpop.permute.xlu0 %5451 }
 0x747   : > { %v5517_v13 = vsel %vm389_vm5, %v5513_v19, %v5452_v8 }
 0x748   : > { %9120 = vmatmul.mubr.msk.bf16.gmra.mxu1 %vm378_vm3, %v9974_v50  ;;  %v5504_v12 = vpop.permute.xlu1 %5503 }
 0x749   : > { %4365 = vmatpush1.bf16.msra.mxu1 %v12742_v3  ;;  %v5537_v20 = vsel %vm415_vm9, %v5533_v35, %v5504_v12 }
 0x74a   : > { %4366 = vmatprep.subr.bf16.mxu1 %v12748_v15  ;;  %v5456_v41 = vpop.permute.xlu0 %5455  ;;  %v5546_v32 = vrot.slane %v5537_v20, 4 }
 0x74b   : > { %v5521_v22 = vsel %vm394_vm7, %v5517_v13, %v5456_v41 }
 0x74c   : > { %v5525_v25 = vsel %vm399_vm11, %v5521_v22, %v5460_v6  ;;  %v5547_v53 = vsel %vm527_vm2, %v5543_v52, %v5546_v32  ;;  %v10053_v32 = vld [vmem:[%s14157_s2] sm:$0xff]  }
 0x74d   : > { %4367 = vmatpush1.bf16.msra.mxu1 %v12757_v40  ;;  %v5544_v30 = vrot.slane %v5525_v25, 4  ;;  %9311 = vmatprep.mubr.msk.bf16.mxu0 %vm703_vm10, %v5547_v53  ;;  %v10054_v53 = vld [vmem:[%s14157_s2 + $0x8] sm:$0x3f]  }
 0x74e   : > { %4368 = vmatprep.subr.bf16.mxu1 %v12764_v33 }
 0x751   : > { %4369 = vmatpush1.bf16.msra.mxu1 %v12774_v31 }
 0x752   : > { %4370 = vmatprep.subr.bf16.mxu1 %v12781_v57 }
 0x755   : > { %v4928_v62 = vpop.f32.mrf.mxu0  ;;  %4371 = vmatpush1.bf16.msra.mxu1 %v12793_v48 }
 0x756   : > { %4372 = vmatprep.subr.bf16.mxu1 %v12800_v26 }
 0x757   : > { %v4930_v49 = vpop.f32.mrf.mxu0 }
 0x759   : > { %v4932_v36 = vpop.f32.mrf.mxu0  ;;  %4373 = vmatpush1.bf16.msra.mxu1 %v12812_v47 }
 0x75a   : > { %4374 = vmatprep.subr.bf16.mxu1 %v12819_v14 }
 0x75b   : > { %v4934_v59 = vpop.f32.mrf.mxu0 }
 0x75d   : > { %v4938_v29 = vpop.f32.mrf.mxu0  ;;  %4375 = vmatpush1.bf16.msra.mxu1 %v12830_v63 }
 0x75e   : > { %4388 = vmatprep.subr.bf16.mxu1 %v12838_v0 }
 0x75f   : > { %v4940_v51 = vpop.f32.mrf.mxu0 }
 0x761   : > { %v4942_v50 = vpop.f32.mrf.mxu0  ;;  %4389 = vmatpush2.bf16.msra.mxu1 %v12847_v16 }
 0x762   : > { %v4957_v4 = vmax.f32 %v4928_v62, %v4942_v50  ;;  %4390 = vmatprep.subr.bf16.mxu1 %v12853_v2 }
 0x763   : > { %v4944_v38 = vpop.f32.mrf.mxu0 }
 0x764   : > { %v4958_v34 = vmax.f32 %v4930_v49, %v4944_v38 }
 0x765   : > { %v4948_v61 = vpop.f32.mrf.mxu0  ;;  %4391 = vmatpush2.bf16.msra.mxu1 %v12862_v46 }
 0x766   : > { %v4959_v23 = vmax.f32 %v4932_v36, %v4948_v61  ;;  %v5545_v36 = vsel %vm527_vm2, %v5542_v7, %v5544_v30 }
 0x767   : > { %v4950_v56 = vpop.f32.mrf.mxu0  ;;  %5782 = vmatmul.mubr.bf16.gmra.mxu0 %v5545_v36 }
 0x768   : > { %v4963_v43 = vpack.c.bf16 %v4959_v23, %v4957_v4  ;;  %v4960_v55 = vmax.f32 %v4934_v59, %v4950_v56  ;;  %6695 = vmatprep.mubr.bf16.mxu0 %v14190_v28 }
 0x769   : > { %v4952_v62 = vpop.f32.mrf.mxu0 }
 0x76a   : > { %v4964_v10 = vpack.c.bf16 %v4960_v55, %v4958_v34  ;;  %v4961_v49 = vmax.f32 %v4938_v29, %v4952_v62 }
 0x76b   : > { %v4954_v42 = vpop.f32.mrf.mxu0 }
 0x76c   : > { %v4962_v21 = vmax.f32 %v4940_v51, %v4954_v42  ;;  %v4965_v13 = vpack.c.bf16 %v4961_v49, %v4961_v49 }
 0x76e   : > { %v4966_v9 = vpack.c.bf16 %v4962_v21, %v4962_v21  ;;  %v4988_v41 = vsel %vm527_vm2, %v4965_v13, 0  ;;  %v9353_v13 = vld [vmem:[%s10325_s8 + $0x104] sm:$0xf] }
 0x770   : > { %9216 = vmatprep.subr.msk.bf16.mxu1 %vm527_vm2, %v4966_v9 }
 0x7db   : > { %v5763_v58 = vpop.f32.mrf.mxu0 }
 0x7dd   : > { %v5765_v19 = vpop.f32.mrf.mxu0 }
 0x7df   : > { %v5767_v12 = vpop.f32.mrf.mxu0 }
 0x7e1   : > { %v5769_v55 = vpop.f32.mrf.mxu0 }
 0x7fe   : > { %v5773_v22 = vpop.f32.mrf.mxu0 }
 0x800   : > { %v4192_v45 = vpop.f32.mrf.mxu1  ;;  %v5775_v62 = vpop.f32.mrf.mxu0 }
 0x802   : > { %v4194_v5 = vpop.f32.mrf.mxu1  ;;  %v5777_v25 = vpop.f32.mrf.mxu0 }
 0x803   : > { %v5792_v49 = vmax.f32 %v5763_v58, %v5777_v25  ;;  %v9343_v58 = vld [vmem:[%s10325_s8 + $0xe4] sm:$0xf]  ;;  %v9354_v25 = vld [vmem:[%s10325_s8 + $0x108] sm:$0xf] }
 0x804   : > { %v4196_v59 = vpop.f32.mrf.mxu1 }
 0x805   : > { %v4217_v50 = vrot.slane %v4196_v59, 6 }
 0x806   : > { %v4198_v60 = vpop.f32.mrf.mxu1 }
 0x807   : > { %v4220_v6 = vrot.slane %v4198_v60, 6 }
 0x808   : > { %v4202_v39 = vpop.f32.mrf.mxu1 }
 0x809   : > { %v4218_v18 = vrot.slane %v4202_v39, 6 }
 0x80a   : > { %v4204_v52 = vpop.f32.mrf.mxu1 }
 0x80b   : > { %v4221_v29 = vrot.slane %v4204_v52, 6  ;;  %v4219_v38 = vsel %vm875_vm12, %v4217_v50, %v4218_v18  ;;  %v9348_v50 = vld [vmem:[%s10325_s8 + $0xf4] sm:$0xf] }
 0x80c   : > { %v4206_v51 = vpop.f32.mrf.mxu1  ;;  %v4231_v23 = vmax.f32 %v4192_v45, %v4219_v38 }
 0x80d   : > { %v4223_v24 = vrot.slane %v4206_v51, 6  ;;  %v4222_v17 = vsel %vm875_vm12, %v4220_v6, %v4221_v29  ;;  %v9345_v51 = vld [vmem:[%s10325_s8 + $0xec] sm:$0x1] }
 0x80e   : > { %v4208_v7 = vpop.f32.mrf.mxu1  ;;  %v4232_v35 = vmax.f32 %v4194_v5, %v4222_v17 }
 0x80f   : > { %v4224_v4 = vsel %vm875_vm12, %v4218_v18, %v4223_v24  ;;  %v4225_v11 = vrot.slane %v4208_v7, 6  ;;  %v12927_v18 = vld [vmem:[%s10325_s8 + $0xe8] sm:$0xf]  ;;  %v9346_v24 = vld [vmem:[%s10325_s8 + $0xe0] sm:$0xe] }
 0x810   : > { %v4233_v8 = vmax.f32 %v4196_v59, %v4224_v4  ;;  %v12935_v7 = vcombine.low %v12927_v18, %v9345_v51  ;;  %v9360_v17 = vcombine.low %v9346_v24, %v9343_v58  ;;  %v12938_v4 = vld [vmem:[%s10325_s8 + $0xf8] sm:$0xf] }
 0x811   : > { %v4226_v34 = vsel %vm875_vm12, %v4221_v29, %v4225_v11  ;;  %v9342_v29 = vld [vmem:[%s10325_s8 + $0xe0] sm:$0xf]  ;;  %v9350_v11 = vld [vmem:[%s10325_s8 + $0xfc] sm:$0x1] }
 0x812   : > { %v4234_v61 = vmax.f32 %v4198_v60, %v4226_v34  ;;  %v4235_v20 = vpack.c.bf16 %v4233_v8, %v4231_v23  ;;  %v12930_v6 = vcombine.low %v9342_v29, %v9343_v58  ;;  %v12945_v34 = vcombine.low %v12938_v4, %v9350_v11 }
 0x813   : > { %v6127_v23 = vshll.u32 %v12935_v7, 16 }
 0x814   : > { %v4236_v56 = vpack.c.bf16 %v4234_v61, %v4232_v35  ;;  %v6120_v38 = vshrl.u32 %v12930_v6, 16  ;;  %v6122_v8 = vshll.u32 %v12930_v6, 16  ;;  %v9352_v61 = vld [vmem:[%s10325_s8 + $0x100] sm:$0xf]  ;;  %v6171_v11 = vshll.u32 %v12945_v34, 16 }
 0x816   : > { %9141 = vmatprep.mubr.msk.bf16.mxu1 %vm1016_vm13, %v4236_v56  ;;  %v6142_v56 = vrot.slane %v12935_v7, 1 }
 0x817   : > { %4393 = vmatmul.mubr.bf16.vlgmr.msra.gmra.mxu1 %v4235_v20  ;;  %v9365_v20 = vcombine.low %v9352_v61, %v9353_v13  ;;  %v6173_v61 = vrot.slane %v6171_v11, 1 }
 0x818   : > { %5006 = vmatpush1.bf16.msra.mxu1 %v4988_v41  ;;  %5025 = vmatprep.mubr.bf16.mxu1 %v14190_v28  ;;  %v9347_v41 = vld [vmem:[%s10325_s8 + $0xf0] sm:$0xf] }
 0x819   : > { %5007 = vmatprep.subr.bf16.mxu1 %v4964_v10  ;;  %v5779_v10 = vpop.f32.mrf.mxu0 }
 0x81a   : > { %v5793_v30 = vmax.f32 %v5765_v19, %v5779_v10  ;;  %v9351_v19 = vld [vmem:[%s10325_s8 + $0xf0] sm:$0xe] }
 0x81b   : > { %v9364_v35 = vcombine.low %v9351_v19, %v9348_v50 }
 0x81c   : > { %5008 = vmatpush1.bf16.msra.mxu1 %v4963_v43 }
 0x81d   : > { %5195 = vmatprep.subr.bf16.mxu1 %v12705_v27 }
 0x81f   : > { %9217 = vmatmul.mubr.msk.bf16.vlgmr.msra.gmra.mxu1 %vm378_vm3, %v10053_v32  ;;  %v6185_v32 = vrot.slane %v9364_v35, 1 }
 0x820   : > { %5035 = vmatprep.mubr.bf16.mxu1 %v14190_v28  ;;  %5196 = vmatpush1.bf16.msra.mxu1 %v12713_v44 }
 0x821   : > { %5197 = vmatprep.subr.bf16.mxu1 %v12719_v37 }
 0x824   : > { %5198 = vmatpush1.bf16.msra.mxu1 %v12727_v54 }
 0x825   : > { %5199 = vmatprep.subr.bf16.mxu1 %v12733_v1 }
 0x827   : > { %9218 = vmatmul.mubr.msk.bf16.gmra.mxu1 %vm378_vm3, %v10054_v53  ;;  %v5783_v43 = vpop.f32.mrf.mxu0  ;;  %v6208_v53 = vshrl.u32 %v9365_v20, 16 }
 0x828   : > { %5200 = vmatpush1.bf16.msra.mxu1 %v12742_v3  ;;  %v5794_v42 = vmax.f32 %v5767_v12, %v5783_v43  ;;  %v6141_v12 = vrot.slane %v9360_v17, 1  ;;  %v6210_v43 = vshll.u32 %v9365_v20, 16 }
 0x829   : > { %5201 = vmatprep.subr.bf16.mxu1 %v12748_v15  ;;  %v5785_v21 = vpop.f32.mrf.mxu0 }
 0x82a   : > { %v12906_v36 = vpack.c.bf16 %v5794_v42, %v5792_v49  ;;  %v5795_v9 = vmax.f32 %v5769_v55, %v5785_v21  ;;  %v6124_v55 = vrot.slane %v6122_v8, 1  ;;  %v6129_v49 = vrot.slane %v6127_v23, 1  ;;  %v9369_v23 = vld [vmem:[%s10325_s8 + $0x110] sm:$0xf] }
 0x82b   : > { %v5787_v45 = vpop.f32.mrf.mxu0  ;;  %v6143_v10 = vsel %vm282_vm0, %v6141_v12, %v6142_v56  ;;  %v9370_v12 = vld [vmem:[%s10325_s8 + $0x114] sm:$0xf] }
 0x82c   : > { %5202 = vmatpush1.bf16.msra.mxu1 %v12757_v40  ;;  %v12910_v5 = vpack.c.bf16 %v5795_v9, %v5793_v30  ;;  %v12912_v59 = vmax.f32 %v5773_v22, %v5787_v45  ;;  %v12953_v22 = vrot.slane %v12945_v34, 1  ;;  %v9355_v30 = vld [vmem:[%s10325_s8 + $0x10c] sm:$0x1]  ;;  %v6125_v42 = vor.u32 %v6124_v55, %v6120_v38  ;;  %6144 = vrot.lane.b32.xlu1 %v6143_v10, %s10260_s20  ;;  %v9356_v9 = vld [vmem:[%s10325_s8 + $0x100] sm:$0xe] }
 0x82d   : > { %5203 = vmatprep.subr.bf16.mxu1 %v12764_v33  ;;  %v5789_v60 = vpop.f32.mrf.mxu0  ;;  %v9367_v21 = vcombine.low %v9354_v25, %v9355_v30  ;;  %v6212_v45 = vrot.slane %v6210_v43, 1  ;;  %v9374_v55 = vcombine.low %v9369_v23, %v9370_v12  ;;  %v9372_v10 = vld [vmem:[%s10325_s8 + $0x11c] sm:$0x1]  ;;  %v6131_v43 = vshrl.u32 %v12935_v7, 16  ;;  %v4406_v23 = vld [vmem:[%s14159_s4 + $0x8] sm:$0x3f] }
 0x82e   : > { %v5797_v39 = vmax.f32 %v5775_v62, %v5789_v60  ;;  %v12955_v62 = vcombine.low %v9347_v41, %v9348_v50  ;;  %v6187_v58 = vsel %vm282_vm0, %v6185_v32, %v12953_v22  ;;  %v9371_v32 = vld [vmem:[%s10325_s8 + $0x118] sm:$0xf]  ;;  %v13006_v7 = vcombine.low %v12938_v4, %v12938_v4 }
 0x82f   : > { %v6215_v29 = vshll.u32 %v9367_v21, 16  ;;  %v6213_v51 = vor.u32 %v6212_v45, %v6208_v53  ;;  %v6230_v38 = vrot.slane %v9367_v21, 1  ;;  %v9376_v30 = vcombine.low %v9371_v32, %v9372_v10 }
 0x830   : > { %5204 = vmatpush1.bf16.msra.mxu1 %v12774_v31  ;;  %v5801_v52 = vpack.c.bf16 %v5797_v39, %v5797_v39  ;;  %v6166_v60 = vshll.u32 %v12955_v62, 16  ;;  %v9368_v39 = vcombine.low %v9356_v9, %v9353_v13  ;;  %6200 = vrot.lane.b32.xlu1 %v9365_v20, %s10257_s13  ;;  %v6164_v50 = vshrl.u32 %v12955_v62, 16 }
 0x831   : > { %5205 = vmatprep.subr.bf16.mxu1 %v12781_v57  ;;  %v6217_v24 = vrot.slane %v6215_v29, 1  ;;  %v6314_v53 = vshll.u32 %v9374_v55, 16  ;;  %v6319_v45 = vshll.u32 %v9376_v30, 16  ;;  %v6334_v11 = vrot.slane %v9376_v30, 1 }
 0x832   : > { %v6168_v17 = vrot.slane %v6166_v60, 1  ;;  %v6229_v19 = vrot.slane %v9368_v39, 1  ;;  %v9373_v60 = vld [vmem:[%s10325_s8 + $0x110] sm:$0xe]  ;;  %v6133_v39 = vor.u32 %v6131_v43, %v6129_v49 }
 0x833   : > { %v6218_v8 = vsel %vm259_vm1, %v6213_v51, %v6217_v24  ;;  %v6316_v9 = vrot.slane %v6314_v53, 1  ;;  %v6321_v29 = vrot.slane %v6319_v45, 1 }
 0x834   : > { %5206 = vmatpush1.bf16.msra.mxu1 %v12793_v48  ;;  %6222 = vrot.lane.b32.xlu1 %v6218_v8, %s10264_s22  ;;  %v6169_v35 = vor.u32 %v6168_v17, %v6164_v50  ;;  %v6231_v13 = vsel %vm282_vm0, %v6229_v19, %v6230_v38  ;;  %v9366_v50 = vcombine.low %v9354_v25, %v9354_v25 }
 0x835   : > { %5207 = vmatprep.subr.bf16.mxu1 %v12800_v26 }
 0x836   : > { %v6174_v41 = vsel %vm259_vm1, %v6169_v35, %v6173_v61 }
 0x838   : > { %5208 = vmatpush1.bf16.msra.mxu1 %v12812_v47  ;;  %6232 = vrot.lane.b32.xlu1 %v6231_v13, %s10261_s27 }
 0x839   : > { %5209 = vmatprep.subr.bf16.mxu1 %v12819_v14 }
 0x83c   : > { %5210 = vmatpush1.bf16.msra.mxu1 %v12830_v63  ;;  %6280 = vrot.lane.b32.xlu1 %v6187_v58, %s10260_s20 }
 0x83d   : > { %5223 = vmatprep.subr.bf16.mxu1 %v12838_v0 }
 0x840   : > { %5224 = vmatpush2.bf16.msra.mxu1 %v12847_v16  ;;  %6304 = vrot.lane.b32.xlu1 %v9374_v55, %s10257_s13 }
 0x841   : > { %5225 = vmatprep.subr.bf16.mxu1 %v12853_v2 }
 0x844   : > { %5226 = vmatpush2.bf16.msra.mxu1 %v12862_v46  ;;  %6284 = vrot.lane.b32.xlu1 %v9365_v20, %s10258_s16 }
 0x845   : > { %9314 = vmatprep.subr.msk.bf16.mxu1 %vm527_vm2, %v5801_v52  ;;  %v6130_v52 = vsel %vm259_vm1, %v6125_v42, %v6129_v49  ;;  %v6312_v42 = vshrl.u32 %v9374_v55, 16  ;;  %v6219_v49 = vshrl.u32 %v9367_v21, 16  ;;  %v9375_v21 = vcombine.low %v9371_v32, %v9371_v32 }
 0x846   : > { %6134 = vrot.lane.b32.xlu0 %v6130_v52, %s10262_s30 }
 0x847   : > { %v6317_v52 = vor.u32 %v6316_v9, %v6312_v42  ;;  %v6221_v19 = vor.u32 %v6219_v49, %v6217_v24  ;;  %v6323_v24 = vshrl.u32 %v9376_v30, 16 }
 0x848   : > { %6146 = vrot.lane.b32.xlu1 %v6142_v56, %s10260_s20  ;;  %v6175_v56 = vshrl.u32 %v12945_v34, 16 }
 0x849   : > { %v6322_v51 = vsel %vm259_vm1, %v6317_v52, %v6321_v29  ;;  %v6325_v4 = vor.u32 %v6323_v24, %v6321_v29 }
 0x84a   : > { %6188 = vrot.lane.b32.xlu0 %v6187_v58, %s10259_s17  ;;  %v9377_v58 = vcombine.low %v9373_v60, %v9370_v12  ;;  %v6177_v25 = vor.u32 %v6175_v56, %v6173_v61 }
 0x84c   : > { %v6333_v17 = vrot.slane %v9377_v58, 1  ;;  %6202 = vrot.lane.b32.xlu1 %v9366_v50, %s10257_s13 }
 0x84e   : > { %6156 = vrot.lane.b32.xlu0 %v12955_v62, %s10258_s16  ;;  %v6335_v20 = vsel %vm282_vm0, %v6333_v17, %v6334_v11 }
 0x850   : > { %6336 = vrot.lane.b32.xlu1 %v6335_v20, %s10261_s27 }
 0x852   : > { %6178 = vrot.lane.b32.xlu0 %v6174_v41, %s10263_s11 }
 0x854   : > { %6224 = vrot.lane.b32.xlu1 %v6221_v19, %s10264_s22 }
 0x856   : > { %6276 = vrot.lane.b32.xlu0 %v6174_v41, %s10262_s30 }
 0x858   : > { %6234 = vrot.lane.b32.xlu1 %v6230_v38, %s10261_s27 }
 0x85a   : > { %6292 = vrot.lane.b32.xlu0 %v6231_v13, %s10259_s17 }
 0x85c   : > { %6282 = vrot.lane.b32.xlu1 %v12953_v22, %s10260_s20 }
 0x85e   : > { %6136 = vrot.lane.b32.xlu0 %v6133_v39, %s10262_s30 }
 0x860   : > { %6306 = vrot.lane.b32.xlu1 %v9375_v21, %s10257_s13 }
 0x862   : > { %6326 = vrot.lane.b32.xlu0 %v6322_v51, %s10264_s22 }
 0x864   : > { %6328 = vrot.lane.b32.xlu1 %v6325_v4, %s10264_s22  ;;  %v5800_v4 = vpack.c.bf16 %v12912_v59, %v12912_v59  ;;  %v9446_v59 = vld [vmem:[%s10325_s8 + $0x114] sm:$0xf] }
 0x866   : > { %6190 = vrot.lane.b32.xlu0 %v12953_v22, %s10259_s17 }
 0x868   : > { %6338 = vrot.lane.b32.xlu1 %v6334_v11, %s10261_s27 }
 0x86a   : > { %6288 = vrot.lane.b32.xlu0 %v6218_v8, %s10263_s11  ;;  %v13026_v8 = vld [vmem:[%s14159_s4] sm:$0xff] }
 0x86e   : > { %6158 = vrot.lane.b32.xlu0 %v13006_v7, %s10258_s16 }
 0x872   : > { %6180 = vrot.lane.b32.xlu0 %v6177_v25, %s10263_s11 }
 0x876   : > { %6278 = vrot.lane.b32.xlu0 %v6177_v25, %s10262_s30 }
 0x87a   : > { %6294 = vrot.lane.b32.xlu0 %v6230_v38, %s10259_s17 }
 0x87e   : > { %6286 = vrot.lane.b32.xlu0 %v9366_v50, %s10258_s16 }
 0x882   : > { %6290 = vrot.lane.b32.xlu0 %v6221_v19, %s10263_s11 }
 0x8d7   : > { %v4394_v34 = vpop.f32.mrf.mxu1 }
 0x8d9   : > { %v4396_v22 = vpop.f32.mrf.mxu1 }
 0x8da   : > { %v4403_v35 = vmax.f32 %v4394_v34, %v4396_v22 }
 0x8db   : > { %v4398_v61 = vpop.f32.mrf.mxu1 }
 0x8dc   : > { %v4407_v38 = vadd.f32 %v13026_v8, %v4403_v35 }
 0x8dd   : > { %v4400_v13 = vpop.f32.mrf.mxu1 }
 0x8de   : > { %v4409_v12 = vmax.f32 %v4407_v38, 0.0  ;;  %v4404_v41 = vmax.f32 %v4398_v61, %v4400_v13  ;;  %v5823_v61 = vsel %vm527_vm2, %v5800_v4, 0  ;;  %v10055_v38 = vld [vmem:[%s14157_s2] sm:$0xff]   ;;  %v13103_v13 = vld [vmem:[%s10325_s8 + $0x118] sm:$0xf] }
 0x8df   : > { %v5027_v55 = vpop.f32.mrf.mxu1 }
 0x8e0   : > { %v9646_v32 = vpack.c.bf16 %v4409_v12, %v4409_v12  ;;  %v4408_v10 = vadd.f32 %v4406_v23, %v4404_v41  ;;  %v9448_v23 = vld [vmem:[%s10325_s8 + $0x11c] sm:$0x1]  ;;  %v9449_v41 = vld [vmem:[%s10325_s8 + $0x110] sm:$0xe] }
 0x8e1   : > { %v5029_v30 = vpop.f32.mrf.mxu1 }
 0x8e2   : > { %9144 = vst [vmem:[%s11175_s15 + $0x28] sm:$0xf] %v9646_v32  ;;  %v4410_v53 = vmax.f32 %v4408_v10, 0.0  ;;  %v13113_v32 = vld [vmem:[%s10325_s8 + $0x128] sm:$0xf] }
 0x8e3   : > { %v5031_v43 = vpop.f32.mrf.mxu1  ;;  %v9453_v10 = vld [vmem:[%s10325_s8 + $0x12c] sm:$0x1] }
 0x8e4   : > { %v9647_v42 = vpack.c.bf16 %v4410_v53, %v4410_v53  ;;  %v5052_v50 = vrot.slane %v5031_v43, 6  ;;  %v13118_v53 = vcombine.low %v13113_v32, %v9453_v10 }
 0x8e5   : > { %v5033_v9 = vpop.f32.mrf.mxu1 }
 0x8e6   : > { %9145 = vst [vmem:[%s11175_s15 + $0x2c] sm:$0x7] %v9647_v42  ;;  %v5055_v58 = vrot.slane %v5033_v9, 6 }
 0x8e7   : > { %v5037_v45 = vpop.f32.mrf.mxu1 }
 0x8e8   : > { %v5053_v52 = vrot.slane %v5037_v45, 6 }
 0x8e9   : > { %v5039_v60 = vpop.f32.mrf.mxu1 }
 0x8ea   : > { %v5056_v39 = vrot.slane %v5039_v60, 6  ;;  %v5054_v19 = vsel %vm875_vm12, %v5052_v50, %v5053_v52 }
 0x8eb   : > { %v5041_v29 = vpop.f32.mrf.mxu1  ;;  %v5066_v34 = vmax.f32 %v5027_v55, %v5054_v19  ;;  %v13110_v55 = vcombine.low %v13103_v13, %v9448_v23 }
 0x8ec   : > { %v5058_v51 = vrot.slane %v5041_v29, 6  ;;  %v5057_v11 = vsel %vm875_vm12, %v5055_v58, %v5056_v39 }
 0x8ed   : > { %v5043_v17 = vpop.f32.mrf.mxu1  ;;  %v5067_v21 = vmax.f32 %v5029_v30, %v5057_v11  ;;  %v9462_v30 = vcombine.low %v9449_v41, %v9446_v59  ;;  %v13121_v42 = vrot.slane %v13110_v55, 1 }
 0x8ee   : > { %v5059_v49 = vsel %vm875_vm12, %v5053_v52, %v5058_v51  ;;  %v5060_v20 = vrot.slane %v5043_v17, 6  ;;  %v7050_v52 = vshll.u32 %v13118_v53, 16  ;;  %v9454_v17 = vld [vmem:[%s10325_s8 + $0x120] sm:$0xe] }
 0x8ef   : > { %v5068_v56 = vmax.f32 %v5031_v43, %v5059_v49  ;;  %v7020_v45 = vrot.slane %v9462_v30, 1 }
 0x8f0   : > { %v5061_v25 = vsel %vm875_vm12, %v5056_v39, %v5060_v20  ;;  %v7052_v50 = vrot.slane %v7050_v52, 1 }
 0x8f1   : > { %v5069_v24 = vmax.f32 %v5033_v9, %v5061_v25  ;;  %v5070_v35 = vpack.c.bf16 %v5068_v56, %v5066_v34  ;;  %v9445_v9 = vld [vmem:[%s10325_s8 + $0x110] sm:$0xf]  ;;  %v7022_v58 = vsel %vm282_vm0, %v7020_v45, %v13121_v42  ;;  %v7006_v56 = vshll.u32 %v13110_v55, 16 }
 0x8f2   : > { %v13126_v29 = vcombine.low %v9445_v9, %v9446_v59 }
 0x8f3   : > { %v5071_v22 = vpack.c.bf16 %v5069_v24, %v5067_v21  ;;  %v13138_v24 = vrot.slane %v13118_v53, 1  ;;  %v7008_v4 = vrot.slane %v7006_v56, 1  ;;  %v5241_v56 = vld [vmem:[%s14159_s4 + $0x8] sm:$0x3f] }
 0x8f4   : > { %14193 = vst [vmem:[#allocation4_spill] sm:$0xff] %v13126_v29  ;;  %v7001_v11 = vshll.u32 %v13126_v29, 16  ;;  %v6999_v19 = vshrl.u32 %v13126_v29, 16 }
 0x8f5   : > { %9239 = vmatprep.mubr.msk.bf16.mxu1 %vm1016_vm13, %v5071_v22 }
 0x8f6   : > { %5228 = vmatmul.mubr.bf16.vlgmr.msra.gmra.mxu1 %v5070_v35  ;;  %v7003_v25 = vrot.slane %v7001_v11, 1 }
 0x8f7   : > { %5841 = vmatpush1.bf16.msra.mxu1 %v5823_v61  ;;  %5860 = vmatprep.mubr.bf16.mxu1 %v14190_v28  ;;  %v9467_v61 = vld [vmem:[%s10325_s8 + $0x130] sm:$0xf] }
 0x8f8   : > { %5842 = vmatprep.subr.bf16.mxu1 %v12910_v5  ;;  %v10056_v5 = vld [vmem:[%s14157_s2 + $0x8] sm:$0x3f]   ;;  %v7004_v34 = vor.u32 %v7003_v25, %v6999_v19 }
 0x8fa   : > { %v7009_v35 = vsel %vm259_vm1, %v7004_v34, %v7008_v4 }
 0x8fb   : > { %5843 = vmatpush1.bf16.msra.mxu1 %v12906_v36 }
 0x8fc   : > { %6030 = vmatprep.subr.bf16.mxu1 %v12705_v27  ;;  %v13077_v27 = vld [vmem:[%s14156_s1 + $0x74] ss:$8 sps:$4 sm:$0xff]  }
 0x8fe   : > { %9315 = vmatmul.mubr.msk.bf16.vlgmr.msra.gmra.mxu1 %vm378_vm3, %v10055_v38  ;;  %v9468_v38 = vld [vmem:[%s10325_s8 + $0x134] sm:$0xf] }
 0x8ff   : > { %5870 = vmatprep.mubr.bf16.mxu1 %v14190_v28  ;;  %6031 = vmatpush1.bf16.msra.mxu1 %v12713_v44  ;;  %v9440_v44 = vld [vmem:[%s10325_s8 + $0x100] sm:$0xf]  ;;  %v13419_v28 = vld [vmem:[%s14156_s1 + $0x94] ss:$8 sps:$4 sm:$0xff]  }
 0x900   : > { %6032 = vmatprep.subr.bf16.mxu1 %v12719_v37  ;;  %v9441_v37 = vld [vmem:[%s10325_s8 + $0x104] sm:$0xf] }
 0x903   : > { %6033 = vmatpush1.bf16.msra.mxu1 %v12727_v54  ;;  %v13082_v54 = vcombine.low %v9440_v44, %v9441_v37  ;;  %v13151_v44 = vpop.permute.xlu1 %6144 }
 0x904   : > { %6034 = vmatprep.subr.bf16.mxu1 %v12733_v1  ;;  %v13085_v1 = vld [vmem:[%s10325_s8 + $0x108] sm:$0xf] }
 0x905   : > { %14191 = vst [vmem:[#allocation2_spill] sm:$0xff] %v13082_v54  ;;  %14192 = vst [vmem:[#allocation6_spill] sm:$0xff] %v13085_v1 }
 0x906   : > { %9316 = vmatmul.mubr.msk.bf16.gmra.mxu1 %vm378_vm3, %v10056_v5  ;;  %v9472_v5 = vcombine.low %v9467_v61, %v9468_v38 }
 0x907   : > { %6035 = vmatpush1.bf16.msra.mxu1 %v12742_v3  ;;  %v9443_v3 = vld [vmem:[%s10325_s8 + $0x10c] sm:$0x1]  ;;  %v13165_v23 = vpop.permute.xlu1 %6200 }
 0x908   : > { %6036 = vmatprep.subr.bf16.mxu1 %v12748_v15  ;;  %v13089_v15 = vcombine.low %v13085_v1, %v9443_v3  ;;  %v9469_v3 = vld [vmem:[%s10325_s8 + $0x138] sm:$0xf] }
 0x90b   : > { %6037 = vmatpush1.bf16.msra.mxu1 %v12757_v40  ;;  %v6957_v40 = vshll.u32 %v13082_v54, 16  ;;  %v13178_v30 = vpop.permute.xlu1 %6222 }
 0x90c   : > { %6038 = vmatprep.subr.bf16.mxu1 %v12764_v33  ;;  %v9444_v33 = vld [vmem:[%s10325_s8 + $0x100] sm:$0xe] }
 0x90f   : > { %6039 = vmatpush1.bf16.msra.mxu1 %v12774_v31  ;;  %v9458_v31 = vcombine.low %v9444_v33, %v9441_v37  ;;  %v6966_v37 = vshrl.u32 %v13089_v15, 16  ;;  %v13157_v33 = vpop.permute.xlu0 %6134 }
 0x910   : > { %6040 = vmatprep.subr.bf16.mxu1 %v12781_v57  ;;  %v6955_v57 = vshrl.u32 %v13082_v54, 16  ;;  %v13440_v54 = vld [vmem:[%s14156_s1 + $0x90] ss:$8 sps:$4 sm:$0xff]  }
 0x913   : > { %6041 = vmatpush1.bf16.msra.mxu1 %v12793_v48  ;;  %v6959_v48 = vrot.slane %v6957_v40, 1  ;;  %v9470_v40 = vld [vmem:[%s10325_s8 + $0x13c] sm:$0x1] }
 0x914   : > { %6042 = vmatprep.subr.bf16.mxu1 %v12800_v26  ;;  %v6962_v26 = vshll.u32 %v13089_v15, 16 }
 0x917   : > { %6043 = vmatpush1.bf16.msra.mxu1 %v12812_v47  ;;  %v6976_v47 = vrot.slane %v9458_v31, 1  ;;  %v13159_v31 = vcombine.low %v9469_v3, %v9470_v40 }
 0x918   : > { %6044 = vmatprep.subr.bf16.mxu1 %v12819_v14  ;;  %v6977_v14 = vrot.slane %v13089_v15, 1 }
 0x91b   : > { %6045 = vmatpush1.bf16.msra.mxu1 %v12830_v63  ;;  %v6960_v63 = vor.u32 %v6959_v48, %v6955_v57  ;;  %v7147_v57 = vshrl.u32 %v9472_v5, 16  ;;  %v7149_v48 = vshll.u32 %v9472_v5, 16 }
 0x91c   : > { %6058 = vmatprep.subr.bf16.mxu1 %v12838_v0  ;;  %v6964_v0 = vrot.slane %v6962_v26, 1 }
 0x91e   : > { %v6965_v12 = vsel %vm259_vm1, %v6960_v63, %v6964_v0  ;;  %v6968_v26 = vor.u32 %v6966_v37, %v6964_v0  ;;  %v7151_v63 = vrot.slane %v7149_v48, 1  ;;  %v9464_v0 = vcombine.low %v13113_v32, %v13113_v32 }
 0x91f   : > { %6059 = vmatpush2.bf16.msra.mxu1 %v12847_v16  ;;  %v9450_v16 = vld [vmem:[%s10325_s8 + $0x120] sm:$0xf]  ;;  %6969 = vrot.lane.b32.xlu0 %v6965_v12, %s10262_s30  ;;  %v13168_v12 = vpop.permute.xlu0 %6188  ;;  %v13193_v32 = vcombine.low %v13103_v13, %v13103_v13 }
 0x920   : > { %6060 = vmatprep.subr.bf16.mxu1 %v12853_v2  ;;  %v9451_v2 = vld [vmem:[%s10325_s8 + $0x124] sm:$0xf] }
 0x921   : > { %v9463_v36 = vcombine.low %v9450_v16, %v9451_v2  ;;  %v9466_v20 = vcombine.low %v9454_v17, %v9451_v2  ;;  %v7154_v16 = vshll.u32 %v13159_v31, 16  ;;  %v7152_v2 = vor.u32 %v7151_v63, %v7147_v57  ;;  %14194 = vst [vmem:[#allocation3_spill] sm:$0xff] %v13193_v32 }
 0x922   : > { %v7158_v17 = vshrl.u32 %v13159_v31, 16 }
 0x923   : > { %6061 = vmatpush2.bf16.msra.mxu1 %v12862_v46  ;;  %v6978_v46 = vsel %vm282_vm0, %v6976_v47, %v6977_v14  ;;  %v7045_v43 = vshll.u32 %v9463_v36, 16  ;;  %v7043_v60 = vshrl.u32 %v9463_v36, 16  ;;  %7023 = vrot.lane.b32.xlu0 %v7022_v58, %s10259_s17  ;;  %v7064_v21 = vrot.slane %v9466_v20, 1  ;;  %v9471_v47 = vld [vmem:[%s10325_s8 + $0x130] sm:$0xe]  ;;  %v13182_v9 = vpop.permute.xlu0 %6156 }
 0x924   : > { %6564 = vmatprep.subr.bf16.mxu1 %v13077_v27  ;;  %6979 = vrot.lane.b32.xlu1 %v6978_v46, %s10260_s20  ;;  %v7156_v46 = vrot.slane %v7154_v16, 1  ;;  %v9475_v59 = vcombine.low %v9471_v47, %v9468_v38 }
 0x925   : > { %v7047_v39 = vrot.slane %v7045_v43, 1  ;;  %v7066_v22 = vsel %vm282_vm0, %v7064_v21, %v13138_v24  ;;  %v7054_v43 = vshrl.u32 %v13118_v53, 16  ;;  %v7010_v53 = vshrl.u32 %v13110_v55, 16 }
 0x926   : > { %v7157_v41 = vsel %vm259_vm1, %v7152_v2, %v7156_v46  ;;  %v7168_v10 = vrot.slane %v9475_v59, 1 }
 0x927   : > { %v7048_v51 = vor.u32 %v7047_v39, %v7043_v60  ;;  %6991 = vrot.lane.b32.xlu0 %v13126_v29, %s10258_s16  ;;  %v7056_v15 = vor.u32 %v7054_v43, %v7052_v50  ;;  %v13196_v60 = vpop.permute.xlu0 %6178  ;;  %v7012_v39 = vor.u32 %v7010_v53, %v7008_v4  ;;  %v7160_v4 = vor.u32 %v7158_v17, %v7156_v46  ;;  %v13253_v17 = vld [vmem:[%s14156_s1 + $0x70] ss:$8 sps:$4 sm:$0xff]  }
 0x928   : > { %7035 = vrot.lane.b32.xlu1 %v9463_v36, %s10257_s13 }
 0x929   : > { %v7053_v49 = vsel %vm259_vm1, %v7048_v51, %v7052_v50  ;;  %v9473_v50 = vcombine.low %v9469_v3, %v9469_v3 }
 0x92b   : > { %7013 = vrot.lane.b32.xlu0 %v7009_v35, %s10263_s11  ;;  %v13205_v51 = vpop.permute.xlu0 %6276 }
 0x92c   : > { %7057 = vrot.lane.b32.xlu1 %v7053_v49, %s10264_s22  ;;  %v6341_v29 = vsel %vm378_vm3, %v12955_v62, %v13205_v51 }
 0x92f   : > { %7111 = vrot.lane.b32.xlu0 %v7009_v35, %s10262_s30  ;;  %v13218_v25 = vpop.permute.xlu0 %6292 }
 0x930   : > { %7067 = vrot.lane.b32.xlu1 %v7066_v22, %s10261_s27 }
 0x933   : > { %7127 = vrot.lane.b32.xlu0 %v7066_v22, %s10259_s17  ;;  %v13227_v37 = vpop.permute.xlu0 %6136 }
 0x934   : > { %7115 = vrot.lane.b32.xlu1 %v7022_v58, %s10260_s20 }
 0x937   : > { %6971 = vrot.lane.b32.xlu0 %v6968_v26, %s10262_s30  ;;  %v13235_v48 = vpop.permute.xlu0 %6326 }
 0x938   : > { %7139 = vrot.lane.b32.xlu1 %v9472_v5, %s10257_s13 }
 0x93b   : > { %7161 = vrot.lane.b32.xlu0 %v7157_v41, %s10264_s22  ;;  %v6259_v41 = vsel %vm405_vm6, %v13168_v12, %v13165_v23 }
 0x93c   : > { %7119 = vrot.lane.b32.xlu1 %v9463_v36, %s10258_s16  ;;  %v7169_v36 = vrot.slane %v13159_v31, 1 }
 0x93e   : > { %v7170_v45 = vsel %vm282_vm0, %v7168_v10, %v7169_v36 }
 0x93f   : > { %7025 = vrot.lane.b32.xlu0 %v13121_v42, %s10259_s17 }
 0x940   : > { %6981 = vrot.lane.b32.xlu1 %v6977_v14, %s10260_s20  ;;  %v13188_v14 = vpop.permute.xlu1 %6232 }
 0x943   : > { %7123 = vrot.lane.b32.xlu0 %v7053_v49, %s10263_s11 }
 0x944   : > { %7037 = vrot.lane.b32.xlu1 %v9464_v0, %s10257_s13  ;;  %v13201_v52 = vpop.permute.xlu1 %6280 }
 0x945   : > { %v6346_v51 = vsel %vm384_vm4, %v6341_v29, %v13201_v52  ;;  %v13469_v29 = vld [vmem:[%s14156_s1 + $0x80] ss:$8 sps:$4 sm:$0xff]  }
 0x947   : > { %6993 = vrot.lane.b32.xlu0 %v13193_v32, %s10258_s16 }
 0x948   : > { %7171 = vrot.lane.b32.xlu1 %v7170_v45, %s10261_s27  ;;  %v13212_v20 = vpop.permute.xlu1 %6304 }
 0x949   : > { %v6362_v1 = vsel %vm405_vm6, %v13218_v25, %v13212_v20 }
 0x94b   : > { %7015 = vrot.lane.b32.xlu0 %v7012_v39, %s10263_s11 }
 0x94c   : > { %7059 = vrot.lane.b32.xlu1 %v7056_v15, %s10264_s22  ;;  %v13224_v38 = vpop.permute.xlu1 %6284 }
 0x94d   : > { %v6350_v52 = vsel %vm389_vm5, %v6346_v51, %v13224_v38 }
 0x94f   : > { %7113 = vrot.lane.b32.xlu0 %v7012_v39, %s10262_s30 }
 0x950   : > { %7069 = vrot.lane.b32.xlu1 %v13138_v24, %s10261_s27  ;;  %v13232_v57 = vpop.permute.xlu1 %6146 }
 0x953   : > { %7129 = vrot.lane.b32.xlu0 %v13138_v24, %s10259_s17 }
 0x954   : > { %7117 = vrot.lane.b32.xlu1 %v13121_v42, %s10260_s20  ;;  %v13242_v43 = vpop.permute.xlu1 %6202 }
 0x957   : > { %7121 = vrot.lane.b32.xlu0 %v9464_v0, %s10258_s16 }
 0x958   : > { %7141 = vrot.lane.b32.xlu1 %v9473_v50, %s10257_s13 }
 0x95b   : > { %7125 = vrot.lane.b32.xlu0 %v7056_v15, %s10263_s11  ;;  %v13245_v15 = vpop.permute.xlu0 %6190 }
 0x95c   : > { %7163 = vrot.lane.b32.xlu1 %v7160_v4, %s10264_s22  ;;  %v6261_v20 = vsel %vm405_vm6, %v13245_v15, %v13242_v43 }
 0x960   : > { %7173 = vrot.lane.b32.xlu1 %v7169_v36, %s10261_s27 }
 0x9b6   : > { %v5229_v58 = vpop.f32.mrf.mxu1 }
 0x9b8   : > { %v5231_v13 = vpop.f32.mrf.mxu1 }
 0x9b9   : > { %v5238_v55 = vmax.f32 %v5229_v58, %v5231_v13  ;;  %v6263_v58 = vsel %vm410_vm8, %v6259_v41, %v13178_v30  ;;  %v13265_v30 = vpop.permute.xlu0 %6288  ;;  %v13361_v41 = vld [vmem:[%s14156_s1] ss:$8 sps:$4 sm:$0xff]  }
 0x9ba   : > { %v5233_v11 = vpop.f32.mrf.mxu1 }
 0x9bb   : > { %v5242_v49 = vadd.f32 %v5238_v55, %v13026_v8 }
 0x9bc   : > { %v5235_v19 = vpop.f32.mrf.mxu1 }
 0x9bd   : > { %v5244_v21 = vmax.f32 %v5242_v49, 0.0  ;;  %v5239_v42 = vmax.f32 %v5233_v11, %v5235_v19  ;;  %v6267_v11 = vsel %vm415_vm9, %v6263_v58, %v13188_v14  ;;  %v13257_v19 = vpop.permute.xlu1 %6336  ;;  %v13278_v14 = vld [vmem:[%s14156_s1 + $0x54] ss:$8 sps:$4 sm:$0xff]   ;;  %v13282_v4 = vpop.permute.xlu0 %6158  ;;  %v13383_v58 = vld [vmem:[%s14156_s1 + $0xc0] ss:$8 sps:$4 sm:$0xff]  }
 0x9be   : > { %v5862_v34 = vpop.f32.mrf.mxu1 }
 0x9bf   : > { %v9648_v22 = vpack.c.bf16 %v5244_v21, %v5244_v21  ;;  %v5243_v8 = vadd.f32 %v5241_v56, %v5239_v42  ;;  %v13262_v56 = vld [vmem:[%s14156_s1 + $0x64] ss:$8 sps:$4 sm:$0xff]   ;;  %v13271_v21 = vld [vmem:[%s14156_s1 + $0x60] ss:$8 sps:$4 sm:$0xff]  }
 0x9c0   : > { %v5864_v35 = vpop.f32.mrf.mxu1 }
 0x9c1   : > { %9242 = vst [vmem:[%s11175_s15 + $0x30] sm:$0xf] %v9648_v22  ;;  %v5245_v61 = vmax.f32 %v5243_v8, 0.0  ;;  %v13280_v42 = vpop.permute.xlu1 %6224  ;;  %v13294_v22 = vld [vmem:[%s14156_s1 + $0x44] ss:$8 sps:$4 sm:$0xff]  }
 0x9c2   : > { %v5866_v5 = vpop.f32.mrf.mxu1  ;;  %v13300_v8 = vld [vmem:[%s14156_s1 + $0x40] ss:$8 sps:$4 sm:$0xff]  }
 0x9c3   : > { %v9649_v3 = vpack.c.bf16 %v5245_v61, %v5245_v61  ;;  %v5887_v46 = vrot.slane %v5866_v5, 6  ;;  %v13308_v61 = vld [vmem:[%s14156_s1 + $0x34] ss:$8 sps:$4 sm:$0xff]  }
 0x9c4   : > { %v5868_v40 = vpop.f32.mrf.mxu1 }
 0x9c5   : > { %9243 = vst [vmem:[%s11175_s15 + $0x34] sm:$0x7] %v9649_v3  ;;  %v5890_v16 = vrot.slane %v5868_v40, 6  ;;  %v13316_v3 = vld [vmem:[%s14156_s1 + $0x30] ss:$8 sps:$4 sm:$0xff]  }
 0x9c6   : > { %v5872_v31 = vpop.f32.mrf.mxu1 }
 0x9c7   : > { %v5888_v47 = vrot.slane %v5872_v31, 6 }
 0x9c8   : > { %v5874_v24 = vpop.f32.mrf.mxu1 }
 0x9c9   : > { %v5891_v26 = vrot.slane %v5874_v24, 6  ;;  %v5889_v45 = vsel %vm875_vm12, %v5887_v46, %v5888_v47 }
 0x9ca   : > { %v5876_v63 = vpop.f32.mrf.mxu1  ;;  %v5901_v23 = vmax.f32 %v5862_v34, %v5889_v45  ;;  %v13288_v34 = vld [vmem:[%s14156_s1 + $0x50] ss:$8 sps:$4 sm:$0xff]  }
 0x9cb   : > { %v5893_v2 = vrot.slane %v5876_v63, 6  ;;  %v5892_v0 = vsel %vm875_vm12, %v5890_v16, %v5891_v26  ;;  %v13344_v63 = vld [vmem:[%s14156_s1 + $0x10] ss:$8 sps:$4 sm:$0xff]  }
 0x9cc   : > { %v5878_v59 = vpop.f32.mrf.mxu1  ;;  %v5902_v13 = vmax.f32 %v5864_v35, %v5892_v0  ;;  %v13302_v35 = vpop.permute.xlu1 %6234 }
 0x9cd   : > { %v5894_v10 = vsel %vm875_vm12, %v5888_v47, %v5893_v2  ;;  %v5895_v36 = vrot.slane %v5878_v59, 6  ;;  %v13338_v47 = vld [vmem:[%s14156_s1 + $0x14] ss:$8 sps:$4 sm:$0xff]   ;;  %v13350_v2 = vld [vmem:[%s14156_s1 + $0x4] ss:$8 sps:$4 sm:$0xff]  }
 0x9ce   : > { %v5903_v53 = vmax.f32 %v5866_v5, %v5894_v10  ;;  %v13310_v5 = vpop.permute.xlu0 %6180  ;;  %v6415_v59 = vld [vmem:[%s14156_s1 + $0xd0] sm:$0xff] }
 0x9cf   : > { %v5896_v39 = vsel %vm875_vm12, %v5891_v26, %v5895_v36  ;;  %v13332_v26 = vld [vmem:[%s14156_s1 + $0x20] ss:$8 sps:$4 sm:$0xff]   ;;  %v13364_v0 = vcombine.high %v6415_v59, %v6415_v59  ;;  %v9404_v10 = vcombine.low %v6415_v59, %v6415_v59 }
 0x9d0   : > { %v5904_v55 = vmax.f32 %v5868_v40, %v5896_v39  ;;  %v5905_v49 = vpack.c.bf16 %v5903_v53, %v5901_v23  ;;  %v13322_v40 = vld [vmem:[%s14156_s1 + $0x24] ss:$8 sps:$4 sm:$0xff]   ;;  %v13324_v31 = vpop.permute.xlu1 %6282 }
 0x9d1   : > { %v13372_v53 = vsel %vm527_vm2, %v9404_v10, 0  ;;  %v13377_v39 = vld [vmem:[%s14156_s1 + $0xc4] ss:$8 sps:$4 sm:$0xff]   ;;  %v13413_v10 = vld [vmem:[%s14156_s1 + $0xa0] ss:$8 sps:$4 sm:$0xff]  }
 0x9d2   : > { %v5906_v50 = vpack.c.bf16 %v5904_v55, %v5902_v13  ;;  %v13326_v24 = vpop.permute.xlu0 %6278  ;;  %v13389_v55 = vld [vmem:[%s14156_s1 + $0xb4] ss:$8 sps:$4 sm:$0xff]  }
 0x9d3   : > { %v6344_v38 = vsel %vm378_vm3, %v13006_v7, %v13326_v24 }
 0x9d4   : > { %9337 = vmatprep.mubr.msk.bf16.mxu1 %vm1016_vm13, %v5906_v50  ;;  %v6307_v16 = vpop.permute.xlu1 %6306  ;;  %v13397_v50 = vld [vmem:[%s14156_s1 + $0xb0] ss:$8 sps:$4 sm:$0xff]   ;;  %v6348_v7 = vsel %vm384_vm4, %v6344_v38, %v13324_v31 }
 0x9d5   : > { %6063 = vmatmul.mubr.bf16.vlgmr.msra.gmra.mxu1 %v5905_v49  ;;  %14195 = vst [vmem:[#allocation7_spill] sm:$0xff] %v13397_v50 }
 0x9d6   : > { %6565 = vmatpush1.bf16.msra.mxu1 %v13253_v17  ;;  %9407 = vmatprep.mubr.msk.bf16.mxu1 %vm703_vm10, %v6267_v11  ;;  %v13352_v46 = vpop.permute.xlu0 %6294  ;;  %v13403_v11 = vld [vmem:[%s14156_s1 + $0xa4] ss:$8 sps:$4 sm:$0xff]  }
 0x9d7   : > { %6566 = vmatprep.subr.bf16.mxu1 %v13262_v56  ;;  %14196 = vst [vmem:[#allocation8_spill] sm:$0xff] %v13403_v11 }
 0x9d8   : > { %v6329_v36 = vpop.permute.xlu1 %6328 }
 0x9da   : > { %6567 = vmatpush1.bf16.msra.mxu1 %v13271_v21  ;;  %v13366_v45 = vpop.permute.xlu0 %6286 }
 0x9db   : > { %6568 = vmatprep.subr.bf16.mxu1 %v13278_v14  ;;  %v6352_v31 = vsel %vm389_vm5, %v6348_v7, %v13366_v45 }
 0x9dc   : > { %v6339_v13 = vpop.permute.xlu1 %6338 }
 0x9de   : > { %6569 = vmatpush1.bf16.msra.mxu1 %v13288_v34  ;;  %v13391_v23 = vpop.permute.xlu0 %6290 }
 0x9df   : > { %6570 = vmatprep.subr.bf16.mxu1 %v13294_v22 }
 0x9e0   : > { %v13405_v49 = vpop.permute.xlu1 %6979 }
 0x9e1   : > { %14197 = vst [vmem:[#allocation5_spill] sm:$0xff] %v13405_v49  ;;  %v6237_v49 = vsel %vm378_vm3, %v12930_v6, %v13157_v33  ;;  %v6366_v33 = vsel %vm410_vm8, %v6362_v1, %v13235_v48 }
 0x9e2   : > { %6571 = vmatpush1.bf16.msra.mxu1 %v13300_v8  ;;  %v13407_v59 = vpop.permute.xlu0 %6969  ;;  %v6242_v6 = vsel %vm384_vm4, %v6237_v49, %v13151_v44  ;;  %v6370_v48 = vsel %vm415_vm9, %v6366_v33, %v13257_v19  ;;  %v6364_v19 = vsel %vm405_vm6, %v13352_v46, %v6307_v16 }
 0x9e3   : > { %6572 = vmatprep.subr.bf16.mxu1 %v13308_v61  ;;  %v6246_v1 = vsel %vm389_vm5, %v6242_v6, %v13182_v9  ;;  %v6378_v6 = vrot.slane %v6370_v48, 4 }
 0x9e4   : > { %v13421_v32 = vpop.permute.xlu1 %7035 }
 0x9e6   : > { %6573 = vmatpush1.bf16.msra.mxu1 %v13316_v3 }
 0x9e7   : > { %6574 = vmatprep.subr.bf16.mxu1 %v13322_v40 }
 0x9e8   : > { %v7058_v62 = vpop.permute.xlu1 %7057 }
 0x9ea   : > { %6575 = vmatpush1.bf16.msra.mxu1 %v13332_v26 }
 0x9eb   : > { %6576 = vmatprep.subr.bf16.mxu1 %v13338_v47 }
 0x9ec   : > { %v7068_v43 = vpop.permute.xlu1 %7067 }
 0x9ee   : > { %6577 = vmatpush1.bf16.msra.mxu1 %v13344_v63 }
 0x9ef   : > { %6578 = vmatprep.subr.bf16.mxu1 %v13350_v2 }
 0x9f0   : > { %v13496_v16 = vpop.permute.xlu1 %7115 }
 0x9f2   : > { %6579 = vmatpush1.bf16.msra.mxu1 %v13361_v41 }
 0x9f3   : > { %9406 = vmatprep.subr.msk.bf16.mxu1 %vm527_vm2, %v13364_v0 }
 0x9f6   : > { %6585 = vmatpush2.bf16.msra.mxu1 %v13372_v53 }
 0x9f7   : > { %6586 = vmatprep.subr.bf16.mxu1 %v13377_v39 }
 0x9fa   : > { %6587 = vmatpush2.bf16.msra.mxu1 %v13383_v58 }
 0x9fb   : > { %6588 = vmatprep.subr.bf16.mxu1 %v13389_v55 }
 0x9fe   : > { %6589 = vmatpush2.bf16.msra.mxu1 %v13397_v50  ;;  %v13434_v50 = vpop.permute.xlu0 %7023 }
 0x9ff   : > { %6590 = vmatprep.subr.bf16.mxu1 %v13403_v11  ;;  %v9358_v11 = vcombine.low %v12927_v18, %v12927_v18  ;;  %v13450_v18 = vld [vmem:[%s14156_s1 + $0x84] ss:$8 sps:$4 sm:$0xff]  }
 0xa01   : > { %v6240_v44 = vsel %vm378_vm3, %v9358_v11, %v13227_v37  ;;  %v6265_v37 = vsel %vm410_vm8, %v6261_v20, %v13280_v42  ;;  %v6250_v11 = vsel %vm394_vm7, %v6246_v1, %v13196_v60  ;;  %v6354_v42 = vsel %vm394_vm7, %v6350_v52, %v13265_v30 }
 0xa02   : > { %6591 = vmatpush2.bf16.msra.mxu1 %v13413_v10  ;;  %v13459_v49 = vpop.permute.xlu0 %6991  ;;  %v6244_v9 = vsel %vm384_vm4, %v6240_v44, %v13232_v57  ;;  %v6269_v51 = vsel %vm415_vm9, %v6265_v37, %v13302_v35  ;;  %v6368_v60 = vsel %vm410_vm8, %v6364_v19, %v6329_v36  ;;  %v6254_v30 = vsel %vm399_vm11, %v6250_v11, %v13168_v12  ;;  %v7140_v12 = vpop.permute.xlu1 %7139 }
 0xa03   : > { %6592 = vmatprep.subr.bf16.mxu1 %v13419_v28  ;;  %v6248_v57 = vsel %vm389_vm5, %v6244_v9, %v13282_v4  ;;  %v6358_v35 = vsel %vm399_vm11, %v6354_v42, %v13218_v25  ;;  %v6388_v24 = vsel %vm527_vm2, %v6269_v51, %v6378_v6 }
 0xa04   : > { %v6252_v4 = vsel %vm394_vm7, %v6248_v57, %v13310_v5  ;;  %v6377_v25 = vrot.slane %v6358_v35, 4  ;;  %v6356_v5 = vsel %vm394_vm7, %v6352_v31, %v13391_v23 }
 0xa05   : > { %v6257_v44 = vsel %vm399_vm11, %v6252_v4, %v13245_v15  ;;  %v7094_v15 = vsel %vm405_vm6, %v13434_v50, %v13421_v32 }
 0xa06   : > { %6593 = vmatpush2.bf16.msra.mxu1 %v13440_v54  ;;  %v13485_v33 = vpop.permute.xlu0 %7013  ;;  %v6385_v45 = vsel %vm527_vm2, %v6257_v44, %v6377_v25  ;;  %v7098_v23 = vsel %vm410_vm8, %v7094_v15, %v7058_v62 }
 0xa07   : > { %6594 = vmatprep.subr.bf16.mxu1 %v13450_v18 }
 0xa0a   : > { %6595 = vmatpush2.bf16.msra.mxu1 %v13469_v29  ;;  %v7112_v20 = vpop.permute.xlu0 %7111 }
 0xa0b   : > { %7399 = vmatprep.subr.bf16.mxu1 %v13077_v27  ;;  %v6372_v27 = vsel %vm415_vm9, %v6368_v60, %v6339_v13 }
 0xa0c   : > { %v6381_v36 = vrot.slane %v6372_v27, 4 }
 0xa0d   : > { %6597 = vmatmul.mubr.bf16.vlgmr.msra.gmra.mxu1 %v6254_v30 }
 0xa0e   : > { %9408 = vmatprep.mubr.msk.bf16.mxu1 %vm703_vm10, %v6388_v24  ;;  %7400 = vmatpush1.bf16.msra.mxu1 %v13253_v17  ;;  %v13515_v1 = vpop.permute.xlu0 %7127  ;;  %v7120_v17 = vpop.permute.xlu1 %7119  ;;  %v6382_v13 = vsel %vm527_vm2, %v6378_v6, %v6381_v36 }
 0xa0f   : > { %7401 = vmatprep.subr.bf16.mxu1 %v13262_v56  ;;  %v6360_v56 = vsel %vm399_vm11, %v6356_v5, %v13352_v46  ;;  %v7102_v46 = vsel %vm415_vm9, %v7098_v23, %v7068_v43  ;;  %v14200_v43 = vld [vmem:[#allocation4_spill] sm:$0xff] }
 0xa12   : > { %7402 = vmatpush1.bf16.msra.mxu1 %v13271_v21  ;;  %v6972_v48 = vpop.permute.xlu0 %6971  ;;  %v6982_v21 = vpop.permute.xlu1 %6981 }
 0xa13   : > { %7403 = vmatprep.subr.bf16.mxu1 %v13278_v14  ;;  %v6379_v14 = vrot.slane %v6360_v56, 4 }
 0xa15   : > { %6607 = vmatmul.mubr.bf16.gmra.mxu1 %v6385_v45  ;;  %v6380_v32 = vsel %vm527_vm2, %v6377_v25, %v6379_v14 }
 0xa16   : > { %9409 = vmatprep.mubr.msk.bf16.mxu1 %vm703_vm10, %v6382_v13  ;;  %7404 = vmatpush1.bf16.msra.mxu1 %v13288_v34  ;;  %v7162_v52 = vpop.permute.xlu0 %7161  ;;  %v7038_v37 = vpop.permute.xlu1 %7037 }
 0xa17   : > { %7405 = vmatprep.subr.bf16.mxu1 %v13294_v22 }
 0xa1a   : > { %7406 = vmatpush1.bf16.msra.mxu1 %v13300_v8  ;;  %v13536_v9 = vpop.permute.xlu0 %7025  ;;  %v7172_v34 = vpop.permute.xlu1 %7171 }
 0xa1b   : > { %7407 = vmatprep.subr.bf16.mxu1 %v13308_v61  ;;  %v7096_v42 = vsel %vm405_vm6, %v13536_v9, %v7038_v37 }
 0xa1d   : > { %6617 = vmatmul.mubr.bf16.gmra.mxu1 %v6380_v32  ;;  %v13614_v32 = vld [vmem:[%s10325_s8 + $0x128] sm:$0xf] }
 0xa1e   : > { %7408 = vmatpush1.bf16.msra.mxu1 %v13316_v3  ;;  %9505 = vmatprep.mubr.msk.bf16.mxu1 %vm703_vm10, %v7102_v46  ;;  %v7124_v22 = vpop.permute.xlu0 %7123  ;;  %v7060_v8 = vpop.permute.xlu1 %7059  ;;  %v9539_v46 = vld [vmem:[%s10325_s8 + $0x124] sm:$0xf] }
 0xa1f   : > { %7409 = vmatprep.subr.bf16.mxu1 %v13322_v40  ;;  %v7100_v35 = vsel %vm410_vm8, %v7096_v42, %v7060_v8  ;;  %v9542_v8 = vld [vmem:[%s10325_s8 + $0x120] sm:$0xe]  ;;  %v9551_v42 = vld [vmem:[%s10325_s8 + $0x14c] sm:$0x1] }
 0xa22   : > { %7410 = vmatpush1.bf16.msra.mxu1 %v13332_v26  ;;  %v6994_v61 = vpop.permute.xlu0 %6993  ;;  %v7070_v62 = vpop.permute.xlu1 %7069 }
 0xa23   : > { %7411 = vmatprep.subr.bf16.mxu1 %v13338_v47  ;;  %v7104_v31 = vsel %vm415_vm9, %v7100_v35, %v7070_v62 }
 0xa26   : > { %7412 = vmatpush1.bf16.msra.mxu1 %v13344_v63  ;;  %v7016_v3 = vpop.permute.xlu0 %7015  ;;  %v7118_v40 = vpop.permute.xlu1 %7117  ;;  %v14198_v63 = vld [vmem:[#allocation2_spill] sm:$0xff] }
 0xa27   : > { %7413 = vmatprep.subr.bf16.mxu1 %v13350_v2  ;;  %v7072_v2 = vsel %vm378_vm3, %v14198_v63, %v13407_v59 }
 0xa2a   : > { %7414 = vmatpush1.bf16.msra.mxu1 %v13361_v41  ;;  %v7114_v26 = vpop.permute.xlu0 %7113  ;;  %v7142_v47 = vpop.permute.xlu1 %7141  ;;  %v7197_v41 = vsel %vm405_vm6, %v13515_v1, %v7140_v12 }
 0xa2b   : > { %9504 = vmatprep.subr.msk.bf16.mxu1 %vm527_vm2, %v13364_v0  ;;  %v14199_v0 = vld [vmem:[#allocation7_spill] sm:$0xff]  ;;  %v7201_v6 = vsel %vm410_vm8, %v7197_v41, %v7162_v52  ;;  %v9538_v52 = vld [vmem:[%s10325_s8 + $0x120] sm:$0xf] }
 0xa2c   : > { %v7205_v7 = vsel %vm415_vm9, %v7201_v6, %v7172_v34  ;;  %v13611_v37 = vcombine.low %v9538_v52, %v9539_v46  ;;  %v9548_v41 = vld [vmem:[%s10325_s8 + $0x140] sm:$0xf] }
 0xa2e   : > { %7420 = vmatpush2.bf16.msra.mxu1 %v13372_v53  ;;  %v7176_v53 = vsel %vm378_vm3, %v14200_v43, %v7112_v20  ;;  %v7130_v38 = vpop.permute.xlu0 %7129  ;;  %v7164_v57 = vpop.permute.xlu1 %7163  ;;  %v14204_v20 = vld [vmem:[#allocation3_spill] sm:$0xff]  ;;  %v7790_v62 = vshrl.u32 %v13611_v37, 16  ;;  %v9544_v43 = vld [vmem:[%s10325_s8 + $0x134] sm:$0xf] }
 0xa2f   : > { %7421 = vmatprep.subr.bf16.mxu1 %v13377_v39  ;;  %v14201_v39 = vld [vmem:[#allocation6_spill] sm:$0xff]  ;;  %v7181_v59 = vsel %vm384_vm4, %v7176_v53, %v13496_v16 }
 0xa30   : > { %v9456_v19 = vcombine.low %v14201_v39, %v14201_v39  ;;  %v7185_v30 = vsel %vm389_vm5, %v7181_v59, %v7120_v17  ;;  %v13648_v59 = vld [vmem:[%s10325_s8 + $0x148] sm:$0xf] }
 0xa31   : > { %v7189_v27 = vsel %vm394_vm7, %v7185_v30, %v7124_v22  ;;  %v7792_v22 = vshll.u32 %v13611_v37, 16  ;;  %v9543_v30 = vld [vmem:[%s10325_s8 + $0x130] sm:$0xf] }
 0xa32   : > { %7422 = vmatpush2.bf16.msra.mxu1 %v13383_v58  ;;  %v14202_v58 = vld [vmem:[#allocation8_spill] sm:$0xff]  ;;  %v7075_v51 = vsel %vm378_vm3, %v9456_v19, %v6972_v48  ;;  %v7122_v4 = vpop.permute.xlu0 %7121  ;;  %v7174_v25 = vpop.permute.xlu1 %7173 }
 0xa33   : > { %7423 = vmatprep.subr.bf16.mxu1 %v13389_v55  ;;  %v14203_v55 = vld [vmem:[#allocation5_spill] sm:$0xff]  ;;  %v7079_v16 = vsel %vm384_vm4, %v7075_v51, %v6982_v21  ;;  %v13652_v51 = vcombine.low %v13648_v59, %v9551_v42 }
 0xa34   : > { %v7077_v11 = vsel %vm384_vm4, %v7072_v2, %v14203_v55  ;;  %v7083_v12 = vsel %vm389_vm5, %v7079_v16, %v6994_v61  ;;  %v9556_v61 = vcombine.low %v9542_v8, %v9539_v46  ;;  %v9546_v55 = vld [vmem:[%s10325_s8 + $0x13c] sm:$0x1]  ;;  %v10152_v46 = vld [vmem:[%s14156_s1 + $0x64] ss:$8 sps:$4 sm:$0xff]  }
 0xa35   : > { %v7081_v60 = vsel %vm389_vm5, %v7077_v11, %v13459_v49  ;;  %v7179_v49 = vsel %vm378_vm3, %v14204_v20, %v7114_v26  ;;  %v7087_v5 = vsel %vm394_vm7, %v7083_v12, %v7016_v3  ;;  %v7794_v3 = vrot.slane %v7792_v22, 1  ;;  %v9547_v11 = vld [vmem:[%s10325_s8 + $0x130] sm:$0xe] }
 0xa36   : > { %7424 = vmatpush2.bf16.msra.mxu1 %v14199_v0  ;;  %v7085_v24 = vsel %vm394_vm7, %v7081_v60, %v13485_v33  ;;  %v7193_v33 = vsel %vm399_vm11, %v7189_v27, %v13515_v1  ;;  %v7126_v56 = vpop.permute.xlu0 %7125  ;;  %v7811_v26 = vrot.slane %v9556_v61, 1  ;;  %v9549_v0 = vld [vmem:[%s10325_s8 + $0x144] sm:$0xf]  ;;  %v9552_v27 = vld [vmem:[%s10325_s8 + $0x140] sm:$0xe] }
 0xa37   : > { %7425 = vmatprep.subr.bf16.mxu1 %v14202_v58  ;;  %v7089_v36 = vsel %vm399_vm11, %v7085_v24, %v13434_v50  ;;  %v7212_v50 = vrot.slane %v7193_v33, 4  ;;  %v7795_v63 = vor.u32 %v7794_v3, %v7790_v62  ;;  %v13635_v19 = vcombine.low %v9548_v41, %v9549_v0  ;;  %v13638_v58 = vld [vmem:[%s10325_s8 + $0x138] sm:$0xf]  ;;  %v10150_v61 = vld [vmem:[%s14156_s1 + $0x60] ss:$8 sps:$4 sm:$0xff]  }
 0xa38   : > { %v13645_v6 = vcombine.low %v13638_v58, %v9546_v55  ;;  %v13661_v24 = vcombine.low %v9543_v30, %v9544_v43  ;;  %v9564_v12 = vcombine.low %v9552_v27, %v9549_v0  ;;  %v13683_v33 = vrot.slane %v13652_v51, 1  ;;  %v9569_v3 = vld [vmem:[%s10325_s8 + $0x150] sm:$0xe]  ;;  %v10158_v0 = vld [vmem:[%s14156_s1 + $0x44] ss:$8 sps:$4 sm:$0xff]  }
 0xa39   : > { %v7878_v35 = vshrl.u32 %v13635_v19, 16  ;;  %v13773_v42 = vcombine.low %v13638_v58, %v13638_v58  ;;  %v10170_v30 = vld [vmem:[%s14156_s1 + $0x4] ss:$8 sps:$4 sm:$0xff]  }
 0xa3a   : > { %7426 = vmatpush2.bf16.msra.mxu1 %v13413_v10  ;;  %v7199_v10 = vsel %vm405_vm6, %v7130_v38, %v7142_v47 }
 0xa3b   : > { %7427 = vmatprep.subr.bf16.mxu1 %v13419_v28  ;;  %v7213_v28 = vrot.slane %v7205_v7, 4  ;;  %v13656_v7 = vrot.slane %v13645_v6, 1 }
 0xa3d   : > { %v7223_v44 = vsel %vm527_vm2, %v7104_v31, %v7213_v28 }
 0xa3e   : > { %7428 = vmatpush2.bf16.msra.mxu1 %v13440_v54  ;;  %v7203_v54 = vsel %vm410_vm8, %v7199_v10, %v7164_v57  ;;  %v7880_v57 = vshll.u32 %v13635_v19, 16  ;;  %v7885_v10 = vshll.u32 %v13652_v51, 16 }
 0xa3f   : > { %7429 = vmatprep.subr.bf16.mxu1 %v13450_v18  ;;  %v7183_v18 = vsel %vm384_vm4, %v7179_v49, %v7118_v40  ;;  %v7207_v17 = vsel %vm415_vm9, %v7203_v54, %v7174_v25  ;;  %v7834_v54 = vshrl.u32 %v13661_v24, 16 }
 0xa40   : > { %v7187_v45 = vsel %vm389_vm5, %v7183_v18, %v7122_v4  ;;  %v7216_v1 = vrot.slane %v7207_v17, 4  ;;  %v7882_v16 = vrot.slane %v7880_v57, 1  ;;  %v13668_v49 = vrot.slane %v7885_v10, 1  ;;  %v10162_v57 = vld [vmem:[%s14156_s1 + $0x20] ss:$8 sps:$4 sm:$0xff]  }
 0xa41   : > { %v7191_v13 = vsel %vm394_vm7, %v7187_v45, %v7126_v56  ;;  %v7836_v4 = vshll.u32 %v13661_v24, 16  ;;  %v7899_v18 = vrot.slane %v9564_v12, 1  ;;  %v9565_v56 = vld [vmem:[%s10325_s8 + $0x150] sm:$0xf]  ;;  %v10168_v10 = vld [vmem:[%s14156_s1] ss:$8 sps:$4 sm:$0xff]  }
 0xa42   : > { %7430 = vmatpush2.bf16.msra.mxu1 %v13469_v29  ;;  %v7092_v29 = vsel %vm399_vm11, %v7087_v5, %v13536_v9  ;;  %v7195_v48 = vsel %vm399_vm11, %v7191_v13, %v7130_v38  ;;  %v7217_v21 = vsel %vm527_vm2, %v7213_v28, %v7216_v1  ;;  %v9541_v9 = vld [vmem:[%s10325_s8 + $0x12c] sm:$0x1]  ;;  %v9560_v38 = vcombine.low %v9547_v11, %v9544_v43  ;;  %v13699_v13 = vld [vmem:[%s10325_s8 + $0x158] sm:$0xf] }
 0xa43   : > { %v7220_v15 = vsel %vm527_vm2, %v7092_v29, %v7212_v50  ;;  %v7214_v14 = vrot.slane %v7195_v48, 4  ;;  %v13618_v34 = vcombine.low %v13614_v32, %v9541_v9  ;;  %v7883_v20 = vor.u32 %v7882_v16, %v7878_v35  ;;  %v10159_v11 = vld [vmem:[%s14156_s1 + $0x30] ss:$8 sps:$4 sm:$0xff]  }
 0xa44   : > { %v7855_v60 = vrot.slane %v9560_v38, 1  ;;  %v7838_v25 = vrot.slane %v7836_v4, 1  ;;  %v7901_v17 = vsel %vm282_vm0, %v7899_v18, %v13683_v33  ;;  %v13743_v43 = vcombine.low %v13648_v59, %v13648_v59  ;;  %v10164_v38 = vld [vmem:[%s14156_s1 + $0x24] ss:$8 sps:$4 sm:$0xff]   ;;  %v8085_v35 = vld [vmem:[%s14156_s1 + $0xd0] sm:$0xff] }
 0xa45   : > { %7432 = vmatmul.mubr.bf16.vlgmr.msra.gmra.mxu1 %v7089_v36  ;;  %v7215_v23 = vsel %vm527_vm2, %v7212_v50, %v7214_v14  ;;  %v7797_v40 = vshll.u32 %v13618_v34, 16  ;;  %v7812_v47 = vrot.slane %v13618_v34, 1  ;;  %v13674_v31 = vsel %vm259_vm1, %v7883_v20, %v13668_v49  ;;  %v9566_v50 = vld [vmem:[%s10325_s8 + $0x154] sm:$0xf]  ;;  %v6075_v4 = vld [vmem:[%s14159_s4] sm:$0xff] }
 0xa46   : > { %9506 = vmatprep.mubr.msk.bf16.mxu1 %vm703_vm10, %v7223_v44  ;;  %v7857_v28 = vsel %vm282_vm0, %v7855_v60, %v13656_v7  ;;  %v7841_v36 = vshll.u32 %v13645_v6, 16  ;;  %v7839_v44 = vor.u32 %v7838_v25, %v7834_v54  ;;  %v9570_v29 = vcombine.low %v9565_v56, %v9566_v50  ;;  %v10149_v14 = vld [vmem:[%s14156_s1 + $0x74] ss:$8 sps:$4 sm:$0xff]   ;;  %v10182_v18 = vld [vmem:[%s14156_s1 + $0xc4] ss:$8 sps:$4 sm:$0xff]  }
 0xa47   : > { %v13625_v2 = vrot.slane %v7797_v40, 1  ;;  %v7813_v53 = vsel %vm282_vm0, %v7811_v26, %v7812_v47  ;;  %v7801_v1 = vshrl.u32 %v13618_v34, 16  ;;  %8234 = vmatprep.subr.bf16.mxu1 %v10149_v14  ;;  %v10155_v40 = vld [vmem:[%s14156_s1 + $0x54] ss:$8 sps:$4 sm:$0xff]   ;;  %v9600_v20 = vcombine.low %v8085_v35, %v8085_v35  ;;  %v10180_v56 = vld [vmem:[%s14156_s1 + $0xc0] ss:$8 sps:$4 sm:$0xff]  }
 0xa48   : > { %7814 = vrot.lane.b32.xlu1 %v7813_v53, %s10260_s20  ;;  %v13685_v5 = vrot.slane %v7841_v36, 1  ;;  %v7984_v52 = vshll.u32 %v9570_v29, 16  ;;  %v10161_v34 = vld [vmem:[%s14156_s1 + $0x34] ss:$8 sps:$4 sm:$0xff]   ;;  %v10192_v14 = vld [vmem:[%s14156_s1 + $0xa0] ss:$8 sps:$4 sm:$0xff]  }
 0xa49   : > { %v7800_v39 = vsel %vm259_vm1, %v7795_v63, %v13625_v2  ;;  %v7803_v22 = vor.u32 %v7801_v1, %v13625_v2  ;;  %v9573_v63 = vcombine.low %v9569_v3, %v9566_v50  ;;  %v10153_v2 = vld [vmem:[%s14156_s1 + $0x50] ss:$8 sps:$4 sm:$0xff]   ;;  %v10167_v60 = vld [vmem:[%s14156_s1 + $0x14] ss:$8 sps:$4 sm:$0xff]   ;;  %v8229_v36 = vsel %vm527_vm2, %v9600_v20, 0 }
 0xa4a   : > { %7804 = vrot.lane.b32.xlu0 %v7800_v39, %s10262_s30  ;;  %v7844_v45 = vsel %vm259_vm1, %v7839_v44, %v13685_v5  ;;  %v7986_v8 = vrot.slane %v7984_v52, 1  ;;  %v6076_v44 = vld [vmem:[%s14159_s4 + $0x8] sm:$0x3f]  ;;  %v10188_v1 = vld [vmem:[%s14156_s1 + $0xb4] ss:$8 sps:$4 sm:$0xff]  }
 0xa4b   : > { %v8003_v53 = vrot.slane %v9573_v63, 1  ;;  %v10198_v52 = vld [vmem:[%s14156_s1 + $0x90] ss:$8 sps:$4 sm:$0xff]  }
 0xa4c   : > { %7870 = vrot.lane.b32.xlu1 %v13635_v19, %s10257_s13 }
 0xa4d   : > { %7442 = vmatmul.mubr.bf16.gmra.mxu1 %v7220_v15  ;;  %v9568_v15 = vld [vmem:[%s10325_s8 + $0x15c] sm:$0x1] }
 0xa4e   : > { %9507 = vmatprep.mubr.msk.bf16.mxu1 %vm703_vm10, %v7217_v21  ;;  %7858 = vrot.lane.b32.xlu0 %v7857_v28, %s10259_s17  ;;  %v13703_v48 = vcombine.low %v13699_v13, %v9568_v15  ;;  %v10147_v21 = vld [vmem:[%s14156_s1 + $0x70] ss:$8 sps:$4 sm:$0xff]  }
 0xa4f   : > { %8235 = vmatpush1.bf16.msra.mxu1 %v10147_v21  ;;  %v10194_v21 = vld [vmem:[%s14156_s1 + $0xa4] ss:$8 sps:$4 sm:$0xff]  }
 0xa50   : > { %7892 = vrot.lane.b32.xlu1 %v13674_v31, %s10264_s22  ;;  %v7989_v9 = vshll.u32 %v13703_v48, 16  ;;  %8236 = vmatprep.subr.bf16.mxu1 %v10152_v46  ;;  %v8004_v39 = vrot.slane %v13703_v48, 1  ;;  %v7993_v12 = vshrl.u32 %v13703_v48, 16  ;;  %v10206_v48 = vld [vmem:[%s14156_s1 + $0x84] ss:$8 sps:$4 sm:$0xff]  }
 0xa51   : > { %v10204_v46 = vld [vmem:[%s14156_s1 + $0x80] ss:$8 sps:$4 sm:$0xff]  }
 0xa52   : > { %7826 = vrot.lane.b32.xlu0 %v13661_v24, %s10258_s16  ;;  %v13721_v62 = vrot.slane %v7989_v9, 1  ;;  %v8005_v55 = vsel %vm282_vm0, %v8003_v53, %v8004_v39 }
 0xa53   : > { %8237 = vmatpush1.bf16.msra.mxu1 %v10150_v61 }
 0xa54   : > { %7902 = vrot.lane.b32.xlu1 %v7901_v17, %s10261_s27  ;;  %8238 = vmatprep.subr.bf16.mxu1 %v10155_v40 }
 0xa55   : > { %7452 = vmatmul.mubr.bf16.gmra.mxu1 %v7215_v23  ;;  %v7982_v23 = vshrl.u32 %v9570_v29, 16 }
 0xa56   : > { %7848 = vrot.lane.b32.xlu0 %v7844_v45, %s10263_s11 }
 0xa57   : > { %v7987_v26 = vor.u32 %v7986_v8, %v7982_v23  ;;  %8239 = vmatpush1.bf16.msra.mxu1 %v10153_v2  ;;  %v10200_v23 = vld [vmem:[%s14156_s1 + $0x94] ss:$8 sps:$4 sm:$0xff]  }
 0xa58   : > { %7950 = vrot.lane.b32.xlu1 %v7857_v28, %s10260_s20  ;;  %8240 = vmatprep.subr.bf16.mxu1 %v10158_v0  ;;  %v9601_v28 = vcombine.high %v8085_v35, %v8085_v35 }
 0xa59   : > { %v7992_v41 = vsel %vm259_vm1, %v7987_v26, %v13721_v62 }
 0xa5a   : > { %7946 = vrot.lane.b32.xlu0 %v7844_v45, %s10262_s30  ;;  %v7995_v45 = vor.u32 %v7993_v12, %v13721_v62 }
 0xa5c   : > { %7974 = vrot.lane.b32.xlu1 %v9570_v29, %s10257_s13 }
 0xa5e   : > { %7962 = vrot.lane.b32.xlu0 %v7901_v17, %s10259_s17 }
 0xa60   : > { %7954 = vrot.lane.b32.xlu1 %v13635_v19, %s10258_s16  ;;  %v10156_v19 = vld [vmem:[%s14156_s1 + $0x40] ss:$8 sps:$4 sm:$0xff]  }
 0xa61   : > { %8241 = vmatpush1.bf16.msra.mxu1 %v10156_v19 }
 0xa62   : > { %7806 = vrot.lane.b32.xlu0 %v7803_v22, %s10262_s30  ;;  %8242 = vmatprep.subr.bf16.mxu1 %v10161_v34 }
 0xa64   : > { %7816 = vrot.lane.b32.xlu1 %v7812_v47, %s10260_s20  ;;  %v7889_v47 = vshrl.u32 %v13652_v51, 16  ;;  %v7845_v51 = vshrl.u32 %v13645_v6, 16  ;;  %v10165_v6 = vld [vmem:[%s14156_s1 + $0x10] ss:$8 sps:$4 sm:$0xff]  }
 0xa65   : > { %8243 = vmatpush1.bf16.msra.mxu1 %v10159_v11 }
 0xa66   : > { %7996 = vrot.lane.b32.xlu0 %v7992_v41, %s10264_s22  ;;  %v7891_v59 = vor.u32 %v7889_v47, %v13668_v49  ;;  %8244 = vmatprep.subr.bf16.mxu1 %v10164_v38  ;;  %v7847_v58 = vor.u32 %v7845_v51, %v13685_v5 }
 0xa68   : > { %7872 = vrot.lane.b32.xlu1 %v13743_v43, %s10257_s13 }
 0xa69   : > { %8245 = vmatpush1.bf16.msra.mxu1 %v10162_v57 }
 0xa6a   : > { %7860 = vrot.lane.b32.xlu0 %v13656_v7, %s10259_s17  ;;  %8246 = vmatprep.subr.bf16.mxu1 %v10167_v60 }
 0xa6c   : > { %8006 = vrot.lane.b32.xlu1 %v8005_v55, %s10261_s27 }
 0xa6d   : > { %8247 = vmatpush1.bf16.msra.mxu1 %v10165_v6 }
 0xa6e   : > { %7958 = vrot.lane.b32.xlu0 %v13674_v31, %s10263_s11  ;;  %8248 = vmatprep.subr.bf16.mxu1 %v10170_v30  ;;  %v9571_v31 = vcombine.low %v13699_v13, %v13699_v13 }
 0xa70   : > { %7894 = vrot.lane.b32.xlu1 %v7891_v59, %s10264_s22 }
 0xa71   : > { %8249 = vmatpush1.bf16.msra.mxu1 %v10168_v10 }
 0xa72   : > { %7828 = vrot.lane.b32.xlu0 %v13773_v42, %s10258_s16  ;;  %9602 = vmatprep.subr.msk.bf16.mxu1 %vm527_vm2, %v9601_v28 }
 0xa74   : > { %7904 = vrot.lane.b32.xlu1 %v13683_v33, %s10261_s27 }
 0xa75   : > { %8255 = vmatpush2.bf16.msra.mxu1 %v8229_v36 }
 0xa76   : > { %7850 = vrot.lane.b32.xlu0 %v7847_v58, %s10263_s11  ;;  %8256 = vmatprep.subr.bf16.mxu1 %v10182_v18  ;;  %v10130_v18 = vld [vmem:[%s14157_s2] sm:$0xff]  }
 0xa78   : > { %7952 = vrot.lane.b32.xlu1 %v13656_v7, %s10260_s20 }
 0xa79   : > { %8257 = vmatpush2.bf16.msra.mxu1 %v10180_v56  ;;  %v13895_v56 = vld [vmem:[%s14158_s3 + $0x60] ss:$8 sps:$4 sm:$0xff]  }
 0xa7a   : > { %7948 = vrot.lane.b32.xlu0 %v7847_v58, %s10262_s30  ;;  %8258 = vmatprep.subr.bf16.mxu1 %v10188_v1 }
 0xa7c   : > { %7976 = vrot.lane.b32.xlu1 %v9571_v31, %s10257_s13 }
 0xa7e   : > { %7964 = vrot.lane.b32.xlu0 %v13683_v33, %s10259_s17  ;;  %v10186_v33 = vld [vmem:[%s14156_s1 + $0xb0] ss:$8 sps:$4 sm:$0xff]  }
 0xa7f   : > { %8259 = vmatpush2.bf16.msra.mxu1 %v10186_v33  ;;  %v13910_v33 = vld [vmem:[%s14158_s3 + $0x50] ss:$8 sps:$4 sm:$0xff]  }
 0xa80   : > { %7998 = vrot.lane.b32.xlu1 %v7995_v45, %s10264_s22  ;;  %8260 = vmatprep.subr.bf16.mxu1 %v10194_v21  ;;  %v14205_v45 = vmov 0   ;;  %v13916_v21 = vld [vmem:[%s14158_s3 + $0x44] ss:$8 sps:$4 sm:$0xff]  }
 0xa82   : > { %7956 = vrot.lane.b32.xlu0 %v13743_v43, %s10258_s16 }
 0xa83   : > { %8261 = vmatpush2.bf16.msra.mxu1 %v10192_v14 }
 0xa84   : > { %8008 = vrot.lane.b32.xlu1 %v8004_v39, %s10261_s27  ;;  %8262 = vmatprep.subr.bf16.mxu1 %v10200_v23 }
 0xa86   : > { %7960 = vrot.lane.b32.xlu0 %v7891_v59, %s10263_s11 }
 0xa87   : > { %8263 = vmatpush2.bf16.msra.mxu1 %v10198_v52  ;;  %v13925_v52 = vld [vmem:[%s14158_s3 + $0x40] ss:$8 sps:$4 sm:$0xff]  }
 0xa88   : > { %8264 = vmatprep.subr.bf16.mxu1 %v10206_v48 }
 0xa8b   : > { %8265 = vmatpush2.bf16.msra.mxu1 %v10204_v46 }
 0xa95   : > { %v6064_v16 = vpop.f32.mrf.mxu1 }
 0xa97   : > { %v6066_v49 = vpop.f32.mrf.mxu1 }
 0xa98   : > { %v6073_v27 = vmax.f32 %v6064_v16, %v6066_v49 }
 0xa99   : > { %v6068_v54 = vpop.f32.mrf.mxu1 }
 0xa9a   : > { %v6077_v25 = vadd.f32 %v6075_v4, %v6073_v27 }
 0xa9b   : > { %v6070_v7 = vpop.f32.mrf.mxu1 }
 0xa9c   : > { %v6079_v5 = vmax.f32 %v6077_v25, 0.0  ;;  %v6074_v17 = vmax.f32 %v6068_v54, %v6070_v7  ;;  %v13873_v54 = vld [vmem:[%s14158_s3 + $0x74] ss:$8 sps:$4 sm:$0xff]   ;;  %v13881_v7 = vld [vmem:[%s14158_s3 + $0x70] ss:$8 sps:$4 sm:$0xff]  }
 0xa9e   : > { %v9650_v50 = vpack.c.bf16 %v6079_v5, %v6079_v5  ;;  %v6078_v29 = vadd.f32 %v6076_v44, %v6074_v17  ;;  %v13887_v5 = vld [vmem:[%s14158_s3 + $0x64] ss:$8 sps:$4 sm:$0xff]  }
 0xaa0   : > { %9340 = vst [vmem:[%s11175_s15 + $0x38] sm:$0xf] %v9650_v50  ;;  %v6080_v13 = vmax.f32 %v6078_v29, 0.0  ;;  %v13901_v29 = vld [vmem:[%s14158_s3 + $0x54] ss:$8 sps:$4 sm:$0xff]  }
 0xaa2   : > { %v9651_v15 = vpack.c.bf16 %v6080_v13, %v6080_v13  ;;  %v10134_v13 = vld [vmem:[%s14157_s2 + $0x8] sm:$0x3f]  }
 0xaa4   : > { %9341 = vst [vmem:[%s11175_s15 + $0x3c] sm:$0x7] %v9651_v15 }
 0xaba   : > { %v7815_v26 = vpop.permute.xlu1 %7814 }
 0xabc   : > { %v7805_v63 = vpop.permute.xlu0 %7804 }
 0xabd   : > { %v7907_v53 = vsel %vm378_vm3, %v13611_v37, %v7805_v63 }
 0xabe   : > { %v7871_v0 = vpop.permute.xlu1 %7870  ;;  %v7912_v11 = vsel %vm384_vm4, %v7907_v53, %v7815_v26  ;;  %v13949_v26 = vld [vmem:[%s14158_s3 + $0x24] ss:$8 sps:$4 sm:$0xff]  }
 0xac0   : > { %v7859_v39 = vpop.permute.xlu0 %7858 }
 0xac1   : > { %v7929_v34 = vsel %vm405_vm6, %v7859_v39, %v7871_v0 }
 0xac2   : > { %v7893_v55 = vpop.permute.xlu1 %7892 }
 0xac3   : > { %v7933_v58 = vsel %vm410_vm8, %v7929_v34, %v7893_v55 }
 0xac4   : > { %v7827_v59 = vpop.permute.xlu0 %7826 }
 0xac5   : > { %v7916_v6 = vsel %vm389_vm5, %v7912_v11, %v7827_v59 }
 0xac6   : > { %v7903_v37 = vpop.permute.xlu1 %7902 }
 0xac7   : > { %v7937_v10 = vsel %vm415_vm9, %v7933_v58, %v7903_v37  ;;  %v13987_v58 = vld [vmem:[%s14158_s3 + $0x4] ss:$8 sps:$4 sm:$0xff]  }
 0xac8   : > { %v7849_v28 = vpop.permute.xlu0 %7848  ;;  %9603 = vmatprep.mubr.msk.bf16.mxu1 %vm703_vm10, %v7937_v10 }
 0xac9   : > { %v7920_v4 = vsel %vm394_vm7, %v7916_v6, %v7849_v28 }
 0xaca   : > { %v7924_v31 = vsel %vm399_vm11, %v7920_v4, %v7859_v39  ;;  %v7951_v12 = vpop.permute.xlu1 %7950  ;;  %v14006_v4 = vld [vmem:[%s14158_s3 + $0x94] ss:$8 sps:$4 sm:$0xff]  }
 0xacb   : > { %8267 = vmatmul.mubr.bf16.vlgmr.msra.gmra.mxu1 %v7924_v31 }
 0xacc   : > { %v7947_v36 = vpop.permute.xlu0 %7946 }
 0xacd   : > { %v6598_v9 = vpop.f32.mrf.mxu1  ;;  %v8011_v14 = vsel %vm378_vm3, %v13661_v24, %v7947_v36  ;;  %v14015_v36 = vld [vmem:[%s14158_s3 + $0x90] ss:$8 sps:$4 sm:$0xff]  }
 0xace   : > { %v7975_v44 = vpop.permute.xlu1 %7974  ;;  %v8016_v48 = vsel %vm384_vm4, %v8011_v14, %v7951_v12  ;;  %v14030_v14 = vld [vmem:[%s14158_s3 + $0x80] ss:$8 sps:$4 sm:$0xff]  }
 0xacf   : > { %v6600_v22 = vpop.f32.mrf.mxu1 }
 0xad0   : > { %v7963_v17 = vpop.permute.xlu0 %7962 }
 0xad1   : > { %v6602_v8 = vpop.f32.mrf.mxu1  ;;  %v8032_v24 = vsel %vm405_vm6, %v7963_v17, %v7975_v44  ;;  %v14021_v44 = vld [vmem:[%s14158_s3 + $0x84] ss:$8 sps:$4 sm:$0xff]  }
 0xad2   : > { %v7955_v50 = vpop.permute.xlu1 %7954 }
 0xad3   : > { %v6604_v61 = vpop.f32.mrf.mxu1 }
 0xad4   : > { %v7807_v1 = vpop.permute.xlu0 %7806 }
 0xad5   : > { %v6608_v62 = vpop.f32.mrf.mxu1 }
 0xad6   : > { %v7817_v15 = vpop.permute.xlu1 %7816 }
 0xad7   : > { %v6610_v3 = vpop.f32.mrf.mxu1 }
 0xad8   : > { %v7997_v23 = vpop.permute.xlu0 %7996 }
 0xad9   : > { %v6612_v40 = vpop.f32.mrf.mxu1 }
 0xada   : > { %v6627_v27 = vmax.f32 %v6598_v9, %v6612_v40  ;;  %v7873_v46 = vpop.permute.xlu1 %7872  ;;  %v13932_v9 = vld [vmem:[%s14158_s3 + $0x34] ss:$8 sps:$4 sm:$0xff]  }
 0xadb   : > { %v6614_v2 = vpop.f32.mrf.mxu1 }
 0xadc   : > { %v6628_v30 = vmax.f32 %v6600_v22, %v6614_v2  ;;  %v9554_v22 = vcombine.low %v13614_v32, %v13614_v32 }
 0xadd   : > { %v6618_v41 = vpop.f32.mrf.mxu1 }
 0xade   : > { %v6629_v16 = vmax.f32 %v6602_v8, %v6618_v41  ;;  %v7861_v8 = vpop.permute.xlu0 %7860  ;;  %v8007_v40 = vpop.permute.xlu1 %8006  ;;  %v7910_v32 = vsel %vm378_vm3, %v9554_v22, %v7807_v1 }
 0xadf   : > { %v6620_v43 = vpop.f32.mrf.mxu1  ;;  %v7931_v41 = vsel %vm405_vm6, %v7861_v8, %v7873_v46  ;;  %v7914_v53 = vsel %vm384_vm4, %v7910_v32, %v7817_v15 }
 0xae0   : > { %v6630_v51 = vmax.f32 %v6604_v61, %v6620_v43  ;;  %v6633_v25 = vpack.c.bf16 %v6629_v16, %v6627_v27  ;;  %v8020_v61 = vsel %vm389_vm5, %v8016_v48, %v7955_v50  ;;  %v13961_v43 = vld [vmem:[%s14158_s3 + $0x20] ss:$8 sps:$4 sm:$0xff]  }
 0xae1   : > { %v6622_v19 = vpop.f32.mrf.mxu1 }
 0xae2   : > { %v6631_v47 = vmax.f32 %v6608_v62, %v6622_v19  ;;  %v6634_v20 = vpack.c.bf16 %v6630_v51, %v6628_v30  ;;  %v13942_v62 = vld [vmem:[%s14158_s3 + $0x30] ss:$8 sps:$4 sm:$0xff]   ;;  %v7959_v63 = vpop.permute.xlu0 %7958  ;;  %v7895_v39 = vpop.permute.xlu1 %7894  ;;  %v13968_v19 = vld [vmem:[%s14158_s3 + $0x14] ss:$8 sps:$4 sm:$0xff]  }
 0xae3   : > { %v6624_v38 = vpop.f32.mrf.mxu1  ;;  %v8024_v2 = vsel %vm394_vm7, %v8020_v61, %v7959_v63  ;;  %v7935_v11 = vsel %vm410_vm8, %v7931_v41, %v7895_v39  ;;  %v13980_v51 = vld [vmem:[%s14158_s3 + $0x10] ss:$8 sps:$4 sm:$0xff]  }
 0xae4   : > { %v6635_v57 = vpack.c.bf16 %v6631_v47, %v6631_v47  ;;  %v6632_v60 = vmax.f32 %v6610_v3, %v6624_v38  ;;  %v8036_v3 = vsel %vm410_vm8, %v8032_v24, %v7997_v23  ;;  %v13971_v34 = vsel %vm399_vm11, %v8024_v2, %v7963_v17 }
 0xae5   : > { %v13955_v0 = vsel %vm415_vm9, %v8036_v3, %v8007_v40 }
 0xae6   : > { %v6636_v35 = vpack.c.bf16 %v6632_v60, %v6632_v60  ;;  %v6658_v49 = vsel %vm527_vm2, %v6635_v57, 0  ;;  %v7829_v47 = vpop.permute.xlu0 %7828  ;;  %v8048_v55 = vrot.slane %v13955_v0, 4  ;;  %v8047_v57 = vrot.slane %v13971_v34, 4  ;;  %v7905_v60 = vpop.permute.xlu1 %7904 }
 0xae7   : > { %v7918_v59 = vsel %vm389_vm5, %v7914_v53, %v7829_v47  ;;  %v7939_v30 = vsel %vm415_vm9, %v7935_v11, %v7905_v60 }
 0xae8   : > { %9412 = vmatprep.subr.msk.bf16.mxu0 %vm527_vm2, %v6636_v35  ;;  %v8058_v16 = vsel %vm527_vm2, %v7939_v30, %v8048_v55 }
 0xae9   : > { %6676 = vmatpush1.bf16.msra.mxu0 %v6658_v49  ;;  %9604 = vmatprep.mubr.msk.bf16.mxu1 %vm703_vm10, %v8058_v16 }
 0xaea   : > { %6677 = vmatprep.subr.bf16.mxu0 %v6634_v20  ;;  %v7851_v35 = vpop.permute.xlu0 %7850  ;;  %v13999_v20 = vld [vmem:[%s14158_s3] ss:$8 sps:$4 sm:$0xff]   ;;  %v7953_v49 = vpop.permute.xlu1 %7952 }
 0xaeb   : > { %v7922_v37 = vsel %vm394_vm7, %v7918_v59, %v7851_v35 }
 0xaec   : > { %v7927_v28 = vsel %vm399_vm11, %v7922_v37, %v7861_v8 }
 0xaed   : > { %6678 = vmatpush1.bf16.msra.mxu0 %v6633_v25  ;;  %v8055_v27 = vsel %vm527_vm2, %v7927_v28, %v8047_v57 }
 0xaee   : > { %6865 = vmatprep.subr.bf16.mxu0 %v13873_v54  ;;  %v7949_v12 = vpop.permute.xlu0 %7948  ;;  %8277 = vmatmul.mubr.bf16.gmra.mxu1 %v8055_v27 }
 0xaef   : > { %v8014_v50 = vsel %vm378_vm3, %v13773_v42, %v7949_v12 }
 0xaf0   : > { %9413 = vmatmul.mubr.msk.bf16.vlgmr.msra.gmra.mxu0 %vm378_vm3, %v10130_v18  ;;  %v7977_v18 = vpop.permute.xlu1 %7976  ;;  %v8018_v46 = vsel %vm384_vm4, %v8014_v50, %v7953_v49 }
 0xaf1   : > { %6705 = vmatprep.mubr.bf16.mxu0 %v14205_v45  ;;  %6866 = vmatpush1.bf16.msra.mxu0 %v13881_v7 }
 0xaf2   : > { %6867 = vmatprep.subr.bf16.mxu0 %v13887_v5  ;;  %v7965_v1 = vpop.permute.xlu0 %7964 }
 0xaf3   : > { %v8034_v15 = vsel %vm405_vm6, %v7965_v1, %v7977_v18 }
 0xaf4   : > { %v7999_v48 = vpop.permute.xlu1 %7998 }
 0xaf5   : > { %6868 = vmatpush1.bf16.msra.mxu0 %v13895_v56  ;;  %v8038_v8 = vsel %vm410_vm8, %v8034_v15, %v7999_v48 }
 0xaf6   : > { %6869 = vmatprep.subr.bf16.mxu0 %v13901_v29  ;;  %v7957_v22 = vpop.permute.xlu0 %7956 }
 0xaf7   : > { %v8022_v3 = vsel %vm389_vm5, %v8018_v46, %v7957_v22 }
 0xaf8   : > { %9414 = vmatmul.mubr.msk.bf16.gmra.mxu0 %vm378_vm3, %v10134_v13  ;;  %v8009_v32 = vpop.permute.xlu1 %8008 }
 0xaf9   : > { %6870 = vmatpush1.bf16.msra.mxu0 %v13910_v33  ;;  %v8042_v2 = vsel %vm415_vm9, %v8038_v8, %v8009_v32 }
 0xafa   : > { %6871 = vmatprep.subr.bf16.mxu0 %v13916_v21  ;;  %v7961_v41 = vpop.permute.xlu0 %7960  ;;  %v8051_v47 = vrot.slane %v8042_v2, 4 }
 0xafb   : > { %v8026_v11 = vsel %vm394_vm7, %v8022_v3, %v7961_v41 }
 0xafc   : > { %v8030_v59 = vsel %vm399_vm11, %v8026_v11, %v7965_v1  ;;  %v8052_v35 = vsel %vm527_vm2, %v8048_v55, %v8051_v47  ;;  %v10219_v47 = vld [vmem:[%s14157_s2] sm:$0xff]  }
 0xafd   : > { %6872 = vmatpush1.bf16.msra.mxu0 %v13925_v52  ;;  %v8049_v30 = vrot.slane %v8030_v59, 4  ;;  %9605 = vmatprep.mubr.msk.bf16.mxu1 %vm703_vm10, %v8052_v35  ;;  %v10220_v35 = vld [vmem:[%s14157_s2 + $0x8] sm:$0x3f]  }
 0xafe   : > { %6873 = vmatprep.subr.bf16.mxu0 %v13932_v9 }
 0xb01   : > { %6874 = vmatpush1.bf16.msra.mxu0 %v13942_v62 }
 0xb02   : > { %6875 = vmatprep.subr.bf16.mxu0 %v13949_v26 }
 0xb05   : > { %v7433_v38 = vpop.f32.mrf.mxu1  ;;  %6876 = vmatpush1.bf16.msra.mxu0 %v13961_v43 }
 0xb06   : > { %6877 = vmatprep.subr.bf16.mxu0 %v13968_v19 }
 0xb07   : > { %v7435_v6 = vpop.f32.mrf.mxu1 }
 0xb09   : > { %v7437_v10 = vpop.f32.mrf.mxu1  ;;  %6878 = vmatpush1.bf16.msra.mxu0 %v13980_v51 }
 0xb0a   : > { %6879 = vmatprep.subr.bf16.mxu0 %v13987_v58 }
 0xb0b   : > { %v7439_v31 = vpop.f32.mrf.mxu1 }
 0xb0d   : > { %v7443_v25 = vpop.f32.mrf.mxu1  ;;  %6880 = vmatpush1.bf16.msra.mxu0 %v13999_v20 }
 0xb0e   : > { %6893 = vmatprep.subr.bf16.mxu0 %v14006_v4 }
 0xb0f   : > { %v7445_v17 = vpop.f32.mrf.mxu1 }
 0xb11   : > { %v7447_v13 = vpop.f32.mrf.mxu1  ;;  %6894 = vmatpush2.bf16.msra.mxu0 %v14015_v36 }
 0xb12   : > { %v7462_v23 = vmax.f32 %v7433_v38, %v7447_v13  ;;  %6895 = vmatprep.subr.bf16.mxu0 %v14021_v44 }
 0xb13   : > { %v7449_v24 = vpop.f32.mrf.mxu1 }
 0xb14   : > { %v7463_v42 = vmax.f32 %v7435_v6, %v7449_v24 }
 0xb15   : > { %v7453_v61 = vpop.f32.mrf.mxu1  ;;  %6896 = vmatpush2.bf16.msra.mxu0 %v14030_v14 }
 0xb16   : > { %v7464_v40 = vmax.f32 %v7437_v10, %v7453_v61  ;;  %v8050_v10 = vsel %vm527_vm2, %v8047_v57, %v8049_v30 }
 0xb17   : > { %v7455_v63 = vpop.f32.mrf.mxu1  ;;  %8287 = vmatmul.mubr.bf16.gmra.mxu1 %v8050_v10 }
 0xb18   : > { %v7468_v53 = vpack.c.bf16 %v7464_v40, %v7462_v23  ;;  %v7465_v39 = vmax.f32 %v7439_v31, %v7455_v63 }
 0xb19   : > { %v7457_v38 = vpop.f32.mrf.mxu1 }
 0xb1a   : > { %v7469_v60 = vpack.c.bf16 %v7465_v39, %v7463_v42  ;;  %v7466_v6 = vmax.f32 %v7443_v25, %v7457_v38 }
 0xb1b   : > { %v7459_v37 = vpop.f32.mrf.mxu1 }
 0xb1c   : > { %v7467_v16 = vmax.f32 %v7445_v17, %v7459_v37  ;;  %v7470_v3 = vpack.c.bf16 %v7466_v6, %v7466_v6 }
 0xb1e   : > { %v7471_v28 = vpack.c.bf16 %v7467_v16, %v7467_v16  ;;  %v7493_v41 = vsel %vm527_vm2, %v7470_v3, 0 }
 0xb20   : > { %9510 = vmatprep.subr.msk.bf16.mxu0 %vm527_vm2, %v7471_v28 }
 0xb8b   : > { %v8268_v55 = vpop.f32.mrf.mxu1 }
 0xb8d   : > { %v8270_v46 = vpop.f32.mrf.mxu1 }
 0xb8f   : > { %v8272_v32 = vpop.f32.mrf.mxu1 }
 0xb91   : > { %v8274_v39 = vpop.f32.mrf.mxu1 }
 0xbae   : > { %v8278_v11 = vpop.f32.mrf.mxu1 }
 0xbb0   : > { %v6697_v49 = vpop.f32.mrf.mxu0  ;;  %v8280_v38 = vpop.f32.mrf.mxu1 }
 0xbb2   : > { %v6699_v27 = vpop.f32.mrf.mxu0  ;;  %v8282_v59 = vpop.f32.mrf.mxu1 }
 0xbb3   : > { %v8297_v6 = vmax.f32 %v8268_v55, %v8282_v59 }
 0xbb4   : > { %v6701_v31 = vpop.f32.mrf.mxu0 }
 0xbb5   : > { %v6722_v15 = vrot.slane %v6701_v31, 6 }
 0xbb6   : > { %v6703_v12 = vpop.f32.mrf.mxu0 }
 0xbb7   : > { %v6725_v13 = vrot.slane %v6703_v12, 6 }
 0xbb8   : > { %v6707_v25 = vpop.f32.mrf.mxu0 }
 0xbb9   : > { %v6723_v50 = vrot.slane %v6707_v25, 6 }
 0xbba   : > { %v6709_v0 = vpop.f32.mrf.mxu0 }
 0xbbb   : > { %v6726_v18 = vrot.slane %v6709_v0, 6  ;;  %v6724_v24 = vsel %vm875_vm12, %v6722_v15, %v6723_v50 }
 0xbbc   : > { %v6711_v1 = vpop.f32.mrf.mxu0  ;;  %v6736_v40 = vmax.f32 %v6697_v49, %v6724_v24 }
 0xbbd   : > { %v6728_v17 = vrot.slane %v6711_v1, 6  ;;  %v6727_v57 = vsel %vm875_vm12, %v6725_v13, %v6726_v18 }
 0xbbe   : > { %v6713_v34 = vpop.f32.mrf.mxu0  ;;  %v6737_v8 = vmax.f32 %v6699_v27, %v6727_v57 }
 0xbbf   : > { %v6729_v23 = vsel %vm875_vm12, %v6723_v50, %v6728_v17  ;;  %v6730_v48 = vrot.slane %v6713_v34, 6  ;;  %v14090_v50 = vld [vmem:[%s14159_s4] sm:$0xff]  ;;  %v6911_v34 = vld [vmem:[%s14159_s4 + $0x8] sm:$0x3f] }
 0xbc0   : > { %v6738_v22 = vmax.f32 %v6701_v31, %v6729_v23 }
 0xbc1   : > { %v6731_v42 = vsel %vm875_vm12, %v6726_v18, %v6730_v48 }
 0xbc2   : > { %v6739_v61 = vmax.f32 %v6703_v12, %v6731_v42  ;;  %v6740_v2 = vpack.c.bf16 %v6738_v22, %v6736_v40 }
 0xbc4   : > { %v6741_v63 = vpack.c.bf16 %v6739_v61, %v6737_v8 }
 0xbc6   : > { %9435 = vmatprep.mubr.msk.bf16.mxu0 %vm1016_vm13, %v6741_v63 }
 0xbc7   : > { %6898 = vmatmul.mubr.bf16.vlgmr.msra.gmra.mxu0 %v6740_v2 }
 0xbc8   : > { %7511 = vmatpush1.bf16.msra.mxu0 %v7493_v41  ;;  %7530 = vmatprep.mubr.bf16.mxu0 %v14205_v45 }
 0xbc9   : > { %7512 = vmatprep.subr.bf16.mxu0 %v7469_v60  ;;  %v8284_v60 = vpop.f32.mrf.mxu1 }
 0xbca   : > { %v8298_v30 = vmax.f32 %v8270_v46, %v8284_v60 }
 0xbcc   : > { %7513 = vmatpush1.bf16.msra.mxu0 %v7468_v53 }
 0xbcd   : > { %7700 = vmatprep.subr.bf16.mxu0 %v13873_v54 }
 0xbcf   : > { %9511 = vmatmul.mubr.msk.bf16.vlgmr.msra.gmra.mxu0 %vm378_vm3, %v10219_v47 }
 0xbd0   : > { %7540 = vmatprep.mubr.bf16.mxu0 %v14205_v45  ;;  %7701 = vmatpush1.bf16.msra.mxu0 %v13881_v7 }
 0xbd1   : > { %7702 = vmatprep.subr.bf16.mxu0 %v13887_v5 }
 0xbd4   : > { %7703 = vmatpush1.bf16.msra.mxu0 %v13895_v56 }
 0xbd5   : > { %7704 = vmatprep.subr.bf16.mxu0 %v13901_v29 }
 0xbd7   : > { %9512 = vmatmul.mubr.msk.bf16.gmra.mxu0 %vm378_vm3, %v10220_v35  ;;  %v8288_v53 = vpop.f32.mrf.mxu1 }
 0xbd8   : > { %7705 = vmatpush1.bf16.msra.mxu0 %v13910_v33  ;;  %v8299_v37 = vmax.f32 %v8272_v32, %v8288_v53 }
 0xbd9   : > { %7706 = vmatprep.subr.bf16.mxu0 %v13916_v21  ;;  %v8290_v16 = vpop.f32.mrf.mxu1 }
 0xbda   : > { %v14073_v10 = vpack.c.bf16 %v8299_v37, %v8297_v6  ;;  %v8300_v28 = vmax.f32 %v8274_v39, %v8290_v16 }
 0xbdb   : > { %v8292_v49 = vpop.f32.mrf.mxu1 }
 0xbdc   : > { %7707 = vmatpush1.bf16.msra.mxu0 %v13925_v52  ;;  %v8304_v27 = vpack.c.bf16 %v8300_v28, %v8298_v30  ;;  %v8301_v31 = vmax.f32 %v8278_v11, %v8292_v49 }
 0xbdd   : > { %7708 = vmatprep.subr.bf16.mxu0 %v13932_v9  ;;  %v8294_v12 = vpop.f32.mrf.mxu1 }
 0xbde   : > { %v8302_v25 = vmax.f32 %v8280_v38, %v8294_v12  ;;  %v8305_v28 = vpack.c.bf16 %v8301_v31, %v8301_v31 }
 0xbe0   : > { %7709 = vmatpush1.bf16.msra.mxu0 %v13942_v62  ;;  %v8306_v0 = vpack.c.bf16 %v8302_v25, %v8302_v25 }
 0xbe1   : > { %7710 = vmatprep.subr.bf16.mxu0 %v13949_v26 }
 0xbe4   : > { %7711 = vmatpush1.bf16.msra.mxu0 %v13961_v43 }
 0xbe5   : > { %7712 = vmatprep.subr.bf16.mxu0 %v13968_v19 }
 0xbe8   : > { %7713 = vmatpush1.bf16.msra.mxu0 %v13980_v51 }
 0xbe9   : > { %7714 = vmatprep.subr.bf16.mxu0 %v13987_v58 }
 0xbec   : > { %7715 = vmatpush1.bf16.msra.mxu0 %v13999_v20 }
 0xbed   : > { %7728 = vmatprep.subr.bf16.mxu0 %v14006_v4 }
 0xbf0   : > { %7729 = vmatpush2.bf16.msra.mxu0 %v14015_v36 }
 0xbf1   : > { %7730 = vmatprep.subr.bf16.mxu0 %v14021_v44 }
 0xbf4   : > { %7731 = vmatpush2.bf16.msra.mxu0 %v14030_v14 }
 0xbf5   : > { %9608 = vmatprep.subr.msk.bf16.mxu0 %vm527_vm2, %v8306_v0  ;;  %v8328_v0 = vsel %vm527_vm2, %v8305_v28, 0 }
 0xc87   : > { %v6899_v18 = vpop.f32.mrf.mxu0 }
 0xc89   : > { %v6901_v55 = vpop.f32.mrf.mxu0 }
 0xc8a   : > { %v6908_v1 = vmax.f32 %v6899_v18, %v6901_v55  ;;  %v10221_v18 = vld [vmem:[%s14157_s2] sm:$0xff]  }
 0xc8b   : > { %v6903_v13 = vpop.f32.mrf.mxu0 }
 0xc8c   : > { %v6912_v17 = vadd.f32 %v14090_v50, %v6908_v1 }
 0xc8d   : > { %v6905_v15 = vpop.f32.mrf.mxu0 }
 0xc8e   : > { %v6914_v57 = vmax.f32 %v6912_v17, 0.0  ;;  %v6909_v23 = vmax.f32 %v6903_v13, %v6905_v15 }
 0xc8f   : > { %v7532_v48 = vpop.f32.mrf.mxu0 }
 0xc90   : > { %v9652_v46 = vpack.c.bf16 %v6914_v57, %v6914_v57  ;;  %v6913_v24 = vadd.f32 %v6911_v34, %v6909_v23 }
 0xc91   : > { %v7534_v22 = vpop.f32.mrf.mxu0 }
 0xc92   : > { %9438 = vst [vmem:[%s11175_s15 + $0x40] sm:$0xf] %v9652_v46  ;;  %v6915_v42 = vmax.f32 %v6913_v24, 0.0 }
 0xc93   : > { %v7536_v8 = vpop.f32.mrf.mxu0 }
 0xc94   : > { %v9653_v61 = vpack.c.bf16 %v6915_v42, %v6915_v42  ;;  %v7557_v11 = vrot.slane %v7536_v8, 6 }
 0xc95   : > { %v7538_v3 = vpop.f32.mrf.mxu0 }
 0xc96   : > { %9439 = vst [vmem:[%s11175_s15 + $0x44] sm:$0x7] %v9653_v61  ;;  %v7560_v39 = vrot.slane %v7538_v3, 6 }
 0xc97   : > { %v7542_v40 = vpop.f32.mrf.mxu0 }
 0xc98   : > { %v7558_v2 = vrot.slane %v7542_v40, 6 }
 0xc99   : > { %v7544_v32 = vpop.f32.mrf.mxu0 }
 0xc9a   : > { %v7561_v63 = vrot.slane %v7544_v32, 6  ;;  %v7559_v30 = vsel %vm875_vm12, %v7557_v11, %v7558_v2 }
 0xc9b   : > { %v7546_v41 = vpop.f32.mrf.mxu0  ;;  %v7571_v49 = vmax.f32 %v7532_v48, %v7559_v30 }
 0xc9c   : > { %v7563_v47 = vrot.slane %v7546_v41, 6  ;;  %v7562_v59 = vsel %vm875_vm12, %v7560_v39, %v7561_v63  ;;  %v8581_v41 = vld [vmem:[%s14159_s4 + $0x8] sm:$0x3f] }
 0xc9d   : > { %v7548_v38 = vpop.f32.mrf.mxu0  ;;  %v7572_v37 = vmax.f32 %v7534_v22, %v7562_v59 }
 0xc9e   : > { %v7564_v6 = vsel %vm875_vm12, %v7558_v2, %v7563_v47  ;;  %v7565_v60 = vrot.slane %v7548_v38, 6 }
 0xc9f   : > { %v7573_v35 = vmax.f32 %v7536_v8, %v7564_v6 }
 0xca0   : > { %v7566_v53 = vsel %vm875_vm12, %v7561_v63, %v7565_v60 }
 0xca1   : > { %v7574_v16 = vmax.f32 %v7538_v3, %v7566_v53  ;;  %v7575_v25 = vpack.c.bf16 %v7573_v35, %v7571_v49 }
 0xca3   : > { %v7576_v12 = vpack.c.bf16 %v7574_v16, %v7572_v37 }
 0xca5   : > { %9533 = vmatprep.mubr.msk.bf16.mxu0 %vm1016_vm13, %v7576_v12 }
 0xca6   : > { %7733 = vmatmul.mubr.bf16.vlgmr.msra.gmra.mxu0 %v7575_v25 }
 0xca7   : > { %8346 = vmatpush1.bf16.msra.mxu0 %v8328_v0  ;;  %8365 = vmatprep.mubr.bf16.mxu0 %v14205_v45 }
 0xca8   : > { %8347 = vmatprep.subr.bf16.mxu0 %v8304_v27  ;;  %v10222_v27 = vld [vmem:[%s14157_s2 + $0x8] sm:$0x3f]  }
 0xcab   : > { %8348 = vmatpush1.bf16.msra.mxu0 %v14073_v10 }
 0xcac   : > { %8535 = vmatprep.subr.bf16.mxu0 %v13873_v54 }
 0xcae   : > { %9609 = vmatmul.mubr.msk.bf16.vlgmr.msra.gmra.mxu0 %vm378_vm3, %v10221_v18 }
 0xcaf   : > { %8375 = vmatprep.mubr.bf16.mxu0 %v14205_v45  ;;  %8536 = vmatpush1.bf16.msra.mxu0 %v13881_v7 }
 0xcb0   : > { %8537 = vmatprep.subr.bf16.mxu0 %v13887_v5 }
 0xcb3   : > { %8538 = vmatpush1.bf16.msra.mxu0 %v13895_v56 }
 0xcb4   : > { %8539 = vmatprep.subr.bf16.mxu0 %v13901_v29 }
 0xcb6   : > { %9610 = vmatmul.mubr.msk.bf16.gmra.mxu0 %vm378_vm3, %v10222_v27 }
 0xcb7   : > { %8540 = vmatpush1.bf16.msra.mxu0 %v13910_v33  ;;  %v7746_v33 = vld [vmem:[%s14159_s4 + $0x8] sm:$0x3f] }
 0xcb8   : > { %8541 = vmatprep.subr.bf16.mxu0 %v13916_v21 }
 0xcbb   : > { %8542 = vmatpush1.bf16.msra.mxu0 %v13925_v52 }
 0xcbc   : > { %8543 = vmatprep.subr.bf16.mxu0 %v13932_v9 }
 0xcbf   : > { %8544 = vmatpush1.bf16.msra.mxu0 %v13942_v62 }
 0xcc0   : > { %8545 = vmatprep.subr.bf16.mxu0 %v13949_v26 }
 0xcc3   : > { %8546 = vmatpush1.bf16.msra.mxu0 %v13961_v43 }
 0xcc4   : > { %8547 = vmatprep.subr.bf16.mxu0 %v13968_v19 }
 0xcc7   : > { %8548 = vmatpush1.bf16.msra.mxu0 %v13980_v51 }
 0xcc8   : > { %8549 = vmatprep.subr.bf16.mxu0 %v13987_v58 }
 0xccb   : > { %8550 = vmatpush1.bf16.msra.mxu0 %v13999_v20 }
 0xccc   : > { %8563 = vmatprep.subr.bf16.mxu0 %v14006_v4 }
 0xccf   : > { %8564 = vmatpush2.bf16.msra.mxu0 %v14015_v36 }
 0xcd0   : > { %8565 = vmatprep.subr.bf16.mxu0 %v14021_v44 }
 0xcd3   : > { %8566 = vmatpush2.bf16.msra.mxu0 %v14030_v14 }
 0xd66   : > { %v7734_v54 = vpop.f32.mrf.mxu0 }
 0xd68   : > { %v7736_v7 = vpop.f32.mrf.mxu0 }
 0xd69   : > { %v7743_v5 = vmax.f32 %v7734_v54, %v7736_v7 }
 0xd6a   : > { %v7738_v45 = vpop.f32.mrf.mxu0 }
 0xd6b   : > { %v7747_v56 = vadd.f32 %v7743_v5, %v14090_v50 }
 0xd6c   : > { %v7740_v29 = vpop.f32.mrf.mxu0 }
 0xd6d   : > { %v7749_v21 = vmax.f32 %v7747_v56, 0.0  ;;  %v7744_v52 = vmax.f32 %v7738_v45, %v7740_v29 }
 0xd6e   : > { %v8367_v9 = vpop.f32.mrf.mxu0 }
 0xd6f   : > { %v9654_v62 = vpack.c.bf16 %v7749_v21, %v7749_v21  ;;  %v7748_v26 = vadd.f32 %v7746_v33, %v7744_v52 }
 0xd70   : > { %v8369_v43 = vpop.f32.mrf.mxu0 }
 0xd71   : > { %9536 = vst [vmem:[%s11175_s15 + $0x48] sm:$0xf] %v9654_v62  ;;  %v7750_v19 = vmax.f32 %v7748_v26, 0.0 }
 0xd72   : > { %v8371_v51 = vpop.f32.mrf.mxu0 }
 0xd73   : > { %v9655_v58 = vpack.c.bf16 %v7750_v19, %v7750_v19  ;;  %v8392_v1 = vrot.slane %v8371_v51, 6 }
 0xd74   : > { %v8373_v20 = vpop.f32.mrf.mxu0 }
 0xd75   : > { %9537 = vst [vmem:[%s11175_s15 + $0x4c] sm:$0x7] %v9655_v58  ;;  %v8395_v31 = vrot.slane %v8373_v20, 6 }
 0xd76   : > { %v8377_v4 = vpop.f32.mrf.mxu0 }
 0xd77   : > { %v8393_v14 = vrot.slane %v8377_v4, 6 }
 0xd78   : > { %v8379_v36 = vpop.f32.mrf.mxu0 }
 0xd79   : > { %v8396_v44 = vrot.slane %v8379_v36, 6  ;;  %v8394_v57 = vsel %vm875_vm12, %v8392_v1, %v8393_v14 }
 0xd7a   : > { %v8381_v10 = vpop.f32.mrf.mxu0  ;;  %v8406_v22 = vmax.f32 %v8367_v9, %v8394_v57 }
 0xd7b   : > { %v8398_v55 = vrot.slane %v8381_v10, 6  ;;  %v8397_v17 = vsel %vm875_vm12, %v8395_v31, %v8396_v44 }
 0xd7c   : > { %v8383_v13 = vpop.f32.mrf.mxu0  ;;  %v8407_v46 = vmax.f32 %v8369_v43, %v8397_v17 }
 0xd7d   : > { %v8399_v15 = vsel %vm875_vm12, %v8393_v14, %v8398_v55  ;;  %v8400_v34 = vrot.slane %v8383_v13, 6 }
 0xd7e   : > { %v8408_v23 = vmax.f32 %v8371_v51, %v8399_v15 }
 0xd7f   : > { %v8401_v48 = vsel %vm875_vm12, %v8396_v44, %v8400_v34 }
 0xd80   : > { %v8409_v24 = vmax.f32 %v8373_v20, %v8401_v48  ;;  %v8410_v8 = vpack.c.bf16 %v8408_v23, %v8406_v22 }
 0xd82   : > { %v8411_v42 = vpack.c.bf16 %v8409_v24, %v8407_v46 }
 0xd84   : > { %9631 = vmatprep.mubr.msk.bf16.mxu0 %vm1016_vm13, %v8411_v42 }
 0xd85   : > { %8568 = vmatmul.mubr.bf16.vlgmr.msra.gmra.mxu0 %v8410_v8 }
 0xe45   : > { %v8569_v61 = vpop.f32.mrf.mxu0 }
 0xe47   : > { %v8571_v3 = vpop.f32.mrf.mxu0 }
 0xe48   : > { %v8578_v40 = vmax.f32 %v8569_v61, %v8571_v3 }
 0xe49   : > { %v8573_v32 = vpop.f32.mrf.mxu0 }
 0xe4a   : > { %v8582_v63 = vadd.f32 %v8578_v40, %v14090_v50 }
 0xe4b   : > { %v8575_v2 = vpop.f32.mrf.mxu0 }
 0xe4c   : > { %v8584_v39 = vmax.f32 %v8582_v63, 0.0  ;;  %v8579_v47 = vmax.f32 %v8573_v32, %v8575_v2 }
 0xe4e   : > { %v9656_v11 = vpack.c.bf16 %v8584_v39, %v8584_v39  ;;  %v8583_v38 = vadd.f32 %v8581_v41, %v8579_v47 }
 0xe50   : > { %9634 = vst [vmem:[%s11175_s15 + $0x50] sm:$0xf] %v9656_v11  ;;  %v8585_v59 = vmax.f32 %v8583_v38, 0.0 }
 0xe52   : > { %v9657_v6 = vpack.c.bf16 %v8585_v59, %v8585_v59 }
 0xe54   : > { %9635 = vst [vmem:[%s11175_s15 + $0x54] sm:$0x7] %v9657_v6 }
 0xe55 PF: > { %s15_s18 = sadd.s32 1, %s10255_s18  }
 0xe56   : > { %p12_p4 = scmp.ge.s32.totalorder %s15_s18, 4  }
 0xe58   :  { %14 = sbr.rel (!%p12_p4) target bundleno = 1 (0x1), region = 102 }

</bundles_post_ra>
